<compile_context>
chip_gen: v5e
topology: v5e:2x2
jax: 0.10.0
libtpu: 0.0.40
codegen_flags: <defaults>
</compile_context>

<pallas_src>
import jax
import jax.numpy as jnp
from jax.experimental import pallas as pl
from jax.experimental.pallas import tpu as pltpu

TM = 1024  # conv1 tile along the flattened N*OH*OW axis (review: 512-2048, grid >= 2)


# ---------------- Pallas kernels ----------------

def _conv1_kernel(p_ref, w_ref, b_ref, o_ref):
    # p: (TM, 9*Cin), w: (9*Cin, Cout), b: (1, Cout) -> o: (TM, Cout)
    o_ref[...] = (jnp.dot(p_ref[...], w_ref[...],
                          preferred_element_type=jnp.float32) + b_ref[...])


def _pool_groups(n):
    """MaxPool2d(k=3, s=3, pad=1, floor) window row ranges, clamped to valid rows."""
    return [(max(3 * i - 1, 0), min(3 * i + 2, n)) for i in range((n - 1) // 3 + 1)]


def _make_tail_kernel(OH2, OW2, C1, C2, C3):
    """Fused maxpool1 -> conv2 -> maxpool2 -> conv3 kernel (one batch element/step)."""
    RC = OH2 * OW2                           # conv2 output positions (rows of the GEMM)
    rg, cg = _pool_groups(OH2), _pool_groups(OW2)
    PH2, PW2 = len(rg), len(cg)              # pool2 output spatial size
    assert PH2 >= 3 and PW2 >= 3, "input too small for conv3 (needs >=3x3 after pool2)"
    OH3, OW3 = (PH2 - 3) // 2 + 1, (PW2 - 3) // 2 + 1
    Q = OH3 * OW3                            # conv3 output positions
    QP = max(Q, 8)                           # pad conv3 GEMM M-dim to >= 8 rows

    def kernel(p_ref, w2_ref, b2_ref, w3_ref, b3_ref, o_ref, p2_ref):
        # ---- conv2 as 9 accumulated GEMMs; maxpool1 fused into the LHS ----
        # p_ref[0, k, e] : (RC, C1) slab = pool1 window-tap e of conv2 window-tap k.
        acc = None
        for k in range(9):
            m = p_ref[0, k, 0]
            for e in range(1, 9):
                m = jnp.maximum(m, p_ref[0, k, e])          # pool1 max (pure VPU)
            d = jnp.dot(m, w2_ref[k], preferred_element_type=jnp.float32)
            acc = d if acc is None else acc + d
        y2 = acc + b2_ref[...]                              # (RC, C2), row = r*OW2 + c

        # ---- maxpool2: unrolled static-slice maxima -> pieces[(i, j)] of (1, C2) ----
        pieces = {}
        for i, (rlo, rhi) in enumerate(rg):
            h = y2[rlo * OW2:(rlo + 1) * OW2]
            for r in range(rlo + 1, rhi):
                h = jnp.maximum(h, y2[r * OW2:(r + 1) * OW2])
            for j, (clo, chi) in enumerate(cg):
                w = h[clo:clo + 1]
                for c in range(clo + 1, chi):
                    w = jnp.maximum(w, h[c:c + 1])
                pieces[(i, j)] = w

        # ---- conv3: build (QP, 9*C2) patch rows in VMEM scratch, then one GEMM ----
        p2_ref[...] = jnp.zeros((QP, 9 * C2), jnp.float32)
        for a in range(OH3):
            for b in range(OW3):
                q = a * OW3 + b
                for i in range(3):
                    for j in range(3):
                        kk = i * 3 + j
                        p2_ref[q:q + 1, kk * C2:(kk + 1) * C2] = \
                            pieces[(2 * a + i, 2 * b + j)]
        out = jnp.dot(p2_ref[...], w3_ref[...],
                      preferred_element_type=jnp.float32) + b3_ref[...]
        o_ref[0] = out[:Q]

    return kernel, Q, OH3, OW3, QP


# ---------------- JAX glue (layout only, no reductions) ----------------

def _im2col_stride3(x_nhwc, pad):
    """k=3, stride=3 im2col as a pure space-to-depth (windows tile the padded map)."""
    N, H, W, C = x_nhwc.shape
    OH, OW = (H + 2 * pad - 3) // 3 + 1, (W + 2 * pad - 3) // 3 + 1
    xp = jnp.pad(x_nhwc, ((0, 0), (pad, pad), (pad, pad), (0, 0)))
    xp = xp[:, :3 * OH, :3 * OW, :]                        # floor mode: drop remainder
    p = xp.reshape(N, OH, 3, OW, 3, C).transpose(0, 1, 3, 2, 4, 5)
    return p.reshape(N * OH * OW, 9 * C), OH, OW


def _pool1_window_view(y1):
    """(N,H,W,C) -> (N,P1H,P1W,3,3,C): maxpool(k3,s3,p1) taps.  Edge-clamp duplicates
    stand in for the -inf padding (harmless under max: every window has a real
    element, and duplicates never change the maximum)."""
    N, H, W, C = y1.shape
    P1H, P1W = (H - 1) // 3 + 1, (W - 1) // 3 + 1
    yp = jnp.pad(y1, ((0, 0), (1, 1), (1, 1), (0, 0)), mode="edge")
    yp = yp[:, :3 * P1H, :3 * P1W, :]
    return yp.reshape(N, P1H, 3, P1W, 3, C).transpose(0, 1, 3, 2, 4, 5)


def _build_tail_input(y1):
    """conv1 output (N,H1,W1,C1) -> P (N, 9, 9, OH2*OW2, C1):
    P[n, dr*3+dc, er*3+ec, r*OW2+c, :] = pool1-tap (er,ec) of conv2-tap (dr,dc) of
    conv2 output position (r,c).  All-zero taps encode conv2's zero padding
    (max over 9 zeros = 0 = the padded conv2 input value)."""
    v = _pool1_window_view(y1)                             # (N, P1H, P1W, 3, 3, C1)
    N, P1H, P1W = v.shape[0], v.shape[1], v.shape[2]
    C1 = v.shape[-1]
    OH2, OW2 = (P1H + 2 - 3) // 3 + 1, (P1W + 2 - 3) // 3 + 1
    v = jnp.pad(v, ((0, 0), (1, 1), (1, 1), (0, 0), (0, 0), (0, 0)))  # conv2 zero pad
    v = v[:, :3 * OH2, :3 * OW2]
    v = v.reshape(N, OH2, 3, OW2, 3, 3, 3, C1)             # [n, r, dr, c, dc, er, ec, ch]
    v = v.transpose(0, 2, 4, 5, 6, 1, 3, 7)                # [n, dr, dc, er, ec, r, c, ch]
    return v.reshape(N, 9, 9, OH2 * OW2, C1), OH2, OW2


# ---------------- pallas_call wrappers ----------------

def conv1_pallas(x_nhwc, w1p, b1p):
    patches, OH, OW = _im2col_stride3(x_nhwc, pad=1)
    M, Kt = patches.shape
    Cout = w1p.shape[1]
    Mp = ((M + TM - 1) // TM) * TM
    patches = jnp.pad(patches, ((0, Mp - M), (0, 0)))
    out = pl.pallas_call(
        _conv1_kernel,
        out_shape=jax.ShapeDtypeStruct((Mp, Cout), jnp.float32),
        grid=(Mp // TM,),
        in_specs=[pl.BlockSpec((TM, Kt), lambda i: (i, 0)),
                  pl.BlockSpec((Kt, Cout), lambda i: (0, 0)),
                  pl.BlockSpec((1, Cout), lambda i: (0, 0))],
        out_specs=pl.BlockSpec((TM, Cout), lambda i: (i, 0)),
        compiler_params=pltpu.CompilerParams(dimension_semantics=("parallel",)),
    )(patches, w1p, b1p)
    N = x_nhwc.shape[0]
    return out[:M].reshape(N, OH, OW, Cout)


def tail_pallas(y1, w2p, b2p, w3f, b3p):
    N, _, _, C1 = y1.shape
    C2, C3 = w2p.shape[2], w3f.shape[1]
    P, OH2, OW2 = _build_tail_input(y1)
    RC = OH2 * OW2
    kernel, Q, OH3, OW3, QP = _make_tail_kernel(OH2, OW2, C1, C2, C3)
    out = pl.pallas_call(
        kernel,
        out_shape=jax.ShapeDtypeStruct((N, Q, C3), jnp.float32),
        grid=(N,),
        in_specs=[pl.BlockSpec((1, 9, 9, RC, C1), lambda n: (n, 0, 0, 0, 0)),
                  pl.BlockSpec((9, C1, C2), lambda n: (0, 0, 0)),
                  pl.BlockSpec((1, C2), lambda n: (0, 0)),
                  pl.BlockSpec((9 * C2, C3), lambda n: (0, 0)),
                  pl.BlockSpec((1, C3), lambda n: (0, 0))],
        out_specs=pl.BlockSpec((1, Q, C3), lambda n: (n, 0, 0)),
        scratch_shapes=[pltpu.VMEM((QP, 9 * C2), jnp.float32)],
        compiler_params=pltpu.CompilerParams(dimension_semantics=("parallel",)),
    )(P, w2p, b2p, w3f, b3p)
    return out.reshape(N, OH3, OW3, C3)


def pack_params(params):
    """One-time re-layout of PyTorch OIHW weights into GEMM layout
    (kept out of the per-call jitted path, per the review)."""
    w1, b1 = params["w1"], params["b1"]
    w2, b2 = params["w2"], params["b2"]
    w3, b3 = params["w3"], params["b3"]
    f32 = jnp.float32
    return {
        "w1p": jnp.transpose(w1, (2, 3, 1, 0)).reshape(-1, w1.shape[0]).astype(f32),
        "b1p": b1.reshape(1, -1).astype(f32),
        "w2p": jnp.transpose(w2, (2, 3, 1, 0)).reshape(9, w2.shape[1], w2.shape[0]).astype(f32),
        "b2p": b2.reshape(1, -1).astype(f32),
        "w3f": jnp.transpose(w3, (2, 3, 1, 0)).reshape(-1, w3.shape[0]).astype(f32),
        "b3p": b3.reshape(1, -1).astype(f32),
    }


def bevnet_forward(x_nchw, packed):
    x = jnp.transpose(x_nchw, (0, 2, 3, 1))                     # NCHW -> NHWC
    y1 = conv1_pallas(x, packed["w1p"], packed["b1p"])          # conv1
    y = tail_pallas(y1, packed["w2p"], packed["b2p"],           # pool1+conv2+pool2+conv3
                    packed["w3f"], packed["b3p"])
    return jnp.transpose(y, (0, 3, 1, 2))                       # NHWC -> NCHW


# ---------------- pure-JAX reference (for correctness check) ----------------

def ref_forward(x_nchw, params):
    def conv(x, w, b, stride, pad):
        y = jax.lax.conv_general_dilated(
            x, w, (stride, stride), [(pad, pad), (pad, pad)],
            dimension_numbers=("NCHW", "OIHW", "NCHW"))
        return y + b[None, :, None, None]

    def mp(x):
        return jax.lax.reduce_window(x, -jnp.inf, jax.lax.max,
                                     (1, 1, 3, 3), (1, 1, 3, 3),
                                     [(0, 0), (0, 0), (1, 1), (1, 1)])

    x = conv(x_nchw, params["w1"], params["b1"], 3, 1)
    x = mp(x)
    x = conv(x, params["w2"], params["b2"], 3, 1)
    x = mp(x)
    x = conv(x, params["w3"], params["b3"], 2, 0)
    return x


if __name__ == "__main__":
    key = jax.random.PRNGKey(0)
    ks = jax.random.split(key, 7)
    params = {
        "w1": jax.random.normal(ks[0], (64, 18, 3, 3), jnp.float32) * 0.05,
        "b1": jax.random.normal(ks[1], (64,), jnp.float32) * 0.05,
        "w2": jax.random.normal(ks[2], (128, 64, 3, 3), jnp.float32) * 0.05,
        "b2": jax.random.normal(ks[3], (128,), jnp.float32) * 0.05,
        "w3": jax.random.normal(ks[4], (256, 128, 3, 3), jnp.float32) * 0.05,
        "b3": jax.random.normal(ks[5], (256,), jnp.float32) * 0.05,
    }
    # 163 is the smallest spatial size that reaches conv3 (needs a >=3x3 map after
    # the two conv(s=3)+maxpool(s=3) stages), giving output (2, 256, 1, 1).
    x = jax.random.normal(ks[6], (2, 18, 163, 163), jnp.float32)

    packed = pack_params(params)   # one-time weight re-layout, outside the jit

    out = jax.block_until_ready(jax.jit(bevnet_forward)(x, packed))
    assert out.shape == (2, 256, 1, 1), out.shape

    ref = jax.block_until_ready(jax.jit(ref_forward)(x, params))
    assert jnp.allclose(out, ref, rtol=5e-4, atol=5e-4), \
        float(jnp.max(jnp.abs(out - ref)))

    print("KERNEL_OK")
</pallas_src>

<mosaic_0001>
module attributes {stable_mosaic.version = 11 : i64} {
  func.func @_conv1_kernel(%arg0: i32, %arg1: memref<1024x162xf32, #tpu.memory_space<vmem>>, %arg2: memref<162x64xf32, #tpu.memory_space<vmem>>, %arg3: memref<1x64xf32, #tpu.memory_space<vmem>>, %arg4: memref<1024x64xf32, #tpu.memory_space<vmem>>) attributes {dimension_semantics = [#tpu.dimension_semantics<parallel>], iteration_bounds = array<i64: 6>, scalar_prefetch = 0 : i64, scratch_operands = 0 : i64, tpu.core_type = #tpu.core_type<tc>, window_params = [{transform_indices = @transform_0, window_bounds = array<i64: 1024, 162>}, {pipeline_mode = #tpu.pipeline_mode<synchronous>, transform_indices = @transform_1, window_bounds = array<i64: 162, 64>}, {pipeline_mode = #tpu.pipeline_mode<synchronous>, transform_indices = @transform_2, window_bounds = array<i64: 1, 64>}, {transform_indices = @transform_3, window_bounds = array<i64: 1024, 64>}]} {
    %c0 = arith.constant 0 : index
    %c0_0 = arith.constant 0 : index
    %0 = vector.load %arg1[%c0, %c0_0] : memref<1024x162xf32, #tpu.memory_space<vmem>>, vector<1024x162xf32>
    %c0_1 = arith.constant 0 : index
    %c0_2 = arith.constant 0 : index
    %1 = vector.load %arg2[%c0_1, %c0_2] : memref<162x64xf32, #tpu.memory_space<vmem>>, vector<162x64xf32>
    %cst = arith.constant dense<0.000000e+00> : vector<1024x64xf32>
    %2 = tpu.matmul %0, %1, %cst {dimension_numbers = #tpu.dot_dimension_numbers<[1], [0], [0], [1], [0, 0, 1, 1], [], []>} : vector<1024x162xf32>, vector<162x64xf32>, vector<1024x64xf32> -> vector<1024x64xf32>
    %c0_3 = arith.constant 0 : index
    %c0_4 = arith.constant 0 : index
    %3 = vector.load %arg3[%c0_3, %c0_4] : memref<1x64xf32, #tpu.memory_space<vmem>>, vector<1x64xf32>
    %4 = vector.broadcast %3 : vector<1x64xf32> to vector<1024x64xf32>
    %5 = arith.addf %2, %4 : vector<1024x64xf32>
    %c0_5 = arith.constant 0 : index
    %c0_6 = arith.constant 0 : index
    %6 = vector.load %arg4[%c0_5, %c0_6] : memref<1024x64xf32, #tpu.memory_space<vmem>>, vector<1024x64xf32>
    tpu.vector_store %arg4[%c0_5, %c0_6], %5 {strides = array<i32>} : memref<1024x64xf32, #tpu.memory_space<vmem>>, vector<1024x64xf32>,
    return
  }
  func.func @transform_0(%arg0: i32) -> (i32, i32) {
    %c0_i32 = arith.constant 0 : i32
    %c0_i32_0 = arith.constant 0 : i32
    return %arg0, %c0_i32 : i32, i32
  }
  func.func @transform_1(%arg0: i32) -> (i32, i32) {
    %c0_i32 = arith.constant 0 : i32
    %c0_i32_0 = arith.constant 0 : i32
    %c0_i32_1 = arith.constant 0 : i32
    return %c0_i32, %c0_i32_0 : i32, i32
  }
  func.func @transform_2(%arg0: i32) -> (i32, i32) {
    %c0_i32 = arith.constant 0 : i32
    %c0_i32_0 = arith.constant 0 : i32
    %c0_i32_1 = arith.constant 0 : i32
    return %c0_i32, %c0_i32_0 : i32, i32
  }
  func.func @transform_3(%arg0: i32) -> (i32, i32) {
    %c0_i32 = arith.constant 0 : i32
    %c0_i32_0 = arith.constant 0 : i32
    return %arg0, %c0_i32 : i32, i32
  }
}

module attributes {stable_mosaic.version = 11 : i64} {
  func.func @kernel(%arg0: i32, %arg1: memref<1x9x9x49x64xf32, #tpu.memory_space<vmem>>, %arg2: memref<9x64x128xf32, #tpu.memory_space<vmem>>, %arg3: memref<1x128xf32, #tpu.memory_space<vmem>>, %arg4: memref<1152x256xf32, #tpu.memory_space<vmem>>, %arg5: memref<1x256xf32, #tpu.memory_space<vmem>>, %arg6: memref<1x1x256xf32, #tpu.memory_space<vmem>>, %arg7: memref<8x1152xf32, #tpu.memory_space<vmem>>) attributes {dimension_semantics = [#tpu.dimension_semantics<parallel>], iteration_bounds = array<i64: 2>, scalar_prefetch = 0 : i64, scratch_operands = 1 : i64, tpu.core_type = #tpu.core_type<tc>, window_params = [{transform_indices = @transform_0, window_bounds = array<i64: 1, 9, 9, 49, 64>}, {pipeline_mode = #tpu.pipeline_mode<synchronous>, transform_indices = @transform_1, window_bounds = array<i64: 9, 64, 128>}, {pipeline_mode = #tpu.pipeline_mode<synchronous>, transform_indices = @transform_2, window_bounds = array<i64: 1, 128>}, {pipeline_mode = #tpu.pipeline_mode<synchronous>, transform_indices = @transform_3, window_bounds = array<i64: 1152, 256>}, {pipeline_mode = #tpu.pipeline_mode<synchronous>, transform_indices = @transform_4, window_bounds = array<i64: 1, 256>}, {transform_indices = @transform_5, window_bounds = array<i64: 1, 1, 256>}]} {
    %c0 = arith.constant 0 : index
    %c0_0 = arith.constant 0 : index
    %c0_1 = arith.constant 0 : index
    %c0_2 = arith.constant 0 : index
    %c0_3 = arith.constant 0 : index
    %0 = vector.load %arg1[%c0, %c0_0, %c0_1, %c0_2, %c0_3] : memref<1x9x9x49x64xf32, #tpu.memory_space<vmem>>, vector<1x1x1x49x64xf32>
    %1 = vector.shape_cast %0 : vector<1x1x1x49x64xf32> to vector<49x64xf32>
    %c0_4 = arith.constant 0 : index
    %c0_5 = arith.constant 0 : index
    %c1 = arith.constant 1 : index
    %c0_6 = arith.constant 0 : index
    %c0_7 = arith.constant 0 : index
    %2 = vector.load %arg1[%c0_4, %c0_5, %c1, %c0_6, %c0_7] : memref<1x9x9x49x64xf32, #tpu.memory_space<vmem>>, vector<1x1x1x49x64xf32>
    %3 = vector.shape_cast %2 : vector<1x1x1x49x64xf32> to vector<49x64xf32>
    %4 = arith.maximumf %1, %3 : vector<49x64xf32>
    %c0_8 = arith.constant 0 : index
    %c0_9 = arith.constant 0 : index
    %c2 = arith.constant 2 : index
    %c0_10 = arith.constant 0 : index
    %c0_11 = arith.constant 0 : index
    %5 = vector.load %arg1[%c0_8, %c0_9, %c2, %c0_10, %c0_11] : memref<1x9x9x49x64xf32, #tpu.memory_space<vmem>>, vector<1x1x1x49x64xf32>
    %6 = vector.shape_cast %5 : vector<1x1x1x49x64xf32> to vector<49x64xf32>
    %7 = arith.maximumf %4, %6 : vector<49x64xf32>
    %c0_12 = arith.constant 0 : index
    %c0_13 = arith.constant 0 : index
    %c3 = arith.constant 3 : index
    %c0_14 = arith.constant 0 : index
    %c0_15 = arith.constant 0 : index
    %8 = vector.load %arg1[%c0_12, %c0_13, %c3, %c0_14, %c0_15] : memref<1x9x9x49x64xf32, #tpu.memory_space<vmem>>, vector<1x1x1x49x64xf32>
    %9 = vector.shape_cast %8 : vector<1x1x1x49x64xf32> to vector<49x64xf32>
    %10 = arith.maximumf %7, %9 : vector<49x64xf32>
    %c0_16 = arith.constant 0 : index
    %c0_17 = arith.constant 0 : index
    %c4 = arith.constant 4 : index
    %c0_18 = arith.constant 0 : index
    %c0_19 = arith.constant 0 : index
    %11 = vector.load %arg1[%c0_16, %c0_17, %c4, %c0_18, %c0_19] : memref<1x9x9x49x64xf32, #tpu.memory_space<vmem>>, vector<1x1x1x49x64xf32>
    %12 = vector.shape_cast %11 : vector<1x1x1x49x64xf32> to vector<49x64xf32>
    %13 = arith.maximumf %10, %12 : vector<49x64xf32>
    %c0_20 = arith.constant 0 : index
    %c0_21 = arith.constant 0 : index
    %c5 = arith.constant 5 : index
    %c0_22 = arith.constant 0 : index
    %c0_23 = arith.constant 0 : index
    %14 = vector.load %arg1[%c0_20, %c0_21, %c5, %c0_22, %c0_23] : memref<1x9x9x49x64xf32, #tpu.memory_space<vmem>>, vector<1x1x1x49x64xf32>
    %15 = vector.shape_cast %14 : vector<1x1x1x49x64xf32> to vector<49x64xf32>
    %16 = arith.maximumf %13, %15 : vector<49x64xf32>
    %c0_24 = arith.constant 0 : index
    %c0_25 = arith.constant 0 : index
    %c6 = arith.constant 6 : index
    %c0_26 = arith.constant 0 : index
    %c0_27 = arith.constant 0 : index
    %17 = vector.load %arg1[%c0_24, %c0_25, %c6, %c0_26, %c0_27] : memref<1x9x9x49x64xf32, #tpu.memory_space<vmem>>, vector<1x1x1x49x64xf32>
    %18 = vector.shape_cast %17 : vector<1x1x1x49x64xf32> to vector<49x64xf32>
    %19 = arith.maximumf %16, %18 : vector<49x64xf32>
    %c0_28 = arith.constant 0 : index
    %c0_29 = arith.constant 0 : index
    %c7 = arith.constant 7 : index
    %c0_30 = arith.constant 0 : index
    %c0_31 = arith.constant 0 : index
    %20 = vector.load %arg1[%c0_28, %c0_29, %c7, %c0_30, %c0_31] : memref<1x9x9x49x64xf32, #tpu.memory_space<vmem>>, vector<1x1x1x49x64xf32>
    %21 = vector.shape_cast %20 : vector<1x1x1x49x64xf32> to vector<49x64xf32>
    %22 = arith.maximumf %19, %21 : vector<49x64xf32>
    %c0_32 = arith.constant 0 : index
    %c0_33 = arith.constant 0 : index
    %c8 = arith.constant 8 : index
    %c0_34 = arith.constant 0 : index
    %c0_35 = arith.constant 0 : index
    %23 = vector.load %arg1[%c0_32, %c0_33, %c8, %c0_34, %c0_35] : memref<1x9x9x49x64xf32, #tpu.memory_space<vmem>>, vector<1x1x1x49x64xf32>
    %24 = vector.shape_cast %23 : vector<1x1x1x49x64xf32> to vector<49x64xf32>
    %25 = arith.maximumf %22, %24 : vector<49x64xf32>
    %c0_36 = arith.constant 0 : index
    %c0_37 = arith.constant 0 : index
    %c0_38 = arith.constant 0 : index
    %26 = vector.load %arg2[%c0_36, %c0_37, %c0_38] : memref<9x64x128xf32, #tpu.memory_space<vmem>>, vector<1x64x128xf32>
    %27 = vector.shape_cast %26 : vector<1x64x128xf32> to vector<64x128xf32>
    %cst = arith.constant dense<0.000000e+00> : vector<49x128xf32>
    %28 = tpu.matmul %25, %27, %cst {dimension_numbers = #tpu.dot_dimension_numbers<[1], [0], [0], [1], [0, 0, 1, 1], [], []>} : vector<49x64xf32>, vector<64x128xf32>, vector<49x128xf32> -> vector<49x128xf32>
    %c0_39 = arith.constant 0 : index
    %c1_40 = arith.constant 1 : index
    %c0_41 = arith.constant 0 : index
    %c0_42 = arith.constant 0 : index
    %c0_43 = arith.constant 0 : index
    %29 = vector.load %arg1[%c0_39, %c1_40, %c0_41, %c0_42, %c0_43] : memref<1x9x9x49x64xf32, #tpu.memory_space<vmem>>, vector<1x1x1x49x64xf32>
    %30 = vector.shape_cast %29 : vector<1x1x1x49x64xf32> to vector<49x64xf32>
    %c0_44 = arith.constant 0 : index
    %c1_45 = arith.constant 1 : index
    %c1_46 = arith.constant 1 : index
    %c0_47 = arith.constant 0 : index
    %c0_48 = arith.constant 0 : index
    %31 = vector.load %arg1[%c0_44, %c1_45, %c1_46, %c0_47, %c0_48] : memref<1x9x9x49x64xf32, #tpu.memory_space<vmem>>, vector<1x1x1x49x64xf32>
    %32 = vector.shape_cast %31 : vector<1x1x1x49x64xf32> to vector<49x64xf32>
    %33 = arith.maximumf %30, %32 : vector<49x64xf32>
    %c0_49 = arith.constant 0 : index
    %c1_50 = arith.constant 1 : index
    %c2_51 = arith.constant 2 : index
    %c0_52 = arith.constant 0 : index
    %c0_53 = arith.constant 0 : index
    %34 = vector.load %arg1[%c0_49, %c1_50, %c2_51, %c0_52, %c0_53] : memref<1x9x9x49x64xf32, #tpu.memory_space<vmem>>, vector<1x1x1x49x64xf32>
    %35 = vector.shape_cast %34 : vector<1x1x1x49x64xf32> to vector<49x64xf32>
    %36 = arith.maximumf %33, %35 : vector<49x64xf32>
    %c0_54 = arith.constant 0 : index
    %c1_55 = arith.constant 1 : index
    %c3_56 = arith.constant 3 : index
    %c0_57 = arith.constant 0 : index
    %c0_58 = arith.constant 0 : index
    %37 = vector.load %arg1[%c0_54, %c1_55, %c3_56, %c0_57, %c0_58] : memref<1x9x9x49x64xf32, #tpu.memory_space<vmem>>, vector<1x1x1x49x64xf32>
    %38 = vector.shape_cast %37 : vector<1x1x1x49x64xf32> to vector<49x64xf32>
    %39 = arith.maximumf %36, %38 : vector<49x64xf32>
    %c0_59 = arith.constant 0 : index
    %c1_60 = arith.constant 1 : index
    %c4_61 = arith.constant 4 : index
    %c0_62 = arith.constant 0 : index
    %c0_63 = arith.constant 0 : index
    %40 = vector.load %arg1[%c0_59, %c1_60, %c4_61, %c0_62, %c0_63] : memref<1x9x9x49x64xf32, #tpu.memory_space<vmem>>, vector<1x1x1x49x64xf32>
    %41 = vector.shape_cast %40 : vector<1x1x1x49x64xf32> to vector<49x64xf32>
    %42 = arith.maximumf %39, %41 : vector<49x64xf32>
    %c0_64 = arith.constant 0 : index
    %c1_65 = arith.constant 1 : index
    %c5_66 = arith.constant 5 : index
    %c0_67 = arith.constant 0 : index
    %c0_68 = arith.constant 0 : index
    %43 = vector.load %arg1[%c0_64, %c1_65, %c5_66, %c0_67, %c0_68] : memref<1x9x9x49x64xf32, #tpu.memory_space<vmem>>, vector<1x1x1x49x64xf32>
    %44 = vector.shape_cast %43 : vector<1x1x1x49x64xf32> to vector<49x64xf32>
    %45 = arith.maximumf %42, %44 : vector<49x64xf32>
    %c0_69 = arith.constant 0 : index
    %c1_70 = arith.constant 1 : index
    %c6_71 = arith.constant 6 : index
    %c0_72 = arith.constant 0 : index
    %c0_73 = arith.constant 0 : index
    %46 = vector.load %arg1[%c0_69, %c1_70, %c6_71, %c0_72, %c0_73] : memref<1x9x9x49x64xf32, #tpu.memory_space<vmem>>, vector<1x1x1x49x64xf32>
    %47 = vector.shape_cast %46 : vector<1x1x1x49x64xf32> to vector<49x64xf32>
    %48 = arith.maximumf %45, %47 : vector<49x64xf32>
    %c0_74 = arith.constant 0 : index
    %c1_75 = arith.constant 1 : index
    %c7_76 = arith.constant 7 : index
    %c0_77 = arith.constant 0 : index
    %c0_78 = arith.constant 0 : index
    %49 = vector.load %arg1[%c0_74, %c1_75, %c7_76, %c0_77, %c0_78] : memref<1x9x9x49x64xf32, #tpu.memory_space<vmem>>, vector<1x1x1x49x64xf32>
    %50 = vector.shape_cast %49 : vector<1x1x1x49x64xf32> to vector<49x64xf32>
    %51 = arith.maximumf %48, %50 : vector<49x64xf32>
    %c0_79 = arith.constant 0 : index
    %c1_80 = arith.constant 1 : index
    %c8_81 = arith.constant 8 : index
    %c0_82 = arith.constant 0 : index
    %c0_83 = arith.constant 0 : index
    %52 = vector.load %arg1[%c0_79, %c1_80, %c8_81, %c0_82, %c0_83] : memref<1x9x9x49x64xf32, #tpu.memory_space<vmem>>, vector<1x1x1x49x64xf32>
    %53 = vector.shape_cast %52 : vector<1x1x1x49x64xf32> to vector<49x64xf32>
    %54 = arith.maximumf %51, %53 : vector<49x64xf32>
    %c1_84 = arith.constant 1 : index
    %c0_85 = arith.constant 0 : index
    %c0_86 = arith.constant 0 : index
    %55 = vector.load %arg2[%c1_84, %c0_85, %c0_86] : memref<9x64x128xf32, #tpu.memory_space<vmem>>, vector<1x64x128xf32>
    %56 = vector.shape_cast %55 : vector<1x64x128xf32> to vector<64x128xf32>
    %cst_87 = arith.constant dense<0.000000e+00> : vector<49x128xf32>
    %57 = tpu.matmul %54, %56, %cst_87 {dimension_numbers = #tpu.dot_dimension_numbers<[1], [0], [0], [1], [0, 0, 1, 1], [], []>} : vector<49x64xf32>, vector<64x128xf32>, vector<49x128xf32> -> vector<49x128xf32>
    %58 = arith.addf %28, %57 : vector<49x128xf32>
    %c0_88 = arith.constant 0 : index
    %c2_89 = arith.constant 2 : index
    %c0_90 = arith.constant 0 : index
    %c0_91 = arith.constant 0 : index
    %c0_92 = arith.constant 0 : index
    %59 = vector.load %arg1[%c0_88, %c2_89, %c0_90, %c0_91, %c0_92] : memref<1x9x9x49x64xf32, #tpu.memory_space<vmem>>, vector<1x1x1x49x64xf32>
    %60 = vector.shape_cast %59 : vector<1x1x1x49x64xf32> to vector<49x64xf32>
    %c0_93 = arith.constant 0 : index
    %c2_94 = arith.constant 2 : index
    %c1_95 = arith.constant 1 : index
    %c0_96 = arith.constant 0 : index
    %c0_97 = arith.constant 0 : index
    %61 = vector.load %arg1[%c0_93, %c2_94, %c1_95, %c0_96, %c0_97] : memref<1x9x9x49x64xf32, #tpu.memory_space<vmem>>, vector<1x1x1x49x64xf32>
    %62 = vector.shape_cast %61 : vector<1x1x1x49x64xf32> to vector<49x64xf32>
    %63 = arith.maximumf %60, %62 : vector<49x64xf32>
    %c0_98 = arith.constant 0 : index
    %c2_99 = arith.constant 2 : index
    %c2_100 = arith.constant 2 : index
    %c0_101 = arith.constant 0 : index
    %c0_102 = arith.constant 0 : index
    %64 = vector.load %arg1[%c0_98, %c2_99, %c2_100, %c0_101, %c0_102] : memref<1x9x9x49x64xf32, #tpu.memory_space<vmem>>, vector<1x1x1x49x64xf32>
    %65 = vector.shape_cast %64 : vector<1x1x1x49x64xf32> to vector<49x64xf32>
    %66 = arith.maximumf %63, %65 : vector<49x64xf32>
    %c0_103 = arith.constant 0 : index
    %c2_104 = arith.constant 2 : index
    %c3_105 = arith.constant 3 : index
    %c0_106 = arith.constant 0 : index
    %c0_107 = arith.constant 0 : index
    %67 = vector.load %arg1[%c0_103, %c2_104, %c3_105, %c0_106, %c0_107] : memref<1x9x9x49x64xf32, #tpu.memory_space<vmem>>, vector<1x1x1x49x64xf32>
    %68 = vector.shape_cast %67 : vector<1x1x1x49x64xf32> to vector<49x64xf32>
    %69 = arith.maximumf %66, %68 : vector<49x64xf32>
    %c0_108 = arith.constant 0 : index
    %c2_109 = arith.constant 2 : index
    %c4_110 = arith.constant 4 : index
    %c0_111 = arith.constant 0 : index
    %c0_112 = arith.constant 0 : index
    %70 = vector.load %arg1[%c0_108, %c2_109, %c4_110, %c0_111, %c0_112] : memref<1x9x9x49x64xf32, #tpu.memory_space<vmem>>, vector<1x1x1x49x64xf32>
    %71 = vector.shape_cast %70 : vector<1x1x1x49x64xf32> to vector<49x64xf32>
    %72 = arith.maximumf %69, %71 : vector<49x64xf32>
    %c0_113 = arith.constant 0 : index
    %c2_114 = arith.constant 2 : index
    %c5_115 = arith.constant 5 : index
    %c0_116 = arith.constant 0 : index
    %c0_117 = arith.constant 0 : index
    %73 = vector.load %arg1[%c0_113, %c2_114, %c5_115, %c0_116, %c0_117] : memref<1x9x9x49x64xf32, #tpu.memory_space<vmem>>, vector<1x1x1x49x64xf32>
    %74 = vector.shape_cast %73 : vector<1x1x1x49x64xf32> to vector<49x64xf32>
    %75 = arith.maximumf %72, %74 : vector<49x64xf32>
    %c0_118 = arith.constant 0 : index
    %c2_119 = arith.constant 2 : index
    %c6_120 = arith.constant 6 : index
    %c0_121 = arith.constant 0 : index
    %c0_122 = arith.constant 0 : index
    %76 = vector.load %arg1[%c0_118, %c2_119, %c6_120, %c0_121, %c0_122] : memref<1x9x9x49x64xf32, #tpu.memory_space<vmem>>, vector<1x1x1x49x64xf32>
    %77 = vector.shape_cast %76 : vector<1x1x1x49x64xf32> to vector<49x64xf32>
    %78 = arith.maximumf %75, %77 : vector<49x64xf32>
    %c0_123 = arith.constant 0 : index
    %c2_124 = arith.constant 2 : index
    %c7_125 = arith.constant 7 : index
    %c0_126 = arith.constant 0 : index
    %c0_127 = arith.constant 0 : index
    %79 = vector.load %arg1[%c0_123, %c2_124, %c7_125, %c0_126, %c0_127] : memref<1x9x9x49x64xf32, #tpu.memory_space<vmem>>, vector<1x1x1x49x64xf32>
    %80 = vector.shape_cast %79 : vector<1x1x1x49x64xf32> to vector<49x64xf32>
    %81 = arith.maximumf %78, %80 : vector<49x64xf32>
    %c0_128 = arith.constant 0 : index
    %c2_129 = arith.constant 2 : index
    %c8_130 = arith.constant 8 : index
    %c0_131 = arith.constant 0 : index
    %c0_132 = arith.constant 0 : index
    %82 = vector.load %arg1[%c0_128, %c2_129, %c8_130, %c0_131, %c0_132] : memref<1x9x9x49x64xf32, #tpu.memory_space<vmem>>, vector<1x1x1x49x64xf32>
    %83 = vector.shape_cast %82 : vector<1x1x1x49x64xf32> to vector<49x64xf32>
    %84 = arith.maximumf %81, %83 : vector<49x64xf32>
    %c2_133 = arith.constant 2 : index
    %c0_134 = arith.constant 0 : index
    %c0_135 = arith.constant 0 : index
    %85 = vector.load %arg2[%c2_133, %c0_134, %c0_135] : memref<9x64x128xf32, #tpu.memory_space<vmem>>, vector<1x64x128xf32>
    %86 = vector.shape_cast %85 : vector<1x64x128xf32> to vector<64x128xf32>
    %cst_136 = arith.constant dense<0.000000e+00> : vector<49x128xf32>
    %87 = tpu.matmul %84, %86, %cst_136 {dimension_numbers = #tpu.dot_dimension_numbers<[1], [0], [0], [1], [0, 0, 1, 1], [], []>} : vector<49x64xf32>, vector<64x128xf32>, vector<49x128xf32> -> vector<49x128xf32>
    %88 = arith.addf %58, %87 : vector<49x128xf32>
    %c0_137 = arith.constant 0 : index
    %c3_138 = arith.constant 3 : index
    %c0_139 = arith.constant 0 : index
    %c0_140 = arith.constant 0 : index
    %c0_141 = arith.constant 0 : index
    %89 = vector.load %arg1[%c0_137, %c3_138, %c0_139, %c0_140, %c0_141] : memref<1x9x9x49x64xf32, #tpu.memory_space<vmem>>, vector<1x1x1x49x64xf32>
    %90 = vector.shape_cast %89 : vector<1x1x1x49x64xf32> to vector<49x64xf32>
    %c0_142 = arith.constant 0 : index
    %c3_143 = arith.constant 3 : index
    %c1_144 = arith.constant 1 : index
    %c0_145 = arith.constant 0 : index
    %c0_146 = arith.constant 0 : index
    %91 = vector.load %arg1[%c0_142, %c3_143, %c1_144, %c0_145, %c0_146] : memref<1x9x9x49x64xf32, #tpu.memory_space<vmem>>, vector<1x1x1x49x64xf32>
    %92 = vector.shape_cast %91 : vector<1x1x1x49x64xf32> to vector<49x64xf32>
    %93 = arith.maximumf %90, %92 : vector<49x64xf32>
    %c0_147 = arith.constant 0 : index
    %c3_148 = arith.constant 3 : index
    %c2_149 = arith.constant 2 : index
    %c0_150 = arith.constant 0 : index
    %c0_151 = arith.constant 0 : index
    %94 = vector.load %arg1[%c0_147, %c3_148, %c2_149, %c0_150, %c0_151] : memref<1x9x9x49x64xf32, #tpu.memory_space<vmem>>, vector<1x1x1x49x64xf32>
    %95 = vector.shape_cast %94 : vector<1x1x1x49x64xf32> to vector<49x64xf32>
    %96 = arith.maximumf %93, %95 : vector<49x64xf32>
    %c0_152 = arith.constant 0 : index
    %c3_153 = arith.constant 3 : index
    %c3_154 = arith.constant 3 : index
    %c0_155 = arith.constant 0 : index
    %c0_156 = arith.constant 0 : index
    %97 = vector.load %arg1[%c0_152, %c3_153, %c3_154, %c0_155, %c0_156] : memref<1x9x9x49x64xf32, #tpu.memory_space<vmem>>, vector<1x1x1x49x64xf32>
    %98 = vector.shape_cast %97 : vector<1x1x1x49x64xf32> to vector<49x64xf32>
    %99 = arith.maximumf %96, %98 : vector<49x64xf32>
    %c0_157 = arith.constant 0 : index
    %c3_158 = arith.constant 3 : index
    %c4_159 = arith.constant 4 : index
    %c0_160 = arith.constant 0 : index
    %c0_161 = arith.constant 0 : index
    %100 = vector.load %arg1[%c0_157, %c3_158, %c4_159, %c0_160, %c0_161] : memref<1x9x9x49x64xf32, #tpu.memory_space<vmem>>, vector<1x1x1x49x64xf32>
    %101 = vector.shape_cast %100 : vector<1x1x1x49x64xf32> to vector<49x64xf32>
    %102 = arith.maximumf %99, %101 : vector<49x64xf32>
    %c0_162 = arith.constant 0 : index
    %c3_163 = arith.constant 3 : index
    %c5_164 = arith.constant 5 : index
    %c0_165 = arith.constant 0 : index
    %c0_166 = arith.constant 0 : index
    %103 = vector.load %arg1[%c0_162, %c3_163, %c5_164, %c0_165, %c0_166] : memref<1x9x9x49x64xf32, #tpu.memory_space<vmem>>, vector<1x1x1x49x64xf32>
    %104 = vector.shape_cast %103 : vector<1x1x1x49x64xf32> to vector<49x64xf32>
    %105 = arith.maximumf %102, %104 : vector<49x64xf32>
    %c0_167 = arith.constant 0 : index
    %c3_168 = arith.constant 3 : index
    %c6_169 = arith.constant 6 : index
    %c0_170 = arith.constant 0 : index
    %c0_171 = arith.constant 0 : index
    %106 = vector.load %arg1[%c0_167, %c3_168, %c6_169, %c0_170, %c0_171] : memref<1x9x9x49x64xf32, #tpu.memory_space<vmem>>, vector<1x1x1x49x64xf32>
    %107 = vector.shape_cast %106 : vector<1x1x1x49x64xf32> to vector<49x64xf32>
    %108 = arith.maximumf %105, %107 : vector<49x64xf32>
    %c0_172 = arith.constant 0 : index
    %c3_173 = arith.constant 3 : index
    %c7_174 = arith.constant 7 : index
    %c0_175 = arith.constant 0 : index
    %c0_176 = arith.constant 0 : index
    %109 = vector.load %arg1[%c0_172, %c3_173, %c7_174, %c0_175, %c0_176] : memref<1x9x9x49x64xf32, #tpu.memory_space<vmem>>, vector<1x1x1x49x64xf32>
    %110 = vector.shape_cast %109 : vector<1x1x1x49x64xf32> to vector<49x64xf32>
    %111 = arith.maximumf %108, %110 : vector<49x64xf32>
    %c0_177 = arith.constant 0 : index
    %c3_178 = arith.constant 3 : index
    %c8_179 = arith.constant 8 : index
    %c0_180 = arith.constant 0 : index
    %c0_181 = arith.constant 0 : index
    %112 = vector.load %arg1[%c0_177, %c3_178, %c8_179, %c0_180, %c0_181] : memref<1x9x9x49x64xf32, #tpu.memory_space<vmem>>, vector<1x1x1x49x64xf32>
    %113 = vector.shape_cast %112 : vector<1x1x1x49x64xf32> to vector<49x64xf32>
    %114 = arith.maximumf %111, %113 : vector<49x64xf32>
    %c3_182 = arith.constant 3 : index
    %c0_183 = arith.constant 0 : index
    %c0_184 = arith.constant 0 : index
    %115 = vector.load %arg2[%c3_182, %c0_183, %c0_184] : memref<9x64x128xf32, #tpu.memory_space<vmem>>, vector<1x64x128xf32>
    %116 = vector.shape_cast %115 : vector<1x64x128xf32> to vector<64x128xf32>
    %cst_185 = arith.constant dense<0.000000e+00> : vector<49x128xf32>
    %117 = tpu.matmul %114, %116, %cst_185 {dimension_numbers = #tpu.dot_dimension_numbers<[1], [0], [0], [1], [0, 0, 1, 1], [], []>} : vector<49x64xf32>, vector<64x128xf32>, vector<49x128xf32> -> vector<49x128xf32>
    %118 = arith.addf %88, %117 : vector<49x128xf32>
    %c0_186 = arith.constant 0 : index
    %c4_187 = arith.constant 4 : index
    %c0_188 = arith.constant 0 : index
    %c0_189 = arith.constant 0 : index
    %c0_190 = arith.constant 0 : index
    %119 = vector.load %arg1[%c0_186, %c4_187, %c0_188, %c0_189, %c0_190] : memref<1x9x9x49x64xf32, #tpu.memory_space<vmem>>, vector<1x1x1x49x64xf32>
    %120 = vector.shape_cast %119 : vector<1x1x1x49x64xf32> to vector<49x64xf32>
    %c0_191 = arith.constant 0 : index
    %c4_192 = arith.constant 4 : index
    %c1_193 = arith.constant 1 : index
    %c0_194 = arith.constant 0 : index
    %c0_195 = arith.constant 0 : index
    %121 = vector.load %arg1[%c0_191, %c4_192, %c1_193, %c0_194, %c0_195] : memref<1x9x9x49x64xf32, #tpu.memory_space<vmem>>, vector<1x1x1x49x64xf32>
    %122 = vector.shape_cast %121 : vector<1x1x1x49x64xf32> to vector<49x64xf32>
    %123 = arith.maximumf %120, %122 : vector<49x64xf32>
    %c0_196 = arith.constant 0 : index
    %c4_197 = arith.constant 4 : index
    %c2_198 = arith.constant 2 : index
    %c0_199 = arith.constant 0 : index
    %c0_200 = arith.constant 0 : index
    %124 = vector.load %arg1[%c0_196, %c4_197, %c2_198, %c0_199, %c0_200] : memref<1x9x9x49x64xf32, #tpu.memory_space<vmem>>, vector<1x1x1x49x64xf32>
    %125 = vector.shape_cast %124 : vector<1x1x1x49x64xf32> to vector<49x64xf32>
    %126 = arith.maximumf %123, %125 : vector<49x64xf32>
    %c0_201 = arith.constant 0 : index
    %c4_202 = arith.constant 4 : index
    %c3_203 = arith.constant 3 : index
    %c0_204 = arith.constant 0 : index
    %c0_205 = arith.constant 0 : index
    %127 = vector.load %arg1[%c0_201, %c4_202, %c3_203, %c0_204, %c0_205] : memref<1x9x9x49x64xf32, #tpu.memory_space<vmem>>, vector<1x1x1x49x64xf32>
    %128 = vector.shape_cast %127 : vector<1x1x1x49x64xf32> to vector<49x64xf32>
    %129 = arith.maximumf %126, %128 : vector<49x64xf32>
    %c0_206 = arith.constant 0 : index
    %c4_207 = arith.constant 4 : index
    %c4_208 = arith.constant 4 : index
    %c0_209 = arith.constant 0 : index
    %c0_210 = arith.constant 0 : index
    %130 = vector.load %arg1[%c0_206, %c4_207, %c4_208, %c0_209, %c0_210] : memref<1x9x9x49x64xf32, #tpu.memory_space<vmem>>, vector<1x1x1x49x64xf32>
    %131 = vector.shape_cast %130 : vector<1x1x1x49x64xf32> to vector<49x64xf32>
    %132 = arith.maximumf %129, %131 : vector<49x64xf32>
    %c0_211 = arith.constant 0 : index
    %c4_212 = arith.constant 4 : index
    %c5_213 = arith.constant 5 : index
    %c0_214 = arith.constant 0 : index
    %c0_215 = arith.constant 0 : index
    %133 = vector.load %arg1[%c0_211, %c4_212, %c5_213, %c0_214, %c0_215] : memref<1x9x9x49x64xf32, #tpu.memory_space<vmem>>, vector<1x1x1x49x64xf32>
    %134 = vector.shape_cast %133 : vector<1x1x1x49x64xf32> to vector<49x64xf32>
    %135 = arith.maximumf %132, %134 : vector<49x64xf32>
    %c0_216 = arith.constant 0 : index
    %c4_217 = arith.constant 4 : index
    %c6_218 = arith.constant 6 : index
    %c0_219 = arith.constant 0 : index
    %c0_220 = arith.constant 0 : index
    %136 = vector.load %arg1[%c0_216, %c4_217, %c6_218, %c0_219, %c0_220] : memref<1x9x9x49x64xf32, #tpu.memory_space<vmem>>, vector<1x1x1x49x64xf32>
    %137 = vector.shape_cast %136 : vector<1x1x1x49x64xf32> to vector<49x64xf32>
    %138 = arith.maximumf %135, %137 : vector<49x64xf32>
    %c0_221 = arith.constant 0 : index
    %c4_222 = arith.constant 4 : index
    %c7_223 = arith.constant 7 : index
    %c0_224 = arith.constant 0 : index
    %c0_225 = arith.constant 0 : index
    %139 = vector.load %arg1[%c0_221, %c4_222, %c7_223, %c0_224, %c0_225] : memref<1x9x9x49x64xf32, #tpu.memory_space<vmem>>, vector<1x1x1x49x64xf32>
    %140 = vector.shape_cast %139 : vector<1x1x1x49x64xf32> to vector<49x64xf32>
    %141 = arith.maximumf %138, %140 : vector<49x64xf32>
    %c0_226 = arith.constant 0 : index
    %c4_227 = arith.constant 4 : index
    %c8_228 = arith.constant 8 : index
    %c0_229 = arith.constant 0 : index
    %c0_230 = arith.constant 0 : index
    %142 = vector.load %arg1[%c0_226, %c4_227, %c8_228, %c0_229, %c0_230] : memref<1x9x9x49x64xf32, #tpu.memory_space<vmem>>, vector<1x1x1x49x64xf32>
    %143 = vector.shape_cast %142 : vector<1x1x1x49x64xf32> to vector<49x64xf32>
    %144 = arith.maximumf %141, %143 : vector<49x64xf32>
    %c4_231 = arith.constant 4 : index
    %c0_232 = arith.constant 0 : index
    %c0_233 = arith.constant 0 : index
    %145 = vector.load %arg2[%c4_231, %c0_232, %c0_233] : memref<9x64x128xf32, #tpu.memory_space<vmem>>, vector<1x64x128xf32>
    %146 = vector.shape_cast %145 : vector<1x64x128xf32> to vector<64x128xf32>
    %cst_234 = arith.constant dense<0.000000e+00> : vector<49x128xf32>
    %147 = tpu.matmul %144, %146, %cst_234 {dimension_numbers = #tpu.dot_dimension_numbers<[1], [0], [0], [1], [0, 0, 1, 1], [], []>} : vector<49x64xf32>, vector<64x128xf32>, vector<49x128xf32> -> vector<49x128xf32>
    %148 = arith.addf %118, %147 : vector<49x128xf32>
    %c0_235 = arith.constant 0 : index
    %c5_236 = arith.constant 5 : index
    %c0_237 = arith.constant 0 : index
    %c0_238 = arith.constant 0 : index
    %c0_239 = arith.constant 0 : index
    %149 = vector.load %arg1[%c0_235, %c5_236, %c0_237, %c0_238, %c0_239] : memref<1x9x9x49x64xf32, #tpu.memory_space<vmem>>, vector<1x1x1x49x64xf32>
    %150 = vector.shape_cast %149 : vector<1x1x1x49x64xf32> to vector<49x64xf32>
    %c0_240 = arith.constant 0 : index
    %c5_241 = arith.constant 5 : index
    %c1_242 = arith.constant 1 : index
    %c0_243 = arith.constant 0 : index
    %c0_244 = arith.constant 0 : index
    %151 = vector.load %arg1[%c0_240, %c5_241, %c1_242, %c0_243, %c0_244] : memref<1x9x9x49x64xf32, #tpu.memory_space<vmem>>, vector<1x1x1x49x64xf32>
    %152 = vector.shape_cast %151 : vector<1x1x1x49x64xf32> to vector<49x64xf32>
    %153 = arith.maximumf %150, %152 : vector<49x64xf32>
    %c0_245 = arith.constant 0 : index
    %c5_246 = arith.constant 5 : index
    %c2_247 = arith.constant 2 : index
    %c0_248 = arith.constant 0 : index
    %c0_249 = arith.constant 0 : index
    %154 = vector.load %arg1[%c0_245, %c5_246, %c2_247, %c0_248, %c0_249] : memref<1x9x9x49x64xf32, #tpu.memory_space<vmem>>, vector<1x1x1x49x64xf32>
    %155 = vector.shape_cast %154 : vector<1x1x1x49x64xf32> to vector<49x64xf32>
    %156 = arith.maximumf %153, %155 : vector<49x64xf32>
    %c0_250 = arith.constant 0 : index
    %c5_251 = arith.constant 5 : index
    %c3_252 = arith.constant 3 : index
    %c0_253 = arith.constant 0 : index
    %c0_254 = arith.constant 0 : index
    %157 = vector.load %arg1[%c0_250, %c5_251, %c3_252, %c0_253, %c0_254] : memref<1x9x9x49x64xf32, #tpu.memory_space<vmem>>, vector<1x1x1x49x64xf32>
    %158 = vector.shape_cast %157 : vector<1x1x1x49x64xf32> to vector<49x64xf32>
    %159 = arith.maximumf %156, %158 : vector<49x64xf32>
    %c0_255 = arith.constant 0 : index
    %c5_256 = arith.constant 5 : index
    %c4_257 = arith.constant 4 : index
    %c0_258 = arith.constant 0 : index
    %c0_259 = arith.constant 0 : index
    %160 = vector.load %arg1[%c0_255, %c5_256, %c4_257, %c0_258, %c0_259] : memref<1x9x9x49x64xf32, #tpu.memory_space<vmem>>, vector<1x1x1x49x64xf32>
    %161 = vector.shape_cast %160 : vector<1x1x1x49x64xf32> to vector<49x64xf32>
    %162 = arith.maximumf %159, %161 : vector<49x64xf32>
    %c0_260 = arith.constant 0 : index
    %c5_261 = arith.constant 5 : index
    %c5_262 = arith.constant 5 : index
    %c0_263 = arith.constant 0 : index
    %c0_264 = arith.constant 0 : index
    %163 = vector.load %arg1[%c0_260, %c5_261, %c5_262, %c0_263, %c0_264] : memref<1x9x9x49x64xf32, #tpu.memory_space<vmem>>, vector<1x1x1x49x64xf32>
    %164 = vector.shape_cast %163 : vector<1x1x1x49x64xf32> to vector<49x64xf32>
    %165 = arith.maximumf %162, %164 : vector<49x64xf32>
    %c0_265 = arith.constant 0 : index
    %c5_266 = arith.constant 5 : index
    %c6_267 = arith.constant 6 : index
    %c0_268 = arith.constant 0 : index
    %c0_269 = arith.constant 0 : index
    %166 = vector.load %arg1[%c0_265, %c5_266, %c6_267, %c0_268, %c0_269] : memref<1x9x9x49x64xf32, #tpu.memory_space<vmem>>, vector<1x1x1x49x64xf32>
    %167 = vector.shape_cast %166 : vector<1x1x1x49x64xf32> to vector<49x64xf32>
    %168 = arith.maximumf %165, %167 : vector<49x64xf32>
    %c0_270 = arith.constant 0 : index
    %c5_271 = arith.constant 5 : index
    %c7_272 = arith.constant 7 : index
    %c0_273 = arith.constant 0 : index
    %c0_274 = arith.constant 0 : index
    %169 = vector.load %arg1[%c0_270, %c5_271, %c7_272, %c0_273, %c0_274] : memref<1x9x9x49x64xf32, #tpu.memory_space<vmem>>, vector<1x1x1x49x64xf32>
    %170 = vector.shape_cast %169 : vector<1x1x1x49x64xf32> to vector<49x64xf32>
    %171 = arith.maximumf %168, %170 : vector<49x64xf32>
    %c0_275 = arith.constant 0 : index
    %c5_276 = arith.constant 5 : index
    %c8_277 = arith.constant 8 : index
    %c0_278 = arith.constant 0 : index
    %c0_279 = arith.constant 0 : index
    %172 = vector.load %arg1[%c0_275, %c5_276, %c8_277, %c0_278, %c0_279] : memref<1x9x9x49x64xf32, #tpu.memory_space<vmem>>, vector<1x1x1x49x64xf32>
    %173 = vector.shape_cast %172 : vector<1x1x1x49x64xf32> to vector<49x64xf32>
    %174 = arith.maximumf %171, %173 : vector<49x64xf32>
    %c5_280 = arith.constant 5 : index
    %c0_281 = arith.constant 0 : index
    %c0_282 = arith.constant 0 : index
    %175 = vector.load %arg2[%c5_280, %c0_281, %c0_282] : memref<9x64x128xf32, #tpu.memory_space<vmem>>, vector<1x64x128xf32>
    %176 = vector.shape_cast %175 : vector<1x64x128xf32> to vector<64x128xf32>
    %cst_283 = arith.constant dense<0.000000e+00> : vector<49x128xf32>
    %177 = tpu.matmul %174, %176, %cst_283 {dimension_numbers = #tpu.dot_dimension_numbers<[1], [0], [0], [1], [0, 0, 1, 1], [], []>} : vector<49x64xf32>, vector<64x128xf32>, vector<49x128xf32> -> vector<49x128xf32>
    %178 = arith.addf %148, %177 : vector<49x128xf32>
    %c0_284 = arith.constant 0 : index
    %c6_285 = arith.constant 6 : index
    %c0_286 = arith.constant 0 : index
    %c0_287 = arith.constant 0 : index
    %c0_288 = arith.constant 0 : index
    %179 = vector.load %arg1[%c0_284, %c6_285, %c0_286, %c0_287, %c0_288] : memref<1x9x9x49x64xf32, #tpu.memory_space<vmem>>, vector<1x1x1x49x64xf32>
    %180 = vector.shape_cast %179 : vector<1x1x1x49x64xf32> to vector<49x64xf32>
    %c0_289 = arith.constant 0 : index
    %c6_290 = arith.constant 6 : index
    %c1_291 = arith.constant 1 : index
    %c0_292 = arith.constant 0 : index
    %c0_293 = arith.constant 0 : index
    %181 = vector.load %arg1[%c0_289, %c6_290, %c1_291, %c0_292, %c0_293] : memref<1x9x9x49x64xf32, #tpu.memory_space<vmem>>, vector<1x1x1x49x64xf32>
    %182 = vector.shape_cast %181 : vector<1x1x1x49x64xf32> to vector<49x64xf32>
    %183 = arith.maximumf %180, %182 : vector<49x64xf32>
    %c0_294 = arith.constant 0 : index
    %c6_295 = arith.constant 6 : index
    %c2_296 = arith.constant 2 : index
    %c0_297 = arith.constant 0 : index
    %c0_298 = arith.constant 0 : index
    %184 = vector.load %arg1[%c0_294, %c6_295, %c2_296, %c0_297, %c0_298] : memref<1x9x9x49x64xf32, #tpu.memory_space<vmem>>, vector<1x1x1x49x64xf32>
    %185 = vector.shape_cast %184 : vector<1x1x1x49x64xf32> to vector<49x64xf32>
    %186 = arith.maximumf %183, %185 : vector<49x64xf32>
    %c0_299 = arith.constant 0 : index
    %c6_300 = arith.constant 6 : index
    %c3_301 = arith.constant 3 : index
    %c0_302 = arith.constant 0 : index
    %c0_303 = arith.constant 0 : index
    %187 = vector.load %arg1[%c0_299, %c6_300, %c3_301, %c0_302, %c0_303] : memref<1x9x9x49x64xf32, #tpu.memory_space<vmem>>, vector<1x1x1x49x64xf32>
    %188 = vector.shape_cast %187 : vector<1x1x1x49x64xf32> to vector<49x64xf32>
    %189 = arith.maximumf %186, %188 : vector<49x64xf32>
    %c0_304 = arith.constant 0 : index
    %c6_305 = arith.constant 6 : index
    %c4_306 = arith.constant 4 : index
    %c0_307 = arith.constant 0 : index
    %c0_308 = arith.constant 0 : index
    %190 = vector.load %arg1[%c0_304, %c6_305, %c4_306, %c0_307, %c0_308] : memref<1x9x9x49x64xf32, #tpu.memory_space<vmem>>, vector<1x1x1x49x64xf32>
    %191 = vector.shape_cast %190 : vector<1x1x1x49x64xf32> to vector<49x64xf32>
    %192 = arith.maximumf %189, %191 : vector<49x64xf32>
    %c0_309 = arith.constant 0 : index
    %c6_310 = arith.constant 6 : index
    %c5_311 = arith.constant 5 : index
    %c0_312 = arith.constant 0 : index
    %c0_313 = arith.constant 0 : index
    %193 = vector.load %arg1[%c0_309, %c6_310, %c5_311, %c0_312, %c0_313] : memref<1x9x9x49x64xf32, #tpu.memory_space<vmem>>, vector<1x1x1x49x64xf32>
    %194 = vector.shape_cast %193 : vector<1x1x1x49x64xf32> to vector<49x64xf32>
    %195 = arith.maximumf %192, %194 : vector<49x64xf32>
    %c0_314 = arith.constant 0 : index
    %c6_315 = arith.constant 6 : index
    %c6_316 = arith.constant 6 : index
    %c0_317 = arith.constant 0 : index
    %c0_318 = arith.constant 0 : index
    %196 = vector.load %arg1[%c0_314, %c6_315, %c6_316, %c0_317, %c0_318] : memref<1x9x9x49x64xf32, #tpu.memory_space<vmem>>, vector<1x1x1x49x64xf32>
    %197 = vector.shape_cast %196 : vector<1x1x1x49x64xf32> to vector<49x64xf32>
    %198 = arith.maximumf %195, %197 : vector<49x64xf32>
    %c0_319 = arith.constant 0 : index
    %c6_320 = arith.constant 6 : index
    %c7_321 = arith.constant 7 : index
    %c0_322 = arith.constant 0 : index
    %c0_323 = arith.constant 0 : index
    %199 = vector.load %arg1[%c0_319, %c6_320, %c7_321, %c0_322, %c0_323] : memref<1x9x9x49x64xf32, #tpu.memory_space<vmem>>, vector<1x1x1x49x64xf32>
    %200 = vector.shape_cast %199 : vector<1x1x1x49x64xf32> to vector<49x64xf32>
    %201 = arith.maximumf %198, %200 : vector<49x64xf32>
    %c0_324 = arith.constant 0 : index
    %c6_325 = arith.constant 6 : index
    %c8_326 = arith.constant 8 : index
    %c0_327 = arith.constant 0 : index
    %c0_328 = arith.constant 0 : index
    %202 = vector.load %arg1[%c0_324, %c6_325, %c8_326, %c0_327, %c0_328] : memref<1x9x9x49x64xf32, #tpu.memory_space<vmem>>, vector<1x1x1x49x64xf32>
    %203 = vector.shape_cast %202 : vector<1x1x1x49x64xf32> to vector<49x64xf32>
    %204 = arith.maximumf %201, %203 : vector<49x64xf32>
    %c6_329 = arith.constant 6 : index
    %c0_330 = arith.constant 0 : index
    %c0_331 = arith.constant 0 : index
    %205 = vector.load %arg2[%c6_329, %c0_330, %c0_331] : memref<9x64x128xf32, #tpu.memory_space<vmem>>, vector<1x64x128xf32>
    %206 = vector.shape_cast %205 : vector<1x64x128xf32> to vector<64x128xf32>
    %cst_332 = arith.constant dense<0.000000e+00> : vector<49x128xf32>
    %207 = tpu.matmul %204, %206, %cst_332 {dimension_numbers = #tpu.dot_dimension_numbers<[1], [0], [0], [1], [0, 0, 1, 1], [], []>} : vector<49x64xf32>, vector<64x128xf32>, vector<49x128xf32> -> vector<49x128xf32>
    %208 = arith.addf %178, %207 : vector<49x128xf32>
    %c0_333 = arith.constant 0 : index
    %c7_334 = arith.constant 7 : index
    %c0_335 = arith.constant 0 : index
    %c0_336 = arith.constant 0 : index
    %c0_337 = arith.constant 0 : index
    %209 = vector.load %arg1[%c0_333, %c7_334, %c0_335, %c0_336, %c0_337] : memref<1x9x9x49x64xf32, #tpu.memory_space<vmem>>, vector<1x1x1x49x64xf32>
    %210 = vector.shape_cast %209 : vector<1x1x1x49x64xf32> to vector<49x64xf32>
    %c0_338 = arith.constant 0 : index
    %c7_339 = arith.constant 7 : index
    %c1_340 = arith.constant 1 : index
    %c0_341 = arith.constant 0 : index
    %c0_342 = arith.constant 0 : index
    %211 = vector.load %arg1[%c0_338, %c7_339, %c1_340, %c0_341, %c0_342] : memref<1x9x9x49x64xf32, #tpu.memory_space<vmem>>, vector<1x1x1x49x64xf32>
    %212 = vector.shape_cast %211 : vector<1x1x1x49x64xf32> to vector<49x64xf32>
    %213 = arith.maximumf %210, %212 : vector<49x64xf32>
    %c0_343 = arith.constant 0 : index
    %c7_344 = arith.constant 7 : index
    %c2_345 = arith.constant 2 : index
    %c0_346 = arith.constant 0 : index
    %c0_347 = arith.constant 0 : index
    %214 = vector.load %arg1[%c0_343, %c7_344, %c2_345, %c0_346, %c0_347] : memref<1x9x9x49x64xf32, #tpu.memory_space<vmem>>, vector<1x1x1x49x64xf32>
    %215 = vector.shape_cast %214 : vector<1x1x1x49x64xf32> to vector<49x64xf32>
    %216 = arith.maximumf %213, %215 : vector<49x64xf32>
    %c0_348 = arith.constant 0 : index
    %c7_349 = arith.constant 7 : index
    %c3_350 = arith.constant 3 : index
    %c0_351 = arith.constant 0 : index
    %c0_352 = arith.constant 0 : index
    %217 = vector.load %arg1[%c0_348, %c7_349, %c3_350, %c0_351, %c0_352] : memref<1x9x9x49x64xf32, #tpu.memory_space<vmem>>, vector<1x1x1x49x64xf32>
    %218 = vector.shape_cast %217 : vector<1x1x1x49x64xf32> to vector<49x64xf32>
    %219 = arith.maximumf %216, %218 : vector<49x64xf32>
    %c0_353 = arith.constant 0 : index
    %c7_354 = arith.constant 7 : index
    %c4_355 = arith.constant 4 : index
    %c0_356 = arith.constant 0 : index
    %c0_357 = arith.constant 0 : index
    %220 = vector.load %arg1[%c0_353, %c7_354, %c4_355, %c0_356, %c0_357] : memref<1x9x9x49x64xf32, #tpu.memory_space<vmem>>, vector<1x1x1x49x64xf32>
    %221 = vector.shape_cast %220 : vector<1x1x1x49x64xf32> to vector<49x64xf32>
    %222 = arith.maximumf %219, %221 : vector<49x64xf32>
    %c0_358 = arith.constant 0 : index
    %c7_359 = arith.constant 7 : index
    %c5_360 = arith.constant 5 : index
    %c0_361 = arith.constant 0 : index
    %c0_362 = arith.constant 0 : index
    %223 = vector.load %arg1[%c0_358, %c7_359, %c5_360, %c0_361, %c0_362] : memref<1x9x9x49x64xf32, #tpu.memory_space<vmem>>, vector<1x1x1x49x64xf32>
    %224 = vector.shape_cast %223 : vector<1x1x1x49x64xf32> to vector<49x64xf32>
    %225 = arith.maximumf %222, %224 : vector<49x64xf32>
    %c0_363 = arith.constant 0 : index
    %c7_364 = arith.constant 7 : index
    %c6_365 = arith.constant 6 : index
    %c0_366 = arith.constant 0 : index
    %c0_367 = arith.constant 0 : index
    %226 = vector.load %arg1[%c0_363, %c7_364, %c6_365, %c0_366, %c0_367] : memref<1x9x9x49x64xf32, #tpu.memory_space<vmem>>, vector<1x1x1x49x64xf32>
    %227 = vector.shape_cast %226 : vector<1x1x1x49x64xf32> to vector<49x64xf32>
    %228 = arith.maximumf %225, %227 : vector<49x64xf32>
    %c0_368 = arith.constant 0 : index
    %c7_369 = arith.constant 7 : index
    %c7_370 = arith.constant 7 : index
    %c0_371 = arith.constant 0 : index
    %c0_372 = arith.constant 0 : index
    %229 = vector.load %arg1[%c0_368, %c7_369, %c7_370, %c0_371, %c0_372] : memref<1x9x9x49x64xf32, #tpu.memory_space<vmem>>, vector<1x1x1x49x64xf32>
    %230 = vector.shape_cast %229 : vector<1x1x1x49x64xf32> to vector<49x64xf32>
    %231 = arith.maximumf %228, %230 : vector<49x64xf32>
    %c0_373 = arith.constant 0 : index
    %c7_374 = arith.constant 7 : index
    %c8_375 = arith.constant 8 : index
    %c0_376 = arith.constant 0 : index
    %c0_377 = arith.constant 0 : index
    %232 = vector.load %arg1[%c0_373, %c7_374, %c8_375, %c0_376, %c0_377] : memref<1x9x9x49x64xf32, #tpu.memory_space<vmem>>, vector<1x1x1x49x64xf32>
    %233 = vector.shape_cast %232 : vector<1x1x1x49x64xf32> to vector<49x64xf32>
    %234 = arith.maximumf %231, %233 : vector<49x64xf32>
    %c7_378 = arith.constant 7 : index
    %c0_379 = arith.constant 0 : index
    %c0_380 = arith.constant 0 : index
    %235 = vector.load %arg2[%c7_378, %c0_379, %c0_380] : memref<9x64x128xf32, #tpu.memory_space<vmem>>, vector<1x64x128xf32>
    %236 = vector.shape_cast %235 : vector<1x64x128xf32> to vector<64x128xf32>
    %cst_381 = arith.constant dense<0.000000e+00> : vector<49x128xf32>
    %237 = tpu.matmul %234, %236, %cst_381 {dimension_numbers = #tpu.dot_dimension_numbers<[1], [0], [0], [1], [0, 0, 1, 1], [], []>} : vector<49x64xf32>, vector<64x128xf32>, vector<49x128xf32> -> vector<49x128xf32>
    %238 = arith.addf %208, %237 : vector<49x128xf32>
    %c0_382 = arith.constant 0 : index
    %c8_383 = arith.constant 8 : index
    %c0_384 = arith.constant 0 : index
    %c0_385 = arith.constant 0 : index
    %c0_386 = arith.constant 0 : index
    %239 = vector.load %arg1[%c0_382, %c8_383, %c0_384, %c0_385, %c0_386] : memref<1x9x9x49x64xf32, #tpu.memory_space<vmem>>, vector<1x1x1x49x64xf32>
    %240 = vector.shape_cast %239 : vector<1x1x1x49x64xf32> to vector<49x64xf32>
    %c0_387 = arith.constant 0 : index
    %c8_388 = arith.constant 8 : index
    %c1_389 = arith.constant 1 : index
    %c0_390 = arith.constant 0 : index
    %c0_391 = arith.constant 0 : index
    %241 = vector.load %arg1[%c0_387, %c8_388, %c1_389, %c0_390, %c0_391] : memref<1x9x9x49x64xf32, #tpu.memory_space<vmem>>, vector<1x1x1x49x64xf32>
    %242 = vector.shape_cast %241 : vector<1x1x1x49x64xf32> to vector<49x64xf32>
    %243 = arith.maximumf %240, %242 : vector<49x64xf32>
    %c0_392 = arith.constant 0 : index
    %c8_393 = arith.constant 8 : index
    %c2_394 = arith.constant 2 : index
    %c0_395 = arith.constant 0 : index
    %c0_396 = arith.constant 0 : index
    %244 = vector.load %arg1[%c0_392, %c8_393, %c2_394, %c0_395, %c0_396] : memref<1x9x9x49x64xf32, #tpu.memory_space<vmem>>, vector<1x1x1x49x64xf32>
    %245 = vector.shape_cast %244 : vector<1x1x1x49x64xf32> to vector<49x64xf32>
    %246 = arith.maximumf %243, %245 : vector<49x64xf32>
    %c0_397 = arith.constant 0 : index
    %c8_398 = arith.constant 8 : index
    %c3_399 = arith.constant 3 : index
    %c0_400 = arith.constant 0 : index
    %c0_401 = arith.constant 0 : index
    %247 = vector.load %arg1[%c0_397, %c8_398, %c3_399, %c0_400, %c0_401] : memref<1x9x9x49x64xf32, #tpu.memory_space<vmem>>, vector<1x1x1x49x64xf32>
    %248 = vector.shape_cast %247 : vector<1x1x1x49x64xf32> to vector<49x64xf32>
    %249 = arith.maximumf %246, %248 : vector<49x64xf32>
    %c0_402 = arith.constant 0 : index
    %c8_403 = arith.constant 8 : index
    %c4_404 = arith.constant 4 : index
    %c0_405 = arith.constant 0 : index
    %c0_406 = arith.constant 0 : index
    %250 = vector.load %arg1[%c0_402, %c8_403, %c4_404, %c0_405, %c0_406] : memref<1x9x9x49x64xf32, #tpu.memory_space<vmem>>, vector<1x1x1x49x64xf32>
    %251 = vector.shape_cast %250 : vector<1x1x1x49x64xf32> to vector<49x64xf32>
    %252 = arith.maximumf %249, %251 : vector<49x64xf32>
    %c0_407 = arith.constant 0 : index
    %c8_408 = arith.constant 8 : index
    %c5_409 = arith.constant 5 : index
    %c0_410 = arith.constant 0 : index
    %c0_411 = arith.constant 0 : index
    %253 = vector.load %arg1[%c0_407, %c8_408, %c5_409, %c0_410, %c0_411] : memref<1x9x9x49x64xf32, #tpu.memory_space<vmem>>, vector<1x1x1x49x64xf32>
    %254 = vector.shape_cast %253 : vector<1x1x1x49x64xf32> to vector<49x64xf32>
    %255 = arith.maximumf %252, %254 : vector<49x64xf32>
    %c0_412 = arith.constant 0 : index
    %c8_413 = arith.constant 8 : index
    %c6_414 = arith.constant 6 : index
    %c0_415 = arith.constant 0 : index
    %c0_416 = arith.constant 0 : index
    %256 = vector.load %arg1[%c0_412, %c8_413, %c6_414, %c0_415, %c0_416] : memref<1x9x9x49x64xf32, #tpu.memory_space<vmem>>, vector<1x1x1x49x64xf32>
    %257 = vector.shape_cast %256 : vector<1x1x1x49x64xf32> to vector<49x64xf32>
    %258 = arith.maximumf %255, %257 : vector<49x64xf32>
    %c0_417 = arith.constant 0 : index
    %c8_418 = arith.constant 8 : index
    %c7_419 = arith.constant 7 : index
    %c0_420 = arith.constant 0 : index
    %c0_421 = arith.constant 0 : index
    %259 = vector.load %arg1[%c0_417, %c8_418, %c7_419, %c0_420, %c0_421] : memref<1x9x9x49x64xf32, #tpu.memory_space<vmem>>, vector<1x1x1x49x64xf32>
    %260 = vector.shape_cast %259 : vector<1x1x1x49x64xf32> to vector<49x64xf32>
    %261 = arith.maximumf %258, %260 : vector<49x64xf32>
    %c0_422 = arith.constant 0 : index
    %c8_423 = arith.constant 8 : index
    %c8_424 = arith.constant 8 : index
    %c0_425 = arith.constant 0 : index
    %c0_426 = arith.constant 0 : index
    %262 = vector.load %arg1[%c0_422, %c8_423, %c8_424, %c0_425, %c0_426] : memref<1x9x9x49x64xf32, #tpu.memory_space<vmem>>, vector<1x1x1x49x64xf32>
    %263 = vector.shape_cast %262 : vector<1x1x1x49x64xf32> to vector<49x64xf32>
    %264 = arith.maximumf %261, %263 : vector<49x64xf32>
    %c8_427 = arith.constant 8 : index
    %c0_428 = arith.constant 0 : index
    %c0_429 = arith.constant 0 : index
    %265 = vector.load %arg2[%c8_427, %c0_428, %c0_429] : memref<9x64x128xf32, #tpu.memory_space<vmem>>, vector<1x64x128xf32>
    %266 = vector.shape_cast %265 : vector<1x64x128xf32> to vector<64x128xf32>
    %cst_430 = arith.constant dense<0.000000e+00> : vector<49x128xf32>
    %267 = tpu.matmul %264, %266, %cst_430 {dimension_numbers = #tpu.dot_dimension_numbers<[1], [0], [0], [1], [0, 0, 1, 1], [], []>} : vector<49x64xf32>, vector<64x128xf32>, vector<49x128xf32> -> vector<49x128xf32>
    %268 = arith.addf %238, %267 : vector<49x128xf32>
    %c0_431 = arith.constant 0 : index
    %c0_432 = arith.constant 0 : index
    %269 = vector.load %arg3[%c0_431, %c0_432] : memref<1x128xf32, #tpu.memory_space<vmem>>, vector<1x128xf32>
    %270 = vector.broadcast %269 : vector<1x128xf32> to vector<49x128xf32>
    %271 = arith.addf %268, %270 : vector<49x128xf32>
    %272 = vector.extract_strided_slice %271 {offsets = [0, 0], sizes = [7, 128], strides = [1, 1]} : vector<49x128xf32> to vector<7x128xf32>
    %273 = vector.extract_strided_slice %271 {offsets = [7, 0], sizes = [7, 128], strides = [1, 1]} : vector<49x128xf32> to vector<7x128xf32>
    %274 = arith.maximumf %272, %273 : vector<7x128xf32>
    %275 = vector.extract_strided_slice %274 {offsets = [0, 0], sizes = [1, 128], strides = [1, 1]} : vector<7x128xf32> to vector<1x128xf32>
    %276 = vector.extract_strided_slice %274 {offsets = [1, 0], sizes = [1, 128], strides = [1, 1]} : vector<7x128xf32> to vector<1x128xf32>
    %277 = arith.maximumf %275, %276 : vector<1x128xf32>
    %278 = vector.extract_strided_slice %274 {offsets = [2, 0], sizes = [1, 128], strides = [1, 1]} : vector<7x128xf32> to vector<1x128xf32>
    %279 = vector.extract_strided_slice %274 {offsets = [3, 0], sizes = [1, 128], strides = [1, 1]} : vector<7x128xf32> to vector<1x128xf32>
    %280 = arith.maximumf %278, %279 : vector<1x128xf32>
    %281 = vector.extract_strided_slice %274 {offsets = [4, 0], sizes = [1, 128], strides = [1, 1]} : vector<7x128xf32> to vector<1x128xf32>
    %282 = arith.maximumf %280, %281 : vector<1x128xf32>
    %283 = vector.extract_strided_slice %274 {offsets = [5, 0], sizes = [1, 128], strides = [1, 1]} : vector<7x128xf32> to vector<1x128xf32>
    %284 = vector.extract_strided_slice %274 {offsets = [6, 0], sizes = [1, 128], strides = [1, 1]} : vector<7x128xf32> to vector<1x128xf32>
    %285 = arith.maximumf %283, %284 : vector<1x128xf32>
    %286 = vector.extract_strided_slice %271 {offsets = [14, 0], sizes = [7, 128], strides = [1, 1]} : vector<49x128xf32> to vector<7x128xf32>
    %287 = vector.extract_strided_slice %271 {offsets = [21, 0], sizes = [7, 128], strides = [1, 1]} : vector<49x128xf32> to vector<7x128xf32>
    %288 = arith.maximumf %286, %287 : vector<7x128xf32>
    %289 = vector.extract_strided_slice %271 {offsets = [28, 0], sizes = [7, 128], strides = [1, 1]} : vector<49x128xf32> to vector<7x128xf32>
    %290 = arith.maximumf %288, %289 : vector<7x128xf32>
    %291 = vector.extract_strided_slice %290 {offsets = [0, 0], sizes = [1, 128], strides = [1, 1]} : vector<7x128xf32> to vector<1x128xf32>
    %292 = vector.extract_strided_slice %290 {offsets = [1, 0], sizes = [1, 128], strides = [1, 1]} : vector<7x128xf32> to vector<1x128xf32>
    %293 = arith.maximumf %291, %292 : vector<1x128xf32>
    %294 = vector.extract_strided_slice %290 {offsets = [2, 0], sizes = [1, 128], strides = [1, 1]} : vector<7x128xf32> to vector<1x128xf32>
    %295 = vector.extract_strided_slice %290 {offsets = [3, 0], sizes = [1, 128], strides = [1, 1]} : vector<7x128xf32> to vector<1x128xf32>
    %296 = arith.maximumf %294, %295 : vector<1x128xf32>
    %297 = vector.extract_strided_slice %290 {offsets = [4, 0], sizes = [1, 128], strides = [1, 1]} : vector<7x128xf32> to vector<1x128xf32>
    %298 = arith.maximumf %296, %297 : vector<1x128xf32>
    %299 = vector.extract_strided_slice %290 {offsets = [5, 0], sizes = [1, 128], strides = [1, 1]} : vector<7x128xf32> to vector<1x128xf32>
    %300 = vector.extract_strided_slice %290 {offsets = [6, 0], sizes = [1, 128], strides = [1, 1]} : vector<7x128xf32> to vector<1x128xf32>
    %301 = arith.maximumf %299, %300 : vector<1x128xf32>
    %302 = vector.extract_strided_slice %271 {offsets = [35, 0], sizes = [7, 128], strides = [1, 1]} : vector<49x128xf32> to vector<7x128xf32>
    %303 = vector.extract_strided_slice %271 {offsets = [42, 0], sizes = [7, 128], strides = [1, 1]} : vector<49x128xf32> to vector<7x128xf32>
    %304 = arith.maximumf %302, %303 : vector<7x128xf32>
    %305 = vector.extract_strided_slice %304 {offsets = [0, 0], sizes = [1, 128], strides = [1, 1]} : vector<7x128xf32> to vector<1x128xf32>
    %306 = vector.extract_strided_slice %304 {offsets = [1, 0], sizes = [1, 128], strides = [1, 1]} : vector<7x128xf32> to vector<1x128xf32>
    %307 = arith.maximumf %305, %306 : vector<1x128xf32>
    %308 = vector.extract_strided_slice %304 {offsets = [2, 0], sizes = [1, 128], strides = [1, 1]} : vector<7x128xf32> to vector<1x128xf32>
    %309 = vector.extract_strided_slice %304 {offsets = [3, 0], sizes = [1, 128], strides = [1, 1]} : vector<7x128xf32> to vector<1x128xf32>
    %310 = arith.maximumf %308, %309 : vector<1x128xf32>
    %311 = vector.extract_strided_slice %304 {offsets = [4, 0], sizes = [1, 128], strides = [1, 1]} : vector<7x128xf32> to vector<1x128xf32>
    %312 = arith.maximumf %310, %311 : vector<1x128xf32>
    %313 = vector.extract_strided_slice %304 {offsets = [5, 0], sizes = [1, 128], strides = [1, 1]} : vector<7x128xf32> to vector<1x128xf32>
    %314 = vector.extract_strided_slice %304 {offsets = [6, 0], sizes = [1, 128], strides = [1, 1]} : vector<7x128xf32> to vector<1x128xf32>
    %315 = arith.maximumf %313, %314 : vector<1x128xf32>
    %cst_433 = arith.constant 0.000000e+00 : f32
    %316 = vector.broadcast %cst_433 : f32 to vector<8x1152xf32>
    %c0_434 = arith.constant 0 : index
    %c0_435 = arith.constant 0 : index
    %317 = vector.load %arg7[%c0_434, %c0_435] : memref<8x1152xf32, #tpu.memory_space<vmem>>, vector<8x1152xf32>
    tpu.vector_store %arg7[%c0_434, %c0_435], %316 {strides = array<i32>} : memref<8x1152xf32, #tpu.memory_space<vmem>>, vector<8x1152xf32>,
    %c0_436 = arith.constant 0 : index
    %c0_437 = arith.constant 0 : index
    %318 = vector.load %arg7[%c0_436, %c0_437] : memref<8x1152xf32, #tpu.memory_space<vmem>>, vector<1x128xf32>
    tpu.vector_store %arg7[%c0_436, %c0_437], %277 {strides = array<i32>} : memref<8x1152xf32, #tpu.memory_space<vmem>>, vector<1x128xf32>,
    %c0_438 = arith.constant 0 : index
    %c128 = arith.constant 128 : index
    %319 = vector.load %arg7[%c0_438, %c128] : memref<8x1152xf32, #tpu.memory_space<vmem>>, vector<1x128xf32>
    tpu.vector_store %arg7[%c0_438, %c128], %282 {strides = array<i32>} : memref<8x1152xf32, #tpu.memory_space<vmem>>, vector<1x128xf32>,
    %c0_439 = arith.constant 0 : index
    %c256 = arith.constant 256 : index
    %320 = vector.load %arg7[%c0_439, %c256] : memref<8x1152xf32, #tpu.memory_space<vmem>>, vector<1x128xf32>
    tpu.vector_store %arg7[%c0_439, %c256], %285 {strides = array<i32>} : memref<8x1152xf32, #tpu.memory_space<vmem>>, vector<1x128xf32>,
    %c0_440 = arith.constant 0 : index
    %c384 = arith.constant 384 : index
    %321 = vector.load %arg7[%c0_440, %c384] : memref<8x1152xf32, #tpu.memory_space<vmem>>, vector<1x128xf32>
    tpu.vector_store %arg7[%c0_440, %c384], %293 {strides = array<i32>} : memref<8x1152xf32, #tpu.memory_space<vmem>>, vector<1x128xf32>,
    %c0_441 = arith.constant 0 : index
    %c512 = arith.constant 512 : index
    %322 = vector.load %arg7[%c0_441, %c512] : memref<8x1152xf32, #tpu.memory_space<vmem>>, vector<1x128xf32>
    tpu.vector_store %arg7[%c0_441, %c512], %298 {strides = array<i32>} : memref<8x1152xf32, #tpu.memory_space<vmem>>, vector<1x128xf32>,
    %c0_442 = arith.constant 0 : index
    %c640 = arith.constant 640 : index
    %323 = vector.load %arg7[%c0_442, %c640] : memref<8x1152xf32, #tpu.memory_space<vmem>>, vector<1x128xf32>
    tpu.vector_store %arg7[%c0_442, %c640], %301 {strides = array<i32>} : memref<8x1152xf32, #tpu.memory_space<vmem>>, vector<1x128xf32>,
    %c0_443 = arith.constant 0 : index
    %c768 = arith.constant 768 : index
    %324 = vector.load %arg7[%c0_443, %c768] : memref<8x1152xf32, #tpu.memory_space<vmem>>, vector<1x128xf32>
    tpu.vector_store %arg7[%c0_443, %c768], %307 {strides = array<i32>} : memref<8x1152xf32, #tpu.memory_space<vmem>>, vector<1x128xf32>,
    %c0_444 = arith.constant 0 : index
    %c896 = arith.constant 896 : index
    %325 = vector.load %arg7[%c0_444, %c896] : memref<8x1152xf32, #tpu.memory_space<vmem>>, vector<1x128xf32>
    tpu.vector_store %arg7[%c0_444, %c896], %312 {strides = array<i32>} : memref<8x1152xf32, #tpu.memory_space<vmem>>, vector<1x128xf32>,
    %c0_445 = arith.constant 0 : index
    %c1024 = arith.constant 1024 : index
    %326 = vector.load %arg7[%c0_445, %c1024] : memref<8x1152xf32, #tpu.memory_space<vmem>>, vector<1x128xf32>
    tpu.vector_store %arg7[%c0_445, %c1024], %315 {strides = array<i32>} : memref<8x1152xf32, #tpu.memory_space<vmem>>, vector<1x128xf32>,
    %c0_446 = arith.constant 0 : index
    %c0_447 = arith.constant 0 : index
    %327 = vector.load %arg7[%c0_446, %c0_447] : memref<8x1152xf32, #tpu.memory_space<vmem>>, vector<8x1152xf32>
    %c0_448 = arith.constant 0 : index
    %c0_449 = arith.constant 0 : index
    %328 = vector.load %arg4[%c0_448, %c0_449] : memref<1152x256xf32, #tpu.memory_space<vmem>>, vector<1152x256xf32>
    %cst_450 = arith.constant dense<0.000000e+00> : vector<8x256xf32>
    %329 = tpu.matmul %327, %328, %cst_450 {dimension_numbers = #tpu.dot_dimension_numbers<[1], [0], [0], [1], [0, 0, 1, 1], [], []>} : vector<8x1152xf32>, vector<1152x256xf32>, vector<8x256xf32> -> vector<8x256xf32>
    %c0_451 = arith.constant 0 : index
    %c0_452 = arith.constant 0 : index
    %330 = vector.load %arg5[%c0_451, %c0_452] : memref<1x256xf32, #tpu.memory_space<vmem>>, vector<1x256xf32>
    %331 = vector.broadcast %330 : vector<1x256xf32> to vector<8x256xf32>
    %332 = arith.addf %329, %331 : vector<8x256xf32>
    %333 = vector.extract_strided_slice %332 {offsets = [0, 0], sizes = [1, 256], strides = [1, 1]} : vector<8x256xf32> to vector<1x256xf32>
    %c0_453 = arith.constant 0 : index
    %c0_454 = arith.constant 0 : index
    %c0_455 = arith.constant 0 : index
    %334 = vector.load %arg6[%c0_453, %c0_454, %c0_455] : memref<1x1x256xf32, #tpu.memory_space<vmem>>, vector<1x1x256xf32>
    %335 = vector.shape_cast %334 : vector<1x1x256xf32> to vector<1x256xf32>
    %336 = vector.shape_cast %333 : vector<1x256xf32> to vector<1x1x256xf32>
    tpu.vector_store %arg6[%c0_453, %c0_454, %c0_455], %336 {strides = array<i32>} : memref<1x1x256xf32, #tpu.memory_space<vmem>>, vector<1x1x256xf32>,
    return
  }
  func.func @transform_0(%arg0: i32) -> (i32, i32, i32, i32, i32) {
    %c0_i32 = arith.constant 0 : i32
    %c0_i32_0 = arith.constant 0 : i32
    %c0_i32_1 = arith.constant 0 : i32
    %c0_i32_2 = arith.constant 0 : i32
    %c0_i32_3 = arith.constant 0 : i32
    return %arg0, %c0_i32, %c0_i32_0, %c0_i32_1, %c0_i32_2 : i32, i32, i32, i32, i32
  }
  func.func @transform_1(%arg0: i32) -> (i32, i32, i32) {
    %c0_i32 = arith.constant 0 : i32
    %c0_i32_0 = arith.constant 0 : i32
    %c0_i32_1 = arith.constant 0 : i32
    %c0_i32_2 = arith.constant 0 : i32
    return %c0_i32, %c0_i32_0, %c0_i32_1 : i32, i32, i32
  }
  func.func @transform_2(%arg0: i32) -> (i32, i32) {
    %c0_i32 = arith.constant 0 : i32
    %c0_i32_0 = arith.constant 0 : i32
    %c0_i32_1 = arith.constant 0 : i32
    return %c0_i32, %c0_i32_0 : i32, i32
  }
  func.func @transform_3(%arg0: i32) -> (i32, i32) {
    %c0_i32 = arith.constant 0 : i32
    %c0_i32_0 = arith.constant 0 : i32
    %c0_i32_1 = arith.constant 0 : i32
    return %c0_i32, %c0_i32_0 : i32, i32
  }
  func.func @transform_4(%arg0: i32) -> (i32, i32) {
    %c0_i32 = arith.constant 0 : i32
    %c0_i32_0 = arith.constant 0 : i32
    %c0_i32_1 = arith.constant 0 : i32
    return %c0_i32, %c0_i32_0 : i32, i32
  }
  func.func @transform_5(%arg0: i32) -> (i32, i32, i32) {
    %c0_i32 = arith.constant 0 : i32
    %c0_i32_0 = arith.constant 0 : i32
    %c0_i32_1 = arith.constant 0 : i32
    return %arg0, %c0_i32, %c0_i32_0 : i32, i32, i32
  }
}

</mosaic_0001>

<bundles_post_ra>
// kernel: bevnet_forward.2
= control target key start
LH: loop header
LB: loop body
LE: loop exit
PB: predicated region body
PF: predicated region fallthrough
CT: control target
= control target key end

     0   :  { %s2051_s12 = smov 0   ;;  %s2951_s0 = inlined_call_operand.vmem [shape: f32[6144,162], index: 0, kind: input, shape index: {}]   ;;  %s2952_s1 = inlined_call_operand.vmem [shape: f32[162,64], index: 1, kind: input, shape index: {}]   ;;  %s2953_s2 = inlined_call_operand.vmem [shape: f32[1,64], index: 2, kind: input, shape index: {}]   ;;  %s2954_s3 = inlined_call_operand.vmem [shape: f32[6144,64], index: 3, kind: output, shape index: {}]  }
   0x1 LB: > { %s1834_s13 = sadd.s32 4294967295, %s2029_s12   ;;  %p1838_p0 = scmp.ge.s32.totalorder %s2029_s12, 1  ;;  %s2029_s12 = sphi %s2051_s12, %s13_s12  }
   0x2   : > { %p139_p1 = scmp.lt.s32.totalorder %s2029_s12, 7 }
   0x4   : > { %p140_p2 = pnand %p1838_p0, %p139_p1 }
   0x5   : > { %s1839_s20 = sshll.u32 (!%p140_p2), %s1834_s13, 7 }
   0x6   : > { %143 = sbr.rel (%p140_p2) target bundleno = 685 (0x2ad), region = 32  ;;  %p165_p3 = scmp.lt.s32.totalorder (!%p140_p2), %s1839_s20, 767 }
   0xb   : > { %v448_v0 = vld [vmem:[%s2952_s1 + $0x78] sm:$0xff]  ;;  %v2065_v1 = vld [vmem:[%s2952_s1 + $0xa0] sm:$0x3]  ;;  %vm843_vm0 = vcmask 1041408   ;;  %v447_v2 = vld [vmem:[%s2952_s1 + $0x70] sm:$0xff]  ;;  %s2956_s20 = smov (!%p165_p3, %s1839_s20), 767 }
   0xc   : > { %847 = vmatpush.msra.mxu0 %v448_v0  ;;  %1976 = vmatpush.msra.mxu2 %v448_v0  ;;  %v2073_v3 = vld [vmem:[%s2952_s1 + $0x98] sm:$0xff]  ;;  %v446_v4 = vld [vmem:[%s2952_s1 + $0x68] sm:$0xff]  ;;  %v2083_v5 = vld [vmem:[%s2952_s1 + $0x90] sm:$0xff]  ;;  %s1975_s4 = sshll.u32 %s2956_s20, 4  ;;  %vm458_vm1 = vcmask 277504   ;;  %s1843_s13 = sshll.u32 %s2956_s20, 3 }
   0xd   : > { %1977 = vmatpush.msra.mxu3 %v448_v0  ;;  %1844 = vmatpush.msk.msra.mxu1 %vm843_vm0, %v2065_v1  ;;  %v445_v6 = vld [vmem:[%s2952_s1 + $0x60] sm:$0xff]  ;;  %v2094_v7 = vld [vmem:[%s2952_s1 + $0x88] sm:$0xff]  ;;  %v444_v8 = vld [vmem:[%s2952_s1 + $0x58] sm:$0xff]  ;;  %s2104_s9 = scalar_lea.vmem %s2951_s0, %s1975_s4  ;;  %s2265_s16 = scalar_lea.vmem %s2954_s3, %s1843_s13  ;;  %vm1649_vm2 = vcmask 523264  }
   0xe   : > { %848 = vmatpush.msra.mxu0 %v447_v2  ;;  %1978 = vmatpush.msra.mxu2 %v447_v2  ;;  %v2109_v9 = vld [vmem:[%s2952_s1 + $0x80] sm:$0xff]  ;;  %v178_v10 = vld [vmem:[%s2104_s9 + $0x8] sm:$0xff]  ;;  %v443_v11 = vld [vmem:[%s2952_s1 + $0x50] sm:$0xff] }
   0xf   : > { %1979 = vmatpush.msra.mxu3 %v447_v2  ;;  %1260 = vmatpush.msra.mxu1 %v2073_v3  ;;  %v442_v12 = vld [vmem:[%s2952_s1 + $0x48] sm:$0xff]  ;;  %v441_v13 = vld [vmem:[%s2952_s1 + $0x40] sm:$0xff]  ;;  %v440_v14 = vld [vmem:[%s2952_s1 + $0x38] sm:$0xff] }
  0x10   : > { %849 = vmatpush.msra.mxu0 %v446_v4  ;;  %1980 = vmatpush.msra.mxu2 %v446_v4  ;;  %v180_v15 = vld [vmem:[%s2104_s9 + $0x18] sm:$0xff]  ;;  %v439_v16 = vld [vmem:[%s2952_s1 + $0x30] sm:$0xff]  ;;  %v438_v17 = vld [vmem:[%s2952_s1 + $0x28] sm:$0xff] }
  0x11   : > { %1981 = vmatpush.msra.mxu3 %v446_v4  ;;  %1261 = vmatpush.msra.mxu1 %v2083_v5  ;;  %v437_v18 = vld [vmem:[%s2952_s1 + $0x20] sm:$0xff]  ;;  %v436_v19 = vld [vmem:[%s2952_s1 + $0x18] sm:$0xff]  ;;  %v182_v20 = vld [vmem:[%s2104_s9 + $0x28] sm:$0xff] }
  0x12   : > { %850 = vmatpush.msra.mxu0 %v445_v6  ;;  %1982 = vmatpush.msra.mxu2 %v445_v6  ;;  %v435_v21 = vld [vmem:[%s2952_s1 + $0x10] sm:$0xff]  ;;  %v434_v22 = vld [vmem:[%s2952_s1 + $0x8] sm:$0xff]  ;;  %v433_v23 = vld [vmem:[%s2952_s1] sm:$0xff] }
  0x13   : > { %1983 = vmatpush.msra.mxu3 %v445_v6  ;;  %1262 = vmatpush.msra.mxu1 %v2094_v7  ;;  %v177_v24 = vld [vmem:[%s2104_s9] sm:$0xff]  ;;  %v303_v25 = vld [vmem:[%s2104_s9 + $0x3f0] sm:$0xff]  ;;  %v184_v27 = vld [vmem:[%s2104_s9 + $0x38] sm:$0xff] }
  0x14   : > { %851 = vmatpush.msra.mxu0 %v444_v8  ;;  %1984 = vmatpush.msra.mxu2 %v444_v8  ;;  %v431_v26 = vld [vmem:[%s2104_s9 + $0x7f0] sm:$0xff]  ;;  %v305_v29 = vld [vmem:[%s2104_s9 + $0x400] sm:$0xff]  ;;  %v310_v30 = vld [vmem:[%s2104_s9 + $0x428] sm:$0xff] }
  0x15   : > { %1985 = vmatpush.msra.mxu3 %v444_v8  ;;  %1263 = vmatpush.msra.mxu1 %v2109_v9  ;;  %v179_v28 = vld [vmem:[%s2104_s9 + $0x10] sm:$0xff]  ;;  %v186_v31 = vld [vmem:[%s2104_s9 + $0x48] sm:$0xff]  ;;  %v181_v32 = vld [vmem:[%s2104_s9 + $0x20] sm:$0xff] }
  0x16   : > { %1845 = vmatmul.msk.f32.vlgmr.msra.gmra.mxu1 %vm458_vm1, %v178_v10  ;;  %852 = vmatpush.msra.mxu0 %v443_v11  ;;  %v307_v33 = vld [vmem:[%s2104_s9 + $0x410] sm:$0xff]  ;;  %v312_v34 = vld [vmem:[%s2104_s9 + $0x438] sm:$0xff]  ;;  %v309_v37 = vld [vmem:[%s2104_s9 + $0x420] sm:$0xff] }
  0x17   : > { %1986 = vmatpush.msra.mxu2 %v443_v11  ;;  %1987 = vmatpush.msra.mxu3 %v443_v11  ;;  %v188_v35 = vld [vmem:[%s2104_s9 + $0x58] sm:$0xff]  ;;  %v183_v36 = vld [vmem:[%s2104_s9 + $0x30] sm:$0xff]  ;;  %v314_v38 = vld [vmem:[%s2104_s9 + $0x448] sm:$0xff] }
  0x18   : > { %853 = vmatpush.msra.mxu0 %v442_v12  ;;  %v190_v39 = vld [vmem:[%s2104_s9 + $0x68] sm:$0xff]  ;;  %v185_v40 = vld [vmem:[%s2104_s9 + $0x40] sm:$0xff]  ;;  %v311_v41 = vld [vmem:[%s2104_s9 + $0x430] sm:$0xff] }
  0x19   : > { %1988 = vmatpush.msra.mxu2 %v442_v12  ;;  %1989 = vmatpush.msra.mxu3 %v442_v12  ;;  %v316_v42 = vld [vmem:[%s2104_s9 + $0x458] sm:$0xff]  ;;  %v187_v44 = vld [vmem:[%s2104_s9 + $0x50] sm:$0xff]  ;;  %v313_v45 = vld [vmem:[%s2104_s9 + $0x440] sm:$0xff] }
  0x1a   : > { %854 = vmatpush.msra.mxu0 %v441_v13  ;;  %v192_v43 = vld [vmem:[%s2104_s9 + $0x78] sm:$0xff]  ;;  %v318_v46 = vld [vmem:[%s2104_s9 + $0x468] sm:$0xff]  ;;  %v189_v48 = vld [vmem:[%s2104_s9 + $0x60] sm:$0xff] }
  0x1b   : > { %1990 = vmatpush.msra.mxu2 %v441_v13  ;;  %1991 = vmatpush.msra.mxu3 %v441_v13  ;;  %v194_v47 = vld [vmem:[%s2104_s9 + $0x88] sm:$0xff]  ;;  %v315_v49 = vld [vmem:[%s2104_s9 + $0x450] sm:$0xff]  ;;  %v320_v50 = vld [vmem:[%s2104_s9 + $0x478] sm:$0xff] }
  0x1c   : > { %855 = vmatpush.msra.mxu0 %v440_v14  ;;  %v196_v51 = vld [vmem:[%s2104_s9 + $0x98] sm:$0xff]  ;;  %v191_v52 = vld [vmem:[%s2104_s9 + $0x70] sm:$0xff]  ;;  %v317_v53 = vld [vmem:[%s2104_s9 + $0x460] sm:$0xff] }
  0x1d   : > { %1992 = vmatpush.msra.mxu2 %v440_v14  ;;  %1993 = vmatpush.msra.mxu3 %v440_v14  ;;  %v322_v54 = vld [vmem:[%s2104_s9 + $0x488] sm:$0xff]  ;;  %v193_v56 = vld [vmem:[%s2104_s9 + $0x80] sm:$0xff]  ;;  %v319_v57 = vld [vmem:[%s2104_s9 + $0x470] sm:$0xff] }
  0x1e   : > { %1846 = vmatmul.msk.f32.gmra.mxu1 %vm458_vm1, %v180_v15  ;;  %856 = vmatpush.msra.mxu0 %v439_v16  ;;  %v198_v55 = vld [vmem:[%s2104_s9 + $0xa8] sm:$0xff]  ;;  %v324_v58 = vld [vmem:[%s2104_s9 + $0x498] sm:$0xff]  ;;  %v195_v60 = vld [vmem:[%s2104_s9 + $0x90] sm:$0xff] }
  0x1f   : > { %1994 = vmatpush.msra.mxu2 %v439_v16  ;;  %1995 = vmatpush.msra.mxu3 %v439_v16  ;;  %v200_v59 = vld [vmem:[%s2104_s9 + $0xb8] sm:$0xff]  ;;  %v321_v61 = vld [vmem:[%s2104_s9 + $0x480] sm:$0xff]  ;;  %v326_v62 = vld [vmem:[%s2104_s9 + $0x4a8] sm:$0xff] }
  0x20   : > { %857 = vmatpush.msra.mxu0 %v438_v17  ;;  %v202_v63 = vld [vmem:[%s2104_s9 + $0xc8] sm:$0xff]  ;;  %v197_v0 = vld [vmem:[%s2104_s9 + $0xa0] sm:$0xff]  ;;  %v328_v2 = vld [vmem:[%s2104_s9 + $0x4b8] sm:$0xff] }
  0x21   : > { %1996 = vmatpush.msra.mxu2 %v438_v17  ;;  %1997 = vmatpush.msra.mxu3 %v438_v17  ;;  %v199_v4 = vld [vmem:[%s2104_s9 + $0xb0] sm:$0xff]  ;;  %v330_v6 = vld [vmem:[%s2104_s9 + $0x4c8] sm:$0xff]  ;;  %v201_v8 = vld [vmem:[%s2104_s9 + $0xc0] sm:$0xff] }
  0x22   : > { %858 = vmatpush.msra.mxu0 %v437_v18  ;;  %v332_v10 = vld [vmem:[%s2104_s9 + $0x4d8] sm:$0xff]  ;;  %v203_v12 = vld [vmem:[%s2104_s9 + $0xd0] sm:$0xff]  ;;  %v329_v13 = vld [vmem:[%s2104_s9 + $0x4c0] sm:$0xff] }
  0x23   : > { %1998 = vmatpush.msra.mxu2 %v437_v18  ;;  %1999 = vmatpush.msra.mxu3 %v437_v18  ;;  %v208_v11 = vld [vmem:[%s2104_s9 + $0xf8] sm:$0xff]  ;;  %v334_v15 = vld [vmem:[%s2104_s9 + $0x4e8] sm:$0xff]  ;;  %v205_v17 = vld [vmem:[%s2104_s9 + $0xe0] sm:$0xff] }
  0x24   : > { %859 = vmatpush.msra.mxu0 %v436_v19  ;;  %v210_v16 = vld [vmem:[%s2104_s9 + $0x108] sm:$0xff]  ;;  %v331_v18 = vld [vmem:[%s2104_s9 + $0x4d0] sm:$0xff] }
  0x25   : > { %2000 = vmatpush.msra.mxu2 %v436_v19  ;;  %2001 = vmatpush.msra.mxu3 %v436_v19 }
  0x26   : > { %1847 = vmatmul.msk.f32.gmra.mxu1 %vm458_vm1, %v182_v20  ;;  %860 = vmatpush.msra.mxu0 %v435_v21  ;;  %v336_v20 = vld [vmem:[%s2104_s9 + $0x4f8] sm:$0xff] }
  0x27   : > { %2002 = vmatpush.msra.mxu2 %v435_v21  ;;  %2003 = vmatpush.msra.mxu3 %v435_v21  ;;  %v212_v21 = vld [vmem:[%s2104_s9 + $0x118] sm:$0xff] }
  0x28   : > { %861 = vmatpush.msra.mxu0 %v434_v22 }
  0x29   : > { %2004 = vmatpush.msra.mxu2 %v434_v22  ;;  %2005 = vmatpush.msra.mxu3 %v434_v22  ;;  %v207_v22 = vld [vmem:[%s2104_s9 + $0xf0] sm:$0xff] }
  0x2a   : > { %862 = vmatpush.msra.mxu0 %v433_v23 }
  0x2b   : > { %2006 = vmatpush.msra.mxu2 %v433_v23  ;;  %2007 = vmatpush.msra.mxu3 %v433_v23  ;;  %v333_v23 = vld [vmem:[%s2104_s9 + $0x4e0] sm:$0xff] }
  0x2c   : > { %863 = vmatmul.f32.vlgmr.msra.gmra.mxu0 %v177_v24  ;;  %1052 = vmatmul.f32.vlgmr.msra.gmra.mxu2 %v303_v25  ;;  %v338_v25 = vld [vmem:[%s2104_s9 + $0x508] sm:$0xff] }
  0x2d   : > { %2008 = vmatpush.msk.msrb.mxu3 %vm843_vm0, %v2065_v1  ;;  %v323_v1 = vld [vmem:[%s2104_s9 + $0x490] sm:$0xff] }
  0x2e   : > { %1244 = vmatmul.f32.vlgmr.msra.gmra.mxu3 %v431_v26  ;;  %1848 = vmatmul.msk.f32.gmra.mxu1 %vm458_vm1, %v184_v27  ;;  %v214_v26 = vld [vmem:[%s2104_s9 + $0x128] sm:$0xff]  ;;  %v2256_v27 = vld [vmem:[%s2953_s2] ss:$0 sm:$0xff] }
  0x2f   : > { %2009 = vmatpush.msrb.mxu3 %v2073_v3  ;;  %v204_v3 = vld [vmem:[%s2104_s9 + $0xd8] sm:$0xff] }
  0x31   : > { %2010 = vmatpush.msrb.mxu3 %v2083_v5  ;;  %v325_v5 = vld [vmem:[%s2104_s9 + $0x4a0] sm:$0xff] }
  0x33   : > { %2011 = vmatpush.msrb.mxu3 %v2094_v7  ;;  %v206_v7 = vld [vmem:[%s2104_s9 + $0xe8] sm:$0xff] }
  0x34   : > { %866 = vmatmul.f32.gmra.mxu0 %v179_v28  ;;  %1055 = vmatmul.f32.gmra.mxu2 %v305_v29  ;;  %v209_v29 = vld [vmem:[%s2104_s9 + $0x100] sm:$0xff] }
  0x35   : > { %2012 = vmatpush.msrb.mxu3 %v2109_v9  ;;  %v327_v9 = vld [vmem:[%s2104_s9 + $0x4b0] sm:$0xff] }
  0x36   : > { %1911 = vmatmul.msk.f32.vlgmr.msrb.gmra.mxu3 %vm458_vm1, %v310_v30  ;;  %1849 = vmatmul.msk.f32.gmra.mxu1 %vm458_vm1, %v186_v31  ;;  %v335_v30 = vld [vmem:[%s2104_s9 + $0x4f0] sm:$0xff] }
  0x3c   : > { %869 = vmatmul.f32.gmra.mxu0 %v181_v32  ;;  %1058 = vmatmul.f32.gmra.mxu2 %v307_v33  ;;  %v340_v33 = vld [vmem:[%s2104_s9 + $0x518] sm:$0xff] }
  0x3e   : > { %1912 = vmatmul.msk.f32.gmra.mxu3 %vm458_vm1, %v312_v34  ;;  %1850 = vmatmul.msk.f32.gmra.mxu1 %vm458_vm1, %v188_v35  ;;  %v216_v34 = vld [vmem:[%s2104_s9 + $0x138] sm:$0xff] }
  0x44   : > { %872 = vmatmul.f32.gmra.mxu0 %v183_v36  ;;  %1061 = vmatmul.f32.gmra.mxu2 %v309_v37 }
  0x46   : > { %1913 = vmatmul.msk.f32.gmra.mxu3 %vm458_vm1, %v314_v38  ;;  %1851 = vmatmul.msk.f32.gmra.mxu1 %vm458_vm1, %v190_v39  ;;  %v211_v39 = vld [vmem:[%s2104_s9 + $0x110] sm:$0xff] }
  0x4c   : > { %875 = vmatmul.f32.gmra.mxu0 %v185_v40  ;;  %1064 = vmatmul.f32.gmra.mxu2 %v311_v41  ;;  %v337_v40 = vld [vmem:[%s2104_s9 + $0x500] sm:$0xff] }
  0x4e   : > { %1914 = vmatmul.msk.f32.gmra.mxu3 %vm458_vm1, %v316_v42  ;;  %1852 = vmatmul.msk.f32.gmra.mxu1 %vm458_vm1, %v192_v43  ;;  %v342_v43 = vld [vmem:[%s2104_s9 + $0x528] sm:$0xff] }
  0x54   : > { %878 = vmatmul.f32.gmra.mxu0 %v187_v44  ;;  %1067 = vmatmul.f32.gmra.mxu2 %v313_v45  ;;  %v218_v44 = vld [vmem:[%s2104_s9 + $0x148] sm:$0xff] }
  0x56   : > { %1915 = vmatmul.msk.f32.gmra.mxu3 %vm458_vm1, %v318_v46  ;;  %1853 = vmatmul.msk.f32.gmra.mxu1 %vm458_vm1, %v194_v47 }
  0x5c   : > { %881 = vmatmul.f32.gmra.mxu0 %v189_v48  ;;  %1070 = vmatmul.f32.gmra.mxu2 %v315_v49  ;;  %v213_v49 = vld [vmem:[%s2104_s9 + $0x120] sm:$0xff] }
  0x5e   : > { %1916 = vmatmul.msk.f32.gmra.mxu3 %vm458_vm1, %v320_v50  ;;  %1854 = vmatmul.msk.f32.gmra.mxu1 %vm458_vm1, %v196_v51  ;;  %v339_v50 = vld [vmem:[%s2104_s9 + $0x510] sm:$0xff] }
  0x64   : > { %884 = vmatmul.f32.gmra.mxu0 %v191_v52  ;;  %1073 = vmatmul.f32.gmra.mxu2 %v317_v53  ;;  %v344_v53 = vld [vmem:[%s2104_s9 + $0x538] sm:$0xff] }
  0x66   : > { %1917 = vmatmul.msk.f32.gmra.mxu3 %vm458_vm1, %v322_v54  ;;  %1855 = vmatmul.msk.f32.gmra.mxu1 %vm458_vm1, %v198_v55  ;;  %v220_v54 = vld [vmem:[%s2104_s9 + $0x158] sm:$0xff] }
  0x6c   : > { %887 = vmatmul.f32.gmra.mxu0 %v193_v56  ;;  %1076 = vmatmul.f32.gmra.mxu2 %v319_v57 }
  0x6e   : > { %1918 = vmatmul.msk.f32.gmra.mxu3 %vm458_vm1, %v324_v58  ;;  %1856 = vmatmul.msk.f32.gmra.mxu1 %vm458_vm1, %v200_v59  ;;  %v215_v59 = vld [vmem:[%s2104_s9 + $0x130] sm:$0xff] }
  0x74   : > { %890 = vmatmul.f32.gmra.mxu0 %v195_v60  ;;  %1079 = vmatmul.f32.gmra.mxu2 %v321_v61  ;;  %v341_v60 = vld [vmem:[%s2104_s9 + $0x520] sm:$0xff] }
  0x76   : > { %1919 = vmatmul.msk.f32.gmra.mxu3 %vm458_vm1, %v326_v62  ;;  %1857 = vmatmul.msk.f32.gmra.mxu1 %vm458_vm1, %v202_v63  ;;  %v346_v63 = vld [vmem:[%s2104_s9 + $0x548] sm:$0xff] }
  0x7c   : > { %893 = vmatmul.f32.gmra.mxu0 %v197_v0  ;;  %1082 = vmatmul.f32.gmra.mxu2 %v323_v1  ;;  %v222_v0 = vld [vmem:[%s2104_s9 + $0x168] sm:$0xff] }
  0x7e   : > { %1920 = vmatmul.msk.f32.gmra.mxu3 %vm458_vm1, %v328_v2  ;;  %1858 = vmatmul.msk.f32.gmra.mxu1 %vm458_vm1, %v204_v3 }
  0x84   : > { %896 = vmatmul.f32.gmra.mxu0 %v199_v4  ;;  %1085 = vmatmul.f32.gmra.mxu2 %v325_v5 }
  0x86   : > { %1921 = vmatmul.msk.f32.gmra.mxu3 %vm458_vm1, %v330_v6  ;;  %1859 = vmatmul.msk.f32.gmra.mxu1 %vm458_vm1, %v206_v7  ;;  %v217_v6 = vld [vmem:[%s2104_s9 + $0x140] sm:$0xff]  ;;  %v343_v7 = vld [vmem:[%s2104_s9 + $0x530] sm:$0xff] }
  0x8c   : > { %899 = vmatmul.f32.gmra.mxu0 %v201_v8  ;;  %1088 = vmatmul.f32.gmra.mxu2 %v327_v9 }
  0x8e   : > { %1922 = vmatmul.msk.f32.gmra.mxu3 %vm458_vm1, %v332_v10  ;;  %1860 = vmatmul.msk.f32.gmra.mxu1 %vm458_vm1, %v208_v11  ;;  %v348_v11 = vld [vmem:[%s2104_s9 + $0x558] sm:$0xff] }
  0x93   : > { %v1265_v14 = vpop.f32.mrf.mxu1 }
  0x94   : > { %902 = vmatmul.f32.gmra.mxu0 %v203_v12  ;;  %1091 = vmatmul.f32.gmra.mxu2 %v329_v13  ;;  %v224_v12 = vld [vmem:[%s2104_s9 + $0x178] sm:$0xff] }
  0x96   : > { %1923 = vmatmul.msk.f32.gmra.mxu3 %vm458_vm1, %v334_v15  ;;  %1861 = vmatmul.msk.f32.gmra.mxu1 %vm458_vm1, %v210_v16 }
  0x9b   : > { %v1268_v19 = vpop.f32.mrf.mxu1 }
  0x9c   : > { %905 = vmatmul.f32.gmra.mxu0 %v205_v17  ;;  %1094 = vmatmul.f32.gmra.mxu2 %v331_v18  ;;  %v219_v18 = vld [vmem:[%s2104_s9 + $0x150] sm:$0xff] }
  0x9e   : > { %1924 = vmatmul.msk.f32.gmra.mxu3 %vm458_vm1, %v336_v20  ;;  %1862 = vmatmul.msk.f32.gmra.mxu1 %vm458_vm1, %v212_v21 }
  0xa3   : > { %v1271_v24 = vpop.f32.mrf.mxu1 }
  0xa4   : > { %908 = vmatmul.f32.gmra.mxu0 %v207_v22  ;;  %1097 = vmatmul.f32.gmra.mxu2 %v333_v23  ;;  %v350_v23 = vld [vmem:[%s2104_s9 + $0x568] sm:$0xff] }
  0xa6   : > { %1925 = vmatmul.msk.f32.gmra.mxu3 %vm458_vm1, %v338_v25  ;;  %1863 = vmatmul.msk.f32.gmra.mxu1 %vm458_vm1, %v214_v26 }
  0xa9   : > { %v864_v28 = vpop.f32.mrf.mxu0 }
  0xaa   : > { %v865_v31 = vadd.f32 %v2256_v27, %v864_v28 }
  0xab   : > { %v1274_v32 = vpop.f32.mrf.mxu1 }
  0xac   : > { %v1266_v35 = vadd.f32 %v1265_v14, %v865_v31  ;;  %911 = vmatmul.f32.gmra.mxu0 %v209_v29  ;;  %1100 = vmatmul.f32.gmra.mxu2 %v335_v30  ;;  %v221_v31 = vld [vmem:[%s2104_s9 + $0x160] sm:$0xff] }
  0xae   : > { %1650 = vst.msk [vmem:[%s2265_s16] sm:$0xff] %vm1649_vm2, %v1266_v35  ;;  %1926 = vmatmul.msk.f32.gmra.mxu3 %vm458_vm1, %v340_v33  ;;  %1864 = vmatmul.msk.f32.gmra.mxu1 %vm458_vm1, %v216_v34 }
  0xaf   : > { %v2273_v36 = vpop.f32.mrf.mxu2 }
  0xb1   : > { %v2275_v37 = vpop.f32.mrf.mxu3  ;;  %v867_v38 = vpop.f32.mrf.mxu0 }
  0xb2   : > { %v868_v41 = vadd.f32 %v2256_v27, %v867_v38  ;;  %v352_v38 = vld [vmem:[%s2104_s9 + $0x578] sm:$0xff] }
  0xb3   : > { %v1277_v42 = vpop.f32.mrf.mxu1 }
  0xb4   : > { %v1269_v45 = vadd.f32 %v1268_v19, %v868_v41  ;;  %914 = vmatmul.f32.gmra.mxu0 %v211_v39  ;;  %1103 = vmatmul.f32.gmra.mxu2 %v337_v40  ;;  %v345_v19 = vld [vmem:[%s2104_s9 + $0x540] sm:$0xff]  ;;  %v228_v39 = vld [vmem:[%s2104_s9 + $0x198] sm:$0xff] }
  0xb6   : > { %1651 = vst.msk [vmem:[%s2265_s16 + $0x8] sm:$0xff] %vm1649_vm2, %v1269_v45  ;;  %1927 = vmatmul.msk.f32.gmra.mxu3 %vm458_vm1, %v342_v43  ;;  %1865 = vmatmul.msk.f32.gmra.mxu1 %vm458_vm1, %v218_v44  ;;  %v223_v45 = vld [vmem:[%s2104_s9 + $0x170] sm:$0xff] }
  0xb7   : > { %v2286_v46 = vpop.f32.mrf.mxu2 }
  0xb9   : > { %v1463_v47 = vpop.f32.mrf.mxu3  ;;  %v870_v48 = vpop.f32.mrf.mxu0 }
  0xba   : > { %v871_v51 = vadd.f32 %v2256_v27, %v870_v48 }
  0xbb   : > { %v1280_v52 = vpop.f32.mrf.mxu1 }
  0xbc   : > { %v1272_v55 = vadd.f32 %v1271_v24, %v871_v51  ;;  %917 = vmatmul.f32.gmra.mxu0 %v213_v49  ;;  %1106 = vmatmul.f32.gmra.mxu2 %v339_v50  ;;  %v226_v24 = vld [vmem:[%s2104_s9 + $0x188] sm:$0xff] }
  0xbd   : > { %v354_v51 = vld [vmem:[%s2104_s9 + $0x588] sm:$0xff] }
  0xbe   : > { %1652 = vst.msk [vmem:[%s2265_s16 + $0x10] sm:$0xff] %vm1649_vm2, %v1272_v55  ;;  %1928 = vmatmul.msk.f32.gmra.mxu3 %vm458_vm1, %v344_v53  ;;  %1866 = vmatmul.msk.f32.gmra.mxu1 %vm458_vm1, %v220_v54 }
  0xbf   : > { %v2297_v56 = vpop.f32.mrf.mxu2 }
  0xc1   : > { %v1466_v57 = vpop.f32.mrf.mxu3  ;;  %v873_v58 = vpop.f32.mrf.mxu0 }
  0xc2   : > { %v874_v61 = vadd.f32 %v2256_v27, %v873_v58 }
  0xc3   : > { %v1283_v62 = vpop.f32.mrf.mxu1 }
  0xc4   : > { %v1275_v1 = vadd.f32 %v1274_v32, %v874_v61  ;;  %920 = vmatmul.f32.gmra.mxu0 %v215_v59  ;;  %1109 = vmatmul.f32.gmra.mxu2 %v341_v60  ;;  %v347_v32 = vld [vmem:[%s2104_s9 + $0x550] sm:$0xff]  ;;  %v225_v59 = vld [vmem:[%s2104_s9 + $0x180] sm:$0xff] }
  0xc5   : > { %v351_v60 = vld [vmem:[%s2104_s9 + $0x570] sm:$0xff] }
  0xc6   : > { %1653 = vst.msk [vmem:[%s2265_s16 + $0x18] sm:$0xff] %vm1649_vm2, %v1275_v1  ;;  %1929 = vmatmul.msk.f32.gmra.mxu3 %vm458_vm1, %v346_v63  ;;  %1867 = vmatmul.msk.f32.gmra.mxu1 %vm458_vm1, %v222_v0  ;;  %v356_v0 = vld [vmem:[%s2104_s9 + $0x598] sm:$0xff] }
  0xc7   : > { %v1062_v2 = vpop.f32.mrf.mxu2  ;;  %v232_v1 = vld [vmem:[%s2104_s9 + $0x1b8] sm:$0xff] }
  0xc8   : > { %v1063_v3 = vadd.f32 %v2256_v27, %v1062_v2 }
  0xc9   : > { %v1469_v4 = vpop.f32.mrf.mxu3  ;;  %v876_v5 = vpop.f32.mrf.mxu0 }
  0xca   : > { %v1464_v8 = vadd.f32 %v1463_v47, %v1063_v3  ;;  %v877_v9 = vadd.f32 %v2256_v27, %v876_v5  ;;  %v349_v47 = vld [vmem:[%s2104_s9 + $0x560] sm:$0xff] }
  0xcb   : > { %v1286_v10 = vpop.f32.mrf.mxu1 }
  0xcc   : > { %1716 = vst.msk [vmem:[%s2265_s16 + $0x210] sm:$0xff] %vm1649_vm2, %v1464_v8  ;;  %v1278_v13 = vadd.f32 %v1277_v42, %v877_v9  ;;  %923 = vmatmul.f32.gmra.mxu0 %v217_v6  ;;  %1112 = vmatmul.f32.gmra.mxu2 %v343_v7  ;;  %v227_v7 = vld [vmem:[%s2104_s9 + $0x190] sm:$0xff]  ;;  %v353_v8 = vld [vmem:[%s2104_s9 + $0x580] sm:$0xff] }
  0xce   : > { %1654 = vst.msk [vmem:[%s2265_s16 + $0x20] sm:$0xff] %vm1649_vm2, %v1278_v13  ;;  %1930 = vmatmul.msk.f32.gmra.mxu3 %vm458_vm1, %v348_v11  ;;  %1868 = vmatmul.msk.f32.gmra.mxu1 %vm458_vm1, %v224_v12  ;;  %v358_v12 = vld [vmem:[%s2104_s9 + $0x5a8] sm:$0xff] }
  0xcf   : > { %v1065_v14 = vpop.f32.mrf.mxu2  ;;  %v234_v13 = vld [vmem:[%s2104_s9 + $0x1c8] sm:$0xff] }
  0xd0   : > { %v1066_v15 = vadd.f32 %v2256_v27, %v1065_v14 }
  0xd1   : > { %v1472_v16 = vpop.f32.mrf.mxu3  ;;  %v879_v17 = vpop.f32.mrf.mxu0 }
  0xd2   : > { %v1467_v20 = vadd.f32 %v1466_v57, %v1066_v15  ;;  %v880_v21 = vadd.f32 %v2256_v27, %v879_v17 }
  0xd3   : > { %v1289_v22 = vpop.f32.mrf.mxu1 }
  0xd4   : > { %1717 = vst.msk [vmem:[%s2265_s16 + $0x218] sm:$0xff] %vm1649_vm2, %v1467_v20  ;;  %v1281_v25 = vadd.f32 %v1280_v52, %v880_v21  ;;  %926 = vmatmul.f32.gmra.mxu0 %v219_v18  ;;  %1115 = vmatmul.f32.gmra.mxu2 %v345_v19  ;;  %v230_v52 = vld [vmem:[%s2104_s9 + $0x1a8] sm:$0xff]  ;;  %v229_v19 = vld [vmem:[%s2104_s9 + $0x1a0] sm:$0xff]  ;;  %v355_v20 = vld [vmem:[%s2104_s9 + $0x590] sm:$0xff] }
  0xd6   : > { %1655 = vst.msk [vmem:[%s2265_s16 + $0x28] sm:$0xff] %vm1649_vm2, %v1281_v25  ;;  %1931 = vmatmul.msk.f32.gmra.mxu3 %vm458_vm1, %v350_v23  ;;  %1869 = vmatmul.msk.f32.gmra.mxu1 %vm458_vm1, %v226_v24  ;;  %v360_v24 = vld [vmem:[%s2104_s9 + $0x5b8] sm:$0xff] }
  0xd7   : > { %v1068_v26 = vpop.f32.mrf.mxu2  ;;  %v236_v25 = vld [vmem:[%s2104_s9 + $0x1d8] sm:$0xff] }
  0xd8   : > { %v1069_v28 = vadd.f32 %v2256_v27, %v1068_v26 }
  0xd9   : > { %v1475_v29 = vpop.f32.mrf.mxu3  ;;  %v882_v30 = vpop.f32.mrf.mxu0 }
  0xda   : > { %v1470_v33 = vadd.f32 %v1469_v4, %v1069_v28  ;;  %v883_v34 = vadd.f32 %v2256_v27, %v882_v30 }
  0xdb   : > { %v1292_v35 = vpop.f32.mrf.mxu1 }
  0xdc   : > { %1718 = vst.msk [vmem:[%s2265_s16 + $0x220] sm:$0xff] %vm1649_vm2, %v1470_v33  ;;  %v1284_v40 = vadd.f32 %v1283_v62, %v883_v34  ;;  %929 = vmatmul.f32.gmra.mxu0 %v221_v31  ;;  %1118 = vmatmul.f32.gmra.mxu2 %v347_v32  ;;  %v231_v32 = vld [vmem:[%s2104_s9 + $0x1b0] sm:$0xff]  ;;  %v357_v33 = vld [vmem:[%s2104_s9 + $0x5a0] sm:$0xff] }
  0xde   : > { %1656 = vst.msk [vmem:[%s2265_s16 + $0x30] sm:$0xff] %vm1649_vm2, %v1284_v40  ;;  %1932 = vmatmul.msk.f32.gmra.mxu3 %vm458_vm1, %v352_v38  ;;  %1870 = vmatmul.msk.f32.gmra.mxu1 %vm458_vm1, %v228_v39  ;;  %v362_v39 = vld [vmem:[%s2104_s9 + $0x5c8] sm:$0xff] }
  0xdf   : > { %v1071_v41 = vpop.f32.mrf.mxu2  ;;  %v238_v40 = vld [vmem:[%s2104_s9 + $0x1e8] sm:$0xff] }
  0xe0   : > { %v1072_v42 = vadd.f32 %v2256_v27, %v1071_v41 }
  0xe1   : > { %v1478_v43 = vpop.f32.mrf.mxu3  ;;  %v885_v44 = vpop.f32.mrf.mxu0 }
  0xe2   : > { %v1473_v48 = vadd.f32 %v1472_v16, %v1072_v42  ;;  %v886_v49 = vadd.f32 %v2256_v27, %v885_v44 }
  0xe3   : > { %v1295_v50 = vpop.f32.mrf.mxu1 }
  0xe4   : > { %1719 = vst.msk [vmem:[%s2265_s16 + $0x228] sm:$0xff] %vm1649_vm2, %v1473_v48  ;;  %v1287_v53 = vadd.f32 %v1286_v10, %v886_v49  ;;  %932 = vmatmul.f32.gmra.mxu0 %v223_v45  ;;  %1121 = vmatmul.f32.gmra.mxu2 %v349_v47  ;;  %v233_v47 = vld [vmem:[%s2104_s9 + $0x1c0] sm:$0xff]  ;;  %v359_v48 = vld [vmem:[%s2104_s9 + $0x5b0] sm:$0xff] }
  0xe6   : > { %1657 = vst.msk [vmem:[%s2265_s16 + $0x38] sm:$0xff] %vm1649_vm2, %v1287_v53  ;;  %1933 = vmatmul.msk.f32.gmra.mxu3 %vm458_vm1, %v354_v51  ;;  %1871 = vmatmul.msk.f32.gmra.mxu1 %vm458_vm1, %v230_v52  ;;  %v364_v52 = vld [vmem:[%s2104_s9 + $0x5d8] sm:$0xff] }
  0xe7   : > { %v1074_v54 = vpop.f32.mrf.mxu2  ;;  %v240_v53 = vld [vmem:[%s2104_s9 + $0x1f8] sm:$0xff] }
  0xe8   : > { %v1075_v55 = vadd.f32 %v2256_v27, %v1074_v54 }
  0xe9   : > { %v1481_v57 = vpop.f32.mrf.mxu3  ;;  %v888_v58 = vpop.f32.mrf.mxu0 }
  0xea   : > { %v1476_v61 = vadd.f32 %v1475_v29, %v1075_v55  ;;  %v889_v62 = vadd.f32 %v2256_v27, %v888_v58 }
  0xeb   : > { %v1298_v63 = vpop.f32.mrf.mxu1 }
  0xec   : > { %1720 = vst.msk [vmem:[%s2265_s16 + $0x230] sm:$0xff] %vm1649_vm2, %v1476_v61  ;;  %v1290_v2 = vadd.f32 %v1289_v22, %v889_v62  ;;  %935 = vmatmul.f32.gmra.mxu0 %v225_v59  ;;  %1124 = vmatmul.f32.gmra.mxu2 %v351_v60  ;;  %v235_v60 = vld [vmem:[%s2104_s9 + $0x1d0] sm:$0xff]  ;;  %v361_v61 = vld [vmem:[%s2104_s9 + $0x5c0] sm:$0xff] }
  0xee   : > { %1658 = vst.msk [vmem:[%s2265_s16 + $0x40] sm:$0xff] %vm1649_vm2, %v1290_v2  ;;  %1934 = vmatmul.msk.f32.gmra.mxu3 %vm458_vm1, %v356_v0  ;;  %1872 = vmatmul.msk.f32.gmra.mxu1 %vm458_vm1, %v232_v1  ;;  %v366_v1 = vld [vmem:[%s2104_s9 + $0x5e8] sm:$0xff] }
  0xef   : > { %v1077_v3 = vpop.f32.mrf.mxu2  ;;  %v242_v2 = vld [vmem:[%s2104_s9 + $0x208] sm:$0xff] }
  0xf0   : > { %v1078_v4 = vadd.f32 %v2256_v27, %v1077_v3 }
  0xf1   : > { %v1484_v5 = vpop.f32.mrf.mxu3  ;;  %v891_v6 = vpop.f32.mrf.mxu0 }
  0xf2   : > { %v1479_v9 = vadd.f32 %v1478_v43, %v1078_v4  ;;  %v892_v10 = vadd.f32 %v2256_v27, %v891_v6 }
  0xf3   : > { %v1301_v11 = vpop.f32.mrf.mxu1 }
  0xf4   : > { %1721 = vst.msk [vmem:[%s2265_s16 + $0x238] sm:$0xff] %vm1649_vm2, %v1479_v9  ;;  %v1293_v14 = vadd.f32 %v1292_v35, %v892_v10  ;;  %938 = vmatmul.f32.gmra.mxu0 %v227_v7  ;;  %1127 = vmatmul.f32.gmra.mxu2 %v353_v8  ;;  %v237_v8 = vld [vmem:[%s2104_s9 + $0x1e0] sm:$0xff]  ;;  %v363_v9 = vld [vmem:[%s2104_s9 + $0x5d0] sm:$0xff] }
  0xf6   : > { %1659 = vst.msk [vmem:[%s2265_s16 + $0x48] sm:$0xff] %vm1649_vm2, %v1293_v14  ;;  %1935 = vmatmul.msk.f32.gmra.mxu3 %vm458_vm1, %v358_v12  ;;  %1873 = vmatmul.msk.f32.gmra.mxu1 %vm458_vm1, %v234_v13  ;;  %v368_v13 = vld [vmem:[%s2104_s9 + $0x5f8] sm:$0xff] }
  0xf7   : > { %v1080_v15 = vpop.f32.mrf.mxu2  ;;  %v244_v14 = vld [vmem:[%s2104_s9 + $0x218] sm:$0xff] }
  0xf8   : > { %v1081_v16 = vadd.f32 %v2256_v27, %v1080_v15 }
  0xf9   : > { %v1487_v17 = vpop.f32.mrf.mxu3  ;;  %v894_v18 = vpop.f32.mrf.mxu0 }
  0xfa   : > { %v1482_v21 = vadd.f32 %v1481_v57, %v1081_v16  ;;  %v895_v22 = vadd.f32 %v2256_v27, %v894_v18 }
  0xfb   : > { %v1304_v23 = vpop.f32.mrf.mxu1 }
  0xfc   : > { %1722 = vst.msk [vmem:[%s2265_s16 + $0x240] sm:$0xff] %vm1649_vm2, %v1482_v21  ;;  %v1296_v26 = vadd.f32 %v1295_v50, %v895_v22  ;;  %941 = vmatmul.f32.gmra.mxu0 %v229_v19  ;;  %1130 = vmatmul.f32.gmra.mxu2 %v355_v20  ;;  %v239_v20 = vld [vmem:[%s2104_s9 + $0x1f0] sm:$0xff]  ;;  %v365_v21 = vld [vmem:[%s2104_s9 + $0x5e0] sm:$0xff] }
  0xfe   : > { %1660 = vst.msk [vmem:[%s2265_s16 + $0x50] sm:$0xff] %vm1649_vm2, %v1296_v26  ;;  %1936 = vmatmul.msk.f32.gmra.mxu3 %vm458_vm1, %v360_v24  ;;  %1874 = vmatmul.msk.f32.gmra.mxu1 %vm458_vm1, %v236_v25  ;;  %v370_v25 = vld [vmem:[%s2104_s9 + $0x608] sm:$0xff] }
  0xff   : > { %v1083_v28 = vpop.f32.mrf.mxu2  ;;  %v246_v26 = vld [vmem:[%s2104_s9 + $0x228] sm:$0xff] }
 0x100   : > { %v1084_v29 = vadd.f32 %v2256_v27, %v1083_v28 }
 0x101   : > { %v1490_v30 = vpop.f32.mrf.mxu3  ;;  %v897_v31 = vpop.f32.mrf.mxu0 }
 0x102   : > { %v1485_v34 = vadd.f32 %v1484_v5, %v1084_v29  ;;  %v898_v35 = vadd.f32 %v2256_v27, %v897_v31 }
 0x103   : > { %v1307_v38 = vpop.f32.mrf.mxu1 }
 0x104   : > { %1723 = vst.msk [vmem:[%s2265_s16 + $0x248] sm:$0xff] %vm1649_vm2, %v1485_v34  ;;  %v1299_v41 = vadd.f32 %v1298_v63, %v898_v35  ;;  %944 = vmatmul.f32.gmra.mxu0 %v231_v32  ;;  %1133 = vmatmul.f32.gmra.mxu2 %v357_v33  ;;  %v241_v33 = vld [vmem:[%s2104_s9 + $0x200] sm:$0xff]  ;;  %v367_v34 = vld [vmem:[%s2104_s9 + $0x5f0] sm:$0xff] }
 0x106   : > { %1661 = vst.msk [vmem:[%s2265_s16 + $0x58] sm:$0xff] %vm1649_vm2, %v1299_v41  ;;  %1937 = vmatmul.msk.f32.gmra.mxu3 %vm458_vm1, %v362_v39  ;;  %1875 = vmatmul.msk.f32.gmra.mxu1 %vm458_vm1, %v238_v40  ;;  %v372_v40 = vld [vmem:[%s2104_s9 + $0x618] sm:$0xff] }
 0x107   : > { %v1086_v42 = vpop.f32.mrf.mxu2  ;;  %v248_v41 = vld [vmem:[%s2104_s9 + $0x238] sm:$0xff] }
 0x108   : > { %v1087_v43 = vadd.f32 %v2256_v27, %v1086_v42 }
 0x109   : > { %v1493_v44 = vpop.f32.mrf.mxu3  ;;  %v900_v45 = vpop.f32.mrf.mxu0 }
 0x10a   : > { %v1488_v49 = vadd.f32 %v1487_v17, %v1087_v43  ;;  %v901_v50 = vadd.f32 %v2256_v27, %v900_v45 }
 0x10b   : > { %v1310_v51 = vpop.f32.mrf.mxu1 }
 0x10c   : > { %1724 = vst.msk [vmem:[%s2265_s16 + $0x250] sm:$0xff] %vm1649_vm2, %v1488_v49  ;;  %v1302_v54 = vadd.f32 %v1301_v11, %v901_v50  ;;  %947 = vmatmul.f32.gmra.mxu0 %v233_v47  ;;  %1136 = vmatmul.f32.gmra.mxu2 %v359_v48  ;;  %v243_v48 = vld [vmem:[%s2104_s9 + $0x210] sm:$0xff]  ;;  %v369_v49 = vld [vmem:[%s2104_s9 + $0x600] sm:$0xff] }
 0x10e   : > { %1662 = vst.msk [vmem:[%s2265_s16 + $0x60] sm:$0xff] %vm1649_vm2, %v1302_v54  ;;  %1938 = vmatmul.msk.f32.gmra.mxu3 %vm458_vm1, %v364_v52  ;;  %1876 = vmatmul.msk.f32.gmra.mxu1 %vm458_vm1, %v240_v53  ;;  %v374_v53 = vld [vmem:[%s2104_s9 + $0x628] sm:$0xff] }
 0x10f   : > { %v1089_v55 = vpop.f32.mrf.mxu2  ;;  %v250_v54 = vld [vmem:[%s2104_s9 + $0x248] sm:$0xff] }
 0x110   : > { %v1090_v57 = vadd.f32 %v2256_v27, %v1089_v55 }
 0x111   : > { %v1496_v58 = vpop.f32.mrf.mxu3  ;;  %v903_v59 = vpop.f32.mrf.mxu0 }
 0x112   : > { %v1491_v62 = vadd.f32 %v1490_v30, %v1090_v57  ;;  %v904_v63 = vadd.f32 %v2256_v27, %v903_v59 }
 0x113   : > { %v1313_v0 = vpop.f32.mrf.mxu1 }
 0x114   : > { %1725 = vst.msk [vmem:[%s2265_s16 + $0x258] sm:$0xff] %vm1649_vm2, %v1491_v62  ;;  %v1305_v3 = vadd.f32 %v1304_v23, %v904_v63  ;;  %950 = vmatmul.f32.gmra.mxu0 %v235_v60  ;;  %1139 = vmatmul.f32.gmra.mxu2 %v361_v61  ;;  %v245_v61 = vld [vmem:[%s2104_s9 + $0x220] sm:$0xff]  ;;  %v371_v62 = vld [vmem:[%s2104_s9 + $0x610] sm:$0xff] }
 0x116   : > { %1663 = vst.msk [vmem:[%s2265_s16 + $0x68] sm:$0xff] %vm1649_vm2, %v1305_v3  ;;  %1939 = vmatmul.msk.f32.gmra.mxu3 %vm458_vm1, %v366_v1  ;;  %1877 = vmatmul.msk.f32.gmra.mxu1 %vm458_vm1, %v242_v2  ;;  %v376_v2 = vld [vmem:[%s2104_s9 + $0x638] sm:$0xff] }
 0x117   : > { %v1092_v4 = vpop.f32.mrf.mxu2  ;;  %v252_v3 = vld [vmem:[%s2104_s9 + $0x258] sm:$0xff] }
 0x118   : > { %v1093_v5 = vadd.f32 %v2256_v27, %v1092_v4 }
 0x119   : > { %v1499_v6 = vpop.f32.mrf.mxu3  ;;  %v906_v7 = vpop.f32.mrf.mxu0 }
 0x11a   : > { %v1494_v10 = vadd.f32 %v1493_v44, %v1093_v5  ;;  %v907_v11 = vadd.f32 %v2256_v27, %v906_v7 }
 0x11b   : > { %v1316_v12 = vpop.f32.mrf.mxu1 }
 0x11c   : > { %1726 = vst.msk [vmem:[%s2265_s16 + $0x260] sm:$0xff] %vm1649_vm2, %v1494_v10  ;;  %v1308_v15 = vadd.f32 %v1307_v38, %v907_v11  ;;  %953 = vmatmul.f32.gmra.mxu0 %v237_v8  ;;  %1142 = vmatmul.f32.gmra.mxu2 %v363_v9  ;;  %v247_v9 = vld [vmem:[%s2104_s9 + $0x230] sm:$0xff]  ;;  %v373_v10 = vld [vmem:[%s2104_s9 + $0x620] sm:$0xff] }
 0x11e   : > { %1664 = vst.msk [vmem:[%s2265_s16 + $0x70] sm:$0xff] %vm1649_vm2, %v1308_v15  ;;  %1940 = vmatmul.msk.f32.gmra.mxu3 %vm458_vm1, %v368_v13  ;;  %1878 = vmatmul.msk.f32.gmra.mxu1 %vm458_vm1, %v244_v14  ;;  %v378_v14 = vld [vmem:[%s2104_s9 + $0x648] sm:$0xff] }
 0x11f   : > { %v1095_v16 = vpop.f32.mrf.mxu2  ;;  %v254_v15 = vld [vmem:[%s2104_s9 + $0x268] sm:$0xff] }
 0x120   : > { %v1096_v17 = vadd.f32 %v2256_v27, %v1095_v16 }
 0x121   : > { %v1502_v18 = vpop.f32.mrf.mxu3  ;;  %v909_v19 = vpop.f32.mrf.mxu0 }
 0x122   : > { %v1497_v22 = vadd.f32 %v1496_v58, %v1096_v17  ;;  %v910_v23 = vadd.f32 %v2256_v27, %v909_v19 }
 0x123   : > { %v1319_v24 = vpop.f32.mrf.mxu1 }
 0x124   : > { %1727 = vst.msk [vmem:[%s2265_s16 + $0x268] sm:$0xff] %vm1649_vm2, %v1497_v22  ;;  %v1311_v28 = vadd.f32 %v1310_v51, %v910_v23  ;;  %956 = vmatmul.f32.gmra.mxu0 %v239_v20  ;;  %1145 = vmatmul.f32.gmra.mxu2 %v365_v21  ;;  %v249_v21 = vld [vmem:[%s2104_s9 + $0x240] sm:$0xff]  ;;  %v375_v22 = vld [vmem:[%s2104_s9 + $0x630] sm:$0xff] }
 0x126   : > { %1665 = vst.msk [vmem:[%s2265_s16 + $0x78] sm:$0xff] %vm1649_vm2, %v1311_v28  ;;  %1941 = vmatmul.msk.f32.gmra.mxu3 %vm458_vm1, %v370_v25  ;;  %1879 = vmatmul.msk.f32.gmra.mxu1 %vm458_vm1, %v246_v26  ;;  %v380_v26 = vld [vmem:[%s2104_s9 + $0x658] sm:$0xff] }
 0x127   : > { %v1098_v29 = vpop.f32.mrf.mxu2  ;;  %v256_v28 = vld [vmem:[%s2104_s9 + $0x278] sm:$0xff] }
 0x128   : > { %v1099_v30 = vadd.f32 %v2256_v27, %v1098_v29 }
 0x129   : > { %v1505_v31 = vpop.f32.mrf.mxu3  ;;  %v912_v32 = vpop.f32.mrf.mxu0 }
 0x12a   : > { %v1500_v35 = vadd.f32 %v1499_v6, %v1099_v30  ;;  %v913_v38 = vadd.f32 %v2256_v27, %v912_v32 }
 0x12b   : > { %v1322_v39 = vpop.f32.mrf.mxu1 }
 0x12c   : > { %1728 = vst.msk [vmem:[%s2265_s16 + $0x270] sm:$0xff] %vm1649_vm2, %v1500_v35  ;;  %v1314_v42 = vadd.f32 %v1313_v0, %v913_v38  ;;  %959 = vmatmul.f32.gmra.mxu0 %v241_v33  ;;  %1148 = vmatmul.f32.gmra.mxu2 %v367_v34  ;;  %v251_v34 = vld [vmem:[%s2104_s9 + $0x250] sm:$0xff]  ;;  %v377_v35 = vld [vmem:[%s2104_s9 + $0x640] sm:$0xff] }
 0x12e   : > { %1666 = vst.msk [vmem:[%s2265_s16 + $0x80] sm:$0xff] %vm1649_vm2, %v1314_v42  ;;  %1942 = vmatmul.msk.f32.gmra.mxu3 %vm458_vm1, %v372_v40  ;;  %1880 = vmatmul.msk.f32.gmra.mxu1 %vm458_vm1, %v248_v41  ;;  %v382_v41 = vld [vmem:[%s2104_s9 + $0x668] sm:$0xff] }
 0x12f   : > { %v1101_v43 = vpop.f32.mrf.mxu2  ;;  %v258_v42 = vld [vmem:[%s2104_s9 + $0x288] sm:$0xff] }
 0x130   : > { %v1102_v44 = vadd.f32 %v2256_v27, %v1101_v43 }
 0x131   : > { %v1508_v45 = vpop.f32.mrf.mxu3  ;;  %v915_v47 = vpop.f32.mrf.mxu0 }
 0x132   : > { %v1503_v50 = vadd.f32 %v1502_v18, %v1102_v44  ;;  %v916_v51 = vadd.f32 %v2256_v27, %v915_v47 }
 0x133   : > { %v1325_v52 = vpop.f32.mrf.mxu1 }
 0x134   : > { %1729 = vst.msk [vmem:[%s2265_s16 + $0x278] sm:$0xff] %vm1649_vm2, %v1503_v50  ;;  %v1317_v55 = vadd.f32 %v1316_v12, %v916_v51  ;;  %962 = vmatmul.f32.gmra.mxu0 %v243_v48  ;;  %1151 = vmatmul.f32.gmra.mxu2 %v369_v49  ;;  %v253_v49 = vld [vmem:[%s2104_s9 + $0x260] sm:$0xff]  ;;  %v379_v50 = vld [vmem:[%s2104_s9 + $0x650] sm:$0xff] }
 0x136   : > { %1667 = vst.msk [vmem:[%s2265_s16 + $0x88] sm:$0xff] %vm1649_vm2, %v1317_v55  ;;  %1943 = vmatmul.msk.f32.gmra.mxu3 %vm458_vm1, %v374_v53  ;;  %1881 = vmatmul.msk.f32.gmra.mxu1 %vm458_vm1, %v250_v54  ;;  %v384_v54 = vld [vmem:[%s2104_s9 + $0x678] sm:$0xff] }
 0x137   : > { %v1104_v57 = vpop.f32.mrf.mxu2  ;;  %v260_v55 = vld [vmem:[%s2104_s9 + $0x298] sm:$0xff] }
 0x138   : > { %v1105_v58 = vadd.f32 %v2256_v27, %v1104_v57 }
 0x139   : > { %v1511_v59 = vpop.f32.mrf.mxu3  ;;  %v918_v60 = vpop.f32.mrf.mxu0 }
 0x13a   : > { %v1506_v63 = vadd.f32 %v1505_v31, %v1105_v58  ;;  %v919_v0 = vadd.f32 %v2256_v27, %v918_v60 }
 0x13b   : > { %v1328_v1 = vpop.f32.mrf.mxu1 }
 0x13c   : > { %1730 = vst.msk [vmem:[%s2265_s16 + $0x280] sm:$0xff] %vm1649_vm2, %v1506_v63  ;;  %v1320_v4 = vadd.f32 %v1319_v24, %v919_v0  ;;  %965 = vmatmul.f32.gmra.mxu0 %v245_v61  ;;  %1154 = vmatmul.f32.gmra.mxu2 %v371_v62  ;;  %v255_v62 = vld [vmem:[%s2104_s9 + $0x270] sm:$0xff]  ;;  %v381_v63 = vld [vmem:[%s2104_s9 + $0x660] sm:$0xff] }
 0x13e   : > { %1668 = vst.msk [vmem:[%s2265_s16 + $0x90] sm:$0xff] %vm1649_vm2, %v1320_v4  ;;  %1944 = vmatmul.msk.f32.gmra.mxu3 %vm458_vm1, %v376_v2  ;;  %1882 = vmatmul.msk.f32.gmra.mxu1 %vm458_vm1, %v252_v3  ;;  %v386_v3 = vld [vmem:[%s2104_s9 + $0x688] sm:$0xff] }
 0x13f   : > { %v1107_v5 = vpop.f32.mrf.mxu2  ;;  %v262_v4 = vld [vmem:[%s2104_s9 + $0x2a8] sm:$0xff] }
 0x140   : > { %v1108_v6 = vadd.f32 %v2256_v27, %v1107_v5 }
 0x141   : > { %v1514_v7 = vpop.f32.mrf.mxu3  ;;  %v921_v8 = vpop.f32.mrf.mxu0 }
 0x142   : > { %v1509_v11 = vadd.f32 %v1508_v45, %v1108_v6  ;;  %v922_v12 = vadd.f32 %v2256_v27, %v921_v8 }
 0x143   : > { %v1331_v13 = vpop.f32.mrf.mxu1 }
 0x144   : > { %1731 = vst.msk [vmem:[%s2265_s16 + $0x288] sm:$0xff] %vm1649_vm2, %v1509_v11  ;;  %v1323_v16 = vadd.f32 %v1322_v39, %v922_v12  ;;  %968 = vmatmul.f32.gmra.mxu0 %v247_v9  ;;  %1157 = vmatmul.f32.gmra.mxu2 %v373_v10  ;;  %v257_v10 = vld [vmem:[%s2104_s9 + $0x280] sm:$0xff]  ;;  %v383_v11 = vld [vmem:[%s2104_s9 + $0x670] sm:$0xff] }
 0x146   : > { %1669 = vst.msk [vmem:[%s2265_s16 + $0x98] sm:$0xff] %vm1649_vm2, %v1323_v16  ;;  %1945 = vmatmul.msk.f32.gmra.mxu3 %vm458_vm1, %v378_v14  ;;  %1883 = vmatmul.msk.f32.gmra.mxu1 %vm458_vm1, %v254_v15  ;;  %v388_v15 = vld [vmem:[%s2104_s9 + $0x698] sm:$0xff] }
 0x147   : > { %v1110_v17 = vpop.f32.mrf.mxu2  ;;  %v264_v16 = vld [vmem:[%s2104_s9 + $0x2b8] sm:$0xff] }
 0x148   : > { %v1111_v18 = vadd.f32 %v2256_v27, %v1110_v17 }
 0x149   : > { %v1517_v19 = vpop.f32.mrf.mxu3  ;;  %v924_v20 = vpop.f32.mrf.mxu0 }
 0x14a   : > { %v1512_v23 = vadd.f32 %v1511_v59, %v1111_v18  ;;  %v925_v24 = vadd.f32 %v2256_v27, %v924_v20 }
 0x14b   : > { %v1334_v25 = vpop.f32.mrf.mxu1 }
 0x14c   : > { %1732 = vst.msk [vmem:[%s2265_s16 + $0x290] sm:$0xff] %vm1649_vm2, %v1512_v23  ;;  %v1326_v29 = vadd.f32 %v1325_v52, %v925_v24  ;;  %971 = vmatmul.f32.gmra.mxu0 %v249_v21  ;;  %1160 = vmatmul.f32.gmra.mxu2 %v375_v22  ;;  %v259_v22 = vld [vmem:[%s2104_s9 + $0x290] sm:$0xff]  ;;  %v385_v23 = vld [vmem:[%s2104_s9 + $0x680] sm:$0xff] }
 0x14e   : > { %1670 = vst.msk [vmem:[%s2265_s16 + $0xa0] sm:$0xff] %vm1649_vm2, %v1326_v29  ;;  %1946 = vmatmul.msk.f32.gmra.mxu3 %vm458_vm1, %v380_v26  ;;  %1884 = vmatmul.msk.f32.gmra.mxu1 %vm458_vm1, %v256_v28  ;;  %v390_v28 = vld [vmem:[%s2104_s9 + $0x6a8] sm:$0xff] }
 0x14f   : > { %v1113_v30 = vpop.f32.mrf.mxu2  ;;  %v266_v29 = vld [vmem:[%s2104_s9 + $0x2c8] sm:$0xff] }
 0x150   : > { %v1114_v31 = vadd.f32 %v2256_v27, %v1113_v30 }
 0x151   : > { %v1520_v32 = vpop.f32.mrf.mxu3  ;;  %v927_v33 = vpop.f32.mrf.mxu0 }
 0x152   : > { %v1515_v38 = vadd.f32 %v1514_v7, %v1114_v31  ;;  %v928_v39 = vadd.f32 %v2256_v27, %v927_v33 }
 0x153   : > { %v1337_v40 = vpop.f32.mrf.mxu1 }
 0x154   : > { %1733 = vst.msk [vmem:[%s2265_s16 + $0x298] sm:$0xff] %vm1649_vm2, %v1515_v38  ;;  %v1329_v43 = vadd.f32 %v1328_v1, %v928_v39  ;;  %974 = vmatmul.f32.gmra.mxu0 %v251_v34  ;;  %1163 = vmatmul.f32.gmra.mxu2 %v377_v35  ;;  %v261_v35 = vld [vmem:[%s2104_s9 + $0x2a0] sm:$0xff]  ;;  %v387_v38 = vld [vmem:[%s2104_s9 + $0x690] sm:$0xff] }
 0x156   : > { %1671 = vst.msk [vmem:[%s2265_s16 + $0xa8] sm:$0xff] %vm1649_vm2, %v1329_v43  ;;  %1947 = vmatmul.msk.f32.gmra.mxu3 %vm458_vm1, %v382_v41  ;;  %1885 = vmatmul.msk.f32.gmra.mxu1 %vm458_vm1, %v258_v42  ;;  %v392_v42 = vld [vmem:[%s2104_s9 + $0x6b8] sm:$0xff] }
 0x157   : > { %v1116_v44 = vpop.f32.mrf.mxu2  ;;  %v268_v43 = vld [vmem:[%s2104_s9 + $0x2d8] sm:$0xff] }
 0x158   : > { %v1117_v45 = vadd.f32 %v2256_v27, %v1116_v44 }
 0x159   : > { %v1523_v47 = vpop.f32.mrf.mxu3  ;;  %v930_v48 = vpop.f32.mrf.mxu0 }
 0x15a   : > { %v1518_v51 = vadd.f32 %v1517_v19, %v1117_v45  ;;  %v931_v52 = vadd.f32 %v2256_v27, %v930_v48 }
 0x15b   : > { %v1340_v53 = vpop.f32.mrf.mxu1 }
 0x15c   : > { %1734 = vst.msk [vmem:[%s2265_s16 + $0x2a0] sm:$0xff] %vm1649_vm2, %v1518_v51  ;;  %v1332_v57 = vadd.f32 %v1331_v13, %v931_v52  ;;  %977 = vmatmul.f32.gmra.mxu0 %v253_v49  ;;  %1166 = vmatmul.f32.gmra.mxu2 %v379_v50  ;;  %v263_v50 = vld [vmem:[%s2104_s9 + $0x2b0] sm:$0xff]  ;;  %v389_v51 = vld [vmem:[%s2104_s9 + $0x6a0] sm:$0xff] }
 0x15e   : > { %1672 = vst.msk [vmem:[%s2265_s16 + $0xb0] sm:$0xff] %vm1649_vm2, %v1332_v57  ;;  %1948 = vmatmul.msk.f32.gmra.mxu3 %vm458_vm1, %v384_v54  ;;  %1886 = vmatmul.msk.f32.gmra.mxu1 %vm458_vm1, %v260_v55  ;;  %v394_v55 = vld [vmem:[%s2104_s9 + $0x6c8] sm:$0xff] }
 0x15f   : > { %v1119_v58 = vpop.f32.mrf.mxu2  ;;  %v270_v57 = vld [vmem:[%s2104_s9 + $0x2e8] sm:$0xff] }
 0x160   : > { %v1120_v59 = vadd.f32 %v2256_v27, %v1119_v58 }
 0x161   : > { %v1526_v60 = vpop.f32.mrf.mxu3  ;;  %v933_v61 = vpop.f32.mrf.mxu0 }
 0x162   : > { %v1521_v0 = vadd.f32 %v1520_v32, %v1120_v59  ;;  %v934_v1 = vadd.f32 %v2256_v27, %v933_v61 }
 0x163   : > { %v1343_v2 = vpop.f32.mrf.mxu1 }
 0x164   : > { %1735 = vst.msk [vmem:[%s2265_s16 + $0x2a8] sm:$0xff] %vm1649_vm2, %v1521_v0  ;;  %v1335_v5 = vadd.f32 %v1334_v25, %v934_v1  ;;  %980 = vmatmul.f32.gmra.mxu0 %v255_v62  ;;  %1169 = vmatmul.f32.gmra.mxu2 %v381_v63  ;;  %v265_v63 = vld [vmem:[%s2104_s9 + $0x2c0] sm:$0xff]  ;;  %v391_v0 = vld [vmem:[%s2104_s9 + $0x6b0] sm:$0xff] }
 0x166   : > { %1673 = vst.msk [vmem:[%s2265_s16 + $0xb8] sm:$0xff] %vm1649_vm2, %v1335_v5  ;;  %1949 = vmatmul.msk.f32.gmra.mxu3 %vm458_vm1, %v386_v3  ;;  %1887 = vmatmul.msk.f32.gmra.mxu1 %vm458_vm1, %v262_v4  ;;  %v396_v4 = vld [vmem:[%s2104_s9 + $0x6d8] sm:$0xff] }
 0x167   : > { %v1122_v6 = vpop.f32.mrf.mxu2  ;;  %v272_v5 = vld [vmem:[%s2104_s9 + $0x2f8] sm:$0xff] }
 0x168   : > { %v1123_v7 = vadd.f32 %v2256_v27, %v1122_v6 }
 0x169   : > { %v1529_v8 = vpop.f32.mrf.mxu3  ;;  %v936_v9 = vpop.f32.mrf.mxu0 }
 0x16a   : > { %v1524_v12 = vadd.f32 %v1523_v47, %v1123_v7  ;;  %v937_v13 = vadd.f32 %v2256_v27, %v936_v9  ;;  %v2611_v7 = vld [vmem:[%s2953_s2] ss:$0 sm:$0xff] }
 0x16b   : > { %v1346_v14 = vpop.f32.mrf.mxu1 }
 0x16c   : > { %1736 = vst.msk [vmem:[%s2265_s16 + $0x2b0] sm:$0xff] %vm1649_vm2, %v1524_v12  ;;  %v1338_v17 = vadd.f32 %v1337_v40, %v937_v13  ;;  %983 = vmatmul.f32.gmra.mxu0 %v257_v10  ;;  %1172 = vmatmul.f32.gmra.mxu2 %v383_v11  ;;  %v267_v11 = vld [vmem:[%s2104_s9 + $0x2d0] sm:$0xff]  ;;  %v393_v12 = vld [vmem:[%s2104_s9 + $0x6c0] sm:$0xff] }
 0x16e   : > { %1674 = vst.msk [vmem:[%s2265_s16 + $0xc0] sm:$0xff] %vm1649_vm2, %v1338_v17  ;;  %1950 = vmatmul.msk.f32.gmra.mxu3 %vm458_vm1, %v388_v15  ;;  %1888 = vmatmul.msk.f32.gmra.mxu1 %vm458_vm1, %v264_v16  ;;  %v398_v16 = vld [vmem:[%s2104_s9 + $0x6e8] sm:$0xff] }
 0x16f   : > { %v1125_v18 = vpop.f32.mrf.mxu2  ;;  %v274_v17 = vld [vmem:[%s2104_s9 + $0x308] sm:$0xff] }
 0x170   : > { %v1126_v19 = vadd.f32 %v2256_v27, %v1125_v18 }
 0x171   : > { %v1532_v20 = vpop.f32.mrf.mxu3  ;;  %v939_v21 = vpop.f32.mrf.mxu0 }
 0x172   : > { %v1527_v24 = vadd.f32 %v1526_v60, %v1126_v19  ;;  %v940_v25 = vadd.f32 %v2256_v27, %v939_v21 }
 0x173   : > { %v1349_v26 = vpop.f32.mrf.mxu1 }
 0x174   : > { %1737 = vst.msk [vmem:[%s2265_s16 + $0x2b8] sm:$0xff] %vm1649_vm2, %v1527_v24  ;;  %v1341_v30 = vadd.f32 %v1340_v53, %v940_v25  ;;  %986 = vmatmul.f32.gmra.mxu0 %v259_v22  ;;  %1175 = vmatmul.f32.gmra.mxu2 %v385_v23  ;;  %v269_v23 = vld [vmem:[%s2104_s9 + $0x2e0] sm:$0xff]  ;;  %v395_v24 = vld [vmem:[%s2104_s9 + $0x6d0] sm:$0xff] }
 0x176   : > { %1675 = vst.msk [vmem:[%s2265_s16 + $0xc8] sm:$0xff] %vm1649_vm2, %v1341_v30  ;;  %1951 = vmatmul.msk.f32.gmra.mxu3 %vm458_vm1, %v390_v28  ;;  %1889 = vmatmul.msk.f32.gmra.mxu1 %vm458_vm1, %v266_v29  ;;  %v400_v29 = vld [vmem:[%s2104_s9 + $0x6f8] sm:$0xff] }
 0x177   : > { %v1128_v31 = vpop.f32.mrf.mxu2  ;;  %v276_v30 = vld [vmem:[%s2104_s9 + $0x318] sm:$0xff] }
 0x178   : > { %v1129_v32 = vadd.f32 %v2256_v27, %v1128_v31 }
 0x179   : > { %v1535_v33 = vpop.f32.mrf.mxu3  ;;  %v942_v34 = vpop.f32.mrf.mxu0 }
 0x17a   : > { %v1530_v39 = vadd.f32 %v1529_v8, %v1129_v32  ;;  %v943_v40 = vadd.f32 %v2256_v27, %v942_v34 }
 0x17b   : > { %v1352_v41 = vpop.f32.mrf.mxu1 }
 0x17c   : > { %1738 = vst.msk [vmem:[%s2265_s16 + $0x2c0] sm:$0xff] %vm1649_vm2, %v1530_v39  ;;  %v1344_v44 = vadd.f32 %v1343_v2, %v943_v40  ;;  %989 = vmatmul.f32.gmra.mxu0 %v261_v35  ;;  %1178 = vmatmul.f32.gmra.mxu2 %v387_v38  ;;  %v271_v38 = vld [vmem:[%s2104_s9 + $0x2f0] sm:$0xff]  ;;  %v397_v39 = vld [vmem:[%s2104_s9 + $0x6e0] sm:$0xff] }
 0x17e   : > { %1676 = vst.msk [vmem:[%s2265_s16 + $0xd0] sm:$0xff] %vm1649_vm2, %v1344_v44  ;;  %1952 = vmatmul.msk.f32.gmra.mxu3 %vm458_vm1, %v392_v42  ;;  %1890 = vmatmul.msk.f32.gmra.mxu1 %vm458_vm1, %v268_v43  ;;  %v402_v43 = vld [vmem:[%s2104_s9 + $0x708] sm:$0xff] }
 0x17f   : > { %v1131_v45 = vpop.f32.mrf.mxu2  ;;  %v278_v44 = vld [vmem:[%s2104_s9 + $0x328] sm:$0xff] }
 0x180   : > { %v1132_v47 = vadd.f32 %v2256_v27, %v1131_v45 }
 0x181   : > { %v1538_v48 = vpop.f32.mrf.mxu3  ;;  %v945_v49 = vpop.f32.mrf.mxu0 }
 0x182   : > { %v1533_v52 = vadd.f32 %v1532_v20, %v1132_v47  ;;  %v946_v53 = vadd.f32 %v2256_v27, %v945_v49 }
 0x183   : > { %v1355_v54 = vpop.f32.mrf.mxu1 }
 0x184   : > { %1739 = vst.msk [vmem:[%s2265_s16 + $0x2c8] sm:$0xff] %vm1649_vm2, %v1533_v52  ;;  %v1347_v58 = vadd.f32 %v1346_v14, %v946_v53  ;;  %992 = vmatmul.f32.gmra.mxu0 %v263_v50  ;;  %1181 = vmatmul.f32.gmra.mxu2 %v389_v51  ;;  %v273_v51 = vld [vmem:[%s2104_s9 + $0x300] sm:$0xff]  ;;  %v399_v52 = vld [vmem:[%s2104_s9 + $0x6f0] sm:$0xff] }
 0x186   : > { %1677 = vst.msk [vmem:[%s2265_s16 + $0xd8] sm:$0xff] %vm1649_vm2, %v1347_v58  ;;  %1953 = vmatmul.msk.f32.gmra.mxu3 %vm458_vm1, %v394_v55  ;;  %1891 = vmatmul.msk.f32.gmra.mxu1 %vm458_vm1, %v270_v57  ;;  %v404_v57 = vld [vmem:[%s2104_s9 + $0x718] sm:$0xff] }
 0x187   : > { %v1134_v59 = vpop.f32.mrf.mxu2  ;;  %v280_v58 = vld [vmem:[%s2104_s9 + $0x338] sm:$0xff] }
 0x188   : > { %v1135_v60 = vadd.f32 %v2256_v27, %v1134_v59 }
 0x189   : > { %v1541_v61 = vpop.f32.mrf.mxu3  ;;  %v948_v62 = vpop.f32.mrf.mxu0 }
 0x18a   : > { %v1536_v1 = vadd.f32 %v1535_v33, %v1135_v60  ;;  %v949_v2 = vadd.f32 %v2256_v27, %v948_v62 }
 0x18b   : > { %v1358_v3 = vpop.f32.mrf.mxu1 }
 0x18c   : > { %1740 = vst.msk [vmem:[%s2265_s16 + $0x2d0] sm:$0xff] %vm1649_vm2, %v1536_v1  ;;  %v1350_v6 = vadd.f32 %v1349_v26, %v949_v2  ;;  %995 = vmatmul.f32.gmra.mxu0 %v265_v63  ;;  %1184 = vmatmul.f32.gmra.mxu2 %v391_v0  ;;  %v275_v0 = vld [vmem:[%s2104_s9 + $0x310] sm:$0xff]  ;;  %v401_v1 = vld [vmem:[%s2104_s9 + $0x700] sm:$0xff] }
 0x18e   : > { %1678 = vst.msk [vmem:[%s2265_s16 + $0xe0] sm:$0xff] %vm1649_vm2, %v1350_v6  ;;  %1954 = vmatmul.msk.f32.gmra.mxu3 %vm458_vm1, %v396_v4  ;;  %1892 = vmatmul.msk.f32.gmra.mxu1 %vm458_vm1, %v272_v5  ;;  %v406_v5 = vld [vmem:[%s2104_s9 + $0x728] sm:$0xff] }
 0x18f   : > { %v1137_v27 = vpop.f32.mrf.mxu2  ;;  %v282_v6 = vld [vmem:[%s2104_s9 + $0x348] sm:$0xff] }
 0x190   : > { %v1138_v8 = vadd.f32 %v2611_v7, %v1137_v27 }
 0x191   : > { %v1544_v9 = vpop.f32.mrf.mxu3  ;;  %v951_v10 = vpop.f32.mrf.mxu0 }
 0x192   : > { %v1539_v13 = vadd.f32 %v1538_v48, %v1138_v8  ;;  %v952_v14 = vadd.f32 %v2611_v7, %v951_v10 }
 0x193   : > { %v1361_v15 = vpop.f32.mrf.mxu1 }
 0x194   : > { %1741 = vst.msk [vmem:[%s2265_s16 + $0x2d8] sm:$0xff] %vm1649_vm2, %v1539_v13  ;;  %v1353_v18 = vadd.f32 %v1352_v41, %v952_v14  ;;  %998 = vmatmul.f32.gmra.mxu0 %v267_v11  ;;  %1187 = vmatmul.f32.gmra.mxu2 %v393_v12  ;;  %v277_v12 = vld [vmem:[%s2104_s9 + $0x320] sm:$0xff]  ;;  %v403_v13 = vld [vmem:[%s2104_s9 + $0x710] sm:$0xff] }
 0x196   : > { %1679 = vst.msk [vmem:[%s2265_s16 + $0xe8] sm:$0xff] %vm1649_vm2, %v1353_v18  ;;  %1955 = vmatmul.msk.f32.gmra.mxu3 %vm458_vm1, %v398_v16  ;;  %1893 = vmatmul.msk.f32.gmra.mxu1 %vm458_vm1, %v274_v17  ;;  %v408_v17 = vld [vmem:[%s2104_s9 + $0x738] sm:$0xff] }
 0x197   : > { %v1140_v19 = vpop.f32.mrf.mxu2  ;;  %v284_v18 = vld [vmem:[%s2104_s9 + $0x358] sm:$0xff] }
 0x198   : > { %v1141_v20 = vadd.f32 %v2611_v7, %v1140_v19 }
 0x199   : > { %v1547_v21 = vpop.f32.mrf.mxu3  ;;  %v954_v22 = vpop.f32.mrf.mxu0 }
 0x19a   : > { %v1542_v25 = vadd.f32 %v1541_v61, %v1141_v20  ;;  %v955_v26 = vadd.f32 %v2611_v7, %v954_v22 }
 0x19b   : > { %v1364_v28 = vpop.f32.mrf.mxu1 }
 0x19c   : > { %1742 = vst.msk [vmem:[%s2265_s16 + $0x2e0] sm:$0xff] %vm1649_vm2, %v1542_v25  ;;  %v1356_v31 = vadd.f32 %v1355_v54, %v955_v26  ;;  %1001 = vmatmul.f32.gmra.mxu0 %v269_v23  ;;  %1190 = vmatmul.f32.gmra.mxu2 %v395_v24  ;;  %v279_v24 = vld [vmem:[%s2104_s9 + $0x330] sm:$0xff]  ;;  %v405_v25 = vld [vmem:[%s2104_s9 + $0x720] sm:$0xff] }
 0x19e   : > { %1680 = vst.msk [vmem:[%s2265_s16 + $0xf0] sm:$0xff] %vm1649_vm2, %v1356_v31  ;;  %1956 = vmatmul.msk.f32.gmra.mxu3 %vm458_vm1, %v400_v29  ;;  %1894 = vmatmul.msk.f32.gmra.mxu1 %vm458_vm1, %v276_v30  ;;  %v410_v30 = vld [vmem:[%s2104_s9 + $0x748] sm:$0xff] }
 0x19f   : > { %v1143_v32 = vpop.f32.mrf.mxu2  ;;  %v286_v31 = vld [vmem:[%s2104_s9 + $0x368] sm:$0xff] }
 0x1a0   : > { %v1144_v33 = vadd.f32 %v2611_v7, %v1143_v32 }
 0x1a1   : > { %v1550_v34 = vpop.f32.mrf.mxu3  ;;  %v957_v35 = vpop.f32.mrf.mxu0 }
 0x1a2   : > { %v1545_v40 = vadd.f32 %v1544_v9, %v1144_v33  ;;  %v958_v41 = vadd.f32 %v2611_v7, %v957_v35 }
 0x1a3   : > { %v1367_v42 = vpop.f32.mrf.mxu1 }
 0x1a4   : > { %1743 = vst.msk [vmem:[%s2265_s16 + $0x2e8] sm:$0xff] %vm1649_vm2, %v1545_v40  ;;  %v1359_v45 = vadd.f32 %v1358_v3, %v958_v41  ;;  %1004 = vmatmul.f32.gmra.mxu0 %v271_v38  ;;  %1193 = vmatmul.f32.gmra.mxu2 %v397_v39  ;;  %v281_v39 = vld [vmem:[%s2104_s9 + $0x340] sm:$0xff]  ;;  %v407_v40 = vld [vmem:[%s2104_s9 + $0x730] sm:$0xff] }
 0x1a6   : > { %1681 = vst.msk [vmem:[%s2265_s16 + $0xf8] sm:$0xff] %vm1649_vm2, %v1359_v45  ;;  %1957 = vmatmul.msk.f32.gmra.mxu3 %vm458_vm1, %v402_v43  ;;  %1895 = vmatmul.msk.f32.gmra.mxu1 %vm458_vm1, %v278_v44  ;;  %v412_v44 = vld [vmem:[%s2104_s9 + $0x758] sm:$0xff] }
 0x1a7   : > { %v1146_v47 = vpop.f32.mrf.mxu2  ;;  %v288_v45 = vld [vmem:[%s2104_s9 + $0x378] sm:$0xff] }
 0x1a8   : > { %v1147_v48 = vadd.f32 %v2611_v7, %v1146_v47 }
 0x1a9   : > { %v1553_v49 = vpop.f32.mrf.mxu3  ;;  %v960_v50 = vpop.f32.mrf.mxu0 }
 0x1aa   : > { %v1548_v53 = vadd.f32 %v1547_v21, %v1147_v48  ;;  %v961_v54 = vadd.f32 %v2611_v7, %v960_v50 }
 0x1ab   : > { %v1370_v55 = vpop.f32.mrf.mxu1 }
 0x1ac   : > { %1744 = vst.msk [vmem:[%s2265_s16 + $0x2f0] sm:$0xff] %vm1649_vm2, %v1548_v53  ;;  %v1362_v59 = vadd.f32 %v1361_v15, %v961_v54  ;;  %1007 = vmatmul.f32.gmra.mxu0 %v273_v51  ;;  %1196 = vmatmul.f32.gmra.mxu2 %v399_v52  ;;  %v283_v52 = vld [vmem:[%s2104_s9 + $0x350] sm:$0xff]  ;;  %v409_v53 = vld [vmem:[%s2104_s9 + $0x740] sm:$0xff] }
 0x1ae   : > { %1682 = vst.msk [vmem:[%s2265_s16 + $0x100] sm:$0xff] %vm1649_vm2, %v1362_v59  ;;  %1958 = vmatmul.msk.f32.gmra.mxu3 %vm458_vm1, %v404_v57  ;;  %1896 = vmatmul.msk.f32.gmra.mxu1 %vm458_vm1, %v280_v58  ;;  %v414_v58 = vld [vmem:[%s2104_s9 + $0x768] sm:$0xff] }
 0x1af   : > { %v1149_v60 = vpop.f32.mrf.mxu2  ;;  %v290_v59 = vld [vmem:[%s2104_s9 + $0x388] sm:$0xff] }
 0x1b0   : > { %v1150_v61 = vadd.f32 %v2611_v7, %v1149_v60 }
 0x1b1   : > { %v1556_v62 = vpop.f32.mrf.mxu3  ;;  %v963_v63 = vpop.f32.mrf.mxu0 }
 0x1b2   : > { %v1551_v2 = vadd.f32 %v1550_v34, %v1150_v61  ;;  %v964_v3 = vadd.f32 %v2611_v7, %v963_v63 }
 0x1b3   : > { %v1373_v4 = vpop.f32.mrf.mxu1 }
 0x1b4   : > { %1745 = vst.msk [vmem:[%s2265_s16 + $0x2f8] sm:$0xff] %vm1649_vm2, %v1551_v2  ;;  %v1365_v27 = vadd.f32 %v1364_v28, %v964_v3  ;;  %1010 = vmatmul.f32.gmra.mxu0 %v275_v0  ;;  %1199 = vmatmul.f32.gmra.mxu2 %v401_v1  ;;  %v285_v1 = vld [vmem:[%s2104_s9 + $0x360] sm:$0xff]  ;;  %v411_v2 = vld [vmem:[%s2104_s9 + $0x750] sm:$0xff] }
 0x1b6   : > { %1683 = vst.msk [vmem:[%s2265_s16 + $0x108] sm:$0xff] %vm1649_vm2, %v1365_v27  ;;  %1959 = vmatmul.msk.f32.gmra.mxu3 %vm458_vm1, %v406_v5  ;;  %1897 = vmatmul.msk.f32.gmra.mxu1 %vm458_vm1, %v282_v6  ;;  %v416_v6 = vld [vmem:[%s2104_s9 + $0x778] sm:$0xff] }
 0x1b7   : > { %v1152_v8 = vpop.f32.mrf.mxu2  ;;  %v292_v27 = vld [vmem:[%s2104_s9 + $0x398] sm:$0xff] }
 0x1b8   : > { %v1153_v9 = vadd.f32 %v2611_v7, %v1152_v8 }
 0x1b9   : > { %v1559_v10 = vpop.f32.mrf.mxu3  ;;  %v966_v11 = vpop.f32.mrf.mxu0 }
 0x1ba   : > { %v1554_v14 = vadd.f32 %v1553_v49, %v1153_v9  ;;  %v967_v15 = vadd.f32 %v2611_v7, %v966_v11 }
 0x1bb   : > { %v1376_v16 = vpop.f32.mrf.mxu1 }
 0x1bc   : > { %1746 = vst.msk [vmem:[%s2265_s16 + $0x300] sm:$0xff] %vm1649_vm2, %v1554_v14  ;;  %v1368_v19 = vadd.f32 %v1367_v42, %v967_v15  ;;  %1013 = vmatmul.f32.gmra.mxu0 %v277_v12  ;;  %1202 = vmatmul.f32.gmra.mxu2 %v403_v13  ;;  %v287_v13 = vld [vmem:[%s2104_s9 + $0x370] sm:$0xff]  ;;  %v413_v14 = vld [vmem:[%s2104_s9 + $0x760] sm:$0xff] }
 0x1be   : > { %1684 = vst.msk [vmem:[%s2265_s16 + $0x110] sm:$0xff] %vm1649_vm2, %v1368_v19  ;;  %1960 = vmatmul.msk.f32.gmra.mxu3 %vm458_vm1, %v408_v17  ;;  %1898 = vmatmul.msk.f32.gmra.mxu1 %vm458_vm1, %v284_v18  ;;  %v418_v18 = vld [vmem:[%s2104_s9 + $0x788] sm:$0xff] }
 0x1bf   : > { %v1155_v20 = vpop.f32.mrf.mxu2  ;;  %v294_v19 = vld [vmem:[%s2104_s9 + $0x3a8] sm:$0xff] }
 0x1c0   : > { %v1156_v21 = vadd.f32 %v2611_v7, %v1155_v20 }
 0x1c1   : > { %v1562_v22 = vpop.f32.mrf.mxu3  ;;  %v969_v23 = vpop.f32.mrf.mxu0 }
 0x1c2   : > { %v1557_v26 = vadd.f32 %v1556_v62, %v1156_v21  ;;  %v970_v28 = vadd.f32 %v2611_v7, %v969_v23 }
 0x1c3   : > { %v1379_v29 = vpop.f32.mrf.mxu1 }
 0x1c4   : > { %1747 = vst.msk [vmem:[%s2265_s16 + $0x308] sm:$0xff] %vm1649_vm2, %v1557_v26  ;;  %v1371_v32 = vadd.f32 %v1370_v55, %v970_v28  ;;  %1016 = vmatmul.f32.gmra.mxu0 %v279_v24  ;;  %1205 = vmatmul.f32.gmra.mxu2 %v405_v25  ;;  %v289_v25 = vld [vmem:[%s2104_s9 + $0x380] sm:$0xff]  ;;  %v415_v26 = vld [vmem:[%s2104_s9 + $0x770] sm:$0xff] }
 0x1c6   : > { %1685 = vst.msk [vmem:[%s2265_s16 + $0x118] sm:$0xff] %vm1649_vm2, %v1371_v32  ;;  %1961 = vmatmul.msk.f32.gmra.mxu3 %vm458_vm1, %v410_v30  ;;  %1899 = vmatmul.msk.f32.gmra.mxu1 %vm458_vm1, %v286_v31  ;;  %v420_v31 = vld [vmem:[%s2104_s9 + $0x798] sm:$0xff] }
 0x1c7   : > { %v1158_v33 = vpop.f32.mrf.mxu2  ;;  %v296_v32 = vld [vmem:[%s2104_s9 + $0x3b8] sm:$0xff] }
 0x1c8   : > { %v1159_v34 = vadd.f32 %v2611_v7, %v1158_v33 }
 0x1c9   : > { %v1565_v35 = vpop.f32.mrf.mxu3  ;;  %v972_v38 = vpop.f32.mrf.mxu0 }
 0x1ca   : > { %v1560_v41 = vadd.f32 %v1559_v10, %v1159_v34  ;;  %v973_v42 = vadd.f32 %v2611_v7, %v972_v38 }
 0x1cb   : > { %v1382_v43 = vpop.f32.mrf.mxu1 }
 0x1cc   : > { %1748 = vst.msk [vmem:[%s2265_s16 + $0x310] sm:$0xff] %vm1649_vm2, %v1560_v41  ;;  %v1374_v47 = vadd.f32 %v1373_v4, %v973_v42  ;;  %1019 = vmatmul.f32.gmra.mxu0 %v281_v39  ;;  %1208 = vmatmul.f32.gmra.mxu2 %v407_v40  ;;  %v291_v40 = vld [vmem:[%s2104_s9 + $0x390] sm:$0xff]  ;;  %v417_v41 = vld [vmem:[%s2104_s9 + $0x780] sm:$0xff] }
 0x1ce   : > { %1686 = vst.msk [vmem:[%s2265_s16 + $0x120] sm:$0xff] %vm1649_vm2, %v1374_v47  ;;  %1962 = vmatmul.msk.f32.gmra.mxu3 %vm458_vm1, %v412_v44  ;;  %1900 = vmatmul.msk.f32.gmra.mxu1 %vm458_vm1, %v288_v45  ;;  %v422_v45 = vld [vmem:[%s2104_s9 + $0x7a8] sm:$0xff] }
 0x1cf   : > { %v1161_v48 = vpop.f32.mrf.mxu2  ;;  %v298_v47 = vld [vmem:[%s2104_s9 + $0x3c8] sm:$0xff] }
 0x1d0   : > { %v1162_v49 = vadd.f32 %v2611_v7, %v1161_v48 }
 0x1d1   : > { %v1568_v50 = vpop.f32.mrf.mxu3  ;;  %v975_v51 = vpop.f32.mrf.mxu0 }
 0x1d2   : > { %v1563_v54 = vadd.f32 %v1562_v22, %v1162_v49  ;;  %v976_v55 = vadd.f32 %v2611_v7, %v975_v51 }
 0x1d3   : > { %v1385_v57 = vpop.f32.mrf.mxu1 }
 0x1d4   : > { %1749 = vst.msk [vmem:[%s2265_s16 + $0x318] sm:$0xff] %vm1649_vm2, %v1563_v54  ;;  %v1377_v60 = vadd.f32 %v1376_v16, %v976_v55  ;;  %1022 = vmatmul.f32.gmra.mxu0 %v283_v52  ;;  %1211 = vmatmul.f32.gmra.mxu2 %v409_v53  ;;  %v293_v53 = vld [vmem:[%s2104_s9 + $0x3a0] sm:$0xff]  ;;  %v419_v54 = vld [vmem:[%s2104_s9 + $0x790] sm:$0xff] }
 0x1d6   : > { %1687 = vst.msk [vmem:[%s2265_s16 + $0x128] sm:$0xff] %vm1649_vm2, %v1377_v60  ;;  %1963 = vmatmul.msk.f32.gmra.mxu3 %vm458_vm1, %v414_v58  ;;  %1901 = vmatmul.msk.f32.gmra.mxu1 %vm458_vm1, %v290_v59  ;;  %v424_v59 = vld [vmem:[%s2104_s9 + $0x7b8] sm:$0xff] }
 0x1d7   : > { %v1164_v61 = vpop.f32.mrf.mxu2  ;;  %v300_v60 = vld [vmem:[%s2104_s9 + $0x3d8] sm:$0xff] }
 0x1d8   : > { %v1165_v62 = vadd.f32 %v2611_v7, %v1164_v61 }
 0x1d9   : > { %v1571_v63 = vpop.f32.mrf.mxu3  ;;  %v978_v0 = vpop.f32.mrf.mxu0 }
 0x1da   : > { %v1566_v3 = vadd.f32 %v1565_v35, %v1165_v62  ;;  %v979_v4 = vadd.f32 %v2611_v7, %v978_v0 }
 0x1db   : > { %v1388_v5 = vpop.f32.mrf.mxu1 }
 0x1dc   : > { %1750 = vst.msk [vmem:[%s2265_s16 + $0x320] sm:$0xff] %vm1649_vm2, %v1566_v3  ;;  %v1380_v8 = vadd.f32 %v1379_v29, %v979_v4  ;;  %1025 = vmatmul.f32.gmra.mxu0 %v285_v1  ;;  %1214 = vmatmul.f32.gmra.mxu2 %v411_v2  ;;  %v295_v2 = vld [vmem:[%s2104_s9 + $0x3b0] sm:$0xff]  ;;  %v421_v3 = vld [vmem:[%s2104_s9 + $0x7a0] sm:$0xff] }
 0x1de   : > { %1688 = vst.msk [vmem:[%s2265_s16 + $0x130] sm:$0xff] %vm1649_vm2, %v1380_v8  ;;  %1964 = vmatmul.msk.f32.gmra.mxu3 %vm458_vm1, %v416_v6  ;;  %1902 = vmatmul.msk.f32.gmra.mxu1 %vm458_vm1, %v292_v27  ;;  %v426_v27 = vld [vmem:[%s2104_s9 + $0x7c8] sm:$0xff] }
 0x1df   : > { %v1167_v9 = vpop.f32.mrf.mxu2  ;;  %v302_v8 = vld [vmem:[%s2104_s9 + $0x3e8] sm:$0xff] }
 0x1e0   : > { %v1168_v10 = vadd.f32 %v2611_v7, %v1167_v9 }
 0x1e1   : > { %v1574_v11 = vpop.f32.mrf.mxu3  ;;  %v981_v12 = vpop.f32.mrf.mxu0 }
 0x1e2   : > { %v1569_v15 = vadd.f32 %v1568_v50, %v1168_v10  ;;  %v982_v16 = vadd.f32 %v2611_v7, %v981_v12 }
 0x1e3   : > { %v1391_v17 = vpop.f32.mrf.mxu1 }
 0x1e4   : > { %1751 = vst.msk [vmem:[%s2265_s16 + $0x328] sm:$0xff] %vm1649_vm2, %v1569_v15  ;;  %v1383_v20 = vadd.f32 %v1382_v43, %v982_v16  ;;  %1028 = vmatmul.f32.gmra.mxu0 %v287_v13  ;;  %1217 = vmatmul.f32.gmra.mxu2 %v413_v14  ;;  %v297_v14 = vld [vmem:[%s2104_s9 + $0x3c0] sm:$0xff]  ;;  %v423_v15 = vld [vmem:[%s2104_s9 + $0x7b0] sm:$0xff] }
 0x1e6   : > { %1689 = vst.msk [vmem:[%s2265_s16 + $0x138] sm:$0xff] %vm1649_vm2, %v1383_v20  ;;  %1965 = vmatmul.msk.f32.gmra.mxu3 %vm458_vm1, %v418_v18  ;;  %1903 = vmatmul.msk.f32.gmra.mxu1 %vm458_vm1, %v294_v19  ;;  %v428_v19 = vld [vmem:[%s2104_s9 + $0x7d8] sm:$0xff] }
 0x1e7   : > { %v1170_v21 = vpop.f32.mrf.mxu2  ;;  %v304_v20 = vld [vmem:[%s2104_s9 + $0x3f8] sm:$0xff] }
 0x1e8   : > { %v1171_v22 = vadd.f32 %v2611_v7, %v1170_v21 }
 0x1e9   : > { %v1577_v23 = vpop.f32.mrf.mxu3  ;;  %v984_v24 = vpop.f32.mrf.mxu0 }
 0x1ea   : > { %v1572_v28 = vadd.f32 %v1571_v63, %v1171_v22  ;;  %v985_v29 = vadd.f32 %v2611_v7, %v984_v24 }
 0x1eb   : > { %v1394_v30 = vpop.f32.mrf.mxu1 }
 0x1ec   : > { %1752 = vst.msk [vmem:[%s2265_s16 + $0x330] sm:$0xff] %vm1649_vm2, %v1572_v28  ;;  %v1386_v33 = vadd.f32 %v1385_v57, %v985_v29  ;;  %1031 = vmatmul.f32.gmra.mxu0 %v289_v25  ;;  %1220 = vmatmul.f32.gmra.mxu2 %v415_v26  ;;  %v299_v26 = vld [vmem:[%s2104_s9 + $0x3d0] sm:$0xff]  ;;  %v425_v28 = vld [vmem:[%s2104_s9 + $0x7c0] sm:$0xff] }
 0x1ee   : > { %1690 = vst.msk [vmem:[%s2265_s16 + $0x140] sm:$0xff] %vm1649_vm2, %v1386_v33  ;;  %1966 = vmatmul.msk.f32.gmra.mxu3 %vm458_vm1, %v420_v31  ;;  %1904 = vmatmul.msk.f32.gmra.mxu1 %vm458_vm1, %v296_v32  ;;  %v430_v32 = vld [vmem:[%s2104_s9 + $0x7e8] sm:$0xff] }
 0x1ef   : > { %v1173_v34 = vpop.f32.mrf.mxu2  ;;  %v306_v33 = vld [vmem:[%s2104_s9 + $0x408] sm:$0xff] }
 0x1f0   : > { %v1174_v35 = vadd.f32 %v2611_v7, %v1173_v34 }
 0x1f1   : > { %v1580_v38 = vpop.f32.mrf.mxu3  ;;  %v987_v39 = vpop.f32.mrf.mxu0 }
 0x1f2   : > { %v1575_v42 = vadd.f32 %v1574_v11, %v1174_v35  ;;  %v988_v43 = vadd.f32 %v2611_v7, %v987_v39 }
 0x1f3   : > { %v1397_v44 = vpop.f32.mrf.mxu1 }
 0x1f4   : > { %1753 = vst.msk [vmem:[%s2265_s16 + $0x338] sm:$0xff] %vm1649_vm2, %v1575_v42  ;;  %v1389_v48 = vadd.f32 %v1388_v5, %v988_v43  ;;  %1034 = vmatmul.f32.gmra.mxu0 %v291_v40  ;;  %1223 = vmatmul.f32.gmra.mxu2 %v417_v41  ;;  %v301_v41 = vld [vmem:[%s2104_s9 + $0x3e0] sm:$0xff]  ;;  %v427_v42 = vld [vmem:[%s2104_s9 + $0x7d0] sm:$0xff] }
 0x1f6   : > { %1691 = vst.msk [vmem:[%s2265_s16 + $0x148] sm:$0xff] %vm1649_vm2, %v1389_v48  ;;  %1967 = vmatmul.msk.f32.gmra.mxu3 %vm458_vm1, %v422_v45  ;;  %1905 = vmatmul.msk.f32.gmra.mxu1 %vm458_vm1, %v298_v47  ;;  %v432_v47 = vld [vmem:[%s2104_s9 + $0x7f8] sm:$0xff] }
 0x1f7   : > { %v1176_v49 = vpop.f32.mrf.mxu2  ;;  %v308_v48 = vld [vmem:[%s2104_s9 + $0x418] sm:$0xff] }
 0x1f8   : > { %v1177_v50 = vadd.f32 %v2611_v7, %v1176_v49 }
 0x1f9   : > { %v1583_v51 = vpop.f32.mrf.mxu3  ;;  %v990_v52 = vpop.f32.mrf.mxu0 }
 0x1fa   : > { %v1578_v55 = vadd.f32 %v1577_v23, %v1177_v50  ;;  %v991_v57 = vadd.f32 %v2611_v7, %v990_v52 }
 0x1fb   : > { %v1400_v58 = vpop.f32.mrf.mxu1 }
 0x1fc   : > { %1754 = vst.msk [vmem:[%s2265_s16 + $0x340] sm:$0xff] %vm1649_vm2, %v1578_v55  ;;  %v1392_v61 = vadd.f32 %v1391_v17, %v991_v57  ;;  %1037 = vmatmul.f32.gmra.mxu0 %v293_v53  ;;  %1226 = vmatmul.f32.gmra.mxu2 %v419_v54  ;;  %v429_v54 = vld [vmem:[%s2104_s9 + $0x7e0] sm:$0xff] }
 0x1fe   : > { %1692 = vst.msk [vmem:[%s2265_s16 + $0x150] sm:$0xff] %vm1649_vm2, %v1392_v61  ;;  %1968 = vmatmul.msk.f32.gmra.mxu3 %vm458_vm1, %v424_v59  ;;  %1906 = vmatmul.msk.f32.gmra.mxu1 %vm458_vm1, %v300_v60 }
 0x1ff   : > { %v1179_v62 = vpop.f32.mrf.mxu2 }
 0x200   : > { %v1180_v63 = vadd.f32 %v2611_v7, %v1179_v62 }
 0x201   : > { %v1586_v0 = vpop.f32.mrf.mxu3  ;;  %v993_v1 = vpop.f32.mrf.mxu0 }
 0x202   : > { %v1581_v4 = vadd.f32 %v1580_v38, %v1180_v63  ;;  %v994_v5 = vadd.f32 %v2611_v7, %v993_v1 }
 0x203   : > { %v1403_v6 = vpop.f32.mrf.mxu1 }
 0x204   : > { %1755 = vst.msk [vmem:[%s2265_s16 + $0x348] sm:$0xff] %vm1649_vm2, %v1581_v4  ;;  %v1395_v9 = vadd.f32 %v1394_v30, %v994_v5  ;;  %1040 = vmatmul.f32.gmra.mxu0 %v295_v2  ;;  %1229 = vmatmul.f32.gmra.mxu2 %v421_v3 }
 0x206   : > { %1693 = vst.msk [vmem:[%s2265_s16 + $0x158] sm:$0xff] %vm1649_vm2, %v1395_v9  ;;  %1969 = vmatmul.msk.f32.gmra.mxu3 %vm458_vm1, %v426_v27  ;;  %1907 = vmatmul.msk.f32.gmra.mxu1 %vm458_vm1, %v302_v8 }
 0x207   : > { %v1182_v10 = vpop.f32.mrf.mxu2 }
 0x208   : > { %v1183_v11 = vadd.f32 %v2611_v7, %v1182_v10 }
 0x209   : > { %v1589_v12 = vpop.f32.mrf.mxu3  ;;  %v996_v13 = vpop.f32.mrf.mxu0 }
 0x20a   : > { %v1584_v16 = vadd.f32 %v1583_v51, %v1183_v11  ;;  %v997_v17 = vadd.f32 %v2611_v7, %v996_v13 }
 0x20b   : > { %v1406_v18 = vpop.f32.mrf.mxu1 }
 0x20c   : > { %1756 = vst.msk [vmem:[%s2265_s16 + $0x350] sm:$0xff] %vm1649_vm2, %v1584_v16  ;;  %v1398_v21 = vadd.f32 %v1397_v44, %v997_v17  ;;  %1043 = vmatmul.f32.gmra.mxu0 %v297_v14  ;;  %1232 = vmatmul.f32.gmra.mxu2 %v423_v15 }
 0x20e   : > { %1694 = vst.msk [vmem:[%s2265_s16 + $0x160] sm:$0xff] %vm1649_vm2, %v1398_v21  ;;  %1970 = vmatmul.msk.f32.gmra.mxu3 %vm458_vm1, %v428_v19  ;;  %1908 = vmatmul.msk.f32.gmra.mxu1 %vm458_vm1, %v304_v20 }
 0x20f   : > { %v1185_v22 = vpop.f32.mrf.mxu2 }
 0x210   : > { %v1186_v23 = vadd.f32 %v2611_v7, %v1185_v22 }
 0x211   : > { %v1592_v24 = vpop.f32.mrf.mxu3  ;;  %v999_v25 = vpop.f32.mrf.mxu0 }
 0x212   : > { %v1587_v29 = vadd.f32 %v1586_v0, %v1186_v23  ;;  %v1000_v30 = vadd.f32 %v2611_v7, %v999_v25 }
 0x213   : > { %v1409_v31 = vpop.f32.mrf.mxu1 }
 0x214   : > { %1757 = vst.msk [vmem:[%s2265_s16 + $0x358] sm:$0xff] %vm1649_vm2, %v1587_v29  ;;  %v1401_v34 = vadd.f32 %v1400_v58, %v1000_v30  ;;  %1046 = vmatmul.f32.gmra.mxu0 %v299_v26  ;;  %1235 = vmatmul.f32.gmra.mxu2 %v425_v28 }
 0x216   : > { %1695 = vst.msk [vmem:[%s2265_s16 + $0x168] sm:$0xff] %vm1649_vm2, %v1401_v34  ;;  %1971 = vmatmul.msk.f32.gmra.mxu3 %vm458_vm1, %v430_v32  ;;  %1909 = vmatmul.msk.f32.gmra.mxu1 %vm458_vm1, %v306_v33 }
 0x217   : > { %v1188_v35 = vpop.f32.mrf.mxu2 }
 0x218   : > { %v1189_v38 = vadd.f32 %v2611_v7, %v1188_v35 }
 0x219   : > { %v1595_v39 = vpop.f32.mrf.mxu3  ;;  %v1002_v40 = vpop.f32.mrf.mxu0 }
 0x21a   : > { %v1590_v43 = vadd.f32 %v1589_v12, %v1189_v38  ;;  %v1003_v44 = vadd.f32 %v2611_v7, %v1002_v40 }
 0x21b   : > { %v1412_v45 = vpop.f32.mrf.mxu1 }
 0x21c   : > { %1758 = vst.msk [vmem:[%s2265_s16 + $0x360] sm:$0xff] %vm1649_vm2, %v1590_v43  ;;  %v1404_v49 = vadd.f32 %v1403_v6, %v1003_v44  ;;  %1049 = vmatmul.f32.gmra.mxu0 %v301_v41  ;;  %1238 = vmatmul.f32.gmra.mxu2 %v427_v42 }
 0x21e   : > { %1696 = vst.msk [vmem:[%s2265_s16 + $0x170] sm:$0xff] %vm1649_vm2, %v1404_v49  ;;  %1972 = vmatmul.msk.f32.gmra.mxu3 %vm458_vm1, %v432_v47  ;;  %1910 = vmatmul.msk.f32.gmra.mxu1 %vm458_vm1, %v308_v48 }
 0x21f   : > { %v1191_v50 = vpop.f32.mrf.mxu2 }
 0x220   : > { %v1192_v51 = vadd.f32 %v2611_v7, %v1191_v50 }
 0x221   : > { %v1598_v52 = vpop.f32.mrf.mxu3  ;;  %v1005_v53 = vpop.f32.mrf.mxu0 }
 0x222   : > { %v1593_v55 = vadd.f32 %v1592_v24, %v1192_v51  ;;  %v1006_v57 = vadd.f32 %v2611_v7, %v1005_v53 }
 0x223   : > { %v1415_v58 = vpop.f32.mrf.mxu1 }
 0x224   : > { %1759 = vst.msk [vmem:[%s2265_s16 + $0x368] sm:$0xff] %vm1649_vm2, %v1593_v55  ;;  %v1407_v59 = vadd.f32 %v1406_v18, %v1006_v57  ;;  %1241 = vmatmul.f32.gmra.mxu2 %v429_v54 }
 0x226   : > { %1697 = vst.msk [vmem:[%s2265_s16 + $0x178] sm:$0xff] %vm1649_vm2, %v1407_v59 }
 0x227   : > { %v1194_v60 = vpop.f32.mrf.mxu2 }
 0x228   : > { %v1195_v61 = vadd.f32 %v2611_v7, %v1194_v60 }
 0x229   : > { %v1601_v62 = vpop.f32.mrf.mxu3  ;;  %v1008_v63 = vpop.f32.mrf.mxu0 }
 0x22a   : > { %v1596_v0 = vadd.f32 %v1595_v39, %v1195_v61  ;;  %v1009_v1 = vadd.f32 %v2611_v7, %v1008_v63 }
 0x22b   : > { %v1418_v2 = vpop.f32.mrf.mxu1 }
 0x22c   : > { %1760 = vst.msk [vmem:[%s2265_s16 + $0x370] sm:$0xff] %vm1649_vm2, %v1596_v0  ;;  %v1410_v3 = vadd.f32 %v1409_v31, %v1009_v1 }
 0x22e   : > { %1698 = vst.msk [vmem:[%s2265_s16 + $0x180] sm:$0xff] %vm1649_vm2, %v1410_v3 }
 0x22f   : > { %v1197_v4 = vpop.f32.mrf.mxu2 }
 0x230   : > { %v1198_v5 = vadd.f32 %v2611_v7, %v1197_v4 }
 0x231   : > { %v1604_v6 = vpop.f32.mrf.mxu3  ;;  %v1011_v27 = vpop.f32.mrf.mxu0 }
 0x232   : > { %v1599_v8 = vadd.f32 %v1598_v52, %v1198_v5  ;;  %v1012_v9 = vadd.f32 %v2611_v7, %v1011_v27 }
 0x233   : > { %v1421_v10 = vpop.f32.mrf.mxu1 }
 0x234   : > { %1761 = vst.msk [vmem:[%s2265_s16 + $0x378] sm:$0xff] %vm1649_vm2, %v1599_v8  ;;  %v1413_v11 = vadd.f32 %v1412_v45, %v1012_v9 }
 0x236   : > { %1699 = vst.msk [vmem:[%s2265_s16 + $0x188] sm:$0xff] %vm1649_vm2, %v1413_v11 }
 0x237   : > { %v1200_v12 = vpop.f32.mrf.mxu2 }
 0x238   : > { %v1201_v13 = vadd.f32 %v2611_v7, %v1200_v12 }
 0x239   : > { %v1607_v14 = vpop.f32.mrf.mxu3  ;;  %v1014_v15 = vpop.f32.mrf.mxu0 }
 0x23a   : > { %v1602_v16 = vadd.f32 %v1601_v62, %v1201_v13  ;;  %v1015_v17 = vadd.f32 %v2611_v7, %v1014_v15 }
 0x23b   : > { %v1424_v18 = vpop.f32.mrf.mxu1 }
 0x23c   : > { %1762 = vst.msk [vmem:[%s2265_s16 + $0x380] sm:$0xff] %vm1649_vm2, %v1602_v16  ;;  %v1416_v19 = vadd.f32 %v1415_v58, %v1015_v17 }
 0x23e   : > { %1700 = vst.msk [vmem:[%s2265_s16 + $0x190] sm:$0xff] %vm1649_vm2, %v1416_v19 }
 0x23f   : > { %v1203_v20 = vpop.f32.mrf.mxu2 }
 0x240   : > { %v1204_v21 = vadd.f32 %v2611_v7, %v1203_v20 }
 0x241   : > { %v1610_v22 = vpop.f32.mrf.mxu3  ;;  %v1017_v23 = vpop.f32.mrf.mxu0 }
 0x242   : > { %v1605_v24 = vadd.f32 %v1604_v6, %v1204_v21  ;;  %v1018_v25 = vadd.f32 %v2611_v7, %v1017_v23 }
 0x243   : > { %v1427_v26 = vpop.f32.mrf.mxu1 }
 0x244   : > { %1763 = vst.msk [vmem:[%s2265_s16 + $0x388] sm:$0xff] %vm1649_vm2, %v1605_v24  ;;  %v1419_v28 = vadd.f32 %v1418_v2, %v1018_v25 }
 0x246   : > { %1701 = vst.msk [vmem:[%s2265_s16 + $0x198] sm:$0xff] %vm1649_vm2, %v1419_v28 }
 0x247   : > { %v1206_v29 = vpop.f32.mrf.mxu2 }
 0x248   : > { %v1207_v30 = vadd.f32 %v2611_v7, %v1206_v29 }
 0x249   : > { %v1613_v31 = vpop.f32.mrf.mxu3  ;;  %v1020_v32 = vpop.f32.mrf.mxu0 }
 0x24a   : > { %v1608_v33 = vadd.f32 %v1607_v14, %v1207_v30  ;;  %v1021_v34 = vadd.f32 %v2611_v7, %v1020_v32 }
 0x24b   : > { %v1430_v35 = vpop.f32.mrf.mxu1 }
 0x24c   : > { %1764 = vst.msk [vmem:[%s2265_s16 + $0x390] sm:$0xff] %vm1649_vm2, %v1608_v33  ;;  %v1422_v38 = vadd.f32 %v1421_v10, %v1021_v34 }
 0x24e   : > { %1702 = vst.msk [vmem:[%s2265_s16 + $0x1a0] sm:$0xff] %vm1649_vm2, %v1422_v38 }
 0x24f   : > { %v1209_v39 = vpop.f32.mrf.mxu2 }
 0x250   : > { %v1210_v40 = vadd.f32 %v2611_v7, %v1209_v39 }
 0x251   : > { %v1616_v41 = vpop.f32.mrf.mxu3  ;;  %v1023_v42 = vpop.f32.mrf.mxu0 }
 0x252   : > { %v1611_v43 = vadd.f32 %v1610_v22, %v1210_v40  ;;  %v1024_v44 = vadd.f32 %v2611_v7, %v1023_v42  ;;  %v1054_v40 = vadd.f32 %v2611_v7, %v2273_v36 }
 0x253   : > { %v1433_v45 = vpop.f32.mrf.mxu1 }
 0x254   : > { %1765 = vst.msk [vmem:[%s2265_s16 + $0x398] sm:$0xff] %vm1649_vm2, %v1611_v43  ;;  %v1425_v47 = vadd.f32 %v1424_v18, %v1024_v44 }
 0x256   : > { %1703 = vst.msk [vmem:[%s2265_s16 + $0x1a8] sm:$0xff] %vm1649_vm2, %v1425_v47 }
 0x257   : > { %v1212_v48 = vpop.f32.mrf.mxu2 }
 0x258   : > { %v1213_v49 = vadd.f32 %v2611_v7, %v1212_v48 }
 0x259   : > { %v1619_v50 = vpop.f32.mrf.mxu3  ;;  %v1026_v51 = vpop.f32.mrf.mxu0 }
 0x25a   : > { %v1614_v52 = vadd.f32 %v1613_v31, %v1213_v49  ;;  %v1027_v53 = vadd.f32 %v2611_v7, %v1026_v51 }
 0x25b   : > { %v1436_v54 = vpop.f32.mrf.mxu1 }
 0x25c   : > { %1766 = vst.msk [vmem:[%s2265_s16 + $0x3a0] sm:$0xff] %vm1649_vm2, %v1614_v52  ;;  %v1428_v55 = vadd.f32 %v1427_v26, %v1027_v53 }
 0x25e   : > { %1704 = vst.msk [vmem:[%s2265_s16 + $0x1b0] sm:$0xff] %vm1649_vm2, %v1428_v55 }
 0x25f   : > { %v1215_v57 = vpop.f32.mrf.mxu2 }
 0x260   : > { %v1216_v58 = vadd.f32 %v2611_v7, %v1215_v57 }
 0x261   : > { %v1622_v59 = vpop.f32.mrf.mxu3  ;;  %v1029_v60 = vpop.f32.mrf.mxu0 }
 0x262   : > { %v1617_v61 = vadd.f32 %v1616_v41, %v1216_v58  ;;  %v1030_v62 = vadd.f32 %v2611_v7, %v1029_v60  ;;  %v1060_v60 = vadd.f32 %v2611_v7, %v2297_v56 }
 0x263   : > { %v1439_v63 = vpop.f32.mrf.mxu1 }
 0x264   : > { %1767 = vst.msk [vmem:[%s2265_s16 + $0x3a8] sm:$0xff] %vm1649_vm2, %v1617_v61  ;;  %v1431_v0 = vadd.f32 %v1430_v35, %v1030_v62 }
 0x266   : > { %1705 = vst.msk [vmem:[%s2265_s16 + $0x1b8] sm:$0xff] %vm1649_vm2, %v1431_v0 }
 0x267   : > { %v1218_v1 = vpop.f32.mrf.mxu2 }
 0x268   : > { %v1219_v2 = vadd.f32 %v2611_v7, %v1218_v1 }
 0x269   : > { %v1625_v3 = vpop.f32.mrf.mxu3  ;;  %v1032_v4 = vpop.f32.mrf.mxu0 }
 0x26a   : > { %v1620_v5 = vadd.f32 %v1619_v50, %v1219_v2  ;;  %v1033_v6 = vadd.f32 %v2611_v7, %v1032_v4  ;;  %v1057_v50 = vadd.f32 %v2611_v7, %v2286_v46 }
 0x26b   : > { %v1442_v27 = vpop.f32.mrf.mxu1 }
 0x26c   : > { %1768 = vst.msk [vmem:[%s2265_s16 + $0x3b0] sm:$0xff] %vm1649_vm2, %v1620_v5  ;;  %v1434_v8 = vadd.f32 %v1433_v45, %v1033_v6 }
 0x26e   : > { %1706 = vst.msk [vmem:[%s2265_s16 + $0x1c0] sm:$0xff] %vm1649_vm2, %v1434_v8 }
 0x26f   : > { %v1221_v9 = vpop.f32.mrf.mxu2 }
 0x270   : > { %v1222_v10 = vadd.f32 %v2611_v7, %v1221_v9 }
 0x271   : > { %v1628_v11 = vpop.f32.mrf.mxu3  ;;  %v1035_v12 = vpop.f32.mrf.mxu0 }
 0x272   : > { %v1623_v13 = vadd.f32 %v1622_v59, %v1222_v10  ;;  %v1036_v14 = vadd.f32 %v2611_v7, %v1035_v12 }
 0x273   : > { %v1445_v15 = vpop.f32.mrf.mxu1 }
 0x274   : > { %1769 = vst.msk [vmem:[%s2265_s16 + $0x3b8] sm:$0xff] %vm1649_vm2, %v1623_v13  ;;  %v1437_v16 = vadd.f32 %v1436_v54, %v1036_v14 }
 0x276   : > { %1707 = vst.msk [vmem:[%s2265_s16 + $0x1c8] sm:$0xff] %vm1649_vm2, %v1437_v16 }
 0x277   : > { %v1224_v17 = vpop.f32.mrf.mxu2 }
 0x278   : > { %v1225_v18 = vadd.f32 %v2611_v7, %v1224_v17 }
 0x279   : > { %v1631_v19 = vpop.f32.mrf.mxu3  ;;  %v1038_v20 = vpop.f32.mrf.mxu0 }
 0x27a   : > { %v1626_v21 = vadd.f32 %v1625_v3, %v1225_v18  ;;  %v1039_v22 = vadd.f32 %v2611_v7, %v1038_v20  ;;  %v1246_v3 = vadd.f32 %v2611_v7, %v2275_v37 }
 0x27b   : > { %v1448_v23 = vpop.f32.mrf.mxu1 }
 0x27c   : > { %1770 = vst.msk [vmem:[%s2265_s16 + $0x3c0] sm:$0xff] %vm1649_vm2, %v1626_v21  ;;  %v1440_v24 = vadd.f32 %v1439_v63, %v1039_v22 }
 0x27e   : > { %1708 = vst.msk [vmem:[%s2265_s16 + $0x1d0] sm:$0xff] %vm1649_vm2, %v1440_v24 }
 0x27f   : > { %v1227_v25 = vpop.f32.mrf.mxu2 }
 0x280   : > { %v1228_v26 = vadd.f32 %v2611_v7, %v1227_v25 }
 0x281   : > { %v1634_v28 = vpop.f32.mrf.mxu3  ;;  %v1041_v29 = vpop.f32.mrf.mxu0 }
 0x282   : > { %v1629_v30 = vadd.f32 %v1628_v11, %v1228_v26  ;;  %v1042_v31 = vadd.f32 %v2611_v7, %v1041_v29 }
 0x283   : > { %v1451_v32 = vpop.f32.mrf.mxu1 }
 0x284   : > { %1771 = vst.msk [vmem:[%s2265_s16 + $0x3c8] sm:$0xff] %vm1649_vm2, %v1629_v30  ;;  %v1443_v33 = vadd.f32 %v1442_v27, %v1042_v31 }
 0x286   : > { %1709 = vst.msk [vmem:[%s2265_s16 + $0x1d8] sm:$0xff] %vm1649_vm2, %v1443_v33 }
 0x287   : > { %v1230_v34 = vpop.f32.mrf.mxu2 }
 0x288   : > { %v1231_v35 = vadd.f32 %v2611_v7, %v1230_v34 }
 0x289   : > { %v1637_v38 = vpop.f32.mrf.mxu3  ;;  %v1044_v39 = vpop.f32.mrf.mxu0 }
 0x28a   : > { %v1632_v41 = vadd.f32 %v1631_v19, %v1231_v35  ;;  %v1045_v42 = vadd.f32 %v2611_v7, %v1044_v39 }
 0x28b   : > { %v1454_v43 = vpop.f32.mrf.mxu1 }
 0x28c   : > { %1772 = vst.msk [vmem:[%s2265_s16 + $0x3d0] sm:$0xff] %vm1649_vm2, %v1632_v41  ;;  %v1446_v44 = vadd.f32 %v1445_v15, %v1045_v42  ;;  %v1455_v45 = vadd.f32 %v1454_v43, %v1054_v40 }
 0x28e   : > { %1710 = vst.msk [vmem:[%s2265_s16 + $0x1e0] sm:$0xff] %vm1649_vm2, %v1446_v44 }
 0x28f   : > { %1713 = vst.msk [vmem:[%s2265_s16 + $0x1f8] sm:$0xff] %vm1649_vm2, %v1455_v45  ;;  %v1233_v47 = vpop.f32.mrf.mxu2 }
 0x290   : > { %v1234_v48 = vadd.f32 %v2611_v7, %v1233_v47 }
 0x291   : > { %v1640_v49 = vpop.f32.mrf.mxu3  ;;  %v1047_v36 = vpop.f32.mrf.mxu0 }
 0x292   : > { %v1635_v51 = vadd.f32 %v1634_v28, %v1234_v48  ;;  %v1048_v52 = vadd.f32 %v2611_v7, %v1047_v36 }
 0x293   : > { %v1457_v53 = vpop.f32.mrf.mxu1 }
 0x294   : > { %1773 = vst.msk [vmem:[%s2265_s16 + $0x3d8] sm:$0xff] %vm1649_vm2, %v1635_v51  ;;  %v1449_v54 = vadd.f32 %v1448_v23, %v1048_v52  ;;  %v1458_v55 = vadd.f32 %v1457_v53, %v1057_v50 }
 0x296   : > { %1711 = vst.msk [vmem:[%s2265_s16 + $0x1e8] sm:$0xff] %vm1649_vm2, %v1449_v54 }
 0x297   : > { %1714 = vst.msk [vmem:[%s2265_s16 + $0x200] sm:$0xff] %vm1649_vm2, %v1458_v55  ;;  %v1236_v57 = vpop.f32.mrf.mxu2 }
 0x298   : > { %v1237_v58 = vadd.f32 %v2611_v7, %v1236_v57 }
 0x299   : > { %v1643_v59 = vpop.f32.mrf.mxu3  ;;  %v1050_v46 = vpop.f32.mrf.mxu0 }
 0x29a   : > { %v1638_v61 = vadd.f32 %v1637_v38, %v1237_v58  ;;  %v1051_v62 = vadd.f32 %v2611_v7, %v1050_v46 }
 0x29b   : > { %v1460_v63 = vpop.f32.mrf.mxu1 }
 0x29c   : > { %1774 = vst.msk [vmem:[%s2265_s16 + $0x3e0] sm:$0xff] %vm1649_vm2, %v1638_v61  ;;  %v1452_v0 = vadd.f32 %v1451_v32, %v1051_v62  ;;  %v1461_v1 = vadd.f32 %v1460_v63, %v1060_v60 }
 0x29e   : > { %1712 = vst.msk [vmem:[%s2265_s16 + $0x1f0] sm:$0xff] %vm1649_vm2, %v1452_v0 }
 0x29f   : > { %1715 = vst.msk [vmem:[%s2265_s16 + $0x208] sm:$0xff] %vm1649_vm2, %v1461_v1  ;;  %v1239_v2 = vpop.f32.mrf.mxu2 }
 0x2a0   : > { %v1240_v56 = vadd.f32 %v2611_v7, %v1239_v2 }
 0x2a1   : > { %v1646_v4 = vpop.f32.mrf.mxu3 }
 0x2a2   : > { %v1641_v5 = vadd.f32 %v1640_v49, %v1240_v56  ;;  %v1647_v6 = vadd.f32 %v1646_v4, %v1246_v3 }
 0x2a4   : > { %1775 = vst.msk [vmem:[%s2265_s16 + $0x3e8] sm:$0xff] %vm1649_vm2, %v1641_v5 }
 0x2a5   : > { %1777 = vst.msk [vmem:[%s2265_s16 + $0x3f8] sm:$0xff] %vm1649_vm2, %v1647_v6 }
 0x2a7   : > { %v1242_v27 = vpop.f32.mrf.mxu2 }
 0x2a8   : > { %v1243_v8 = vadd.f32 %v2611_v7, %v1242_v27 }
 0x2aa   : > { %v1644_v9 = vadd.f32 %v1643_v59, %v1243_v8 }
 0x2ac   : > { %1776 = vst.msk [vmem:[%s2265_s16 + $0x3f0] sm:$0xff] %vm1649_vm2, %v1644_v9 }
 0x2ad PF: > { %s13_s12 = sadd.s32 1, %s2029_s12  }
 0x2ae   : > { %p10_p4 = scmp.ge.s32.totalorder %s13_s12, 8  }
 0x2b0   :  { %12 = sbr.rel (!%p10_p4) target bundleno = 1 (0x1), region = 62 }

// kernel: bevnet_forward.3
= control target key start
LH: loop header
LB: loop body
LE: loop exit
PB: predicated region body
PF: predicated region fallthrough
CT: control target
= control target key end

     0   :  { %10 = vsyncpa [#allocation4], 0  ;;  %s5716_s0 = inlined_call_operand.vmem [shape: f32[2,9,9,49,64], index: 0, kind: input, shape index: {}]   ;;  %s5717_s1 = inlined_call_operand.vmem [shape: f32[9,64,128], index: 1, kind: input, shape index: {}]   ;;  %s5718_s2 = inlined_call_operand.vmem [shape: f32[1,128], index: 2, kind: input, shape index: {}]   ;;  %s5719_s3 = inlined_call_operand.vmem [shape: f32[1152,256], index: 3, kind: input, shape index: {}]   ;;  %s5720_s4 = inlined_call_operand.vmem [shape: f32[1,256], index: 4, kind: input, shape index: {}]   ;;  %s5721_s5 = inlined_call_operand.hbm [shape: f32[2,1,256], index: 5, kind: output, shape index: {}]  }
   0x1   :  { %12 = vsyncpa [#allocation4 + $0x1], 0  ;;  %s3728_s18 = smov 0   ;;  %s3730_s19 = smov 0  }
   0x2   :  { %s3732_s20 = smov 0   ;;  %s3734_s21 = smov 0  }
   0x3 LB: > { %s3749_s22 = sadd.s32 4294967295, %s3695_s21   ;;  %s2894_s23 = sadd.s32 4294967294, %s3695_s21   ;;  %s3695_s21 = sphi %s3734_s21, %s5727_s21   ;;  %s3691_s20 = sphi %s3732_s20, %s5726_s20   ;;  %s3687_s19 = sphi %s3730_s19, %s5725_s19   ;;  %s3683_s18 = sphi %s3728_s18, %s5724_s18  }
   0x4   : > { %s3753_s24 = sadd.s32 1, %s3695_s21   ;;  %s135_s25 = sadd.s32 1, %s3691_s20 }
   0x5   : > { %s132_s26 = ssub.s32 %s3695_s21, %s3753_s24  ;;  %p145_p0 = scmp.ne.s32.totalorder %s3691_s20, %s3687_s19 }
   0x6   : > { %p133_p1 = scmp.eq.s32.totalorder %s132_s26, 0  ;;  %p146_p2 = scmp.eq.s32.totalorder %s3749_s22, 1 }
   0x7   : > { %p151_p3 = scmp.ne.s32.totalorder %s3687_s19, %s3683_s18  ;;  %p152_p4 = scmp.eq.s32.totalorder %s2894_s23, 1 }
   0x8   : > { %s3764_s27 = scalar_select %p133_p1, %s3691_s20, %s135_s25  }
   0x9   : > { %p3766_p5 = por %p146_p2, %p145_p0  ;;  %p3770_p6 = por %p152_p4, %p151_p3 }
   0xa   : > { %p2897_p7 = scmp.ge.s32.totalorder %s3695_s21, 1  ;;  %p190_p8 = scmp.lt.s32.totalorder %s3695_s21, 3 }
   0xc   : > { %p191_p9 = pnand %p2897_p7, %p190_p8 }
   0xd   : > { %p218_p10 = scmp.lt.s32.totalorder (!%p191_p9), %s3749_s22, 1  ;;  %s3653_s25 = scalar_lea.hbm (!%p191_p9), %s5721_s5, 4 }
   0xe   : > { %194 = sbr.rel (%p191_p9) target bundleno = 626 (0x272), region = 40 }
  0x13   : > { %v3026_v0 = vld [vmem:[%s5717_s1 + $0x78] sm:$0xff]  ;;  %v3025_v3 = vld [vmem:[%s5717_s1 + $0x70] sm:$0xff]  ;;  %v3024_v7 = vld [vmem:[%s5717_s1 + $0x68] sm:$0xff]  ;;  %s219_s7 = scalar_select %p218_p10, %s3749_s22, 1  ;;  %vm495_vm0 = vcmask 523264   ;;  %vm2048_vm1 = vcmask 1040384  }
  0x14   : > { %v357_v1 = vld [vmem:[%s5717_s1 + $0x38] sm:$0xff]  ;;  %525 = vmatpush.msra.mxu0 %v3026_v0  ;;  %v356_v4 = vld [vmem:[%s5717_s1 + $0x30] sm:$0xff]  ;;  %v355_v8 = vld [vmem:[%s5717_s1 + $0x28] sm:$0xff]  ;;  %vm2071_vm2 = vcmask 1041408  }
  0x15   : > { %v3111_v2 = vld [vmem:[%s5717_s1 + $0xb8] sm:$0xff]  ;;  %584 = vmatpush.msra.mxu1 %v357_v1  ;;  %v3110_v5 = vld [vmem:[%s5717_s1 + $0xb0] sm:$0xff]  ;;  %v3109_v9 = vld [vmem:[%s5717_s1 + $0xa8] sm:$0xff]  ;;  %s3591_s16 = smul.u32 4536, %s219_s7 }
  0x16   : > { %780 = vmatpush.msra.mxu2 %v3111_v2  ;;  %v3189_v6 = vld [vmem:[%s5717_s1 + $0xf8] sm:$0xff]  ;;  %526 = vmatpush.msra.mxu0 %v3025_v3  ;;  %v3188_v10 = vld [vmem:[%s5717_s1 + $0xf0] sm:$0xff]  ;;  %v3023_v11 = vld [vmem:[%s5717_s1 + $0x60] sm:$0xff] }
  0x17   : > { %585 = vmatpush.msra.mxu1 %v356_v4  ;;  %983 = vmatpush.msra.mxu3 %v3189_v6  ;;  %v354_v12 = vld [vmem:[%s5717_s1 + $0x20] sm:$0xff]  ;;  %v3187_v14 = vld [vmem:[%s5717_s1 + $0xe8] sm:$0xff]  ;;  %v3022_v15 = vld [vmem:[%s5717_s1 + $0x58] sm:$0xff]  ;;  %s3838_s15 = scalar_lea.vmem %s5716_s0, %s3591_s16  ;;  %s3588_s16 = sshll.u32 %s3749_s22, 1 }
  0x18   : > { %781 = vmatpush.msra.mxu2 %v3110_v5  ;;  %527 = vmatpush.msra.mxu0 %v3024_v7  ;;  %v3108_v13 = vld [vmem:[%s5717_s1 + $0xa0] sm:$0xff]  ;;  %v353_v16 = vld [vmem:[%s5717_s1 + $0x18] sm:$0xff]  ;;  %v3021_v19 = vld [vmem:[%s5717_s1 + $0x50] sm:$0xff]  ;;  %s2830_s7 = scalar_lea.hbm %s5721_s5, %s3588_s16 }
  0x19   : > { %586 = vmatpush.msra.mxu1 %v355_v8  ;;  %984 = vmatpush.msra.mxu3 %v3188_v10  ;;  %v3107_v17 = vld [vmem:[%s5717_s1 + $0x98] sm:$0xff]  ;;  %v3186_v18 = vld [vmem:[%s5717_s1 + $0xe0] sm:$0xff]  ;;  %v352_v20 = vld [vmem:[%s5717_s1 + $0x10] sm:$0xff]  ;;  %s2834_s12 = sshll.u32 %s2830_s7, 4  ;;  %s2835_s12 = int_to_ptr.hbm [resolvable:$true] %s2834_s12 }
  0x1a   : > { %782 = vmatpush.msra.mxu2 %v3109_v9  ;;  %528 = vmatpush.msra.mxu0 %v3023_v11  ;;  %v3106_v21 = vld [vmem:[%s5717_s1 + $0x90] sm:$0xff]  ;;  %v3185_v22 = vld [vmem:[%s5717_s1 + $0xd8] sm:$0xff]  ;;  %v3020_v23 = vld [vmem:[%s5717_s1 + $0x48] sm:$0xff]  ;;  %s3647_s13 = sshra.s32 %s2835_s12, 4  ;;  %s3648_s13 = int_to_ptr.hbm [resolvable:$true] %s3647_s13 }
  0x1b   : > { %587 = vmatpush.msra.mxu1 %v354_v12  ;;  %985 = vmatpush.msra.mxu3 %v3187_v14  ;;  %v351_v24 = vld [vmem:[%s5717_s1 + $0x8] sm:$0xff]  ;;  %v2956_v26 = vld [vmem:[%s3838_s15 + $0x1f8] sm:$0xff]  ;;  %v2963_v27 = vld [vmem:[%s3838_s15 + $0x230] sm:$0xff]  ;;  %s3649_s14 = scalar_lea.hbm %s3648_s13, 2  ;;  %p3654_p0 = scmp.lt.s32.totalorder %s3648_s13, %s5721_s5 }
  0x1c   : > { %783 = vmatpush.msra.mxu2 %v3108_v13  ;;  %529 = vmatpush.msra.mxu0 %v3022_v15  ;;  %v3105_v25 = vld [vmem:[%s5717_s1 + $0x88] sm:$0xff]  ;;  %v3184_v28 = vld [vmem:[%s5717_s1 + $0xd0] sm:$0xff]  ;;  %v3019_v29 = vld [vmem:[%s5717_s1 + $0x40] sm:$0xff]  ;;  %v374_v30 = vmax.f32 %v2956_v26, %v2963_v27  ;;  %p3650_p11 = scmp.ne.s32.totalorder %s3648_s13, %s3649_s14  ;;  %p3655_p1 = scmp.lt.s32.totalorder %s3653_s25, %s3649_s14 }
  0x1d   : > { %588 = vmatpush.msra.mxu1 %v353_v16  ;;  %986 = vmatpush.msra.mxu3 %v3186_v18  ;;  %v2970_v31 = vld [vmem:[%s3838_s15 + $0x268] sm:$0xff]  ;;  %v350_v32 = vld [vmem:[%s5717_s1] sm:$0xff]  ;;  %v2900_v38 = vld [vmem:[%s3838_s15 + $0x38] sm:$0xff] }
  0x1e   : > { %784 = vmatpush.msra.mxu2 %v3107_v17  ;;  %530 = vmatpush.msra.mxu0 %v3021_v19  ;;  %v3104_v33 = vld [vmem:[%s5717_s1 + $0x80] sm:$0xff]  ;;  %v3183_v35 = vld [vmem:[%s5717_s1 + $0xc8] sm:$0xff]  ;;  %v389_v36 = vmax.f32 %v374_v30, %v2970_v31  ;;  %v2984_v39 = vld [vmem:[%s3838_s15 + $0x2d8] sm:$0xff]  ;;  %p3651_p12 = pnand %p3650_p11, %p3766_p5  ;;  %p3656_p2 = por %p3655_p1, %p3654_p0 }
  0x1f   : > { %589 = vmatpush.msra.mxu1 %v352_v20  ;;  %987 = vmatpush.msra.mxu3 %v3185_v22  ;;  %v2977_v34 = vld [vmem:[%s3838_s15 + $0x2a0] sm:$0xff]  ;;  %v2907_v41 = vld [vmem:[%s3838_s15 + $0x70] sm:$0xff]  ;;  %v2914_v43 = vld [vmem:[%s3838_s15 + $0xa8] sm:$0xff] }
  0x20   : > { %785 = vmatpush.msra.mxu2 %v3106_v21  ;;  %531 = vmatpush.msra.mxu0 %v3020_v23  ;;  %v223_v37 = vld [vmem:[%s3838_s15] sm:$0xff]  ;;  %v404_v42 = vmax.f32 %v389_v36, %v2977_v34  ;;  %v2991_v44 = vld [vmem:[%s3838_s15 + $0x310] sm:$0xff]  ;;  %v3048_v47 = vld [vmem:[%s3838_s15 + $0x428] sm:$0xff]  ;;  %p3652_p13 = pneg %p3651_p12 }
  0x21   : > { %590 = vmatpush.msra.mxu1 %v351_v24  ;;  %988 = vmatpush.msra.mxu3 %v3184_v28  ;;  %v238_v40 = vmax.f32 %v223_v37, %v2900_v38  ;;  %v3041_v46 = vld [vmem:[%s3838_s15 + $0x3f0] sm:$0xff]  ;;  %v2921_v49 = vld [vmem:[%s3838_s15 + $0xe0] sm:$0xff]  ;;  %v2998_v52 = vld [vmem:[%s3838_s15 + $0x348] sm:$0xff] }
  0x22   : > { %786 = vmatpush.msra.mxu2 %v3105_v25  ;;  %532 = vmatpush.msra.mxu0 %v3019_v29  ;;  %v419_v48 = vmax.f32 %v404_v42, %v2984_v39  ;;  %v630_v50 = vmax.f32 %v3041_v46, %v3048_v47  ;;  %v3055_v51 = vld [vmem:[%s3838_s15 + $0x460] sm:$0xff]  ;;  %v3062_v55 = vld [vmem:[%s3838_s15 + $0x498] sm:$0xff]  ;;  %v3119_v60 = vld [vmem:[%s3838_s15 + $0x5e8] sm:$0xff]  ;;  %p3657_p3 = pnand %p3656_p2, %p3652_p13 }
  0x23   : > { %591 = vmatpush.msra.mxu1 %v350_v32  ;;  %989 = vmatpush.msra.mxu3 %v3183_v35  ;;  %v253_v45 = vmax.f32 %v238_v40, %v2907_v41  ;;  %v3005_v53 = vld [vmem:[%s3838_s15 + $0x380] sm:$0xff]  ;;  %v2928_v57 = vld [vmem:[%s3838_s15 + $0x118] sm:$0xff]  ;;  %v3069_v62 = vld [vmem:[%s3838_s15 + $0x4d0] sm:$0xff] }
  0x24   : > { %787 = vmatpush.msra.mxu2 %v3104_v33  ;;  %v434_v56 = vmax.f32 %v419_v48, %v2991_v44  ;;  %v645_v58 = vmax.f32 %v630_v50, %v3055_v51  ;;  %v3182_v59 = vld [vmem:[%s5717_s1 + $0xc0] sm:$0xff]  ;;  %v3133_v0 = vld [vmem:[%s3838_s15 + $0x658] sm:$0xff]  ;;  %v2935_v3 = vld [vmem:[%s3838_s15 + $0x150] sm:$0xff] }
  0x25   : > { %v268_v54 = vmax.f32 %v253_v45, %v2914_v43  ;;  %990 = vmatpush.msra.mxu3 %v3182_v59  ;;  %v3126_v63 = vld [vmem:[%s3838_s15 + $0x620] sm:$0xff]  ;;  %v3012_v2 = vld [vmem:[%s3838_s15 + $0x3b8] sm:$0xff]  ;;  %v3076_v7 = vld [vmem:[%s3838_s15 + $0x508] sm:$0xff] }
  0x26   : > { %v449_v1 = vmax.f32 %v434_v56, %v2998_v52  ;;  %v660_v4 = vmax.f32 %v645_v58, %v3062_v55  ;;  %v833_v5 = vmax.f32 %v3119_v60, %v3126_v63  ;;  %v3140_v8 = vld [vmem:[%s3838_s15 + $0x690] sm:$0xff]  ;;  %v2957_v9 = vld [vmem:[%s3838_s15 + $0x200] sm:$0xff]  ;;  %v2942_v11 = vld [vmem:[%s3838_s15 + $0x188] sm:$0xff] }
  0x27   : > { %v283_v61 = vmax.f32 %v268_v54, %v2921_v49  ;;  %v2964_v14 = vld [vmem:[%s3838_s15 + $0x238] sm:$0xff]  ;;  %v2971_v15 = vld [vmem:[%s3838_s15 + $0x270] sm:$0xff]  ;;  %v2949_v17 = vld [vmem:[%s3838_s15 + $0x1c0] sm:$0xff] }
  0x28   : > { %v464_v10 = vmax.f32 %v449_v1, %v3005_v53  ;;  %v675_v12 = vmax.f32 %v660_v4, %v3069_v62  ;;  %v848_v13 = vmax.f32 %v833_v5, %v3133_v0  ;;  %v3083_v18 = vld [vmem:[%s3838_s15 + $0x540] sm:$0xff]  ;;  %v3147_v19 = vld [vmem:[%s3838_s15 + $0x6c8] sm:$0xff]  ;;  %v375_v20 = vmax.f32 %v2957_v9, %v2964_v14  ;;  %v3090_v23 = vld [vmem:[%s3838_s15 + $0x578] sm:$0xff] }
  0x29   : > { %v298_v6 = vmax.f32 %v283_v61, %v2928_v57  ;;  %v2978_v25 = vld [vmem:[%s3838_s15 + $0x2a8] sm:$0xff]  ;;  %v3154_v28 = vld [vmem:[%s3838_s15 + $0x700] sm:$0xff]  ;;  %v2908_v31 = vld [vmem:[%s3838_s15 + $0x78] sm:$0xff] }
  0x2a   : > { %v479_v21 = vmax.f32 %v464_v10, %v3012_v2  ;;  %v690_v22 = vmax.f32 %v675_v12, %v3076_v7  ;;  %v863_v24 = vmax.f32 %v848_v13, %v3140_v8  ;;  %v224_v26 = vld [vmem:[%s3838_s15 + $0x8] sm:$0xff]  ;;  %v390_v29 = vmax.f32 %v375_v20, %v2971_v15  ;;  %v2901_v30 = vld [vmem:[%s3838_s15 + $0x40] sm:$0xff]  ;;  %v3097_v33 = vld [vmem:[%s3838_s15 + $0x5b0] sm:$0xff] }
  0x2b   : > { %v313_v16 = vmax.f32 %v298_v6, %v2935_v3  ;;  %v3161_v35 = vld [vmem:[%s3838_s15 + $0x738] sm:$0xff]  ;;  %v2985_v36 = vld [vmem:[%s3838_s15 + $0x2e0] sm:$0xff]  ;;  %v239_v37 = vmax.f32 %v224_v26, %v2901_v30  ;;  %v3168_v39 = vld [vmem:[%s3838_s15 + $0x770] sm:$0xff] }
  0x2c   : > { %3027 = vmatmul.msk.f32.vlgmr.msra.gmra.mxu0 %vm495_vm0, %v479_v21  ;;  %v705_v32 = vmax.f32 %v690_v22, %v3083_v18  ;;  %v878_v34 = vmax.f32 %v863_v24, %v3147_v19  ;;  %v405_v40 = vmax.f32 %v390_v29, %v2978_v25  ;;  %v2915_v41 = vld [vmem:[%s3838_s15 + $0xb0] sm:$0xff]  ;;  %v3042_v42 = vld [vmem:[%s3838_s15 + $0x3f8] sm:$0xff]  ;;  %v3056_v48 = vld [vmem:[%s3838_s15 + $0x468] sm:$0xff] }
  0x2d   : > { %v328_v27 = vmax.f32 %v313_v16, %v2942_v11  ;;  %v2992_v45 = vld [vmem:[%s3838_s15 + $0x318] sm:$0xff]  ;;  %v254_v46 = vmax.f32 %v239_v37, %v2908_v31  ;;  %v3049_v47 = vld [vmem:[%s3838_s15 + $0x430] sm:$0xff]  ;;  %v3175_v49 = vld [vmem:[%s3838_s15 + $0x7a8] sm:$0xff] }
  0x2e   : > { %v720_v43 = vmax.f32 %v705_v32, %v3090_v23  ;;  %v893_v44 = vmax.f32 %v878_v34, %v3154_v28  ;;  %v420_v50 = vmax.f32 %v405_v40, %v2985_v36  ;;  %v2999_v51 = vld [vmem:[%s3838_s15 + $0x350] sm:$0xff]  ;;  %v2922_v52 = vld [vmem:[%s3838_s15 + $0xe8] sm:$0xff]  ;;  %v631_v53 = vmax.f32 %v3042_v42, %v3049_v47  ;;  %v3063_v58 = vld [vmem:[%s3838_s15 + $0x4a0] sm:$0xff] }
  0x2f   : > { %v343_v38 = vmax.f32 %v328_v27, %v2949_v17  ;;  %v3006_v56 = vld [vmem:[%s3838_s15 + $0x388] sm:$0xff]  ;;  %v269_v57 = vmax.f32 %v254_v46, %v2915_v41  ;;  %v3120_v59 = vld [vmem:[%s3838_s15 + $0x5f0] sm:$0xff]  ;;  %v2929_v61 = vld [vmem:[%s3838_s15 + $0x120] sm:$0xff] }
  0x30   : > { %v735_v54 = vmax.f32 %v720_v43, %v3097_v33  ;;  %v908_v55 = vmax.f32 %v893_v44, %v3161_v35  ;;  %v435_v60 = vmax.f32 %v420_v50, %v2992_v45  ;;  %v646_v62 = vmax.f32 %v631_v53, %v3056_v48  ;;  %v3127_v63 = vld [vmem:[%s3838_s15 + $0x628] sm:$0xff]  ;;  %v3134_v0 = vld [vmem:[%s3838_s15 + $0x660] sm:$0xff]  ;;  %v2936_v4 = vld [vmem:[%s3838_s15 + $0x158] sm:$0xff] }
  0x31   : > { %3034 = vmatmul.msk.f32.vlgmr.msra.gmra.mxu1 %vm495_vm0, %v343_v38  ;;  %v3013_v2 = vld [vmem:[%s3838_s15 + $0x3c0] sm:$0xff]  ;;  %v284_v3 = vmax.f32 %v269_v57, %v2922_v52  ;;  %v3070_v5 = vld [vmem:[%s3838_s15 + $0x4d8] sm:$0xff]  ;;  %v834_v6 = vmax.f32 %v3120_v59, %v3127_v63  ;;  %v2943_v8 = vld [vmem:[%s3838_s15 + $0x190] sm:$0xff] }
  0x32   : > { %3112 = vmatmul.msk.f32.vlgmr.msra.gmra.mxu2 %vm495_vm0, %v735_v54  ;;  %v923_v1 = vmax.f32 %v908_v55, %v3168_v39  ;;  %v450_v7 = vmax.f32 %v435_v60, %v2999_v51  ;;  %v661_v9 = vmax.f32 %v646_v62, %v3063_v58  ;;  %v3141_v10 = vld [vmem:[%s3838_s15 + $0x698] sm:$0xff]  ;;  %v2958_v11 = vld [vmem:[%s3838_s15 + $0x208] sm:$0xff]  ;;  %v3077_v14 = vld [vmem:[%s3838_s15 + $0x510] sm:$0xff] }
  0x33   : > { %v299_v13 = vmax.f32 %v284_v3, %v2929_v61  ;;  %v849_v15 = vmax.f32 %v834_v6, %v3134_v0  ;;  %v2965_v16 = vld [vmem:[%s3838_s15 + $0x240] sm:$0xff]  ;;  %v2972_v17 = vld [vmem:[%s3838_s15 + $0x278] sm:$0xff]  ;;  %v2950_v19 = vld [vmem:[%s3838_s15 + $0x1c8] sm:$0xff] }
  0x34   : > { %v938_v12 = vmax.f32 %v923_v1, %v3175_v49  ;;  %v465_v18 = vmax.f32 %v450_v7, %v3006_v56  ;;  %v676_v20 = vmax.f32 %v661_v9, %v3070_v5  ;;  %v3084_v21 = vld [vmem:[%s3838_s15 + $0x548] sm:$0xff]  ;;  %v3148_v22 = vld [vmem:[%s3838_s15 + $0x6d0] sm:$0xff]  ;;  %v376_v23 = vmax.f32 %v2958_v11, %v2965_v16  ;;  %v3091_v25 = vld [vmem:[%s3838_s15 + $0x580] sm:$0xff] }
  0x35   : > { %v314_v24 = vmax.f32 %v299_v13, %v2936_v4  ;;  %v864_v26 = vmax.f32 %v849_v15, %v3141_v10  ;;  %v2979_v27 = vld [vmem:[%s3838_s15 + $0x2b0] sm:$0xff]  ;;  %v3155_v31 = vld [vmem:[%s3838_s15 + $0x708] sm:$0xff]  ;;  %v2909_v34 = vld [vmem:[%s3838_s15 + $0x80] sm:$0xff] }
  0x36   : > { %3190 = vmatmul.msk.f32.vlgmr.msra.gmra.mxu3 %vm495_vm0, %v938_v12  ;;  %v225_v28 = vld [vmem:[%s3838_s15 + $0x10] sm:$0xff]  ;;  %v480_v29 = vmax.f32 %v465_v18, %v3013_v2  ;;  %v691_v30 = vmax.f32 %v676_v20, %v3077_v14  ;;  %v391_v32 = vmax.f32 %v376_v23, %v2972_v17  ;;  %v2902_v33 = vld [vmem:[%s3838_s15 + $0x48] sm:$0xff]  ;;  %v3098_v36 = vld [vmem:[%s3838_s15 + $0x5b8] sm:$0xff] }
  0x37   : > { %v329_v35 = vmax.f32 %v314_v24, %v2943_v8  ;;  %v879_v37 = vmax.f32 %v864_v26, %v3148_v22  ;;  %v3162_v38 = vld [vmem:[%s3838_s15 + $0x740] sm:$0xff]  ;;  %v2986_v39 = vld [vmem:[%s3838_s15 + $0x2e8] sm:$0xff]  ;;  %v240_v40 = vmax.f32 %v225_v28, %v2902_v33  ;;  %v3169_v42 = vld [vmem:[%s3838_s15 + $0x778] sm:$0xff] }
  0x38   : > { %3028 = vmatmul.msk.f32.gmra.mxu0 %vm495_vm0, %v480_v29  ;;  %v706_v41 = vmax.f32 %v691_v30, %v3084_v21  ;;  %v406_v43 = vmax.f32 %v391_v32, %v2979_v27  ;;  %v2916_v44 = vld [vmem:[%s3838_s15 + $0xb8] sm:$0xff]  ;;  %v3043_v45 = vld [vmem:[%s3838_s15 + $0x400] sm:$0xff]  ;;  %v3057_v51 = vld [vmem:[%s3838_s15 + $0x470] sm:$0xff] }
  0x39   : > { %v344_v46 = vmax.f32 %v329_v35, %v2950_v19  ;;  %v894_v47 = vmax.f32 %v879_v37, %v3155_v31  ;;  %v2993_v48 = vld [vmem:[%s3838_s15 + $0x320] sm:$0xff]  ;;  %v255_v49 = vmax.f32 %v240_v40, %v2909_v34  ;;  %v3050_v50 = vld [vmem:[%s3838_s15 + $0x438] sm:$0xff]  ;;  %v3176_v53 = vld [vmem:[%s3838_s15 + $0x7b0] sm:$0xff] }
  0x3a   : > { %v721_v52 = vmax.f32 %v706_v41, %v3091_v25  ;;  %v421_v54 = vmax.f32 %v406_v43, %v2986_v39  ;;  %v3000_v55 = vld [vmem:[%s3838_s15 + $0x358] sm:$0xff]  ;;  %v2923_v56 = vld [vmem:[%s3838_s15 + $0xf0] sm:$0xff]  ;;  %v632_v57 = vmax.f32 %v3043_v45, %v3050_v50  ;;  %v3064_v61 = vld [vmem:[%s3838_s15 + $0x4a8] sm:$0xff] }
  0x3b   : > { %3035 = vmatmul.msk.f32.gmra.mxu1 %vm495_vm0, %v344_v46  ;;  %v909_v58 = vmax.f32 %v894_v47, %v3162_v38  ;;  %v3007_v59 = vld [vmem:[%s3838_s15 + $0x390] sm:$0xff]  ;;  %v270_v60 = vmax.f32 %v255_v49, %v2916_v44  ;;  %v3121_v62 = vld [vmem:[%s3838_s15 + $0x5f8] sm:$0xff]  ;;  %v2930_v1 = vld [vmem:[%s3838_s15 + $0x128] sm:$0xff] }
  0x3c   : > { %v736_v63 = vmax.f32 %v721_v52, %v3098_v36  ;;  %v436_v0 = vmax.f32 %v421_v54, %v2993_v48  ;;  %v647_v2 = vmax.f32 %v632_v57, %v3057_v51  ;;  %v3128_v3 = vld [vmem:[%s3838_s15 + $0x630] sm:$0xff]  ;;  %v3135_v4 = vld [vmem:[%s3838_s15 + $0x668] sm:$0xff]  ;;  %v2937_v8 = vld [vmem:[%s3838_s15 + $0x160] sm:$0xff] }
  0x3d   : > { %v924_v5 = vmax.f32 %v909_v58, %v3169_v42  ;;  %v3014_v6 = vld [vmem:[%s3838_s15 + $0x3c8] sm:$0xff]  ;;  %v285_v7 = vmax.f32 %v270_v60, %v2923_v56  ;;  %v3071_v9 = vld [vmem:[%s3838_s15 + $0x4e0] sm:$0xff]  ;;  %v835_v10 = vmax.f32 %v3121_v62, %v3128_v3  ;;  %v2944_v12 = vld [vmem:[%s3838_s15 + $0x198] sm:$0xff] }
  0x3e   : > { %3113 = vmatmul.msk.f32.gmra.mxu2 %vm495_vm0, %v736_v63  ;;  %v451_v11 = vmax.f32 %v436_v0, %v3000_v55  ;;  %v662_v13 = vmax.f32 %v647_v2, %v3064_v61  ;;  %v3142_v14 = vld [vmem:[%s3838_s15 + $0x6a0] sm:$0xff]  ;;  %v2959_v15 = vld [vmem:[%s3838_s15 + $0x210] sm:$0xff]  ;;  %v3078_v18 = vld [vmem:[%s3838_s15 + $0x518] sm:$0xff] }
  0x3f   : > { %v939_v16 = vmax.f32 %v924_v5, %v3176_v53  ;;  %v300_v17 = vmax.f32 %v285_v7, %v2930_v1  ;;  %v850_v19 = vmax.f32 %v835_v10, %v3135_v4  ;;  %v2966_v20 = vld [vmem:[%s3838_s15 + $0x248] sm:$0xff]  ;;  %v2973_v21 = vld [vmem:[%s3838_s15 + $0x280] sm:$0xff]  ;;  %v2951_v23 = vld [vmem:[%s3838_s15 + $0x1d0] sm:$0xff] }
  0x40   : > { %v466_v22 = vmax.f32 %v451_v11, %v3007_v59  ;;  %v677_v24 = vmax.f32 %v662_v13, %v3071_v9  ;;  %v3085_v25 = vld [vmem:[%s3838_s15 + $0x550] sm:$0xff]  ;;  %v3149_v26 = vld [vmem:[%s3838_s15 + $0x6d8] sm:$0xff]  ;;  %v377_v27 = vmax.f32 %v2959_v15, %v2966_v20  ;;  %v3092_v29 = vld [vmem:[%s3838_s15 + $0x588] sm:$0xff] }
  0x41   : > { %3191 = vmatmul.msk.f32.gmra.mxu3 %vm495_vm0, %v939_v16  ;;  %v315_v28 = vmax.f32 %v300_v17, %v2937_v8  ;;  %v865_v30 = vmax.f32 %v850_v19, %v3142_v14  ;;  %v2980_v31 = vld [vmem:[%s3838_s15 + $0x2b8] sm:$0xff]  ;;  %v3156_v35 = vld [vmem:[%s3838_s15 + $0x710] sm:$0xff]  ;;  %v2910_v38 = vld [vmem:[%s3838_s15 + $0x88] sm:$0xff] }
  0x42   : > { %v226_v32 = vld [vmem:[%s3838_s15 + $0x18] sm:$0xff]  ;;  %v481_v33 = vmax.f32 %v466_v22, %v3014_v6  ;;  %v692_v34 = vmax.f32 %v677_v24, %v3078_v18  ;;  %v392_v36 = vmax.f32 %v377_v27, %v2973_v21  ;;  %v2903_v37 = vld [vmem:[%s3838_s15 + $0x50] sm:$0xff]  ;;  %v3099_v40 = vld [vmem:[%s3838_s15 + $0x5c0] sm:$0xff] }
  0x43   : > { %v330_v39 = vmax.f32 %v315_v28, %v2944_v12  ;;  %v880_v41 = vmax.f32 %v865_v30, %v3149_v26  ;;  %v3163_v42 = vld [vmem:[%s3838_s15 + $0x748] sm:$0xff]  ;;  %v2987_v43 = vld [vmem:[%s3838_s15 + $0x2f0] sm:$0xff]  ;;  %v241_v44 = vmax.f32 %v226_v32, %v2903_v37  ;;  %v3170_v46 = vld [vmem:[%s3838_s15 + $0x780] sm:$0xff] }
  0x44   : > { %3029 = vmatmul.msk.f32.gmra.mxu0 %vm495_vm0, %v481_v33  ;;  %v707_v45 = vmax.f32 %v692_v34, %v3085_v25  ;;  %v407_v47 = vmax.f32 %v392_v36, %v2980_v31  ;;  %v2917_v48 = vld [vmem:[%s3838_s15 + $0xc0] sm:$0xff]  ;;  %v3044_v49 = vld [vmem:[%s3838_s15 + $0x408] sm:$0xff]  ;;  %v3058_v55 = vld [vmem:[%s3838_s15 + $0x478] sm:$0xff] }
  0x45   : > { %v345_v50 = vmax.f32 %v330_v39, %v2951_v23  ;;  %v895_v51 = vmax.f32 %v880_v41, %v3156_v35  ;;  %v2994_v52 = vld [vmem:[%s3838_s15 + $0x328] sm:$0xff]  ;;  %v256_v53 = vmax.f32 %v241_v44, %v2910_v38  ;;  %v3051_v54 = vld [vmem:[%s3838_s15 + $0x440] sm:$0xff]  ;;  %v3177_v57 = vld [vmem:[%s3838_s15 + $0x7b8] sm:$0xff] }
  0x46   : > { %v722_v56 = vmax.f32 %v707_v45, %v3092_v29  ;;  %v422_v58 = vmax.f32 %v407_v47, %v2987_v43  ;;  %v3001_v59 = vld [vmem:[%s3838_s15 + $0x360] sm:$0xff]  ;;  %v2924_v60 = vld [vmem:[%s3838_s15 + $0xf8] sm:$0xff]  ;;  %v633_v61 = vmax.f32 %v3044_v49, %v3051_v54  ;;  %v3065_v1 = vld [vmem:[%s3838_s15 + $0x4b0] sm:$0xff] }
  0x47   : > { %3036 = vmatmul.msk.f32.gmra.mxu1 %vm495_vm0, %v345_v50  ;;  %v910_v62 = vmax.f32 %v895_v51, %v3163_v42  ;;  %v3008_v63 = vld [vmem:[%s3838_s15 + $0x398] sm:$0xff]  ;;  %v271_v0 = vmax.f32 %v256_v53, %v2917_v48  ;;  %v3122_v2 = vld [vmem:[%s3838_s15 + $0x600] sm:$0xff]  ;;  %v2931_v5 = vld [vmem:[%s3838_s15 + $0x130] sm:$0xff] }
  0x48   : > { %v737_v3 = vmax.f32 %v722_v56, %v3099_v40  ;;  %v437_v4 = vmax.f32 %v422_v58, %v2994_v52  ;;  %v648_v6 = vmax.f32 %v633_v61, %v3058_v55  ;;  %v3129_v7 = vld [vmem:[%s3838_s15 + $0x638] sm:$0xff]  ;;  %v3136_v8 = vld [vmem:[%s3838_s15 + $0x670] sm:$0xff]  ;;  %v2938_v12 = vld [vmem:[%s3838_s15 + $0x168] sm:$0xff] }
  0x49   : > { %v925_v9 = vmax.f32 %v910_v62, %v3170_v46  ;;  %v3015_v10 = vld [vmem:[%s3838_s15 + $0x3d0] sm:$0xff]  ;;  %v286_v11 = vmax.f32 %v271_v0, %v2924_v60  ;;  %v3072_v13 = vld [vmem:[%s3838_s15 + $0x4e8] sm:$0xff]  ;;  %v836_v14 = vmax.f32 %v3122_v2, %v3129_v7  ;;  %v2945_v16 = vld [vmem:[%s3838_s15 + $0x1a0] sm:$0xff] }
  0x4a   : > { %3114 = vmatmul.msk.f32.gmra.mxu2 %vm495_vm0, %v737_v3  ;;  %v452_v15 = vmax.f32 %v437_v4, %v3001_v59  ;;  %v663_v17 = vmax.f32 %v648_v6, %v3065_v1  ;;  %v3079_v18 = vld [vmem:[%s3838_s15 + $0x520] sm:$0xff]  ;;  %v3143_v19 = vld [vmem:[%s3838_s15 + $0x6a8] sm:$0xff]  ;;  %v3267_v20 = vld [vmem:[%s5717_s1 + $0x138] sm:$0xff] }
  0x4b   : > { %v940_v21 = vmax.f32 %v925_v9, %v3177_v57  ;;  %v301_v22 = vmax.f32 %v286_v11, %v2931_v5  ;;  %v851_v23 = vmax.f32 %v836_v14, %v3136_v8  ;;  %1186 = vmatpush.msrb.mxu0 %v3267_v20  ;;  %v2960_v24 = vld [vmem:[%s3838_s15 + $0x218] sm:$0xff]  ;;  %v2967_v25 = vld [vmem:[%s3838_s15 + $0x250] sm:$0xff]  ;;  %v2974_v26 = vld [vmem:[%s3838_s15 + $0x288] sm:$0xff] }
  0x4c   : > { %v467_v27 = vmax.f32 %v452_v15, %v3008_v63  ;;  %v2952_v28 = vld [vmem:[%s3838_s15 + $0x1d8] sm:$0xff]  ;;  %v678_v29 = vmax.f32 %v663_v17, %v3072_v13  ;;  %v3150_v31 = vld [vmem:[%s3838_s15 + $0x6e0] sm:$0xff]  ;;  %v378_v32 = vmax.f32 %v2960_v24, %v2967_v25  ;;  %v3093_v34 = vld [vmem:[%s3838_s15 + $0x590] sm:$0xff] }
  0x4d   : > { %v3086_v30 = vld [vmem:[%s3838_s15 + $0x558] sm:$0xff]  ;;  %3192 = vmatmul.msk.f32.gmra.mxu3 %vm495_vm0, %v940_v21  ;;  %v316_v33 = vmax.f32 %v301_v22, %v2938_v12  ;;  %v866_v35 = vmax.f32 %v851_v23, %v3143_v19  ;;  %v2981_v37 = vld [vmem:[%s3838_s15 + $0x2c0] sm:$0xff]  ;;  %v2911_v43 = vld [vmem:[%s3838_s15 + $0x90] sm:$0xff] }
  0x4e   : > { %v3157_v36 = vld [vmem:[%s3838_s15 + $0x718] sm:$0xff]  ;;  %v482_v38 = vmax.f32 %v467_v27, %v3015_v10  ;;  %v693_v39 = vmax.f32 %v678_v29, %v3079_v18  ;;  %v393_v40 = vmax.f32 %v378_v32, %v2974_v26  ;;  %v227_v41 = vld [vmem:[%s3838_s15 + $0x20] sm:$0xff]  ;;  %v3100_v45 = vld [vmem:[%s3838_s15 + $0x5c8] sm:$0xff] }
  0x4f   : > { %v2904_v42 = vld [vmem:[%s3838_s15 + $0x58] sm:$0xff]  ;;  %v331_v44 = vmax.f32 %v316_v33, %v2945_v16  ;;  %v881_v46 = vmax.f32 %v866_v35, %v3150_v31  ;;  %v3164_v47 = vld [vmem:[%s3838_s15 + $0x750] sm:$0xff]  ;;  %v3171_v51 = vld [vmem:[%s3838_s15 + $0x788] sm:$0xff] }
  0x50   : > { %v2988_v48 = vld [vmem:[%s3838_s15 + $0x2f8] sm:$0xff]  ;;  %v242_v49 = vmax.f32 %v227_v41, %v2904_v42  ;;  %3030 = vmatmul.msk.f32.gmra.mxu0 %vm495_vm0, %v482_v38  ;;  %v708_v50 = vmax.f32 %v693_v39, %v3086_v30  ;;  %v408_v52 = vmax.f32 %v393_v40, %v2981_v37  ;;  %v2995_v53 = vld [vmem:[%s3838_s15 + $0x330] sm:$0xff]  ;;  %v2918_v54 = vld [vmem:[%s3838_s15 + $0xc8] sm:$0xff] }
  0x51   : > { %v346_v55 = vmax.f32 %v331_v44, %v2952_v28  ;;  %v896_v56 = vmax.f32 %v881_v46, %v3157_v36  ;;  %v3045_v58 = vld [vmem:[%s3838_s15 + $0x410] sm:$0xff]  ;;  %v3052_v59 = vld [vmem:[%s3838_s15 + $0x448] sm:$0xff]  ;;  %v3059_v60 = vld [vmem:[%s3838_s15 + $0x480] sm:$0xff] }
  0x52   : > { %v257_v57 = vmax.f32 %v242_v49, %v2911_v43  ;;  %v723_v61 = vmax.f32 %v708_v50, %v3093_v34  ;;  %v3178_v62 = vld [vmem:[%s3838_s15 + $0x7c0] sm:$0xff]  ;;  %v423_v63 = vmax.f32 %v408_v52, %v2988_v48  ;;  %v3002_v0 = vld [vmem:[%s3838_s15 + $0x368] sm:$0xff]  ;;  %v634_v2 = vmax.f32 %v3045_v58, %v3052_v59  ;;  %v2932_v6 = vld [vmem:[%s3838_s15 + $0x138] sm:$0xff] }
  0x53   : > { %v2925_v1 = vld [vmem:[%s3838_s15 + $0x100] sm:$0xff]  ;;  %3037 = vmatmul.msk.f32.gmra.mxu1 %vm495_vm0, %v346_v55  ;;  %v911_v3 = vmax.f32 %v896_v56, %v3164_v47  ;;  %v3066_v7 = vld [vmem:[%s3838_s15 + $0x4b8] sm:$0xff]  ;;  %v3266_v11 = vld [vmem:[%s5717_s1 + $0x130] sm:$0xff] }
  0x54   : > { %v3009_v4 = vld [vmem:[%s3838_s15 + $0x3a0] sm:$0xff]  ;;  %v272_v5 = vmax.f32 %v257_v57, %v2918_v54  ;;  %v738_v8 = vmax.f32 %v723_v61, %v3100_v45  ;;  %v438_v9 = vmax.f32 %v423_v63, %v2995_v53  ;;  %v649_v10 = vmax.f32 %v634_v2, %v3059_v60  ;;  %v3123_v12 = vld [vmem:[%s3838_s15 + $0x608] sm:$0xff]  ;;  %v3016_v15 = vld [vmem:[%s3838_s15 + $0x3d8] sm:$0xff]  ;;  %1187 = vmatpush.msrb.mxu0 %v3266_v11 }
  0x55   : > { %v3130_v13 = vld [vmem:[%s3838_s15 + $0x640] sm:$0xff]  ;;  %v926_v14 = vmax.f32 %v911_v3, %v3171_v51  ;;  %v3073_v17 = vld [vmem:[%s3838_s15 + $0x4f0] sm:$0xff]  ;;  %v3137_v19 = vld [vmem:[%s3838_s15 + $0x678] sm:$0xff] }
  0x56   : > { %v287_v16 = vmax.f32 %v272_v5, %v2925_v1  ;;  %v837_v18 = vmax.f32 %v3123_v12, %v3130_v13  ;;  %3115 = vmatmul.msk.f32.gmra.mxu2 %vm495_vm0, %v738_v8  ;;  %v453_v20 = vmax.f32 %v438_v9, %v3002_v0  ;;  %v2939_v21 = vld [vmem:[%s3838_s15 + $0x170] sm:$0xff]  ;;  %v2946_v22 = vld [vmem:[%s3838_s15 + $0x1a8] sm:$0xff]  ;;  %v664_v23 = vmax.f32 %v649_v10, %v3066_v7  ;;  %v2961_v29 = vld [vmem:[%s3838_s15 + $0x220] sm:$0xff] }
  0x57   : > { %v3144_v24 = vld [vmem:[%s3838_s15 + $0x6b0] sm:$0xff]  ;;  %v941_v25 = vmax.f32 %v926_v14, %v3178_v62  ;;  %v3080_v27 = vld [vmem:[%s3838_s15 + $0x528] sm:$0xff]  ;;  %v2968_v30 = vld [vmem:[%s3838_s15 + $0x258] sm:$0xff] }
  0x58   : > { %v302_v26 = vmax.f32 %v287_v16, %v2932_v6  ;;  %v852_v28 = vmax.f32 %v837_v18, %v3137_v19  ;;  %v468_v31 = vmax.f32 %v453_v20, %v3009_v4  ;;  %v2953_v32 = vld [vmem:[%s3838_s15 + $0x1e0] sm:$0xff]  ;;  %v679_v33 = vmax.f32 %v664_v23, %v3073_v17  ;;  %v3151_v34 = vld [vmem:[%s3838_s15 + $0x6e8] sm:$0xff]  ;;  %v2975_v36 = vld [vmem:[%s3838_s15 + $0x290] sm:$0xff] }
  0x59   : > { %v379_v35 = vmax.f32 %v2961_v29, %v2968_v30  ;;  %3193 = vmatmul.msk.f32.gmra.mxu3 %vm495_vm0, %v941_v25  ;;  %v3087_v38 = vld [vmem:[%s3838_s15 + $0x560] sm:$0xff]  ;;  %v3094_v39 = vld [vmem:[%s3838_s15 + $0x598] sm:$0xff]  ;;  %v2982_v41 = vld [vmem:[%s3838_s15 + $0x2c8] sm:$0xff] }
  0x5a   : > { %v317_v37 = vmax.f32 %v302_v26, %v2939_v21  ;;  %v867_v40 = vmax.f32 %v852_v28, %v3144_v24  ;;  %v483_v42 = vmax.f32 %v468_v31, %v3016_v15  ;;  %v694_v43 = vmax.f32 %v679_v33, %v3080_v27  ;;  %v3158_v44 = vld [vmem:[%s3838_s15 + $0x720] sm:$0xff]  ;;  %v228_v46 = vld [vmem:[%s3838_s15 + $0x28] sm:$0xff]  ;;  %v3101_v49 = vld [vmem:[%s3838_s15 + $0x5d0] sm:$0xff] }
  0x5b   : > { %v394_v45 = vmax.f32 %v379_v35, %v2975_v36  ;;  %v2905_v47 = vld [vmem:[%s3838_s15 + $0x60] sm:$0xff]  ;;  %v2912_v53 = vld [vmem:[%s3838_s15 + $0x98] sm:$0xff]  ;;  %v3172_v56 = vld [vmem:[%s3838_s15 + $0x790] sm:$0xff] }
  0x5c   : > { %v332_v48 = vmax.f32 %v317_v37, %v2946_v22  ;;  %v882_v50 = vmax.f32 %v867_v40, %v3151_v34  ;;  %v2989_v51 = vld [vmem:[%s3838_s15 + $0x300] sm:$0xff]  ;;  %v243_v52 = vmax.f32 %v228_v46, %v2905_v47  ;;  %3031 = vmatmul.msk.f32.gmra.mxu0 %vm495_vm0, %v483_v42  ;;  %v709_v54 = vmax.f32 %v694_v43, %v3087_v38  ;;  %v3165_v55 = vld [vmem:[%s3838_s15 + $0x758] sm:$0xff]  ;;  %v2919_v58 = vld [vmem:[%s3838_s15 + $0xd0] sm:$0xff] }
  0x5d   : > { %v409_v57 = vmax.f32 %v394_v45, %v2982_v41  ;;  %v2996_v61 = vld [vmem:[%s3838_s15 + $0x338] sm:$0xff]  ;;  %v3053_v0 = vld [vmem:[%s3838_s15 + $0x450] sm:$0xff]  ;;  %v3179_v2 = vld [vmem:[%s3838_s15 + $0x7c8] sm:$0xff] }
  0x5e   : > { %v347_v59 = vmax.f32 %v332_v48, %v2953_v32  ;;  %v897_v60 = vmax.f32 %v882_v50, %v3158_v44  ;;  %v258_v62 = vmax.f32 %v243_v52, %v2912_v53  ;;  %v3046_v63 = vld [vmem:[%s3838_s15 + $0x418] sm:$0xff]  ;;  %v724_v1 = vmax.f32 %v709_v54, %v3094_v39  ;;  %v3003_v4 = vld [vmem:[%s3838_s15 + $0x370] sm:$0xff]  ;;  %v2926_v5 = vld [vmem:[%s3838_s15 + $0x108] sm:$0xff] }
  0x5f   : > { %v424_v3 = vmax.f32 %v409_v57, %v2989_v51  ;;  %v635_v6 = vmax.f32 %v3046_v63, %v3053_v0  ;;  %v3060_v7 = vld [vmem:[%s3838_s15 + $0x488] sm:$0xff]  ;;  %v2933_v11 = vld [vmem:[%s3838_s15 + $0x140] sm:$0xff]  ;;  %v3074_v16 = vld [vmem:[%s3838_s15 + $0x4f8] sm:$0xff] }
  0x60   : > { %3038 = vmatmul.msk.f32.gmra.mxu1 %vm495_vm0, %v347_v59  ;;  %v912_v8 = vmax.f32 %v897_v60, %v3165_v55  ;;  %v3010_v9 = vld [vmem:[%s3838_s15 + $0x3a8] sm:$0xff]  ;;  %v273_v10 = vmax.f32 %v258_v62, %v2919_v58  ;;  %v3067_v12 = vld [vmem:[%s3838_s15 + $0x4c0] sm:$0xff]  ;;  %v739_v13 = vmax.f32 %v724_v1, %v3101_v49  ;;  %v3423_v18 = vld [vmem:[%s5717_s1 + $0x1b8] sm:$0xff] }
  0x61   : > { %v439_v14 = vmax.f32 %v424_v3, %v2996_v61  ;;  %v650_v15 = vmax.f32 %v635_v6, %v3060_v7  ;;  %v3265_v17 = vld [vmem:[%s5717_s1 + $0x128] sm:$0xff]  ;;  %v3017_v20 = vld [vmem:[%s3838_s15 + $0x3e0] sm:$0xff]  ;;  %1592 = vmatpush.msrb.mxu2 %v3423_v18  ;;  %v3124_v22 = vld [vmem:[%s3838_s15 + $0x610] sm:$0xff] }
  0x62   : > { %v927_v19 = vmax.f32 %v912_v8, %v3172_v56  ;;  %v288_v21 = vmax.f32 %v273_v10, %v2926_v5  ;;  %1188 = vmatpush.msrb.mxu0 %v3265_v17  ;;  %v3131_v23 = vld [vmem:[%s3838_s15 + $0x648] sm:$0xff]  ;;  %v3138_v24 = vld [vmem:[%s3838_s15 + $0x680] sm:$0xff]  ;;  %3116 = vmatmul.msk.f32.gmra.mxu2 %vm495_vm0, %v739_v13  ;;  %v2940_v26 = vld [vmem:[%s3838_s15 + $0x178] sm:$0xff] }
  0x63   : > { %v454_v25 = vmax.f32 %v439_v14, %v3003_v4  ;;  %v2947_v27 = vld [vmem:[%s3838_s15 + $0x1b0] sm:$0xff]  ;;  %v665_v28 = vmax.f32 %v650_v15, %v3067_v12  ;;  %v838_v30 = vmax.f32 %v3124_v22, %v3131_v23  ;;  %v3088_v33 = vld [vmem:[%s3838_s15 + $0x568] sm:$0xff]  ;;  %v3145_v34 = vld [vmem:[%s3838_s15 + $0x6b8] sm:$0xff] }
  0x64   : > { %v3081_v29 = vld [vmem:[%s3838_s15 + $0x530] sm:$0xff]  ;;  %v942_v31 = vmax.f32 %v927_v19, %v3179_v2  ;;  %v303_v32 = vmax.f32 %v288_v21, %v2933_v11  ;;  %v2954_v37 = vld [vmem:[%s3838_s15 + $0x1e8] sm:$0xff]  ;;  %v3345_v40 = vld [vmem:[%s5717_s1 + $0x178] sm:$0xff] }
  0x65   : > { %v3152_v35 = vld [vmem:[%s3838_s15 + $0x6f0] sm:$0xff]  ;;  %v469_v36 = vmax.f32 %v454_v25, %v3010_v9  ;;  %v680_v38 = vmax.f32 %v665_v28, %v3074_v16  ;;  %v853_v39 = vmax.f32 %v838_v30, %v3138_v24  ;;  %v3501_v42 = vld [vmem:[%s5717_s1 + $0x1f8] sm:$0xff]  ;;  %v3095_v44 = vld [vmem:[%s3838_s15 + $0x5a0] sm:$0xff]  ;;  %1389 = vmatpush.msrb.mxu1 %v3345_v40 }
  0x66   : > { %v3422_v41 = vld [vmem:[%s5717_s1 + $0x1b0] sm:$0xff]  ;;  %3194 = vmatmul.msk.f32.gmra.mxu3 %vm495_vm0, %v942_v31  ;;  %v318_v43 = vmax.f32 %v303_v32, %v2940_v26  ;;  %v3159_v45 = vld [vmem:[%s3838_s15 + $0x728] sm:$0xff]  ;;  %v3264_v52 = vld [vmem:[%s5717_s1 + $0x120] sm:$0xff] }
  0x67   : > { %v3344_v46 = vld [vmem:[%s5717_s1 + $0x170] sm:$0xff]  ;;  %v3421_v47 = vld [vmem:[%s5717_s1 + $0x1a8] sm:$0xff]  ;;  %v484_v48 = vmax.f32 %v469_v36, %v3017_v20  ;;  %v695_v49 = vmax.f32 %v680_v38, %v3081_v29  ;;  %v868_v50 = vmax.f32 %v853_v39, %v3145_v34  ;;  %1593 = vmatpush.msrb.mxu2 %v3422_v41  ;;  %1795 = vmatpush.msrb.mxu3 %v3501_v42  ;;  %v3420_v55 = vld [vmem:[%s5717_s1 + $0x1a0] sm:$0xff] }
  0x68   : > { %v3500_v51 = vld [vmem:[%s5717_s1 + $0x1f0] sm:$0xff]  ;;  %v3343_v53 = vld [vmem:[%s5717_s1 + $0x168] sm:$0xff]  ;;  %v333_v54 = vmax.f32 %v318_v43, %v2947_v27  ;;  %1390 = vmatpush.msrb.mxu1 %v3344_v46  ;;  %1189 = vmatpush.msrb.mxu0 %v3264_v52  ;;  %v2969_v57 = vld [vmem:[%s3838_s15 + $0x260] sm:$0x1] }
  0x69   : > { %v2962_v56 = vld [vmem:[%s3838_s15 + $0x228] sm:$0x1]  ;;  %3032 = vmatmul.msk.f32.gmra.mxu0 %vm495_vm0, %v484_v48  ;;  %v710_v58 = vmax.f32 %v695_v49, %v3088_v33  ;;  %v883_v59 = vmax.f32 %v868_v50, %v3152_v35  ;;  %1594 = vmatpush.msrb.mxu2 %v3421_v47  ;;  %v2976_v62 = vld [vmem:[%s3838_s15 + $0x298] sm:$0x1]  ;;  %v3166_v1 = vld [vmem:[%s3838_s15 + $0x760] sm:$0xff] }
  0x6a   : > { %v3499_v60 = vld [vmem:[%s5717_s1 + $0x1e8] sm:$0xff]  ;;  %v380_v61 = vmax.f32 %v2962_v56, %v2969_v57  ;;  %v348_v63 = vmax.f32 %v333_v54, %v2954_v37  ;;  %v3102_v0 = vld [vmem:[%s3838_s15 + $0x5d8] sm:$0xff]  ;;  %1796 = vmatpush.msrb.mxu3 %v3500_v51  ;;  %1391 = vmatpush.msrb.mxu1 %v3343_v53  ;;  %v2983_v2 = vld [vmem:[%s3838_s15 + $0x2d0] sm:$0x1] }
  0x6b   : > { %v725_v3 = vmax.f32 %v710_v58, %v3095_v44  ;;  %v898_v4 = vmax.f32 %v883_v59, %v3159_v45  ;;  %1595 = vmatpush.msrb.mxu2 %v3420_v55  ;;  %v229_v6 = vld [vmem:[%s3838_s15 + $0x30] sm:$0x1]  ;;  %v2906_v7 = vld [vmem:[%s3838_s15 + $0x68] sm:$0x1]  ;;  %v3173_v8 = vld [vmem:[%s3838_s15 + $0x798] sm:$0xff] }
  0x6c   : > { %v395_v5 = vmax.f32 %v380_v61, %v2976_v62  ;;  %3039 = vmatmul.msk.f32.gmra.mxu1 %vm495_vm0, %v348_v63  ;;  %1797 = vmatpush.msrb.mxu3 %v3499_v60  ;;  %v2990_v9 = vld [vmem:[%s3838_s15 + $0x308] sm:$0x1]  ;;  %v244_v10 = vmax.f32 %v229_v6, %v2906_v7  ;;  %v2913_v11 = vld [vmem:[%s3838_s15 + $0xa0] sm:$0x1]  ;;  %v3180_v14 = vld [vmem:[%s3838_s15 + $0x7d0] sm:$0xff] }
  0x6d   : > { %v740_v12 = vmax.f32 %v725_v3, %v3102_v0  ;;  %v913_v13 = vmax.f32 %v898_v4, %v3166_v1  ;;  %v2920_v16 = vld [vmem:[%s3838_s15 + $0xd8] sm:$0x1]  ;;  %v2997_v17 = vld [vmem:[%s3838_s15 + $0x340] sm:$0x1]  ;;  %v2927_v24 = vld [vmem:[%s3838_s15 + $0x110] sm:$0x1] }
  0x6e   : > { %v410_v15 = vmax.f32 %v395_v5, %v2983_v2  ;;  %v259_v18 = vmax.f32 %v244_v10, %v2913_v11  ;;  %v3047_v19 = vld [vmem:[%s3838_s15 + $0x420] sm:$0x1]  ;;  %v3054_v20 = vld [vmem:[%s3838_s15 + $0x458] sm:$0x1]  ;;  %v3061_v26 = vld [vmem:[%s3838_s15 + $0x490] sm:$0x1] }
  0x6f   : > { %3117 = vmatmul.msk.f32.gmra.mxu2 %vm495_vm0, %v740_v12  ;;  %v928_v21 = vmax.f32 %v913_v13, %v3173_v8  ;;  %v3004_v23 = vld [vmem:[%s3838_s15 + $0x378] sm:$0x1]  ;;  %v636_v25 = vmax.f32 %v3047_v19, %v3054_v20  ;;  %v3011_v27 = vld [vmem:[%s3838_s15 + $0x3b0] sm:$0x1]  ;;  %v2934_v29 = vld [vmem:[%s3838_s15 + $0x148] sm:$0x1] }
  0x70   : > { %v425_v22 = vmax.f32 %v410_v15, %v2990_v9  ;;  %v274_v28 = vmax.f32 %v259_v18, %v2920_v16  ;;  %v3068_v30 = vld [vmem:[%s3838_s15 + $0x4c8] sm:$0x1]  ;;  %v3075_v34 = vld [vmem:[%s3838_s15 + $0x500] sm:$0x1]  ;;  %v3263_v35 = vld [vmem:[%s5717_s1 + $0x118] sm:$0xff] }
  0x71   : > { %v943_v31 = vmax.f32 %v928_v21, %v3180_v14  ;;  %v651_v33 = vmax.f32 %v636_v25, %v3061_v26  ;;  %v3342_v36 = vld [vmem:[%s5717_s1 + $0x160] sm:$0xff]  ;;  %v3018_v37 = vld [vmem:[%s3838_s15 + $0x3e8] sm:$0x1]  ;;  %1190 = vmatpush.msrb.mxu0 %v3263_v35  ;;  %v3419_v39 = vld [vmem:[%s5717_s1 + $0x198] sm:$0xff] }
  0x72   : > { %v440_v32 = vmax.f32 %v425_v22, %v2997_v17  ;;  %v289_v38 = vmax.f32 %v274_v28, %v2927_v24  ;;  %1392 = vmatpush.msrb.mxu1 %v3342_v36  ;;  %v3498_v40 = vld [vmem:[%s5717_s1 + $0x1e0] sm:$0xff]  ;;  %v3125_v41 = vld [vmem:[%s3838_s15 + $0x618] sm:$0x1]  ;;  %1596 = vmatpush.msrb.mxu2 %v3419_v39  ;;  %v3132_v45 = vld [vmem:[%s3838_s15 + $0x650] sm:$0x1] }
  0x73   : > { %3195 = vmatmul.msk.f32.gmra.mxu3 %vm495_vm0, %v943_v31  ;;  %v2941_v43 = vld [vmem:[%s3838_s15 + $0x180] sm:$0x1]  ;;  %v666_v44 = vmax.f32 %v651_v33, %v3068_v30  ;;  %v3139_v46 = vld [vmem:[%s3838_s15 + $0x688] sm:$0x1]  ;;  %v2948_v48 = vld [vmem:[%s3838_s15 + $0x1b8] sm:$0x1]  ;;  %v839_v51 = vmax.f32 %v3125_v41, %v3132_v45 }
  0x74   : > { %v455_v42 = vmax.f32 %v440_v32, %v3004_v23  ;;  %v304_v47 = vmax.f32 %v289_v38, %v2934_v29  ;;  %v3082_v49 = vld [vmem:[%s3838_s15 + $0x538] sm:$0x1]  ;;  %v3089_v50 = vld [vmem:[%s3838_s15 + $0x570] sm:$0x1]  ;;  %1798 = vmatpush.msrb.mxu3 %v3498_v40  ;;  %v3146_v55 = vld [vmem:[%s3838_s15 + $0x6c0] sm:$0x1] }
  0x75   : > { %v2955_v53 = vld [vmem:[%s3838_s15 + $0x1f0] sm:$0x1]  ;;  %v681_v54 = vmax.f32 %v666_v44, %v3075_v34  ;;  %v3153_v56 = vld [vmem:[%s3838_s15 + $0x6f8] sm:$0x1]  ;;  %v3096_v59 = vld [vmem:[%s3838_s15 + $0x5a8] sm:$0x1]  ;;  %v854_v60 = vmax.f32 %v839_v51, %v3139_v46 }
  0x76   : > { %v470_v52 = vmax.f32 %v455_v42, %v3011_v27  ;;  %v3262_v57 = vld [vmem:[%s5717_s1 + $0x110] sm:$0xff]  ;;  %v319_v58 = vmax.f32 %v304_v47, %v2941_v43  ;;  %v3341_v61 = vld [vmem:[%s5717_s1 + $0x158] sm:$0xff]  ;;  %v3261_v2 = vld [vmem:[%s5717_s1 + $0x108] sm:$0xff] }
  0x77   : > { %1191 = vmatpush.msrb.mxu0 %v3262_v57  ;;  %v3418_v62 = vld [vmem:[%s5717_s1 + $0x190] sm:$0xff]  ;;  %v3497_v63 = vld [vmem:[%s5717_s1 + $0x1d8] sm:$0xff]  ;;  %v696_v1 = vmax.f32 %v681_v54, %v3082_v49  ;;  %1393 = vmatpush.msrb.mxu1 %v3341_v61  ;;  %v3417_v4 = vld [vmem:[%s5717_s1 + $0x188] sm:$0xff]  ;;  %v869_v7 = vmax.f32 %v854_v60, %v3146_v55 }
  0x78   : > { %v485_v0 = vmax.f32 %v470_v52, %v3018_v37  ;;  %1597 = vmatpush.msrb.mxu2 %v3418_v62  ;;  %v3340_v3 = vld [vmem:[%s5717_s1 + $0x150] sm:$0xff]  ;;  %v334_v5 = vmax.f32 %v319_v58, %v2948_v48  ;;  %v3103_v6 = vld [vmem:[%s3838_s15 + $0x5e0] sm:$0x1]  ;;  %1799 = vmatpush.msrb.mxu3 %v3497_v63  ;;  %v3339_v10 = vld [vmem:[%s5717_s1 + $0x148] sm:$0xff] }
  0x79   : > { %1192 = vmatpush.msrb.mxu0 %v3261_v2  ;;  %v3496_v8 = vld [vmem:[%s5717_s1 + $0x1d0] sm:$0xff]  ;;  %v3260_v9 = vld [vmem:[%s5717_s1 + $0x100] sm:$0xff]  ;;  %v711_v11 = vmax.f32 %v696_v1, %v3089_v50  ;;  %1394 = vmatpush.msrb.mxu1 %v3340_v3  ;;  %v884_v16 = vmax.f32 %v869_v7, %v3153_v56  ;;  %v3495_v17 = vld [vmem:[%s5717_s1 + $0x1c8] sm:$0xff] }
  0x7a   : > { %3033 = vmatmul.msk.f32.gmra.mxu0 %vm495_vm0, %v485_v0  ;;  %v3160_v12 = vld [vmem:[%s3838_s15 + $0x730] sm:$0x1]  ;;  %v3416_v13 = vld [vmem:[%s5717_s1 + $0x180] sm:$0xff]  ;;  %v349_v15 = vmax.f32 %v334_v5, %v2955_v53  ;;  %1598 = vmatpush.msrb.mxu2 %v3417_v4  ;;  %v3204_v18 = vld [vmem:[%s3838_s15 + $0x818] sm:$0xff] }
  0x7b   : > { %v3197_v14 = vld [vmem:[%s3838_s15 + $0x7e0] sm:$0xff]  ;;  %1800 = vmatpush.msrb.mxu3 %v3496_v8  ;;  %v3211_v19 = vld [vmem:[%s3838_s15 + $0x850] sm:$0xff]  ;;  %v726_v20 = vmax.f32 %v711_v11, %v3096_v59  ;;  %v3167_v21 = vld [vmem:[%s3838_s15 + $0x768] sm:$0x1]  ;;  %1193 = vmatpush.msrb.mxu0 %v3260_v9  ;;  %v899_v23 = vmax.f32 %v884_v16, %v3160_v12 }
  0x7c   : > { %1395 = vmatpush.msrb.mxu1 %v3339_v10  ;;  %v1036_v22 = vmax.f32 %v3197_v14, %v3204_v18  ;;  %1599 = vmatpush.msrb.mxu2 %v3416_v13  ;;  %v3218_v24 = vld [vmem:[%s3838_s15 + $0x888] sm:$0xff]  ;;  %v3353_v25 = vld [vmem:[%s3838_s15 + $0xbd0] sm:$0xff]  ;;  %v3174_v27 = vld [vmem:[%s3838_s15 + $0x7a0] sm:$0x1] }
  0x7d   : > { %3040 = vmatmul.msk.f32.gmra.mxu1 %vm495_vm0, %v349_v15  ;;  %v741_v26 = vmax.f32 %v726_v20, %v3103_v6  ;;  %1801 = vmatpush.msrb.mxu3 %v3495_v17  ;;  %v3360_v29 = vld [vmem:[%s3838_s15 + $0xc08] sm:$0xff]  ;;  %v3367_v30 = vld [vmem:[%s3838_s15 + $0xc40] sm:$0xff]  ;;  %v914_v31 = vmax.f32 %v899_v23, %v3167_v21  ;;  %v3181_v32 = vld [vmem:[%s3838_s15 + $0x7d8] sm:$0x1] }
  0x7e   : > { %v1051_v28 = vmax.f32 %v1036_v22, %v3211_v19  ;;  %v3225_v33 = vld [vmem:[%s3838_s15 + $0x8c0] sm:$0xff]  ;;  %v1442_v34 = vmax.f32 %v3353_v25, %v3360_v29  ;;  %v3232_v36 = vld [vmem:[%s3838_s15 + $0x8f8] sm:$0xff]  ;;  %v3282_v43 = vld [vmem:[%s3838_s15 + $0xa10] sm:$0xff] }
  0x7f   : > { %3118 = vmatmul.msk.f32.gmra.mxu2 %vm495_vm0, %v741_v26  ;;  %v3374_v37 = vld [vmem:[%s3838_s15 + $0xc78] sm:$0xff]  ;;  %v3338_v38 = vld [vmem:[%s5717_s1 + $0x140] sm:$0xff]  ;;  %v929_v39 = vmax.f32 %v914_v31, %v3174_v27  ;;  %v3381_v45 = vld [vmem:[%s3838_s15 + $0xcb0] sm:$0xff] }
  0x80   : > { %v1066_v35 = vmax.f32 %v1051_v28, %v3218_v24  ;;  %v1457_v40 = vmax.f32 %v1442_v34, %v3367_v30  ;;  %1396 = vmatpush.msrb.mxu1 %v3338_v38  ;;  %v3494_v41 = vld [vmem:[%s5717_s1 + $0x1c0] sm:$0xff]  ;;  %v3275_v42 = vld [vmem:[%s3838_s15 + $0x9d8] sm:$0xff]  ;;  %v3289_v47 = vld [vmem:[%s3838_s15 + $0xa48] sm:$0xff] }
  0x81   : > { %1802 = vmatpush.msrb.mxu3 %v3494_v41  ;;  %v1239_v46 = vmax.f32 %v3275_v42, %v3282_v43  ;;  %v944_v48 = vmax.f32 %v929_v39, %v3181_v32  ;;  %v3239_v49 = vld [vmem:[%s3838_s15 + $0x930] sm:$0xff]  ;;  %v3246_v50 = vld [vmem:[%s3838_s15 + $0x968] sm:$0xff]  ;;  %v3296_v52 = vld [vmem:[%s3838_s15 + $0xa80] sm:$0xff] }
  0x82   : > { %v1081_v44 = vmax.f32 %v1066_v35, %v3225_v33  ;;  %v1472_v51 = vmax.f32 %v1457_v40, %v3374_v37  ;;  %v3388_v54 = vld [vmem:[%s3838_s15 + $0xce8] sm:$0xff]  ;;  %v3438_v57 = vld [vmem:[%s3838_s15 + $0xe00] sm:$0xff]  ;;  %v3303_v60 = vld [vmem:[%s3838_s15 + $0xab8] sm:$0xff] }
  0x83   : > { %v1254_v55 = vmax.f32 %v1239_v46, %v3289_v47  ;;  %v3431_v56 = vld [vmem:[%s3838_s15 + $0xdc8] sm:$0xff]  ;;  %3196 = vmatmul.msk.f32.gmra.mxu3 %vm495_vm0, %v944_v48  ;;  %v3253_v58 = vld [vmem:[%s3838_s15 + $0x9a0] sm:$0xff]  ;;  %v3445_v62 = vld [vmem:[%s3838_s15 + $0xe38] sm:$0xff] }
  0x84   : > { %v1096_v53 = vmax.f32 %v1081_v44, %v3232_v36  ;;  %v1487_v59 = vmax.f32 %v1472_v51, %v3381_v45  ;;  %v1645_v61 = vmax.f32 %v3431_v56, %v3438_v57  ;;  %v3395_v0 = vld [vmem:[%s3838_s15 + $0xd20] sm:$0xff]  ;;  %v3402_v1 = vld [vmem:[%s3838_s15 + $0xd58] sm:$0xff]  ;;  %v3452_v3 = vld [vmem:[%s3838_s15 + $0xe70] sm:$0xff] }
  0x85   : > { %v1269_v2 = vmax.f32 %v1254_v55, %v3296_v52  ;;  %v3310_v5 = vld [vmem:[%s3838_s15 + $0xaf0] sm:$0xff]  ;;  %v3198_v7 = vld [vmem:[%s3838_s15 + $0x7e8] sm:$0xff]  ;;  %v3205_v8 = vld [vmem:[%s3838_s15 + $0x820] sm:$0xff] }
  0x86   : > { %v1111_v63 = vmax.f32 %v1096_v53, %v3239_v49  ;;  %v1502_v4 = vmax.f32 %v1487_v59, %v3388_v54  ;;  %v1660_v6 = vmax.f32 %v1645_v61, %v3445_v62  ;;  %v3409_v10 = vld [vmem:[%s3838_s15 + $0xd90] sm:$0xff]  ;;  %v3459_v12 = vld [vmem:[%s3838_s15 + $0xea8] sm:$0xff]  ;;  %v1037_v13 = vmax.f32 %v3198_v7, %v3205_v8  ;;  %v3212_v14 = vld [vmem:[%s3838_s15 + $0x858] sm:$0xff] }
  0x87   : > { %v1284_v11 = vmax.f32 %v1269_v2, %v3303_v60  ;;  %v3317_v16 = vld [vmem:[%s3838_s15 + $0xb28] sm:$0xff]  ;;  %v3324_v17 = vld [vmem:[%s3838_s15 + $0xb60] sm:$0xff]  ;;  %v3219_v19 = vld [vmem:[%s3838_s15 + $0x890] sm:$0xff] }
  0x88   : > { %v1126_v9 = vmax.f32 %v1111_v63, %v3246_v50  ;;  %v1517_v15 = vmax.f32 %v1502_v4, %v3395_v0  ;;  %v1675_v18 = vmax.f32 %v1660_v6, %v3452_v3  ;;  %v3466_v22 = vld [vmem:[%s3838_s15 + $0xee0] sm:$0xff]  ;;  %v1052_v23 = vmax.f32 %v1037_v13, %v3212_v14  ;;  %v3354_v24 = vld [vmem:[%s3838_s15 + $0xbd8] sm:$0xff]  ;;  %v3361_v25 = vld [vmem:[%s3838_s15 + $0xc10] sm:$0xff] }
  0x89   : > { %v1299_v21 = vmax.f32 %v1284_v11, %v3310_v5  ;;  %v3331_v27 = vld [vmem:[%s3838_s15 + $0xb98] sm:$0xff]  ;;  %v3226_v29 = vld [vmem:[%s3838_s15 + $0x8c8] sm:$0xff]  ;;  %v1443_v30 = vmax.f32 %v3354_v24, %v3361_v25  ;;  %v3480_v34 = vld [vmem:[%s3838_s15 + $0xf50] sm:$0xff] }
  0x8a   : > { %v1141_v20 = vmax.f32 %v1126_v9, %v3253_v58  ;;  %v1532_v26 = vmax.f32 %v1517_v15, %v3402_v1  ;;  %v1690_v28 = vmax.f32 %v1675_v18, %v3459_v12  ;;  %v3368_v31 = vld [vmem:[%s3838_s15 + $0xc48] sm:$0xff]  ;;  %v3473_v33 = vld [vmem:[%s3838_s15 + $0xf18] sm:$0xff]  ;;  %v1067_v35 = vmax.f32 %v1052_v23, %v3219_v19  ;;  %v3375_v36 = vld [vmem:[%s3838_s15 + $0xc80] sm:$0xff] }
  0x8b   : > { %v1314_v32 = vmax.f32 %v1299_v21, %v3317_v16  ;;  %v3233_v39 = vld [vmem:[%s3838_s15 + $0x900] sm:$0xff]  ;;  %v1458_v40 = vmax.f32 %v1443_v30, %v3368_v31  ;;  %v3283_v42 = vld [vmem:[%s3838_s15 + $0xa18] sm:$0xff]  ;;  %v3487_v44 = vld [vmem:[%s3838_s15 + $0xf88] sm:$0xff] }
  0x8c   : > { %3268 = vmatmul.msk.f32.vlgmr.msrb.gmra.mxu0 %vm495_vm0, %v1141_v20  ;;  %v1547_v37 = vmax.f32 %v1532_v26, %v3409_v10  ;;  %v1705_v38 = vmax.f32 %v1690_v28, %v3466_v22  ;;  %v3276_v41 = vld [vmem:[%s3838_s15 + $0x9e0] sm:$0xff]  ;;  %v1082_v45 = vmax.f32 %v1067_v35, %v3226_v29  ;;  %v3382_v46 = vld [vmem:[%s3838_s15 + $0xcb8] sm:$0xff]  ;;  %v3290_v48 = vld [vmem:[%s3838_s15 + $0xa50] sm:$0xff] }
  0x8d   : > { %v1329_v43 = vmax.f32 %v1314_v32, %v3324_v17  ;;  %v1240_v47 = vmax.f32 %v3276_v41, %v3283_v42  ;;  %v3240_v50 = vld [vmem:[%s3838_s15 + $0x938] sm:$0xff]  ;;  %v3247_v51 = vld [vmem:[%s3838_s15 + $0x970] sm:$0xff]  ;;  %v1473_v52 = vmax.f32 %v1458_v40, %v3375_v36  ;;  %v3297_v53 = vld [vmem:[%s3838_s15 + $0xa88] sm:$0xff] }
  0x8e   : > { %3424 = vmatmul.msk.f32.vlgmr.msrb.gmra.mxu2 %vm495_vm0, %v1547_v37  ;;  %v1720_v49 = vmax.f32 %v1705_v38, %v3473_v33  ;;  %v1097_v55 = vmax.f32 %v1082_v45, %v3233_v39  ;;  %v3389_v56 = vld [vmem:[%s3838_s15 + $0xcf0] sm:$0xff]  ;;  %v3439_v59 = vld [vmem:[%s3838_s15 + $0xe08] sm:$0xff]  ;;  %v3304_v63 = vld [vmem:[%s3838_s15 + $0xac0] sm:$0xff] }
  0x8f   : > { %v1344_v54 = vmax.f32 %v1329_v43, %v3331_v27  ;;  %v1255_v57 = vmax.f32 %v1240_v47, %v3290_v48  ;;  %v3432_v58 = vld [vmem:[%s3838_s15 + $0xdd0] sm:$0xff]  ;;  %v3254_v61 = vld [vmem:[%s3838_s15 + $0x9a8] sm:$0xff]  ;;  %v1488_v62 = vmax.f32 %v1473_v52, %v3382_v46  ;;  %v3446_v1 = vld [vmem:[%s3838_s15 + $0xe40] sm:$0xff] }
  0x90   : > { %v1735_v60 = vmax.f32 %v1720_v49, %v3480_v34  ;;  %v1646_v0 = vmax.f32 %v3432_v58, %v3439_v59  ;;  %v1112_v2 = vmax.f32 %v1097_v55, %v3240_v50  ;;  %v3396_v3 = vld [vmem:[%s3838_s15 + $0xd28] sm:$0xff]  ;;  %v3403_v4 = vld [vmem:[%s3838_s15 + $0xd60] sm:$0xff]  ;;  %v3453_v6 = vld [vmem:[%s3838_s15 + $0xe78] sm:$0xff] }
  0x91   : > { %3346 = vmatmul.msk.f32.vlgmr.msrb.gmra.mxu1 %vm495_vm0, %v1344_v54  ;;  %v1270_v5 = vmax.f32 %v1255_v57, %v3297_v53  ;;  %v1503_v8 = vmax.f32 %v1488_v62, %v3389_v56  ;;  %v3311_v9 = vld [vmem:[%s3838_s15 + $0xaf8] sm:$0xff]  ;;  %v3199_v11 = vld [vmem:[%s3838_s15 + $0x7f0] sm:$0xff]  ;;  %v3206_v12 = vld [vmem:[%s3838_s15 + $0x828] sm:$0xff] }
  0x92   : > { %v1750_v7 = vmax.f32 %v1735_v60, %v3487_v44  ;;  %v1661_v10 = vmax.f32 %v1646_v0, %v3446_v1  ;;  %v1127_v13 = vmax.f32 %v1112_v2, %v3247_v51  ;;  %v3410_v14 = vld [vmem:[%s3838_s15 + $0xd98] sm:$0xff]  ;;  %v3460_v16 = vld [vmem:[%s3838_s15 + $0xeb0] sm:$0xff]  ;;  %v1038_v17 = vmax.f32 %v3199_v11, %v3206_v12  ;;  %v3213_v18 = vld [vmem:[%s3838_s15 + $0x860] sm:$0xff] }
  0x93   : > { %v1285_v15 = vmax.f32 %v1270_v5, %v3304_v63  ;;  %v1518_v19 = vmax.f32 %v1503_v8, %v3396_v3  ;;  %v3318_v20 = vld [vmem:[%s3838_s15 + $0xb30] sm:$0xff]  ;;  %v3325_v21 = vld [vmem:[%s3838_s15 + $0xb68] sm:$0xff]  ;;  %v3220_v23 = vld [vmem:[%s3838_s15 + $0x898] sm:$0xff] }
  0x94   : > { %3502 = vmatmul.msk.f32.vlgmr.msrb.gmra.mxu3 %vm495_vm0, %v1750_v7  ;;  %v1676_v22 = vmax.f32 %v1661_v10, %v3453_v6  ;;  %v1142_v24 = vmax.f32 %v1127_v13, %v3254_v61  ;;  %v3467_v26 = vld [vmem:[%s3838_s15 + $0xee8] sm:$0xff]  ;;  %v1053_v27 = vmax.f32 %v1038_v17, %v3213_v18  ;;  %v3355_v28 = vld [vmem:[%s3838_s15 + $0xbe0] sm:$0xff]  ;;  %v3362_v29 = vld [vmem:[%s3838_s15 + $0xc18] sm:$0xff] }
  0x95   : > { %v1300_v25 = vmax.f32 %v1285_v15, %v3311_v9  ;;  %v1533_v30 = vmax.f32 %v1518_v19, %v3403_v4  ;;  %v3332_v31 = vld [vmem:[%s3838_s15 + $0xba0] sm:$0xff]  ;;  %v3227_v33 = vld [vmem:[%s3838_s15 + $0x8d0] sm:$0xff]  ;;  %v1444_v34 = vmax.f32 %v3355_v28, %v3362_v29  ;;  %v3481_v38 = vld [vmem:[%s3838_s15 + $0xf58] sm:$0xff] }
  0x96   : > { %v1691_v32 = vmax.f32 %v1676_v22, %v3460_v16  ;;  %v3369_v35 = vld [vmem:[%s3838_s15 + $0xc50] sm:$0xff]  ;;  %3269 = vmatmul.msk.f32.gmra.mxu0 %vm495_vm0, %v1142_v24  ;;  %v3474_v37 = vld [vmem:[%s3838_s15 + $0xf20] sm:$0xff]  ;;  %v1068_v39 = vmax.f32 %v1053_v27, %v3220_v23  ;;  %v3376_v40 = vld [vmem:[%s3838_s15 + $0xc88] sm:$0xff] }
  0x97   : > { %v1315_v36 = vmax.f32 %v1300_v25, %v3318_v20  ;;  %v1548_v41 = vmax.f32 %v1533_v30, %v3410_v14  ;;  %v3234_v43 = vld [vmem:[%s3838_s15 + $0x908] sm:$0xff]  ;;  %v1459_v44 = vmax.f32 %v1444_v34, %v3369_v35  ;;  %v3284_v46 = vld [vmem:[%s3838_s15 + $0xa20] sm:$0xff]  ;;  %v3488_v48 = vld [vmem:[%s3838_s15 + $0xf90] sm:$0xff] }
  0x98   : > { %v1706_v42 = vmax.f32 %v1691_v32, %v3467_v26  ;;  %v3277_v45 = vld [vmem:[%s3838_s15 + $0x9e8] sm:$0xff]  ;;  %v1083_v49 = vmax.f32 %v1068_v39, %v3227_v33  ;;  %v3383_v50 = vld [vmem:[%s3838_s15 + $0xcc0] sm:$0xff]  ;;  %v3291_v52 = vld [vmem:[%s3838_s15 + $0xa58] sm:$0xff] }
  0x99   : > { %v1330_v47 = vmax.f32 %v1315_v36, %v3325_v21  ;;  %v1241_v51 = vmax.f32 %v3277_v45, %v3284_v46  ;;  %3425 = vmatmul.msk.f32.gmra.mxu2 %vm495_vm0, %v1548_v41  ;;  %v3241_v54 = vld [vmem:[%s3838_s15 + $0x940] sm:$0xff]  ;;  %v3248_v55 = vld [vmem:[%s3838_s15 + $0x978] sm:$0xff]  ;;  %v1474_v56 = vmax.f32 %v1459_v44, %v3376_v40  ;;  %v3298_v57 = vld [vmem:[%s3838_s15 + $0xa90] sm:$0xff] }
  0x9a   : > { %v1721_v53 = vmax.f32 %v1706_v42, %v3474_v37  ;;  %v1098_v59 = vmax.f32 %v1083_v49, %v3234_v43  ;;  %v3390_v60 = vld [vmem:[%s3838_s15 + $0xcf8] sm:$0xff]  ;;  %v3440_v63 = vld [vmem:[%s3838_s15 + $0xe10] sm:$0xff]  ;;  %v3305_v3 = vld [vmem:[%s3838_s15 + $0xac8] sm:$0xff] }
  0x9b   : > { %v1345_v58 = vmax.f32 %v1330_v47, %v3332_v31  ;;  %v1256_v61 = vmax.f32 %v1241_v51, %v3291_v52  ;;  %v3433_v62 = vld [vmem:[%s3838_s15 + $0xdd8] sm:$0xff]  ;;  %v3255_v1 = vld [vmem:[%s3838_s15 + $0x9b0] sm:$0xff]  ;;  %v1489_v2 = vmax.f32 %v1474_v56, %v3383_v50  ;;  %v3447_v5 = vld [vmem:[%s3838_s15 + $0xe48] sm:$0xff] }
  0x9c   : > { %v1736_v0 = vmax.f32 %v1721_v53, %v3481_v38  ;;  %v1647_v4 = vmax.f32 %v3433_v62, %v3440_v63  ;;  %v1113_v6 = vmax.f32 %v1098_v59, %v3241_v54  ;;  %v3397_v7 = vld [vmem:[%s3838_s15 + $0xd30] sm:$0xff]  ;;  %v3404_v8 = vld [vmem:[%s3838_s15 + $0xd68] sm:$0xff]  ;;  %v3454_v10 = vld [vmem:[%s3838_s15 + $0xe80] sm:$0xff] }
  0x9d   : > { %3347 = vmatmul.msk.f32.gmra.mxu1 %vm495_vm0, %v1345_v58  ;;  %v1271_v9 = vmax.f32 %v1256_v61, %v3298_v57  ;;  %v1504_v12 = vmax.f32 %v1489_v2, %v3390_v60  ;;  %v3312_v13 = vld [vmem:[%s3838_s15 + $0xb00] sm:$0xff]  ;;  %v3200_v15 = vld [vmem:[%s3838_s15 + $0x7f8] sm:$0xff]  ;;  %v3207_v16 = vld [vmem:[%s3838_s15 + $0x830] sm:$0xff] }
  0x9e   : > { %v1751_v11 = vmax.f32 %v1736_v0, %v3488_v48  ;;  %v1662_v14 = vmax.f32 %v1647_v4, %v3447_v5  ;;  %v1128_v17 = vmax.f32 %v1113_v6, %v3248_v55  ;;  %v3411_v18 = vld [vmem:[%s3838_s15 + $0xda0] sm:$0xff]  ;;  %v3461_v20 = vld [vmem:[%s3838_s15 + $0xeb8] sm:$0xff]  ;;  %v1039_v21 = vmax.f32 %v3200_v15, %v3207_v16  ;;  %v3214_v22 = vld [vmem:[%s3838_s15 + $0x868] sm:$0xff] }
  0x9f   : > { %v1286_v19 = vmax.f32 %v1271_v9, %v3305_v3  ;;  %v1519_v23 = vmax.f32 %v1504_v12, %v3397_v7  ;;  %v3319_v24 = vld [vmem:[%s3838_s15 + $0xb38] sm:$0xff]  ;;  %v3326_v25 = vld [vmem:[%s3838_s15 + $0xb70] sm:$0xff]  ;;  %v3221_v27 = vld [vmem:[%s3838_s15 + $0x8a0] sm:$0xff] }
  0xa0   : > { %3503 = vmatmul.msk.f32.gmra.mxu3 %vm495_vm0, %v1751_v11  ;;  %v1677_v26 = vmax.f32 %v1662_v14, %v3454_v10  ;;  %v1143_v28 = vmax.f32 %v1128_v17, %v3255_v1  ;;  %v3468_v30 = vld [vmem:[%s3838_s15 + $0xef0] sm:$0xff]  ;;  %v1054_v31 = vmax.f32 %v1039_v21, %v3214_v22  ;;  %v3356_v32 = vld [vmem:[%s3838_s15 + $0xbe8] sm:$0xff]  ;;  %v3363_v33 = vld [vmem:[%s3838_s15 + $0xc20] sm:$0xff] }
  0xa1   : > { %v1301_v29 = vmax.f32 %v1286_v19, %v3312_v13  ;;  %v1534_v34 = vmax.f32 %v1519_v23, %v3404_v8  ;;  %v3333_v35 = vld [vmem:[%s3838_s15 + $0xba8] sm:$0xff]  ;;  %v3228_v37 = vld [vmem:[%s3838_s15 + $0x8d8] sm:$0xff]  ;;  %v1445_v38 = vmax.f32 %v3356_v32, %v3363_v33  ;;  %v3482_v42 = vld [vmem:[%s3838_s15 + $0xf60] sm:$0xff] }
  0xa2   : > { %v1692_v36 = vmax.f32 %v1677_v26, %v3461_v20  ;;  %v3370_v39 = vld [vmem:[%s3838_s15 + $0xc58] sm:$0xff]  ;;  %3270 = vmatmul.msk.f32.gmra.mxu0 %vm495_vm0, %v1143_v28  ;;  %v3475_v41 = vld [vmem:[%s3838_s15 + $0xf28] sm:$0xff]  ;;  %v1069_v43 = vmax.f32 %v1054_v31, %v3221_v27  ;;  %v3377_v44 = vld [vmem:[%s3838_s15 + $0xc90] sm:$0xff] }
  0xa3   : > { %v1316_v40 = vmax.f32 %v1301_v29, %v3319_v24  ;;  %v1549_v45 = vmax.f32 %v1534_v34, %v3411_v18  ;;  %v3235_v47 = vld [vmem:[%s3838_s15 + $0x910] sm:$0xff]  ;;  %v1460_v48 = vmax.f32 %v1445_v38, %v3370_v39  ;;  %v3285_v50 = vld [vmem:[%s3838_s15 + $0xa28] sm:$0xff]  ;;  %v3489_v52 = vld [vmem:[%s3838_s15 + $0xf98] sm:$0xff] }
  0xa4   : > { %v1707_v46 = vmax.f32 %v1692_v36, %v3468_v30  ;;  %v3278_v49 = vld [vmem:[%s3838_s15 + $0x9f0] sm:$0xff]  ;;  %v1084_v53 = vmax.f32 %v1069_v43, %v3228_v37  ;;  %v3384_v54 = vld [vmem:[%s3838_s15 + $0xcc8] sm:$0xff]  ;;  %v3292_v56 = vld [vmem:[%s3838_s15 + $0xa60] sm:$0xff] }
  0xa5   : > { %v1331_v51 = vmax.f32 %v1316_v40, %v3326_v25  ;;  %v1242_v55 = vmax.f32 %v3278_v49, %v3285_v50  ;;  %3426 = vmatmul.msk.f32.gmra.mxu2 %vm495_vm0, %v1549_v45  ;;  %v3242_v58 = vld [vmem:[%s3838_s15 + $0x948] sm:$0xff]  ;;  %v3249_v59 = vld [vmem:[%s3838_s15 + $0x980] sm:$0xff]  ;;  %v1475_v60 = vmax.f32 %v1460_v48, %v3377_v44  ;;  %v3299_v61 = vld [vmem:[%s3838_s15 + $0xa98] sm:$0xff] }
  0xa6   : > { %v1722_v57 = vmax.f32 %v1707_v46, %v3475_v41  ;;  %v1099_v63 = vmax.f32 %v1084_v53, %v3235_v47  ;;  %v3391_v0 = vld [vmem:[%s3838_s15 + $0xd00] sm:$0xff]  ;;  %v3441_v3 = vld [vmem:[%s3838_s15 + $0xe18] sm:$0xff]  ;;  %v3306_v7 = vld [vmem:[%s3838_s15 + $0xad0] sm:$0xff] }
  0xa7   : > { %v1346_v62 = vmax.f32 %v1331_v51, %v3333_v35  ;;  %v1257_v1 = vmax.f32 %v1242_v55, %v3292_v56  ;;  %v3434_v2 = vld [vmem:[%s3838_s15 + $0xde0] sm:$0xff]  ;;  %v3256_v5 = vld [vmem:[%s3838_s15 + $0x9b8] sm:$0xff]  ;;  %v1490_v6 = vmax.f32 %v1475_v60, %v3384_v54  ;;  %v3448_v9 = vld [vmem:[%s3838_s15 + $0xe50] sm:$0xff] }
  0xa8   : > { %v1737_v4 = vmax.f32 %v1722_v57, %v3482_v42  ;;  %v1648_v8 = vmax.f32 %v3434_v2, %v3441_v3  ;;  %v1114_v10 = vmax.f32 %v1099_v63, %v3242_v58  ;;  %v3398_v11 = vld [vmem:[%s3838_s15 + $0xd38] sm:$0xff]  ;;  %v3405_v12 = vld [vmem:[%s3838_s15 + $0xd70] sm:$0xff]  ;;  %v3455_v14 = vld [vmem:[%s3838_s15 + $0xe88] sm:$0xff] }
  0xa9   : > { %3348 = vmatmul.msk.f32.gmra.mxu1 %vm495_vm0, %v1346_v62  ;;  %v1272_v13 = vmax.f32 %v1257_v1, %v3299_v61  ;;  %v1505_v16 = vmax.f32 %v1490_v6, %v3391_v0  ;;  %v3313_v17 = vld [vmem:[%s3838_s15 + $0xb08] sm:$0xff]  ;;  %v3579_v19 = vld [vmem:[%s5717_s1 + $0x238] sm:$0xff]  ;;  %v3201_v20 = vld [vmem:[%s3838_s15 + $0x800] sm:$0xff] }
  0xaa   : > { %v1752_v15 = vmax.f32 %v1737_v4, %v3489_v52  ;;  %v1663_v18 = vmax.f32 %v1648_v8, %v3448_v9  ;;  %v1129_v21 = vmax.f32 %v1114_v10, %v3249_v59  ;;  %v3462_v23 = vld [vmem:[%s3838_s15 + $0xec0] sm:$0xff]  ;;  %1998 = vmatpush.msra.mxu0 %v3579_v19  ;;  %v3208_v24 = vld [vmem:[%s3838_s15 + $0x838] sm:$0xff]  ;;  %v3215_v25 = vld [vmem:[%s3838_s15 + $0x870] sm:$0xff] }
  0xab   : > { %v1287_v22 = vmax.f32 %v1272_v13, %v3306_v7  ;;  %v1520_v26 = vmax.f32 %v1505_v16, %v3398_v11  ;;  %v3412_v27 = vld [vmem:[%s3838_s15 + $0xda8] sm:$0xff]  ;;  %v3320_v28 = vld [vmem:[%s3838_s15 + $0xb40] sm:$0xff]  ;;  %v3327_v29 = vld [vmem:[%s3838_s15 + $0xb78] sm:$0xff]  ;;  %v1040_v31 = vmax.f32 %v3201_v20, %v3208_v24 }
  0xac   : > { %3504 = vmatmul.msk.f32.gmra.mxu3 %vm495_vm0, %v1752_v15  ;;  %v1678_v30 = vmax.f32 %v1663_v18, %v3455_v14  ;;  %v1144_v32 = vmax.f32 %v1129_v21, %v3256_v5  ;;  %v3469_v34 = vld [vmem:[%s3838_s15 + $0xef8] sm:$0xff]  ;;  %v3222_v35 = vld [vmem:[%s3838_s15 + $0x8a8] sm:$0xff]  ;;  %v3357_v36 = vld [vmem:[%s3838_s15 + $0xbf0] sm:$0xff] }
  0xad   : > { %v1302_v33 = vmax.f32 %v1287_v22, %v3313_v17  ;;  %v1535_v37 = vmax.f32 %v1520_v26, %v3405_v12  ;;  %v3334_v38 = vld [vmem:[%s3838_s15 + $0xbb0] sm:$0xff]  ;;  %v1055_v40 = vmax.f32 %v1040_v31, %v3215_v25  ;;  %v3364_v41 = vld [vmem:[%s3838_s15 + $0xc28] sm:$0xff]  ;;  %v3371_v42 = vld [vmem:[%s3838_s15 + $0xc60] sm:$0xff] }
  0xae   : > { %v1693_v39 = vmax.f32 %v1678_v30, %v3462_v23  ;;  %3271 = vmatmul.msk.f32.gmra.mxu0 %vm495_vm0, %v1144_v32  ;;  %v3476_v44 = vld [vmem:[%s3838_s15 + $0xf30] sm:$0xff]  ;;  %v3483_v45 = vld [vmem:[%s3838_s15 + $0xf68] sm:$0xff]  ;;  %v3229_v46 = vld [vmem:[%s3838_s15 + $0x8e0] sm:$0xff]  ;;  %v1446_v47 = vmax.f32 %v3357_v36, %v3364_v41 }
  0xaf   : > { %v1317_v43 = vmax.f32 %v1302_v33, %v3320_v28  ;;  %v1550_v48 = vmax.f32 %v1535_v37, %v3412_v27  ;;  %v1070_v50 = vmax.f32 %v1055_v40, %v3222_v35  ;;  %v3236_v51 = vld [vmem:[%s3838_s15 + $0x918] sm:$0xff]  ;;  %v3578_v53 = vld [vmem:[%s5717_s1 + $0x230] sm:$0xff]  ;;  %v3293_v58 = vld [vmem:[%s3838_s15 + $0xa68] sm:$0xff] }
  0xb0   : > { %v1708_v49 = vmax.f32 %v1693_v39, %v3469_v34  ;;  %v3378_v52 = vld [vmem:[%s3838_s15 + $0xc98] sm:$0xff]  ;;  %v1461_v55 = vmax.f32 %v1446_v47, %v3371_v42  ;;  %1999 = vmatpush.msra.mxu0 %v3578_v53  ;;  %v3286_v57 = vld [vmem:[%s3838_s15 + $0xa30] sm:$0xff]  ;;  %v3490_v60 = vld [vmem:[%s3838_s15 + $0xfa0] sm:$0xff] }
  0xb1   : > { %v1332_v54 = vmax.f32 %v1317_v43, %v3327_v29  ;;  %v3279_v56 = vld [vmem:[%s3838_s15 + $0x9f8] sm:$0xff]  ;;  %3427 = vmatmul.msk.f32.gmra.mxu2 %vm495_vm0, %v1550_v48  ;;  %v1085_v61 = vmax.f32 %v1070_v50, %v3229_v46  ;;  %v3243_v62 = vld [vmem:[%s3838_s15 + $0x950] sm:$0xff]  ;;  %v3250_v2 = vld [vmem:[%s3838_s15 + $0x988] sm:$0xff] }
  0xb2   : > { %v1723_v59 = vmax.f32 %v1708_v49, %v3476_v44  ;;  %v3385_v63 = vld [vmem:[%s3838_s15 + $0xcd0] sm:$0xff]  ;;  %v1243_v0 = vmax.f32 %v3279_v56, %v3286_v57  ;;  %v1476_v3 = vmax.f32 %v1461_v55, %v3378_v52  ;;  %v3392_v4 = vld [vmem:[%s3838_s15 + $0xd08] sm:$0xff]  ;;  %v3300_v5 = vld [vmem:[%s3838_s15 + $0xaa0] sm:$0xff] }
  0xb3   : > { %v1347_v1 = vmax.f32 %v1332_v54, %v3334_v38  ;;  %v1100_v7 = vmax.f32 %v1085_v61, %v3236_v51  ;;  %v3435_v9 = vld [vmem:[%s3838_s15 + $0xde8] sm:$0xff]  ;;  %v3442_v10 = vld [vmem:[%s3838_s15 + $0xe20] sm:$0xff]  ;;  %v3449_v11 = vld [vmem:[%s3838_s15 + $0xe58] sm:$0xff] }
  0xb4   : > { %v1738_v6 = vmax.f32 %v1723_v59, %v3483_v45  ;;  %v1258_v8 = vmax.f32 %v1243_v0, %v3293_v58  ;;  %v3257_v12 = vld [vmem:[%s3838_s15 + $0x9c0] sm:$0xff]  ;;  %v1491_v13 = vmax.f32 %v1476_v3, %v3385_v63  ;;  %v3307_v15 = vld [vmem:[%s3838_s15 + $0xad8] sm:$0xff]  ;;  %v1649_v16 = vmax.f32 %v3435_v9, %v3442_v10  ;;  %v3314_v21 = vld [vmem:[%s3838_s15 + $0xb10] sm:$0xff] }
  0xb5   : > { %3349 = vmatmul.msk.f32.gmra.mxu1 %vm495_vm0, %v1347_v1  ;;  %v3399_v14 = vld [vmem:[%s3838_s15 + $0xd40] sm:$0xff]  ;;  %v1115_v18 = vmax.f32 %v1100_v7, %v3243_v62  ;;  %v3406_v19 = vld [vmem:[%s3838_s15 + $0xd78] sm:$0xff]  ;;  %v3456_v22 = vld [vmem:[%s3838_s15 + $0xe90] sm:$0xff] }
  0xb6   : > { %v1753_v17 = vmax.f32 %v1738_v6, %v3490_v60  ;;  %v1273_v20 = vmax.f32 %v1258_v8, %v3300_v5  ;;  %v1506_v23 = vmax.f32 %v1491_v13, %v3392_v4  ;;  %v1664_v24 = vmax.f32 %v1649_v16, %v3449_v11  ;;  %v3202_v25 = vld [vmem:[%s3838_s15 + $0x808] sm:$0xff]  ;;  %v3209_v26 = vld [vmem:[%s3838_s15 + $0x840] sm:$0xff]  ;;  %v3216_v27 = vld [vmem:[%s3838_s15 + $0x878] sm:$0xff] }
  0xb7   : > { %v1130_v28 = vmax.f32 %v1115_v18, %v3250_v2  ;;  %v3413_v29 = vld [vmem:[%s3838_s15 + $0xdb0] sm:$0xff]  ;;  %v3321_v31 = vld [vmem:[%s3838_s15 + $0xb48] sm:$0xff]  ;;  %v1041_v33 = vmax.f32 %v3202_v25, %v3209_v26  ;;  %v3328_v35 = vld [vmem:[%s3838_s15 + $0xb80] sm:$0xff] }
  0xb8   : > { %3505 = vmatmul.msk.f32.gmra.mxu3 %vm495_vm0, %v1753_v17  ;;  %v1288_v30 = vmax.f32 %v1273_v20, %v3307_v15  ;;  %v3463_v32 = vld [vmem:[%s3838_s15 + $0xec8] sm:$0xff]  ;;  %v1521_v34 = vmax.f32 %v1506_v23, %v3399_v14  ;;  %v1679_v36 = vmax.f32 %v1664_v24, %v3456_v22  ;;  %v3470_v37 = vld [vmem:[%s3838_s15 + $0xf00] sm:$0xff]  ;;  %v3223_v38 = vld [vmem:[%s3838_s15 + $0x8b0] sm:$0xff] }
  0xb9   : > { %v1145_v39 = vmax.f32 %v1130_v28, %v3257_v12  ;;  %v1056_v41 = vmax.f32 %v1041_v33, %v3216_v27  ;;  %v3358_v42 = vld [vmem:[%s3838_s15 + $0xbf8] sm:$0xff]  ;;  %v3365_v43 = vld [vmem:[%s3838_s15 + $0xc30] sm:$0xff]  ;;  %v3372_v44 = vld [vmem:[%s3838_s15 + $0xc68] sm:$0xff] }
  0xba   : > { %v1303_v40 = vmax.f32 %v1288_v30, %v3314_v21  ;;  %v1536_v45 = vmax.f32 %v1521_v34, %v3406_v19  ;;  %v3335_v46 = vld [vmem:[%s3838_s15 + $0xbb8] sm:$0xff]  ;;  %v1694_v47 = vmax.f32 %v1679_v36, %v3463_v32  ;;  %v3230_v49 = vld [vmem:[%s3838_s15 + $0x8e8] sm:$0xff]  ;;  %v1447_v50 = vmax.f32 %v3358_v42, %v3365_v43  ;;  %v3484_v52 = vld [vmem:[%s3838_s15 + $0xf70] sm:$0xff] }
  0xbb   : > { %v3477_v48 = vld [vmem:[%s3838_s15 + $0xf38] sm:$0xff]  ;;  %3272 = vmatmul.msk.f32.gmra.mxu0 %vm495_vm0, %v1145_v39  ;;  %v1071_v53 = vmax.f32 %v1056_v41, %v3223_v38  ;;  %v3237_v54 = vld [vmem:[%s3838_s15 + $0x920] sm:$0xff]  ;;  %v3577_v59 = vld [vmem:[%s5717_s1 + $0x228] sm:$0xff] }
  0xbc   : > { %v1318_v51 = vmax.f32 %v1303_v40, %v3321_v31  ;;  %v3379_v55 = vld [vmem:[%s3838_s15 + $0xca0] sm:$0xff]  ;;  %v1551_v56 = vmax.f32 %v1536_v45, %v3413_v29  ;;  %v1709_v57 = vmax.f32 %v1694_v47, %v3470_v37  ;;  %v1462_v58 = vmax.f32 %v1447_v50, %v3372_v44  ;;  %v3287_v61 = vld [vmem:[%s3838_s15 + $0xa38] sm:$0xff]  ;;  %v3491_v63 = vld [vmem:[%s3838_s15 + $0xfa8] sm:$0xff]  ;;  %2000 = vmatpush.msra.mxu0 %v3577_v59 }
  0xbd   : > { %v3280_v60 = vld [vmem:[%s3838_s15 + $0xa00] sm:$0xff]  ;;  %v1086_v0 = vmax.f32 %v1071_v53, %v3230_v49  ;;  %v3386_v1 = vld [vmem:[%s3838_s15 + $0xcd8] sm:$0xff]  ;;  %v3294_v3 = vld [vmem:[%s3838_s15 + $0xa70] sm:$0xff] }
  0xbe   : > { %v1333_v62 = vmax.f32 %v1318_v51, %v3328_v35  ;;  %v1244_v2 = vmax.f32 %v3280_v60, %v3287_v61  ;;  %3428 = vmatmul.msk.f32.gmra.mxu2 %vm495_vm0, %v1551_v56  ;;  %v1724_v4 = vmax.f32 %v1709_v57, %v3477_v48  ;;  %v3244_v5 = vld [vmem:[%s3838_s15 + $0x958] sm:$0xff]  ;;  %v3251_v6 = vld [vmem:[%s3838_s15 + $0x990] sm:$0xff]  ;;  %v1477_v7 = vmax.f32 %v1462_v58, %v3379_v55  ;;  %v3301_v8 = vld [vmem:[%s3838_s15 + $0xaa8] sm:$0xff] }
  0xbf   : > { %v1101_v10 = vmax.f32 %v1086_v0, %v3237_v54  ;;  %v3393_v11 = vld [vmem:[%s3838_s15 + $0xd10] sm:$0xff]  ;;  %v3443_v14 = vld [vmem:[%s3838_s15 + $0xe28] sm:$0xff]  ;;  %v3308_v18 = vld [vmem:[%s3838_s15 + $0xae0] sm:$0xff] }
  0xc0   : > { %v1348_v9 = vmax.f32 %v1333_v62, %v3335_v46  ;;  %v1259_v12 = vmax.f32 %v1244_v2, %v3294_v3  ;;  %v3436_v13 = vld [vmem:[%s3838_s15 + $0xdf0] sm:$0xff]  ;;  %v1739_v15 = vmax.f32 %v1724_v4, %v3484_v52  ;;  %v3258_v16 = vld [vmem:[%s3838_s15 + $0x9c8] sm:$0xff]  ;;  %v1492_v17 = vmax.f32 %v1477_v7, %v3386_v1  ;;  %v3450_v20 = vld [vmem:[%s3838_s15 + $0xe60] sm:$0xff] }
  0xc1   : > { %v1650_v19 = vmax.f32 %v3436_v13, %v3443_v14  ;;  %v1116_v21 = vmax.f32 %v1101_v10, %v3244_v5  ;;  %v3400_v22 = vld [vmem:[%s3838_s15 + $0xd48] sm:$0xff]  ;;  %v3407_v23 = vld [vmem:[%s3838_s15 + $0xd80] sm:$0xff]  ;;  %v3457_v25 = vld [vmem:[%s3838_s15 + $0xe98] sm:$0xff] }
  0xc2   : > { %3350 = vmatmul.msk.f32.gmra.mxu1 %vm495_vm0, %v1348_v9  ;;  %v1274_v24 = vmax.f32 %v1259_v12, %v3301_v8  ;;  %v1754_v26 = vmax.f32 %v1739_v15, %v3491_v63  ;;  %v1507_v27 = vmax.f32 %v1492_v17, %v3393_v11  ;;  %v3315_v28 = vld [vmem:[%s3838_s15 + $0xb18] sm:$0xff]  ;;  %v3576_v30 = vld [vmem:[%s5717_s1 + $0x220] sm:$0xff]  ;;  %v3203_v31 = vld [vmem:[%s3838_s15 + $0x810] sm:$0x1] }
  0xc3   : > { %v1665_v29 = vmax.f32 %v1650_v19, %v3450_v20  ;;  %v1131_v32 = vmax.f32 %v1116_v21, %v3251_v6  ;;  %v3464_v34 = vld [vmem:[%s3838_s15 + $0xed0] sm:$0xff]  ;;  %2001 = vmatpush.msra.mxu0 %v3576_v30  ;;  %v3210_v35 = vld [vmem:[%s3838_s15 + $0x848] sm:$0x1]  ;;  %v3217_v36 = vld [vmem:[%s3838_s15 + $0x880] sm:$0x1] }
  0xc4   : > { %v1289_v33 = vmax.f32 %v1274_v24, %v3308_v18  ;;  %3506 = vmatmul.msk.f32.gmra.mxu3 %vm495_vm0, %v1754_v26  ;;  %v1522_v37 = vmax.f32 %v1507_v27, %v3400_v22  ;;  %v3414_v38 = vld [vmem:[%s3838_s15 + $0xdb8] sm:$0xff]  ;;  %v3322_v39 = vld [vmem:[%s3838_s15 + $0xb50] sm:$0xff]  ;;  %v3329_v40 = vld [vmem:[%s3838_s15 + $0xb88] sm:$0xff]  ;;  %v1042_v42 = vmax.f32 %v3203_v31, %v3210_v35 }
  0xc5   : > { %v1680_v41 = vmax.f32 %v1665_v29, %v3457_v25  ;;  %v1146_v43 = vmax.f32 %v1131_v32, %v3258_v16  ;;  %v3471_v45 = vld [vmem:[%s3838_s15 + $0xf08] sm:$0xff]  ;;  %v3224_v46 = vld [vmem:[%s3838_s15 + $0x8b8] sm:$0x1]  ;;  %v3359_v47 = vld [vmem:[%s3838_s15 + $0xc00] sm:$0x1] }
  0xc6   : > { %v1304_v44 = vmax.f32 %v1289_v33, %v3315_v28  ;;  %v1537_v48 = vmax.f32 %v1522_v37, %v3407_v23  ;;  %v3336_v49 = vld [vmem:[%s3838_s15 + $0xbc0] sm:$0xff]  ;;  %v1057_v51 = vmax.f32 %v1042_v42, %v3217_v36  ;;  %v3366_v52 = vld [vmem:[%s3838_s15 + $0xc38] sm:$0x1]  ;;  %v3373_v53 = vld [vmem:[%s3838_s15 + $0xc70] sm:$0x1] }
  0xc7   : > { %v1695_v50 = vmax.f32 %v1680_v41, %v3464_v34  ;;  %3273 = vmatmul.msk.f32.gmra.mxu0 %vm495_vm0, %v1146_v43  ;;  %v3478_v55 = vld [vmem:[%s3838_s15 + $0xf40] sm:$0xff]  ;;  %v3485_v56 = vld [vmem:[%s3838_s15 + $0xf78] sm:$0xff]  ;;  %v3231_v57 = vld [vmem:[%s3838_s15 + $0x8f0] sm:$0x1]  ;;  %v1448_v58 = vmax.f32 %v3359_v47, %v3366_v52 }
  0xc8   : > { %v1319_v54 = vmax.f32 %v1304_v44, %v3322_v39  ;;  %v1552_v59 = vmax.f32 %v1537_v48, %v3414_v38  ;;  %v1072_v61 = vmax.f32 %v1057_v51, %v3224_v46  ;;  %v3238_v62 = vld [vmem:[%s3838_s15 + $0x928] sm:$0x1]  ;;  %v3575_v0 = vld [vmem:[%s5717_s1 + $0x218] sm:$0xff]  ;;  %v3288_v4 = vld [vmem:[%s3838_s15 + $0xa40] sm:$0x1] }
  0xc9   : > { %v1710_v60 = vmax.f32 %v1695_v50, %v3471_v45  ;;  %v3380_v63 = vld [vmem:[%s3838_s15 + $0xca8] sm:$0x1]  ;;  %v1463_v2 = vmax.f32 %v1448_v58, %v3373_v53  ;;  %2002 = vmatpush.msra.mxu0 %v3575_v0  ;;  %v3295_v5 = vld [vmem:[%s3838_s15 + $0xa78] sm:$0x1]  ;;  %v3492_v7 = vld [vmem:[%s3838_s15 + $0xfb0] sm:$0xff] }
  0xca   : > { %v1334_v1 = vmax.f32 %v1319_v54, %v3329_v40  ;;  %v3281_v3 = vld [vmem:[%s3838_s15 + $0xa08] sm:$0x1]  ;;  %3429 = vmatmul.msk.f32.gmra.mxu2 %vm495_vm0, %v1552_v59  ;;  %v1087_v8 = vmax.f32 %v1072_v61, %v3231_v57  ;;  %v3245_v9 = vld [vmem:[%s3838_s15 + $0x960] sm:$0x1]  ;;  %v3252_v13 = vld [vmem:[%s3838_s15 + $0x998] sm:$0x1] }
  0xcb   : > { %v1725_v6 = vmax.f32 %v1710_v60, %v3478_v55  ;;  %v3387_v10 = vld [vmem:[%s3838_s15 + $0xce0] sm:$0x1]  ;;  %v1245_v11 = vmax.f32 %v3281_v3, %v3288_v4  ;;  %v1478_v14 = vmax.f32 %v1463_v2, %v3380_v63  ;;  %v3394_v15 = vld [vmem:[%s3838_s15 + $0xd18] sm:$0x1]  ;;  %v3302_v16 = vld [vmem:[%s3838_s15 + $0xab0] sm:$0x1]  ;;  %v4555_v55 = vpop.f32.mrf.mxu0 }
  0xcc   : > { %v1349_v12 = vmax.f32 %v1334_v1, %v3336_v49  ;;  %v1102_v18 = vmax.f32 %v1087_v8, %v3238_v62  ;;  %v3437_v20 = vld [vmem:[%s3838_s15 + $0xdf8] sm:$0x1]  ;;  %v3444_v21 = vld [vmem:[%s3838_s15 + $0xe30] sm:$0x1]  ;;  %v3451_v22 = vld [vmem:[%s3838_s15 + $0xe68] sm:$0x1] }
  0xcd   : > { %v1740_v17 = vmax.f32 %v1725_v6, %v3485_v56  ;;  %v1260_v19 = vmax.f32 %v1245_v11, %v3295_v5  ;;  %v3259_v23 = vld [vmem:[%s3838_s15 + $0x9d0] sm:$0x1]  ;;  %v1493_v24 = vmax.f32 %v1478_v14, %v3387_v10  ;;  %v3309_v26 = vld [vmem:[%s3838_s15 + $0xae8] sm:$0x1]  ;;  %v1651_v27 = vmax.f32 %v3437_v20, %v3444_v21  ;;  %v3316_v32 = vld [vmem:[%s3838_s15 + $0xb20] sm:$0x1] }
  0xce   : > { %3351 = vmatmul.msk.f32.gmra.mxu1 %vm495_vm0, %v1349_v12  ;;  %v3401_v25 = vld [vmem:[%s3838_s15 + $0xd50] sm:$0x1]  ;;  %v1117_v29 = vmax.f32 %v1102_v18, %v3245_v9  ;;  %v3408_v30 = vld [vmem:[%s3838_s15 + $0xd88] sm:$0x1]  ;;  %v3458_v33 = vld [vmem:[%s3838_s15 + $0xea0] sm:$0x1] }
  0xcf   : > { %v1755_v28 = vmax.f32 %v1740_v17, %v3492_v7  ;;  %v1275_v31 = vmax.f32 %v1260_v19, %v3302_v16  ;;  %v1508_v34 = vmax.f32 %v1493_v24, %v3394_v15  ;;  %v1666_v35 = vmax.f32 %v1651_v27, %v3451_v22  ;;  %v3465_v36 = vld [vmem:[%s3838_s15 + $0xed8] sm:$0x1]  ;;  %v3574_v37 = vld [vmem:[%s5717_s1 + $0x210] sm:$0xff]  ;;  %v3573_v38 = vld [vmem:[%s5717_s1 + $0x208] sm:$0xff] }
  0xd0   : > { %v1132_v39 = vmax.f32 %v1117_v29, %v3252_v13  ;;  %2003 = vmatpush.msra.mxu0 %v3574_v37  ;;  %v3509_v41 = vld [vmem:[%s3838_s15 + $0xfc0] sm:$0xff]  ;;  %v3516_v42 = vld [vmem:[%s3838_s15 + $0xff8] sm:$0xff]  ;;  %v3523_v43 = vld [vmem:[%s3838_s15 + $0x1030] sm:$0xff] }
  0xd1   : > { %3507 = vmatmul.msk.f32.gmra.mxu3 %vm495_vm0, %v1755_v28  ;;  %v1290_v40 = vmax.f32 %v1275_v31, %v3309_v26  ;;  %v1523_v44 = vmax.f32 %v1508_v34, %v3401_v25  ;;  %v3415_v45 = vld [vmem:[%s3838_s15 + $0xdc0] sm:$0x1]  ;;  %v3323_v46 = vld [vmem:[%s3838_s15 + $0xb58] sm:$0x1]  ;;  %v3330_v47 = vld [vmem:[%s3838_s15 + $0xb90] sm:$0x1]  ;;  %v1681_v48 = vmax.f32 %v1666_v35, %v3458_v33  ;;  %v1848_v49 = vmax.f32 %v3509_v41, %v3516_v42 }
  0xd2   : > { %v1147_v50 = vmax.f32 %v1132_v39, %v3259_v23  ;;  %v3472_v52 = vld [vmem:[%s3838_s15 + $0xf10] sm:$0x1]  ;;  %2004 = vmatpush.msra.mxu0 %v3573_v38  ;;  %v3572_v53 = vld [vmem:[%s5717_s1 + $0x200] sm:$0xff]  ;;  %v3530_v54 = vld [vmem:[%s3838_s15 + $0x1068] sm:$0xff] }
  0xd3   : > { %v1305_v51 = vmax.f32 %v1290_v40, %v3316_v32  ;;  %v1538_v56 = vmax.f32 %v1523_v44, %v3408_v30  ;;  %v1696_v57 = vmax.f32 %v1681_v48, %v3465_v36  ;;  %v1863_v58 = vmax.f32 %v1848_v49, %v3523_v43  ;;  %v3510_v59 = vld [vmem:[%s3838_s15 + $0xfc8] sm:$0xff]  ;;  %v3517_v60 = vld [vmem:[%s3838_s15 + $0x1000] sm:$0xff]  ;;  %v3524_v61 = vld [vmem:[%s3838_s15 + $0x1038] sm:$0xff]  ;;  %v4584_v40 = vpop.f32.mrf.mxu0 }
  0xd4   : > { %3274 = vmatmul.msk.f32.gmra.mxu0 %vm495_vm0, %v1147_v50  ;;  %v3337_v63 = vld [vmem:[%s3838_s15 + $0xbc8] sm:$0x1]  ;;  %v3537_v1 = vld [vmem:[%s3838_s15 + $0x10a0] sm:$0xff]  ;;  %v1849_v2 = vmax.f32 %v3510_v59, %v3517_v60  ;;  %v3544_v7 = vld [vmem:[%s3838_s15 + $0x10d8] sm:$0xff] }
  0xd5   : > { %v1320_v62 = vmax.f32 %v1305_v51, %v3323_v46  ;;  %v3479_v0 = vld [vmem:[%s3838_s15 + $0xf48] sm:$0x1]  ;;  %v1553_v3 = vmax.f32 %v1538_v56, %v3415_v45  ;;  %v1711_v4 = vmax.f32 %v1696_v57, %v3472_v52  ;;  %v3486_v5 = vld [vmem:[%s3838_s15 + $0xf80] sm:$0x1]  ;;  %2005 = vmatpush.msra.mxu0 %v3572_v53  ;;  %v1878_v6 = vmax.f32 %v1863_v58, %v3530_v54  ;;  %v3531_v8 = vld [vmem:[%s3838_s15 + $0x1070] sm:$0xff] }
  0xd6   : > { %v1864_v10 = vmax.f32 %v1849_v2, %v3524_v61  ;;  %v3511_v11 = vld [vmem:[%s3838_s15 + $0xfd0] sm:$0xff]  ;;  %v3518_v12 = vld [vmem:[%s3838_s15 + $0x1008] sm:$0xff]  ;;  %v3525_v13 = vld [vmem:[%s3838_s15 + $0x1040] sm:$0xff] }
  0xd7   : > { %v1335_v9 = vmax.f32 %v1320_v62, %v3330_v47  ;;  %3430 = vmatmul.msk.f32.gmra.mxu2 %vm495_vm0, %v1553_v3  ;;  %v1726_v14 = vmax.f32 %v1711_v4, %v3479_v0  ;;  %v1893_v15 = vmax.f32 %v1878_v6, %v3537_v1  ;;  %v3538_v16 = vld [vmem:[%s3838_s15 + $0x10a8] sm:$0xff]  ;;  %v1850_v17 = vmax.f32 %v3511_v11, %v3518_v12  ;;  %v3493_v19 = vld [vmem:[%s3838_s15 + $0xfb8] sm:$0x1]  ;;  %v3551_v20 = vld [vmem:[%s3838_s15 + $0x1110] sm:$0xff] }
  0xd8   : > { %v1879_v21 = vmax.f32 %v1864_v10, %v3531_v8  ;;  %v3532_v22 = vld [vmem:[%s3838_s15 + $0x1078] sm:$0xff]  ;;  %v3545_v25 = vld [vmem:[%s3838_s15 + $0x10e0] sm:$0xff]  ;;  %v3519_v28 = vld [vmem:[%s3838_s15 + $0x1010] sm:$0xff] }
  0xd9   : > { %v1350_v18 = vmax.f32 %v1335_v9, %v3337_v63  ;;  %v1741_v23 = vmax.f32 %v1726_v14, %v3486_v5  ;;  %v1908_v24 = vmax.f32 %v1893_v15, %v3544_v7  ;;  %v1865_v26 = vmax.f32 %v1850_v17, %v3525_v13  ;;  %v3512_v27 = vld [vmem:[%s3838_s15 + $0xfd8] sm:$0xff]  ;;  %v3558_v29 = vld [vmem:[%s3838_s15 + $0x1148] sm:$0xff]  ;;  %v3539_v31 = vld [vmem:[%s3838_s15 + $0x10b0] sm:$0xff] }
  0xda   : > { %v1894_v30 = vmax.f32 %v1879_v21, %v3538_v16  ;;  %v1851_v32 = vmax.f32 %v3512_v27, %v3519_v28  ;;  %v3526_v33 = vld [vmem:[%s3838_s15 + $0x1048] sm:$0xff]  ;;  %v3552_v36 = vld [vmem:[%s3838_s15 + $0x1118] sm:$0xff]  ;;  %v3565_v38 = vld [vmem:[%s3838_s15 + $0x1180] sm:$0xff] }
  0xdb   : > { %3352 = vmatmul.msk.f32.gmra.mxu1 %vm495_vm0, %v1350_v18  ;;  %v1756_v34 = vmax.f32 %v1741_v23, %v3493_v19  ;;  %v1923_v35 = vmax.f32 %v1908_v24, %v3551_v20  ;;  %v1880_v37 = vmax.f32 %v1865_v26, %v3532_v22  ;;  %v3559_v42 = vld [vmem:[%s3838_s15 + $0x1150] sm:$0xff]  ;;  %v3546_v44 = vld [vmem:[%s3838_s15 + $0x10e8] sm:$0xff]  ;;  %v3533_v47 = vld [vmem:[%s3838_s15 + $0x1080] sm:$0xff]  ;;  %v4599_v2 = vpop.f32.mrf.mxu0 }
  0xdc   : > { %v1909_v39 = vmax.f32 %v1894_v30, %v3545_v25  ;;  %v1866_v45 = vmax.f32 %v1851_v32, %v3526_v33  ;;  %v3513_v48 = vld [vmem:[%s3838_s15 + $0xfe0] sm:$0xff]  ;;  %v3520_v49 = vld [vmem:[%s3838_s15 + $0x1018] sm:$0xff]  ;;  %v3566_v52 = vld [vmem:[%s3838_s15 + $0x1188] sm:$0xff] }
  0xdd   : > { %3508 = vmatmul.msk.f32.gmra.mxu3 %vm495_vm0, %v1756_v34  ;;  %v1938_v41 = vmax.f32 %v1923_v35, %v3558_v29  ;;  %v1895_v43 = vmax.f32 %v1880_v37, %v3539_v31  ;;  %v1852_v56 = vmax.f32 %v3513_v48, %v3520_v49  ;;  %v3553_v57 = vld [vmem:[%s3838_s15 + $0x1120] sm:$0xff]  ;;  %v3540_v58 = vld [vmem:[%s3838_s15 + $0x10b8] sm:$0xff]  ;;  %v3527_v59 = vld [vmem:[%s3838_s15 + $0x1050] sm:$0xff] }
  0xde   : > { %v1924_v46 = vmax.f32 %v1909_v39, %v3552_v36  ;;  %v1881_v54 = vmax.f32 %v1866_v45, %v3533_v47  ;;  %v3560_v62 = vld [vmem:[%s3838_s15 + $0x1158] sm:$0xff]  ;;  %v3547_v0 = vld [vmem:[%s3838_s15 + $0x10f0] sm:$0xff]  ;;  %v3534_v3 = vld [vmem:[%s3838_s15 + $0x1088] sm:$0xff] }
  0xdf   : > { %v1953_v50 = vmax.f32 %v1938_v41, %v3565_v38  ;;  %v1910_v53 = vmax.f32 %v1895_v43, %v3546_v44  ;;  %v1867_v1 = vmax.f32 %v1852_v56, %v3527_v59  ;;  %v3514_v4 = vld [vmem:[%s3838_s15 + $0xfe8] sm:$0xff]  ;;  %v3521_v5 = vld [vmem:[%s3838_s15 + $0x1020] sm:$0xff]  ;;  %v3567_v7 = vld [vmem:[%s3838_s15 + $0x1190] sm:$0xff] }
  0xe0   : > { %v1939_v51 = vmax.f32 %v1924_v46, %v3559_v42  ;;  %v1896_v63 = vmax.f32 %v1881_v54, %v3540_v58  ;;  %v1853_v10 = vmax.f32 %v3514_v4, %v3521_v5  ;;  %v3554_v11 = vld [vmem:[%s3838_s15 + $0x1128] sm:$0xff]  ;;  %v3541_v12 = vld [vmem:[%s3838_s15 + $0x10c0] sm:$0xff]  ;;  %v3528_v13 = vld [vmem:[%s3838_s15 + $0x1058] sm:$0xff]  ;;  %v4637_v58 = vpop.f32.mrf.mxu2 }
  0xe1   : > { %3580 = vmatmul.msk.f32.vlgmr.msra.gmra.mxu0 %vm495_vm0, %v1953_v50  ;;  %v1925_v61 = vmax.f32 %v1910_v53, %v3553_v57  ;;  %v1882_v9 = vmax.f32 %v1867_v1, %v3534_v3  ;;  %v3561_v16 = vld [vmem:[%s3838_s15 + $0x1160] sm:$0xff]  ;;  %v3548_v18 = vld [vmem:[%s3838_s15 + $0x10f8] sm:$0xff]  ;;  %v3535_v20 = vld [vmem:[%s3838_s15 + $0x1090] sm:$0xff]  ;;  %v4635_v57 = vpop.f32.mrf.mxu1 }
  0xe2   : > { %v1954_v60 = vmax.f32 %v1939_v51, %v3566_v52  ;;  %v1911_v8 = vmax.f32 %v1896_v63, %v3547_v0  ;;  %v1868_v19 = vmax.f32 %v1853_v10, %v3528_v13  ;;  %v3515_v21 = vld [vmem:[%s3838_s15 + $0xff0] sm:$0x1]  ;;  %v3522_v22 = vld [vmem:[%s3838_s15 + $0x1028] sm:$0x1]  ;;  %v3568_v25 = vld [vmem:[%s3838_s15 + $0x1198] sm:$0xff]  ;;  %v4642_v63 = vpop.f32.mrf.mxu3 }
  0xe3   : > { %v1940_v6 = vmax.f32 %v1925_v61, %v3560_v62  ;;  %v1897_v17 = vmax.f32 %v1882_v9, %v3541_v12  ;;  %v4614_v23 = vpop.f32.mrf.mxu0  ;;  %v1854_v28 = vmax.f32 %v3515_v21, %v3522_v22  ;;  %v3555_v29 = vld [vmem:[%s3838_s15 + $0x1130] sm:$0xff]  ;;  %v3542_v30 = vld [vmem:[%s3838_s15 + $0x10c8] sm:$0xff]  ;;  %v3529_v31 = vld [vmem:[%s3838_s15 + $0x1060] sm:$0x1] }
  0xe4   : > { %v1926_v15 = vmax.f32 %v1911_v8, %v3554_v11  ;;  %v1883_v27 = vmax.f32 %v1868_v19, %v3535_v20  ;;  %v3562_v36 = vld [vmem:[%s3838_s15 + $0x1168] sm:$0xff]  ;;  %v3549_v37 = vld [vmem:[%s3838_s15 + $0x1100] sm:$0xff]  ;;  %v3536_v38 = vld [vmem:[%s3838_s15 + $0x1098] sm:$0x1] }
  0xe5   : > { %v1955_v14 = vmax.f32 %v1940_v6, %v3567_v7  ;;  %v1912_v26 = vmax.f32 %v1897_v17, %v3548_v18  ;;  %v1869_v35 = vmax.f32 %v1854_v28, %v3529_v31  ;;  %v3569_v43 = vld [vmem:[%s3838_s15 + $0x11a0] sm:$0xff]  ;;  %v3556_v44 = vld [vmem:[%s3838_s15 + $0x1138] sm:$0xff]  ;;  %v3543_v46 = vld [vmem:[%s3838_s15 + $0x10d0] sm:$0x1] }
  0xe6   : > { %v1941_v24 = vmax.f32 %v1926_v15, %v3561_v16  ;;  %v1898_v34 = vmax.f32 %v1883_v27, %v3542_v30  ;;  %v3563_v50 = vld [vmem:[%s3838_s15 + $0x1170] sm:$0xff]  ;;  %v3550_v51 = vld [vmem:[%s3838_s15 + $0x1108] sm:$0x1]  ;;  %v3557_v56 = vld [vmem:[%s3838_s15 + $0x1140] sm:$0x1] }
  0xe7   : > { %v1927_v33 = vmax.f32 %v1912_v26, %v3555_v29  ;;  %v1884_v42 = vmax.f32 %v1869_v35, %v3536_v38  ;;  %v3570_v54 = vld [vmem:[%s3838_s15 + $0x11a8] sm:$0xff]  ;;  %v3564_v62 = vld [vmem:[%s3838_s15 + $0x1178] sm:$0x1]  ;;  %v3571_v1 = vld [vmem:[%s3838_s15 + $0x11b0] sm:$0x1]  ;;  %s215_s15 = sand.u32 1, %s3687_s19  }
  0xe8   : > { %v1956_v32 = vmax.f32 %v1941_v24, %v3568_v25  ;;  %v1913_v41 = vmax.f32 %v1898_v34, %v3549_v37  ;;  %v4648_v5 = vpop.f32.mrf.mxu2  ;;  %v2185_v7 = vld [vmem:[%s5719_s3 + $0xf0] sm:$0xff]  ;;  %v2183_v9 = vld [vmem:[%s5719_s3 + $0xe0] sm:$0xff]  ;;  %s2898_s6 = sshll.u32 %s215_s15, 1  ;;  %s2820_s22 = scalar_lea.sflag [#allocation4], %s215_s15 }
  0xe9   : > { %3581 = vmatmul.msk.f32.gmra.mxu0 %vm495_vm0, %v1954_v60  ;;  %v1942_v39 = vmax.f32 %v1927_v33, %v3562_v36  ;;  %v1899_v49 = vmax.f32 %v1884_v42, %v3543_v46  ;;  %v4646_v3 = vpop.f32.mrf.mxu1  ;;  %2449 = vmatpush.msra.mxu1 %v2185_v7  ;;  %v2249_v10 = vld [vmem:[%s5719_s3 + $0x2f0] sm:$0xff]  ;;  %v2247_v13 = vld [vmem:[%s5719_s3 + $0x2e0] sm:$0xff]  ;;  %s217_s10 = scalar_lea.vmem [#allocation3], %s2898_s6 }
  0xea   : > { %v1928_v48 = vmax.f32 %v1913_v41, %v3556_v44  ;;  %v4656_v8 = vpop.f32.mrf.mxu3  ;;  %v2181_v11 = vld [vmem:[%s5719_s3 + $0xd0] sm:$0xff]  ;;  %2489 = vmatpush.msra.mxu3 %v2249_v10  ;;  %v2215_v15 = vld [vmem:[%s5719_s3 + $0x1e0] sm:$0xff]  ;;  %s2832_s11 = sshll.u32 %s217_s10, 4  ;;  %s2833_s11 = int_to_ptr.vmem [resolvable:$true] %s2832_s11 }
  0xeb   : > { %v4627_v45 = vpop.f32.mrf.mxu0  ;;  %v1957_v47 = vmax.f32 %v1942_v39, %v3569_v43  ;;  %v1914_v53 = vmax.f32 %v1899_v49, %v3550_v51  ;;  %2450 = vmatpush.msra.mxu1 %v2183_v9  ;;  %v2217_v12 = vld [vmem:[%s5719_s3 + $0x1f0] sm:$0xff]  ;;  %v2243_v22 = vld [vmem:[%s5719_s3 + $0x2c0] sm:$0xff] }
  0xec   : > { %v1943_v52 = vmax.f32 %v1928_v48, %v3563_v50  ;;  %2469 = vmatpush.msra.mxu2 %v2217_v12  ;;  %2490 = vmatpush.msra.mxu3 %v2247_v13  ;;  %v2245_v16 = vld [vmem:[%s5719_s3 + $0x2d0] sm:$0xff]  ;;  %v2175_v25 = vld [vmem:[%s5719_s3 + $0xa0] sm:$0xff] }
  0xed   : > { %v1929_v61 = vmax.f32 %v1914_v53, %v3557_v56  ;;  %2451 = vmatpush.msra.mxu1 %v2181_v11  ;;  %v2177_v20 = vld [vmem:[%s5719_s3 + $0xb0] sm:$0xff]  ;;  %v2211_v26 = vld [vmem:[%s5719_s3 + $0x1c0] sm:$0xff] }
  0xee   : > { %v1958_v60 = vmax.f32 %v1943_v52, %v3570_v54  ;;  %2470 = vmatpush.msra.mxu2 %v2215_v15  ;;  %2491 = vmatpush.msra.mxu3 %v2245_v16  ;;  %v2213_v21 = vld [vmem:[%s5719_s3 + $0x1d0] sm:$0xff]  ;;  %v2239_v30 = vld [vmem:[%s5719_s3 + $0x2a0] sm:$0xff] }
  0xef   : > { %v1944_v0 = vmax.f32 %v1929_v61, %v3564_v62  ;;  %v2241_v27 = vld [vmem:[%s5719_s3 + $0x2b0] sm:$0xff]  ;;  %v2171_v34 = vld [vmem:[%s5719_s3 + $0x80] sm:$0xff] }
  0xf0   : > { %v4684_v18 = vpop.f32.mrf.mxu2  ;;  %2471 = vmatpush.msra.mxu2 %v2213_v21  ;;  %2492 = vmatpush.msra.mxu3 %v2243_v22  ;;  %v2173_v28 = vld [vmem:[%s5719_s3 + $0x90] sm:$0xff]  ;;  %v2207_v35 = vld [vmem:[%s5719_s3 + $0x1a0] sm:$0xff] }
  0xf1   : > { %3582 = vmatmul.msk.f32.gmra.mxu0 %vm495_vm0, %v1955_v14  ;;  %v1959_v4 = vmax.f32 %v1944_v0, %v3571_v1  ;;  %v2179_v14 = vld [vmem:[%s5719_s3 + $0xc0] sm:$0xff]  ;;  %v4682_v17 = vpop.f32.mrf.mxu1  ;;  %v2209_v29 = vld [vmem:[%s5719_s3 + $0x1b0] sm:$0xff] }
  0xf2   : > { %2452 = vmatpush.msra.mxu1 %v2179_v14  ;;  %v4697_v24 = vpop.f32.mrf.mxu3  ;;  %2472 = vmatpush.msra.mxu2 %v2211_v26  ;;  %v2237_v36 = vld [vmem:[%s5719_s3 + $0x290] sm:$0xff]  ;;  %v2235_v41 = vld [vmem:[%s5719_s3 + $0x280] sm:$0xff] }
  0xf3   : > { %v4639_v59 = vpop.f32.mrf.mxu0  ;;  %2493 = vmatpush.msra.mxu3 %v2241_v27  ;;  %v2169_v38 = vld [vmem:[%s5719_s3 + $0x70] sm:$0xff]  ;;  %v2167_v43 = vld [vmem:[%s5719_s3 + $0x60] sm:$0xff] }
  0xf4   : > { %2453 = vmatpush.msra.mxu1 %v2177_v20  ;;  %2473 = vmatpush.msra.mxu2 %v2209_v29  ;;  %v2205_v39 = vld [vmem:[%s5719_s3 + $0x190] sm:$0xff]  ;;  %v2203_v44 = vld [vmem:[%s5719_s3 + $0x180] sm:$0xff] }
  0xf5   : > { %2494 = vmatpush.msra.mxu3 %v2239_v30  ;;  %v2233_v46 = vld [vmem:[%s5719_s3 + $0x270] sm:$0xff]  ;;  %v2231_v51 = vld [vmem:[%s5719_s3 + $0x260] sm:$0xff] }
  0xf6   : > { %2454 = vmatpush.msra.mxu1 %v2175_v25  ;;  %2474 = vmatpush.msra.mxu2 %v2207_v35  ;;  %v2165_v49 = vld [vmem:[%s5719_s3 + $0x50] sm:$0xff]  ;;  %v2163_v52 = vld [vmem:[%s5719_s3 + $0x40] sm:$0xff] }
  0xf7   : > { %2495 = vmatpush.msra.mxu3 %v2237_v36  ;;  %v2201_v50 = vld [vmem:[%s5719_s3 + $0x170] sm:$0xff]  ;;  %v2199_v53 = vld [vmem:[%s5719_s3 + $0x160] sm:$0xff] }
  0xf8   : > { %2455 = vmatpush.msra.mxu1 %v2173_v28  ;;  %2475 = vmatpush.msra.mxu2 %v2205_v39  ;;  %v2229_v54 = vld [vmem:[%s5719_s3 + $0x250] sm:$0xff]  ;;  %v2227_v62 = vld [vmem:[%s5719_s3 + $0x240] sm:$0xff] }
  0xf9   : > { %3583 = vmatmul.msk.f32.gmra.mxu0 %vm495_vm0, %v1956_v32  ;;  %v4717_v31 = vpop.f32.mrf.mxu1  ;;  %v4719_v32 = vpop.f32.mrf.mxu2  ;;  %2496 = vmatpush.msra.mxu3 %v2235_v41  ;;  %v2197_v61 = vld [vmem:[%s5719_s3 + $0x150] sm:$0xff]  ;;  %v2159_v7 = vld [vmem:[%s5719_s3 + $0x20] sm:$0xff] }
  0xfa   : > { %2456 = vmatpush.msra.mxu1 %v2171_v34  ;;  %v4732_v37 = vpop.f32.mrf.mxu3  ;;  %2476 = vmatpush.msra.mxu2 %v2203_v44  ;;  %v2195_v9 = vld [vmem:[%s5719_s3 + $0x140] sm:$0xff]  ;;  %v2225_v10 = vld [vmem:[%s5719_s3 + $0x230] sm:$0xff] }
  0xfb   : > { %v4650_v6 = vpop.f32.mrf.mxu0  ;;  %2497 = vmatpush.msra.mxu3 %v2233_v46  ;;  %v2157_v11 = vld [vmem:[%s5719_s3 + $0x10] sm:$0xff]  ;;  %v2223_v13 = vld [vmem:[%s5719_s3 + $0x220] sm:$0xff] }
  0xfc   : > { %2457 = vmatpush.msra.mxu1 %v2169_v38  ;;  %2477 = vmatpush.msra.mxu2 %v2201_v50  ;;  %v2193_v12 = vld [vmem:[%s5719_s3 + $0x130] sm:$0xff]  ;;  %v2155_v15 = vld [vmem:[%s5719_s3] sm:$0xff] }
  0xfd   : > { %2498 = vmatpush.msra.mxu3 %v2231_v51  ;;  %v2191_v16 = vld [vmem:[%s5719_s3 + $0x120] sm:$0xff]  ;;  %v2221_v20 = vld [vmem:[%s5719_s3 + $0x210] sm:$0xff] }
  0xfe   : > { %2458 = vmatpush.msra.mxu1 %v2167_v43  ;;  %2478 = vmatpush.msra.mxu2 %v2199_v53  ;;  %v2281_v21 = vld [vmem:[%s5719_s3 + $0x3f0] sm:$0xff]  ;;  %v2219_v26 = vld [vmem:[%s5719_s3 + $0x200] sm:$0xff] }
  0xff   : > { %2499 = vmatpush.msra.mxu3 %v2229_v54  ;;  %v2189_v25 = vld [vmem:[%s5719_s3 + $0x110] sm:$0xff]  ;;  %v2279_v29 = vld [vmem:[%s5719_s3 + $0x3e0] sm:$0xff] }
 0x100   : > { %2459 = vmatpush.msra.mxu1 %v2165_v49  ;;  %2479 = vmatpush.msra.mxu2 %v2197_v61  ;;  %v2345_v30 = vld [vmem:[%s5719_s3 + $0x5f0] sm:$0xff]  ;;  %v2187_v35 = vld [vmem:[%s5719_s3 + $0x100] sm:$0xff] }
 0x101   : > { %3584 = vmatmul.msk.f32.gmra.mxu0 %vm495_vm0, %v1957_v47  ;;  %v4743_v42 = vpop.f32.mrf.mxu1  ;;  %v4754_v47 = vpop.f32.mrf.mxu2  ;;  %2500 = vmatpush.msra.mxu3 %v2227_v62  ;;  %v2377_v34 = vld [vmem:[%s5719_s3 + $0x6f0] sm:$0xff]  ;;  %v2343_v39 = vld [vmem:[%s5719_s3 + $0x5e0] sm:$0xff] }
 0x102   : > { %v4776_v56 = vpop.f32.mrf.mxu3  ;;  %2460 = vmatpush.msra.mxu1 %v2163_v52  ;;  %2480 = vmatpush.msra.mxu2 %v2195_v9  ;;  %v2277_v36 = vld [vmem:[%s5719_s3 + $0x3d0] sm:$0xff]  ;;  %v2375_v41 = vld [vmem:[%s5719_s3 + $0x6e0] sm:$0xff] }
 0x103   : > { %2501 = vmatpush.msra.mxu3 %v2225_v10  ;;  %2569 = vmatpush.msrb.mxu0 %v2377_v34  ;;  %v2313_v38 = vld [vmem:[%s5719_s3 + $0x4f0] sm:$0xff]  ;;  %v2275_v43 = vld [vmem:[%s5719_s3 + $0x3c0] sm:$0xff] }
 0x104   : > { %2481 = vmatpush.msra.mxu2 %v2193_v12  ;;  %v2311_v44 = vld [vmem:[%s5719_s3 + $0x4e0] sm:$0xff]  ;;  %v2341_v49 = vld [vmem:[%s5719_s3 + $0x5d0] sm:$0xff] }
 0x105   : > { %2502 = vmatpush.msra.mxu3 %v2223_v13  ;;  %2570 = vmatpush.msrb.mxu0 %v2375_v41  ;;  %v2373_v50 = vld [vmem:[%s5719_s3 + $0x6d0] sm:$0xff]  ;;  %v2339_v53 = vld [vmem:[%s5719_s3 + $0x5c0] sm:$0xff] }
 0x106   : > { %2482 = vmatpush.msra.mxu2 %v2191_v16  ;;  %v2273_v51 = vld [vmem:[%s5719_s3 + $0x3b0] sm:$0xff]  ;;  %v2371_v54 = vld [vmem:[%s5719_s3 + $0x6c0] sm:$0xff] }
 0x107   : > { %2503 = vmatpush.msra.mxu3 %v2221_v20  ;;  %v2309_v52 = vld [vmem:[%s5719_s3 + $0x4d0] sm:$0xff]  ;;  %2571 = vmatpush.msrb.mxu0 %v2373_v50  ;;  %v2271_v61 = vld [vmem:[%s5719_s3 + $0x3a0] sm:$0xff] }
 0x108   : > { %2483 = vmatpush.msra.mxu2 %v2189_v25  ;;  %v2307_v62 = vld [vmem:[%s5719_s3 + $0x4c0] sm:$0xff]  ;;  %v2369_v9 = vld [vmem:[%s5719_s3 + $0x6b0] sm:$0xff] }
 0x109   : > { %3585 = vmatmul.msk.f32.gmra.mxu0 %vm495_vm0, %v1958_v60  ;;  %v4686_v19 = vpop.f32.mrf.mxu0  ;;  %v2161_v60 = vld [vmem:[%s5719_s3 + $0x30] sm:$0xff]  ;;  %v4787_v0 = vpop.f32.mrf.mxu1  ;;  %2504 = vmatpush.msra.mxu3 %v2219_v26  ;;  %v2367_v16 = vld [vmem:[%s5719_s3 + $0x6a0] sm:$0xff] }
 0x10a   : > { %2461 = vmatpush.msra.mxu1 %v2161_v60  ;;  %v4789_v1 = vpop.f32.mrf.mxu2  ;;  %v4811_v14 = vpop.f32.mrf.mxu3  ;;  %2484 = vmatpush.msra.mxu2 %v2187_v35  ;;  %v2269_v12 = vld [vmem:[%s5719_s3 + $0x390] sm:$0xff]  ;;  %v2267_v20 = vld [vmem:[%s5719_s3 + $0x380] sm:$0xff] }
 0x10b   : > { %2549 = vmatpush.msrb.mxu3 %v2345_v30  ;;  %2572 = vmatpush.msrb.mxu0 %v2371_v54  ;;  %v2305_v13 = vld [vmem:[%s5719_s3 + $0x4b0] sm:$0xff]  ;;  %v2331_v35 = vld [vmem:[%s5719_s3 + $0x580] sm:$0xff] }
 0x10c   : > { %2462 = vmatpush.msra.mxu1 %v2159_v7  ;;  %2529 = vmatpush.msrb.mxu2 %v2313_v38  ;;  %v2337_v7 = vld [vmem:[%s5719_s3 + $0x5b0] sm:$0xff]  ;;  %v2363_v38 = vld [vmem:[%s5719_s3 + $0x680] sm:$0xff] }
 0x10d   : > { %2550 = vmatpush.msrb.mxu3 %v2343_v39  ;;  %2573 = vmatpush.msrb.mxu0 %v2369_v9  ;;  %v2333_v25 = vld [vmem:[%s5719_s3 + $0x590] sm:$0xff]  ;;  %v2263_v39 = vld [vmem:[%s5719_s3 + $0x360] sm:$0xff]  ;;  %v3697_v9 = vmov 0.0  }
 0x10e   : > { %2463 = vmatpush.msra.mxu1 %v2157_v11  ;;  %2530 = vmatpush.msrb.mxu2 %v2311_v44  ;;  %v2365_v26 = vld [vmem:[%s5719_s3 + $0x690] sm:$0xff]  ;;  %v2299_v41 = vld [vmem:[%s5719_s3 + $0x480] sm:$0xff]  ;;  %2110 = vst [vmem:[#allocation2 + $0x30] sm:$0xff] %v3697_v9 }
 0x10f   : > { %2551 = vmatpush.msrb.mxu3 %v2341_v49  ;;  %2574 = vmatpush.msrb.mxu0 %v2367_v16  ;;  %v2265_v30 = vld [vmem:[%s5719_s3 + $0x370] sm:$0xff]  ;;  %2111 = vst [vmem:[#allocation2] sm:$0xff] %v3697_v9  ;;  %v2355_v16 = vld [vmem:[%s5719_s3 + $0x640] sm:$0xff] }
 0x110   : > { %2464 = vmatpush.msra.mxu1 %v2155_v15  ;;  %2531 = vmatpush.msrb.mxu2 %v2309_v52  ;;  %v2335_v15 = vld [vmem:[%s5719_s3 + $0x5a0] sm:$0xff]  ;;  %v2301_v34 = vld [vmem:[%s5719_s3 + $0x490] sm:$0xff]  ;;  %2112 = vst [vmem:[#allocation2 + $0x18] sm:$0xff] %v3697_v9 }
 0x111   : > { %3586 = vmatmul.msk.f32.gmra.mxu0 %vm495_vm0, %v1959_v4  ;;  %v4825_v22 = vpop.f32.mrf.mxu1  ;;  %2552 = vmatpush.msrb.mxu3 %v2339_v53  ;;  %v2261_v49 = vld [vmem:[%s5719_s3 + $0x350] sm:$0xff]  ;;  %v2359_v52 = vld [vmem:[%s5719_s3 + $0x660] sm:$0xff]  ;;  %2113 = vst [vmem:[#allocation2 + $0x10] sm:$0xff] %v3697_v9 }
 0x112   : > { %2509 = vmatpush.msrb.mxu1 %v2281_v21  ;;  %v4833_v27 = vpop.f32.mrf.mxu2  ;;  %v4867_v46 = vpop.f32.mrf.mxu3  ;;  %2532 = vmatpush.msrb.mxu2 %v2307_v62  ;;  %v2303_v21 = vld [vmem:[%s5719_s3 + $0x4a0] sm:$0xff]  ;;  %v2297_v50 = vld [vmem:[%s5719_s3 + $0x470] sm:$0xff]  ;;  %2114 = vst [vmem:[#allocation2 + $0x20] sm:$0xff] %v3697_v9 }
 0x113   : > { %v4721_v33 = vpop.f32.mrf.mxu0  ;;  %2553 = vmatpush.msrb.mxu3 %v2337_v7  ;;  %2575 = vmatpush.msrb.mxu0 %v2365_v26  ;;  %2115 = vst [vmem:[#allocation2 + $0x28] sm:$0xff] %v3697_v9 }
 0x114   : > { %2510 = vmatpush.msrb.mxu1 %v2279_v29  ;;  %2533 = vmatpush.msrb.mxu2 %v2305_v13  ;;  %v2257_v13 = vld [vmem:[%s5719_s3 + $0x330] sm:$0xff]  ;;  %2116 = vst [vmem:[#allocation2 + $0x40] sm:$0xff] %v3697_v9 }
 0x115   : > { %2554 = vmatpush.msrb.mxu3 %v2335_v15  ;;  %2576 = vmatpush.msrb.mxu0 %v2363_v38  ;;  %2117 = vst [vmem:[#allocation2 + $0x38] sm:$0xff] %v3697_v9 }
 0x116   : > { %2511 = vmatpush.msrb.mxu1 %v2277_v36  ;;  %2534 = vmatpush.msrb.mxu2 %v2303_v21  ;;  %v594_v36 = vadd.f32 %v4635_v57, %v4555_v55  ;;  %v2329_v55 = vld [vmem:[%s5719_s3 + $0x570] sm:$0xff]  ;;  %v2255_v21 = vld [vmem:[%s5719_s3 + $0x320] sm:$0xff]  ;;  %2118 = vst [vmem:[#allocation2 + $0x8] sm:$0xff] %v3697_v9  ;;  %v603_v9 = vadd.f32 %v4717_v31, %v4614_v23  ;;  %v2212_v31 = vld [vmem:[%s5719_s3 + $0x1c8] sm:$0xff] }
 0x117   : > { %2555 = vmatpush.msrb.mxu3 %v2333_v25  ;;  %v2321_v25 = vld [vmem:[%s5719_s3 + $0x530] sm:$0xff] }
 0x118   : > { %2512 = vmatpush.msrb.mxu1 %v2275_v43  ;;  %2535 = vmatpush.msrb.mxu2 %v2301_v34  ;;  %v810_v57 = vadd.f32 %v4637_v58, %v594_v36  ;;  %v2361_v43 = vld [vmem:[%s5719_s3 + $0x670] sm:$0xff]  ;;  %v2327_v58 = vld [vmem:[%s5719_s3 + $0x560] sm:$0xff]  ;;  %v600_v36 = vadd.f32 %v4682_v17, %v4599_v2 }
 0x119   : > { %v4887_v60 = vpop.f32.mrf.mxu1  ;;  %2556 = vmatpush.msrb.mxu3 %v2331_v35  ;;  %2577 = vmatpush.msrb.mxu0 %v2361_v43  ;;  %v2253_v34 = vld [vmem:[%s5719_s3 + $0x310] sm:$0xff]  ;;  %v2287_v2 = vld [vmem:[%s5719_s3 + $0x420] sm:$0xff] }
 0x11a   : > { %2513 = vmatpush.msrb.mxu1 %v2273_v51  ;;  %v4901_v10 = vpop.f32.mrf.mxu2  ;;  %v4929_v29 = vpop.f32.mrf.mxu3  ;;  %2536 = vmatpush.msrb.mxu2 %v2299_v41  ;;  %v597_v51 = vadd.f32 %v4646_v3, %v4584_v40  ;;  %v2295_v40 = vld [vmem:[%s5719_s3 + $0x460] sm:$0xff]  ;;  %v2325_v3 = vld [vmem:[%s5719_s3 + $0x550] sm:$0xff]  ;;  %v1013_v62 = vadd.f32 %v4642_v63, %v810_v57 }
 0x11b   : > { %2557 = vmatpush.msrb.mxu3 %v2329_v55  ;;  %2578 = vmatpush.msrb.mxu0 %v2359_v52  ;;  %v2293_v63 = vld [vmem:[%s5719_s3 + $0x450] sm:$0xff]  ;;  %v2351_v41 = vld [vmem:[%s5719_s3 + $0x620] sm:$0xff]  ;;  %v2218_v52 = vld [vmem:[%s5719_s3 + $0x1f8] sm:$0xff] }
 0x11c   : > { %2514 = vmatpush.msrb.mxu1 %v2271_v61  ;;  %2537 = vmatpush.msrb.mxu2 %v2297_v50  ;;  %v2259_v61 = vld [vmem:[%s5719_s3 + $0x340] sm:$0xff]  ;;  %v811_v7 = vadd.f32 %v4648_v5, %v597_v51  ;;  %v1216_v15 = vadd.f32 %v4686_v19, %v1013_v62  ;;  %v2289_v35 = vld [vmem:[%s5719_s3 + $0x430] sm:$0xff] }
 0x11d   : > { %2558 = vmatpush.msrb.mxu3 %v2327_v58  ;;  %v2323_v5 = vld [vmem:[%s5719_s3 + $0x540] sm:$0xff]  ;;  %v2317_v17 = vld [vmem:[%s5719_s3 + $0x510] sm:$0xff] }
 0x11e   : > { %2515 = vmatpush.msrb.mxu1 %v2269_v12  ;;  %2538 = vmatpush.msrb.mxu2 %v2295_v40  ;;  %v2357_v12 = vld [vmem:[%s5719_s3 + $0x650] sm:$0xff]  ;;  %v2291_v19 = vld [vmem:[%s5719_s3 + $0x440] sm:$0xff]  ;;  %v1014_v26 = vadd.f32 %v4656_v8, %v811_v7  ;;  %v1419_v38 = vadd.f32 %v4887_v60, %v1216_v15  ;;  %v2216_v7 = vld [vmem:[%s5719_s3 + $0x1e8] sm:$0xff] }
 0x11f   : > { %v4756_v48 = vpop.f32.mrf.mxu0  ;;  %2559 = vmatpush.msrb.mxu3 %v2325_v3  ;;  %2579 = vmatpush.msrb.mxu0 %v2357_v12  ;;  %v2319_v8 = vld [vmem:[%s5719_s3 + $0x520] sm:$0xff]  ;;  %v2349_v43 = vld [vmem:[%s5719_s3 + $0x610] sm:$0xff] }
 0x120   : > { %2516 = vmatpush.msrb.mxu1 %v2267_v20  ;;  %2539 = vmatpush.msrb.mxu2 %v2293_v63  ;;  %v2251_v57 = vld [vmem:[%s5719_s3 + $0x300] sm:$0xff]  ;;  %v1622_v60 = vadd.f32 %v4901_v10, %v1419_v38  ;;  %v2285_v58 = vld [vmem:[%s5719_s3 + $0x410] sm:$0xff] }
 0x121   : > { %v4958_v44 = vpop.f32.mrf.mxu1  ;;  %2560 = vmatpush.msrb.mxu3 %v2323_v5  ;;  %2580 = vmatpush.msrb.mxu0 %v2355_v16  ;;  %v2347_v10 = vld [vmem:[%s5719_s3 + $0x600] sm:$0xff] }
 0x122   : > { %2517 = vmatpush.msrb.mxu1 %v2265_v30  ;;  %v4974_v53 = vpop.f32.mrf.mxu2  ;;  %2540 = vmatpush.msrb.mxu2 %v2291_v19  ;;  %v2353_v30 = vld [vmem:[%s5719_s3 + $0x630] sm:$0xff]  ;;  %v1825_v3 = vadd.f32 %v4929_v29, %v1622_v60  ;;  %v2214_v29 = vld [vmem:[%s5719_s3 + $0x1d8] sm:$0xff] }
 0x123   : > { %v5005_v20 = vpop.f32.mrf.mxu3  ;;  %2561 = vmatpush.msrb.mxu3 %v2321_v25  ;;  %2581 = vmatpush.msrb.mxu0 %v2353_v30  ;;  %v2210_v19 = vld [vmem:[%s5719_s3 + $0x1b8] sm:$0xff]  ;;  %v606_v30 = vadd.f32 %v4743_v42, %v4627_v45  ;;  %v2204_v45 = vld [vmem:[%s5719_s3 + $0x188] sm:$0xff] }
 0x124   : > { %2518 = vmatpush.msrb.mxu1 %v2263_v39  ;;  %v1217_v39 = vadd.f32 %v4721_v33, %v1014_v26  ;;  %2541 = vmatpush.msrb.mxu2 %v2289_v35  ;;  %v812_v33 = vadd.f32 %v4684_v18, %v600_v36  ;;  %v2315_v18 = vld [vmem:[%s5719_s3 + $0x500] sm:$0xff]  ;;  %v2208_v26 = vld [vmem:[%s5719_s3 + $0x1a8] sm:$0xff] }
 0x125   : > { %2562 = vmatpush.msrb.mxu3 %v2319_v8  ;;  %2582 = vmatpush.msrb.mxu0 %v2351_v41  ;;  %v814_v38 = vadd.f32 %v4754_v47, %v606_v30 }
 0x126   : > { %2519 = vmatpush.msrb.mxu1 %v2261_v49  ;;  %2542 = vmatpush.msrb.mxu2 %v2287_v2  ;;  %v1420_v51 = vadd.f32 %v4958_v44, %v1217_v39  ;;  %v1015_v40 = vadd.f32 %v4697_v24, %v812_v33  ;;  %v5078_v24 = vld [vmem:[%s5718_s2] ss:$0 sm:$0xff]  ;;  %v2202_v33 = vld [vmem:[%s5719_s3 + $0x178] sm:$0xff] }
 0x127   : > { %2563 = vmatpush.msrb.mxu3 %v2317_v17  ;;  %2583 = vmatpush.msrb.mxu0 %v2349_v43  ;;  %v1017_v47 = vadd.f32 %v4776_v56, %v814_v38 }
 0x128   : > { %2520 = vmatpush.msrb.mxu1 %v2259_v61  ;;  %2543 = vmatpush.msrb.mxu2 %v2285_v58  ;;  %v2283_v61 = vld [vmem:[%s5719_s3 + $0x400] sm:$0xff]  ;;  %v1623_v62 = vadd.f32 %v4974_v53, %v1420_v51  ;;  %v1218_v12 = vadd.f32 %v4756_v48, %v1015_v40  ;;  %v813_v53 = vadd.f32 %v4719_v32, %v603_v9  ;;  %v2198_v40 = vld [vmem:[%s5719_s3 + $0x158] sm:$0xff] }
 0x129   : > { %v1404_v55 = vpop.f32.mrf.mxu1  ;;  %2564 = vmatpush.msrb.mxu3 %v2315_v18  ;;  %2584 = vmatpush.msrb.mxu0 %v2347_v10  ;;  %v2200_v18 = vld [vmem:[%s5719_s3 + $0x168] sm:$0xff]  ;;  %v609_v10 = vadd.f32 %v4787_v0, %v4639_v59 }
 0x12a   : > { %2521 = vmatpush.msrb.mxu1 %v2257_v13  ;;  %v1607_v49 = vpop.f32.mrf.mxu2  ;;  %2544 = vmatpush.msrb.mxu2 %v2283_v61  ;;  %v1826_v63 = vadd.f32 %v5005_v20, %v1623_v62  ;;  %v1421_v48 = vadd.f32 %v1404_v55, %v1218_v12  ;;  %v1016_v32 = vadd.f32 %v4732_v37, %v813_v53  ;;  %v2206_v37 = vld [vmem:[%s5719_s3 + $0x198] sm:$0xff]  ;;  %v2196_v0 = vld [vmem:[%s5719_s3 + $0x148] sm:$0xff] }
 0x12b   : > { %v4791_v4 = vpop.f32.mrf.mxu0  ;;  %2649 = vmatpush.msra.mxu0 %v2218_v52 }
 0x12c   : > { %2522 = vmatpush.msrb.mxu1 %v2255_v21  ;;  %v1624_v20 = vadd.f32 %v1607_v49, %v1421_v48 }
 0x12d   : > { %2650 = vmatpush.msra.mxu0 %v2216_v7 }
 0x12e   : > { %2523 = vmatpush.msrb.mxu1 %v2253_v34  ;;  %v1219_v34 = vadd.f32 %v4791_v4, %v1016_v32 }
 0x12f   : > { %v1810_v44 = vpop.f32.mrf.mxu3  ;;  %2651 = vmatpush.msra.mxu0 %v2214_v29 }
 0x130   : > { %2524 = vmatpush.msrb.mxu1 %v2251_v57  ;;  %v1827_v39 = vadd.f32 %v1810_v44, %v1624_v20 }
 0x131   : > { %2652 = vmatpush.msra.mxu0 %v2212_v31  ;;  %v2192_v31 = vld [vmem:[%s5719_s3 + $0x128] sm:$0xff] }
 0x132   : > { %v1407_v5 = vpop.f32.mrf.mxu1 }
 0x133   : > { %2653 = vmatpush.msra.mxu0 %v2210_v19  ;;  %v1422_v42 = vadd.f32 %v1407_v5, %v1219_v34  ;;  %v2190_v19 = vld [vmem:[%s5719_s3 + $0x118] sm:$0xff]  ;;  %v2405_v34 = vld [vmem:[%s5719_s3 + $0x7d0] sm:$0xff] }
 0x134   : > { %v1610_v21 = vpop.f32.mrf.mxu2 }
 0x135   : > { %2654 = vmatpush.msra.mxu0 %v2208_v26  ;;  %v1625_v60 = vadd.f32 %v1610_v21, %v1422_v42  ;;  %v2407_v21 = vld [vmem:[%s5719_s3 + $0x7e0] sm:$0xff] }
 0x136   : > { %v2439_v42 = vld [vmem:[%s5719_s3 + $0x8e0] sm:$0xff] }
 0x137   : > { %2655 = vmatpush.msra.mxu0 %v2206_v37 }
 0x138   : > { %v4835_v28 = vpop.f32.mrf.mxu0 }
 0x139   : > { %2656 = vmatpush.msra.mxu0 %v2204_v45  ;;  %v1220_v51 = vadd.f32 %v4835_v28, %v1017_v47  ;;  %v2403_v45 = vld [vmem:[%s5719_s3 + $0x7c0] sm:$0xff]  ;;  %v2437_v47 = vld [vmem:[%s5719_s3 + $0x8d0] sm:$0xff] }
 0x13b   : > { %v1813_v36 = vpop.f32.mrf.mxu3  ;;  %2657 = vmatpush.msra.mxu0 %v2202_v33  ;;  %v2401_v33 = vld [vmem:[%s5719_s3 + $0x7b0] sm:$0xff] }
 0x13c   : > { %v1828_v62 = vadd.f32 %v1813_v36, %v1625_v60 }
 0x13d   : > { %2658 = vmatpush.msra.mxu0 %v2200_v18  ;;  %v2399_v18 = vld [vmem:[%s5719_s3 + $0x7a0] sm:$0xff] }
 0x13f   : > { %v1410_v2 = vpop.f32.mrf.mxu1  ;;  %2659 = vmatpush.msra.mxu0 %v2198_v40 }
 0x140   : > { %v1423_v28 = vadd.f32 %v1410_v2, %v1220_v51 }
 0x141   : > { %v1613_v49 = vpop.f32.mrf.mxu2  ;;  %2660 = vmatpush.msra.mxu0 %v2196_v0  ;;  %v2395_v0 = vld [vmem:[%s5719_s3 + $0x780] sm:$0xff] }
 0x142   : > { %v1626_v29 = vadd.f32 %v1613_v49, %v1423_v28  ;;  %v2431_v28 = vld [vmem:[%s5719_s3 + $0x8a0] sm:$0xff] }
 0x144   : > { %v4903_v11 = vpop.f32.mrf.mxu0 }
 0x147   : > { %v1816_v7 = vpop.f32.mrf.mxu3 }
 0x148   : > { %v1829_v32 = vadd.f32 %v1816_v7, %v1626_v29 }
 0x14b   : > { %v1413_v5 = vpop.f32.mrf.mxu1 }
 0x151   : > { %v4976_v54 = vpop.f32.mrf.mxu0 }
 0x15e   : > { %v2007_v50 = vpop.f32.mrf.mxu0 }
 0x15f   : > { %v2028_v13 = vadd.f32 %v2007_v50, %v1825_v3  ;;  %v815_v3 = vadd.f32 %v4789_v1, %v609_v10  ;;  %v2435_v10 = vld [vmem:[%s5719_s3 + $0x8c0] sm:$0xff] }
 0x161   : > { %v2039_v15 = vadd.f32 %v5078_v24, %v2028_v13  ;;  %v2194_v13 = vld [vmem:[%s5719_s3 + $0x138] sm:$0xff]  ;;  %v1018_v1 = vadd.f32 %v4811_v14, %v815_v3  ;;  %v2397_v3 = vld [vmem:[%s5719_s3 + $0x790] sm:$0xff] }
 0x162   : > { %2661 = vmatpush.msra.mxu0 %v2194_v13 }
 0x163   : > { %v2049_v35 = vrot.slane %v2039_v15, 7  ;;  %v1221_v48 = vadd.f32 %v4903_v11, %v1018_v1  ;;  %v2186_v11 = vld [vmem:[%s5719_s3 + $0xf8] sm:$0xff] }
 0x164   : > { %2662 = vmatpush.msra.mxu0 %v2192_v31  ;;  %v2174_v1 = vld [vmem:[%s5719_s3 + $0x98] sm:$0xff] }
 0x165   : > { %v1424_v36 = vadd.f32 %v1413_v5, %v1221_v48  ;;  %v2393_v5 = vld [vmem:[%s5719_s3 + $0x770] sm:$0xff]  ;;  %v2172_v48 = vld [vmem:[%s5719_s3 + $0x88] sm:$0xff] }
 0x166   : > { %v2010_v23 = vpop.f32.mrf.mxu0  ;;  %2663 = vmatpush.msra.mxu0 %v2190_v19 }
 0x167   : > { %v2029_v16 = vadd.f32 %v2010_v23, %v1826_v63  ;;  %v612_v63 = vadd.f32 %v4825_v22, %v4650_v6  ;;  %v2409_v23 = vld [vmem:[%s5719_s3 + $0x7f0] sm:$0xff]  ;;  %v1616_v22 = vpop.f32.mrf.mxu2 }
 0x169   : > { %v2040_v25 = vadd.f32 %v5078_v24, %v2029_v16  ;;  %v816_v6 = vadd.f32 %v4833_v27, %v612_v63 }
 0x16b   : > { %v2050_v8 = vrot.slane %v2040_v25, 7 }
 0x16d   : > { %v2051_v41 = vsel %vm2048_vm1, %v2049_v35, %v2050_v8  ;;  %v2441_v35 = vld [vmem:[%s5719_s3 + $0x8f0] sm:$0xff]  ;;  %v2188_v8 = vld [vmem:[%s5719_s3 + $0x108] sm:$0xff] }
 0x16e   : > { %v2053_v55 = vmax.f32 %v2039_v15, %v2051_v41  ;;  %v2013_v57 = vpop.f32.mrf.mxu0  ;;  %v2184_v41 = vld [vmem:[%s5719_s3 + $0xe8] sm:$0xff]  ;;  %2664 = vmatpush.msra.mxu0 %v2188_v8  ;;  %v2387_v8 = vld [vmem:[%s5719_s3 + $0x740] sm:$0xff] }
 0x16f   : > { %v2030_v4 = vadd.f32 %v2013_v57, %v1827_v39  ;;  %v1819_v57 = vpop.f32.mrf.mxu3 }
 0x170   : > { %v2055_v17 = vrot.slane %v2053_v55, 1  ;;  %v2058_v58 = vrot.slane %v2053_v55, 2 }
 0x171   : > { %v5113_v43 = vadd.f32 %v5078_v24, %v2030_v4  ;;  %v1627_v4 = vadd.f32 %v1616_v22, %v1424_v36  ;;  %v2391_v22 = vld [vmem:[%s5719_s3 + $0x760] sm:$0xff] }
 0x172   : > { %v2057_v50 = vmax.f32 %v2053_v55, %v2055_v17  ;;  %v1019_v55 = vadd.f32 %v4867_v46, %v816_v6  ;;  %v2182_v46 = vld [vmem:[%s5719_s3 + $0xd8] sm:$0xff]  ;;  %v2423_v36 = vld [vmem:[%s5719_s3 + $0x860] sm:$0xff] }
 0x173   : > { %v2063_v52 = vrot.slane %v5113_v43, 7  ;;  %v1830_v51 = vadd.f32 %v1819_v57, %v1627_v4  ;;  %v2385_v57 = vld [vmem:[%s5719_s3 + $0x730] sm:$0xff] }
 0x174   : > { %v2060_v56 = vmax.f32 %v2057_v50, %v2058_v58  ;;  %2119 = vst [vmem:[#allocation2 + $0x30] sm:$0x1] %v2057_v50  ;;  %v2125_v61 = vrot.slane %v2057_v50, 5  ;;  %v1222_v60 = vadd.f32 %v4976_v54, %v1019_v55  ;;  %v2180_v50 = vld [vmem:[%s5719_s3 + $0xc8] sm:$0xff]  ;;  %v1416_v58 = vpop.f32.mrf.mxu1  ;;  %v2166_v55 = vld [vmem:[%s5719_s3 + $0x58] sm:$0xff] }
 0x175   : > { %v2068_v44 = vmax.f32 %v2040_v25, %v2063_v52 }
 0x176   : > { %v2121_v9 = vrot.slane %v2060_v56, 2  ;;  %2127 = vst [vmem:[#allocation2 + $0x18] sm:$0x1] %v2125_v61  ;;  %v2016_v59 = vpop.f32.mrf.mxu0  ;;  %v1619_v56 = vpop.f32.mrf.mxu2 }
 0x177   : > { %v2031_v12 = vadd.f32 %v2016_v59, %v1828_v62  ;;  %v2433_v62 = vld [vmem:[%s5719_s3 + $0x8b0] sm:$0xff]  ;;  %v1822_v29 = vpop.f32.mrf.mxu3 }
 0x178   : > { %2123 = vst [vmem:[#allocation2] sm:$0x1] %v2121_v9  ;;  %v2176_v9 = vld [vmem:[%s5719_s3 + $0xa8] sm:$0xff] }
 0x179   : > { %v5134_v53 = vadd.f32 %v5078_v24, %v2031_v12 }
 0x17b   : > { %v2064_v14 = vrot.slane %v5134_v53, 7  ;;  %v2072_v15 = vrot.slane %v5134_v53, 6  ;;  %v5147_v16 = vld [vmem:[#allocation2 + $0x30] sm:$0xff] }
 0x17c   : > { %2465 = vmatmul.f32.vlgmr.msra.gmra.mxu1 %v5147_v16 }
 0x17d   : > { %v2065_v20 = vsel %vm2048_vm1, %v2063_v52, %v2064_v14  ;;  %v2077_v25 = vmax.f32 %v2068_v44, %v2072_v15  ;;  %2589 = vmatpush.msra.mxu1 %v2409_v23  ;;  %v5161_v27 = vld [vmem:[#allocation2 + $0x18] sm:$0xff]  ;;  %v1425_v44 = vadd.f32 %v1416_v58, %v1222_v60  ;;  %v2429_v23 = vld [vmem:[%s5719_s3 + $0x890] sm:$0xff]  ;;  %v2419_v60 = vld [vmem:[%s5719_s3 + $0x840] sm:$0xff] }
 0x17e   : > { %v2069_v26 = vmax.f32 %v5113_v43, %v2065_v20  ;;  %v2019_v30 = vpop.f32.mrf.mxu0  ;;  %2505 = vmatmul.f32.vlgmr.msra.gmra.mxu3 %v5161_v27  ;;  %v2178_v52 = vld [vmem:[%s5719_s3 + $0xb8] sm:$0xff]  ;;  %v2381_v58 = vld [vmem:[%s5719_s3 + $0x710] sm:$0xff] }
 0x17f   : > { %v2080_v37 = vrot.slane %v2077_v25, 1  ;;  %v2032_v38 = vadd.f32 %v2019_v30, %v1829_v32  ;;  %2590 = vmatpush.msra.mxu1 %v2407_v21  ;;  %2629 = vmatpush.msra.mxu3 %v2186_v11  ;;  %v5174_v39 = vld [vmem:[#allocation2] sm:$0xff]  ;;  %v1628_v12 = vadd.f32 %v1619_v56, %v1425_v44  ;;  %v2170_v32 = vld [vmem:[%s5719_s3 + $0x78] sm:$0xff] }
 0x180   : > { %2485 = vmatmul.f32.vlgmr.msra.gmra.mxu2 %v5174_v39  ;;  %v2427_v21 = vld [vmem:[%s5719_s3 + $0x880] sm:$0xff]  ;;  %v2158_v56 = vld [vmem:[%s5719_s3 + $0x18] sm:$0xff] }
 0x181   : > { %v2082_v2 = vmax.f32 %v2077_v25, %v2080_v37  ;;  %v2043_v17 = vadd.f32 %v5078_v24, %v2032_v38  ;;  %2591 = vmatpush.msra.mxu1 %v2405_v34  ;;  %2609 = vmatpush.msra.mxu2 %v2441_v35  ;;  %v1831_v11 = vadd.f32 %v1822_v29, %v1628_v12  ;;  %v2389_v25 = vld [vmem:[%s5719_s3 + $0x750] sm:$0xff]  ;;  %v2168_v35 = vld [vmem:[%s5719_s3 + $0x68] sm:$0xff]  ;;  %v2246_v12 = vld [vmem:[%s5719_s3 + $0x2d8] sm:$0xff] }
 0x182   : > { %2630 = vmatpush.msra.mxu3 %v2184_v41  ;;  %v2344_v29 = vld [vmem:[%s5719_s3 + $0x5e8] sm:$0xff] }
 0x183   : > { %v2129_v43 = vrot.slane %v2082_v2, 6  ;;  %v2073_v49 = vrot.slane %v2043_v17, 6  ;;  %2592 = vmatpush.msra.mxu1 %v2403_v45  ;;  %2610 = vmatpush.msra.mxu2 %v2439_v42  ;;  %v2421_v45 = vld [vmem:[%s5719_s3 + $0x850] sm:$0xff] }
 0x184   : > { %2631 = vmatpush.msra.mxu3 %v2182_v46 }
 0x185   : > { %2131 = vst [vmem:[#allocation2 + $0x10] sm:$0x1] %v2129_v43  ;;  %v2074_v54 = vsel %vm2071_vm2, %v2072_v15, %v2073_v49  ;;  %2593 = vmatpush.msra.mxu1 %v2401_v33  ;;  %2611 = vmatpush.msra.mxu2 %v2437_v47  ;;  %v2162_v43 = vld [vmem:[%s5719_s3 + $0x38] sm:$0xff] }
 0x186   : > { %v2078_v61 = vmax.f32 %v2069_v26, %v2074_v54  ;;  %2632 = vmatpush.msra.mxu3 %v2180_v50  ;;  %v2022_v40 = vpop.f32.mrf.mxu0  ;;  %v2425_v26 = vld [vmem:[%s5719_s3 + $0x870] sm:$0xff]  ;;  %v2379_v54 = vld [vmem:[%s5719_s3 + $0x700] sm:$0xff] }
 0x187   : > { %v2033_v7 = vadd.f32 %v2022_v40, %v1830_v51  ;;  %2594 = vmatpush.msra.mxu1 %v2399_v18  ;;  %2612 = vmatpush.msra.mxu2 %v2435_v10  ;;  %v2417_v18 = vld [vmem:[%s5719_s3 + $0x830] sm:$0xff]  ;;  %v2160_v10 = vld [vmem:[%s5719_s3 + $0x28] sm:$0xff]  ;;  %v2250_v40 = vld [vmem:[%s5719_s3 + $0x2f8] sm:$0xff] }
 0x188   : > { %v2084_v59 = vrot.slane %v2078_v61, 1  ;;  %2633 = vmatpush.msra.mxu3 %v2178_v52  ;;  %v2087_v63 = vrot.slane %v2078_v61, 2  ;;  %v2415_v52 = vld [vmem:[%s5719_s3 + $0x820] sm:$0xff] }
 0x189   : > { %v5227_v13 = vadd.f32 %v5078_v24, %v2033_v7  ;;  %2595 = vmatpush.msra.mxu1 %v2397_v3  ;;  %2613 = vmatpush.msra.mxu2 %v2433_v62  ;;  %v2413_v3 = vld [vmem:[%s5719_s3 + $0x810] sm:$0xff]  ;;  %v2156_v62 = vld [vmem:[%s5719_s3 + $0x8] sm:$0xff] }
 0x18a   : > { %v2086_v53 = vmax.f32 %v2078_v61, %v2084_v59  ;;  %2634 = vmatpush.msra.mxu3 %v2176_v9  ;;  %v2248_v7 = vld [vmem:[%s5719_s3 + $0x2e8] sm:$0xff]  ;;  %v2314_v9 = vld [vmem:[%s5719_s3 + $0x4f8] sm:$0xff] }
 0x18b   : > { %v2092_v31 = vrot.slane %v5227_v13, 7  ;;  %2596 = vmatpush.msra.mxu1 %v2395_v0  ;;  %2614 = vmatpush.msra.mxu2 %v2431_v28  ;;  %v2346_v59 = vld [vmem:[%s5719_s3 + $0x5f8] sm:$0xff]  ;;  %v2411_v0 = vld [vmem:[%s5719_s3 + $0x800] sm:$0xff] }
 0x18c   : > { %v2089_v14 = vmax.f32 %v2086_v53, %v2087_v63  ;;  %v2134_v15 = vrot.slane %v2086_v53, 3  ;;  %2635 = vmatpush.msra.mxu3 %v2174_v1  ;;  %v5242_v6 = vld [vmem:[#allocation2 + $0x10] sm:$0xff]  ;;  %v2312_v1 = vld [vmem:[%s5719_s3 + $0x4e8] sm:$0xff] }
 0x18d   : > { %v2097_v19 = vmax.f32 %v2043_v17, %v2092_v31  ;;  %2597 = vmatpush.msra.mxu1 %v2393_v5  ;;  %2615 = vmatpush.msra.mxu2 %v2429_v23  ;;  %v2383_v17 = vld [vmem:[%s5719_s3 + $0x720] sm:$0xff]  ;;  %v2244_v53 = vld [vmem:[%s5719_s3 + $0x2c8] sm:$0xff]  ;;  %v2310_v5 = vld [vmem:[%s5719_s3 + $0x4d8] sm:$0xff] }
 0x18e   : > { %2132 = vst [vmem:[#allocation2 + $0x20] sm:$0x1] %v2089_v14  ;;  %2636 = vmatpush.msra.mxu3 %v2172_v48  ;;  %2525 = vmatmul.f32.vlgmr.msrb.gmra.mxu1 %v5242_v6  ;;  %v2025_v20 = vpop.f32.mrf.mxu0  ;;  %v2280_v63 = vld [vmem:[%s5719_s3 + $0x3e8] sm:$0xff]  ;;  %v2242_v23 = vld [vmem:[%s5719_s3 + $0x2b8] sm:$0xff] }
 0x18f   : > { %2136 = vst [vmem:[#allocation2 + $0x28] sm:$0x1] %v2134_v15  ;;  %v2100_v30 = vrot.slane %v2097_v19, 1  ;;  %v2034_v34 = vadd.f32 %v2025_v20, %v1831_v11  ;;  %2598 = vmatpush.msra.mxu1 %v2391_v22  ;;  %2616 = vmatpush.msra.mxu2 %v2427_v21  ;;  %v2103_v38 = vrot.slane %v2097_v19, 2  ;;  %v2308_v48 = vld [vmem:[%s5719_s3 + $0x4c8] sm:$0xff]  ;;  %v2306_v11 = vld [vmem:[%s5719_s3 + $0x4b8] sm:$0xff] }
 0x190   : > { %2637 = vmatpush.msra.mxu3 %v2170_v32  ;;  %v2340_v14 = vld [vmem:[%s5719_s3 + $0x5c8] sm:$0xff]  ;;  %v2238_v32 = vld [vmem:[%s5719_s3 + $0x298] sm:$0xff] }
 0x191   : > { %v2102_v37 = vmax.f32 %v2097_v19, %v2100_v30  ;;  %v2045_v41 = vadd.f32 %v5078_v24, %v2034_v34  ;;  %2599 = vmatpush.msra.mxu1 %v2389_v25  ;;  %2617 = vmatpush.msra.mxu2 %v2425_v26  ;;  %v2164_v24 = vld [vmem:[%s5719_s3 + $0x48] sm:$0xff]  ;;  %v2338_v19 = vld [vmem:[%s5719_s3 + $0x5b8] sm:$0xff] }
 0x192   : > { %2638 = vmatpush.msra.mxu3 %v2168_v35  ;;  %v2240_v22 = vld [vmem:[%s5719_s3 + $0x2a8] sm:$0xff]  ;;  %v2274_v20 = vld [vmem:[%s5719_s3 + $0x3b8] sm:$0xff] }
 0x193   : > { %v2105_v42 = vmax.f32 %v2102_v37, %v2103_v38  ;;  %v2138_v4 = vrot.slane %v2102_v37, 3  ;;  %v2093_v2 = vrot.slane %v2045_v41, 7  ;;  %2600 = vmatpush.msra.mxu1 %v2387_v8  ;;  %2618 = vmatpush.msra.mxu2 %v2423_v36  ;;  %v2276_v21 = vld [vmem:[%s5719_s3 + $0x3c8] sm:$0xff]  ;;  %v2302_v34 = vld [vmem:[%s5719_s3 + $0x498] sm:$0xff] }
 0x194   : > { %2639 = vmatpush.msra.mxu3 %v2166_v55  ;;  %v2304_v25 = vld [vmem:[%s5719_s3 + $0x4a8] sm:$0xff]  ;;  %v2334_v35 = vld [vmem:[%s5719_s3 + $0x598] sm:$0xff] }
 0x195   : > { %2140 = vst [vmem:[#allocation2 + $0x40] sm:$0x1] %v2138_v4  ;;  %v2142_v46 = vrot.slane %v2105_v42, 5  ;;  %v2094_v33 = vsel %vm2048_vm1, %v2092_v31, %v2093_v2  ;;  %2601 = vmatpush.msra.mxu1 %v2385_v57  ;;  %2619 = vmatpush.msra.mxu2 %v2421_v45  ;;  %v5286_v47 = vld [vmem:[#allocation2 + $0x20] sm:$0xff]  ;;  %v2278_v31 = vld [vmem:[%s5719_s3 + $0x3d8] sm:$0xff]  ;;  %v2336_v26 = vld [vmem:[%s5719_s3 + $0x5a8] sm:$0xff] }
 0x196   : > { %v2098_v49 = vmax.f32 %v5227_v13, %v2094_v33  ;;  %2640 = vmatpush.msra.mxu3 %v2164_v24  ;;  %2545 = vmatmul.f32.vlgmr.msrb.gmra.mxu2 %v5286_v47  ;;  %v5296_v50 = vld [vmem:[#allocation2 + $0x28] sm:$0xff]  ;;  %v2282_v13 = vld [vmem:[%s5719_s3 + $0x3f8] sm:$0xff] }
 0x197   : > { %2144 = vst [vmem:[#allocation2 + $0x38] sm:$0x1] %v2142_v46  ;;  %2565 = vmatmul.f32.vlgmr.msrb.gmra.mxu3 %v5296_v50  ;;  %2602 = vmatpush.msra.mxu1 %v2383_v17  ;;  %v2272_v30 = vld [vmem:[%s5719_s3 + $0x3a8] sm:$0xff]  ;;  %v2234_v8 = vld [vmem:[%s5719_s3 + $0x278] sm:$0xff] }
 0x198   : > { %v2107_v51 = vrot.slane %v2098_v49, 1  ;;  %2620 = vmatpush.msra.mxu2 %v2419_v60  ;;  %2641 = vmatpush.msra.mxu3 %v2162_v43  ;;  %v2270_v36 = vld [vmem:[%s5719_s3 + $0x398] sm:$0xff]  ;;  %v2300_v37 = vld [vmem:[%s5719_s3 + $0x488] sm:$0xff] }
 0x199   : > { %2603 = vmatpush.msra.mxu1 %v2381_v58  ;;  %v2332_v38 = vld [vmem:[%s5719_s3 + $0x588] sm:$0xff]  ;;  %v2298_v57 = vld [vmem:[%s5719_s3 + $0x478] sm:$0xff] }
 0x19a   : > { %v2109_v61 = vmax.f32 %v2098_v49, %v2107_v51  ;;  %2621 = vmatpush.msra.mxu2 %v2417_v18  ;;  %2642 = vmatpush.msra.mxu3 %v2160_v10  ;;  %v2232_v41 = vld [vmem:[%s5719_s3 + $0x268] sm:$0xff]  ;;  %v2330_v45 = vld [vmem:[%s5719_s3 + $0x578] sm:$0xff] }
 0x19b   : > { %2604 = vmatpush.msra.mxu1 %v2379_v54  ;;  %v2268_v55 = vld [vmem:[%s5719_s3 + $0x388] sm:$0xff]  ;;  %v2230_v42 = vld [vmem:[%s5719_s3 + $0x258] sm:$0xff] }
 0x19c   : > { %2145 = vst [vmem:[#allocation2 + $0x8] sm:$0x1] %v2109_v61  ;;  %2622 = vmatpush.msra.mxu2 %v2415_v52  ;;  %2643 = vmatpush.msra.mxu3 %v2158_v56  ;;  %v5326_v44 = vld [vmem:[#allocation2 + $0x40] sm:$0xff]  ;;  %v2266_v4 = vld [vmem:[%s5719_s3 + $0x378] sm:$0xff]  ;;  %v2296_v2 = vld [vmem:[%s5719_s3 + $0x468] sm:$0xff] }
 0x19d   : > { %2669 = vmatpush.msrb.mxu1 %v2250_v40  ;;  %2585 = vmatmul.f32.vlgmr.msrb.gmra.mxu0 %v5326_v44  ;;  %v2328_v24 = vld [vmem:[%s5719_s3 + $0x568] sm:$0xff]  ;;  %v2294_v33 = vld [vmem:[%s5719_s3 + $0x458] sm:$0xff] }
 0x19e   : > { %2623 = vmatpush.msra.mxu2 %v2413_v3  ;;  %2644 = vmatpush.msra.mxu3 %v2156_v62  ;;  %v5341_v28 = vld [vmem:[#allocation2 + $0x38] sm:$0xff]  ;;  %v2228_v17 = vld [vmem:[%s5719_s3 + $0x248] sm:$0xff] }
 0x19f   : > { %2670 = vmatpush.msrb.mxu1 %v2248_v7  ;;  %2729 = vmatpush.msrb.mxu0 %v2346_v59  ;;  %v2264_v46 = vld [vmem:[%s5719_s3 + $0x368] sm:$0xff]  ;;  %v2326_v60 = vld [vmem:[%s5719_s3 + $0x558] sm:$0xff] }
 0x1a0   : > { %2709 = vmatpush.msrb.mxu3 %v2314_v9  ;;  %2624 = vmatpush.msra.mxu2 %v2411_v0  ;;  %v2226_v43 = vld [vmem:[%s5719_s3 + $0x238] sm:$0xff]  ;;  %v2292_v58 = vld [vmem:[%s5719_s3 + $0x448] sm:$0xff] }
 0x1a1   : > { %2645 = vmatmul.f32.vlgmr.msra.gmra.mxu3 %v5147_v16  ;;  %2605 = vmatmul.f32.vlgmr.msra.gmra.mxu1 %v5341_v28  ;;  %v2342_v16 = vld [vmem:[%s5719_s3 + $0x5d8] sm:$0xff]  ;;  %v2324_v18 = vld [vmem:[%s5719_s3 + $0x548] sm:$0xff] }
 0x1a2   : > { %2671 = vmatpush.msrb.mxu1 %v2246_v12  ;;  %2689 = vmatpush.msrb.mxu2 %v2282_v13  ;;  %v2262_v49 = vld [vmem:[%s5719_s3 + $0x358] sm:$0xff]  ;;  %v2224_v10 = vld [vmem:[%s5719_s3 + $0x228] sm:$0xff] }
 0x1a3   : > { %2710 = vmatpush.msrb.mxu3 %v2312_v1  ;;  %2730 = vmatpush.msrb.mxu0 %v2344_v29  ;;  %v5381_v15 = vld [vmem:[#allocation2 + $0x8] sm:$0xff]  ;;  %v2290_v54 = vld [vmem:[%s5719_s3 + $0x438] sm:$0xff] }
 0x1a4   : > { %2672 = vmatpush.msrb.mxu1 %v2244_v53  ;;  %2690 = vmatpush.msrb.mxu2 %v2280_v63  ;;  %v2260_v51 = vld [vmem:[%s5719_s3 + $0x348] sm:$0xff]  ;;  %v2322_v52 = vld [vmem:[%s5719_s3 + $0x538] sm:$0xff] }
 0x1a5   : > { %2711 = vmatpush.msrb.mxu3 %v2310_v5  ;;  %2731 = vmatpush.msrb.mxu0 %v2342_v16  ;;  %v2222_v56 = vld [vmem:[%s5719_s3 + $0x218] sm:$0xff]  ;;  %v2288_v40 = vld [vmem:[%s5719_s3 + $0x428] sm:$0xff] }
 0x1a6   : > { %2673 = vmatpush.msrb.mxu1 %v2242_v23  ;;  %2691 = vmatpush.msrb.mxu2 %v2278_v31  ;;  %v2258_v61 = vld [vmem:[%s5719_s3 + $0x338] sm:$0xff]  ;;  %v2320_v3 = vld [vmem:[%s5719_s3 + $0x528] sm:$0xff] }
 0x1a7   : > { %2712 = vmatpush.msrb.mxu3 %v2308_v48  ;;  %2732 = vmatpush.msrb.mxu0 %v2340_v14  ;;  %v2220_v62 = vld [vmem:[%s5719_s3 + $0x208] sm:$0xff]  ;;  %v2286_v9 = vld [vmem:[%s5719_s3 + $0x418] sm:$0xff] }
 0x1a8   : > { %2625 = vmatmul.f32.vlgmr.msra.gmra.mxu2 %v5381_v15  ;;  %2665 = vmatmul.f32.vlgmr.msra.gmra.mxu0 %v5174_v39  ;;  %v2236_v39 = vld [vmem:[%s5719_s3 + $0x288] sm:$0xff]  ;;  %v2318_v59 = vld [vmem:[%s5719_s3 + $0x518] sm:$0xff] }
 0x1a9   : > { %2674 = vmatpush.msrb.mxu1 %v2240_v22  ;;  %2692 = vmatpush.msrb.mxu2 %v2276_v21  ;;  %v2256_v7 = vld [vmem:[%s5719_s3 + $0x328] sm:$0xff]  ;;  %v2254_v0 = vld [vmem:[%s5719_s3 + $0x318] sm:$0xff] }
 0x1aa   : > { %2713 = vmatpush.msrb.mxu3 %v2306_v11  ;;  %2733 = vmatpush.msrb.mxu0 %v2338_v19  ;;  %v2378_v12 = vld [vmem:[%s5719_s3 + $0x6f8] sm:$0xff]  ;;  %v2284_v13 = vld [vmem:[%s5719_s3 + $0x408] sm:$0xff] }
 0x1ab   : > { %2675 = vmatpush.msrb.mxu1 %v2238_v32  ;;  %2693 = vmatpush.msrb.mxu2 %v2274_v20  ;;  %v2316_v1 = vld [vmem:[%s5719_s3 + $0x508] sm:$0xff]  ;;  %v2442_v53 = vld [vmem:[%s5719_s3 + $0x8f8] sm:$0xff] }
 0x1ac   : > { %2714 = vmatpush.msrb.mxu3 %v2304_v25  ;;  %2734 = vmatpush.msrb.mxu0 %v2336_v26  ;;  %v2376_v29 = vld [vmem:[%s5719_s3 + $0x6e8] sm:$0xff]  ;;  %v2410_v5 = vld [vmem:[%s5719_s3 + $0x7f8] sm:$0xff] }
 0x1ad   : > { %2676 = vmatpush.msrb.mxu1 %v2236_v39  ;;  %2694 = vmatpush.msrb.mxu2 %v2272_v30  ;;  %v2252_v63 = vld [vmem:[%s5719_s3 + $0x308] sm:$0xff]  ;;  %v2438_v23 = vld [vmem:[%s5719_s3 + $0x8d8] sm:$0xff] }
 0x1ae   : > { %2715 = vmatpush.msrb.mxu3 %v2302_v34  ;;  %2735 = vmatpush.msrb.mxu0 %v2334_v35  ;;  %v2440_v16 = vld [vmem:[%s5719_s3 + $0x8e8] sm:$0xff]  ;;  %v2370_v31 = vld [vmem:[%s5719_s3 + $0x6b8] sm:$0xff] }
 0x1af   : > { %2677 = vmatpush.msrb.mxu1 %v2234_v8  ;;  %2695 = vmatpush.msrb.mxu2 %v2270_v36  ;;  %v2436_v48 = vld [vmem:[%s5719_s3 + $0x8c8] sm:$0xff]  ;;  %v2434_v21 = vld [vmem:[%s5719_s3 + $0x8b8] sm:$0xff] }
 0x1b0   : > { %2716 = vmatpush.msrb.mxu3 %v2300_v37  ;;  %2736 = vmatpush.msrb.mxu0 %v2332_v38  ;;  %v2368_v14 = vld [vmem:[%s5719_s3 + $0x6a8] sm:$0xff]  ;;  %v2366_v11 = vld [vmem:[%s5719_s3 + $0x698] sm:$0xff] }
 0x1b1   : > { %2678 = vmatpush.msrb.mxu1 %v2232_v41  ;;  %2696 = vmatpush.msrb.mxu2 %v2268_v55  ;;  %v2404_v22 = vld [vmem:[%s5719_s3 + $0x7c8] sm:$0xff]  ;;  %v2402_v19 = vld [vmem:[%s5719_s3 + $0x7b8] sm:$0xff] }
 0x1b2   : > { %2717 = vmatpush.msrb.mxu3 %v2298_v57  ;;  %2737 = vmatpush.msrb.mxu0 %v2330_v45  ;;  %v2432_v32 = vld [vmem:[%s5719_s3 + $0x8a8] sm:$0xff]  ;;  %v2430_v26 = vld [vmem:[%s5719_s3 + $0x898] sm:$0xff] }
 0x1b3   : > { %2679 = vmatpush.msrb.mxu1 %v2230_v42  ;;  %2697 = vmatpush.msrb.mxu2 %v2266_v4  ;;  %v2364_v20 = vld [vmem:[%s5719_s3 + $0x688] sm:$0xff]  ;;  %v2362_v39 = vld [vmem:[%s5719_s3 + $0x678] sm:$0xff] }
 0x1b4   : > { %2718 = vmatpush.msrb.mxu3 %v2296_v2  ;;  %2738 = vmatpush.msrb.mxu0 %v2328_v24  ;;  %v2400_v25 = vld [vmem:[%s5719_s3 + $0x7a8] sm:$0xff]  ;;  %v2398_v30 = vld [vmem:[%s5719_s3 + $0x798] sm:$0xff] }
 0x1b5   : > { %2680 = vmatpush.msrb.mxu1 %v2228_v17  ;;  %2698 = vmatpush.msrb.mxu2 %v2264_v46  ;;  %v2428_v34 = vld [vmem:[%s5719_s3 + $0x888] sm:$0xff]  ;;  %v2426_v36 = vld [vmem:[%s5719_s3 + $0x878] sm:$0xff] }
 0x1b6   : > { %2719 = vmatpush.msrb.mxu3 %v2294_v33  ;;  %2739 = vmatpush.msrb.mxu0 %v2326_v60  ;;  %v2360_v35 = vld [vmem:[%s5719_s3 + $0x668] sm:$0xff]  ;;  %v2358_v37 = vld [vmem:[%s5719_s3 + $0x658] sm:$0xff] }
 0x1b7   : > { %2681 = vmatpush.msrb.mxu1 %v2226_v43  ;;  %2699 = vmatpush.msrb.mxu2 %v2262_v49  ;;  %v2396_v8 = vld [vmem:[%s5719_s3 + $0x788] sm:$0xff]  ;;  %v2394_v38 = vld [vmem:[%s5719_s3 + $0x778] sm:$0xff] }
 0x1b8   : > { %2720 = vmatpush.msrb.mxu3 %v2292_v58  ;;  %2740 = vmatpush.msrb.mxu0 %v2324_v18  ;;  %v2424_v41 = vld [vmem:[%s5719_s3 + $0x868] sm:$0xff]  ;;  %v2422_v45 = vld [vmem:[%s5719_s3 + $0x858] sm:$0xff] }
 0x1b9   : > { %2682 = vmatpush.msrb.mxu1 %v2224_v10  ;;  %2700 = vmatpush.msrb.mxu2 %v2260_v51  ;;  %v2356_v55 = vld [vmem:[%s5719_s3 + $0x648] sm:$0xff]  ;;  %v2354_v42 = vld [vmem:[%s5719_s3 + $0x638] sm:$0xff] }
 0x1ba   : > { %2721 = vmatpush.msrb.mxu3 %v2290_v54  ;;  %2741 = vmatpush.msrb.mxu0 %v2322_v52  ;;  %v2392_v57 = vld [vmem:[%s5719_s3 + $0x768] sm:$0xff]  ;;  %v2390_v4 = vld [vmem:[%s5719_s3 + $0x758] sm:$0xff] }
 0x1bb   : > { %2683 = vmatpush.msrb.mxu1 %v2222_v56  ;;  %2701 = vmatpush.msrb.mxu2 %v2258_v61  ;;  %v2420_v2 = vld [vmem:[%s5719_s3 + $0x848] sm:$0xff]  ;;  %v2418_v46 = vld [vmem:[%s5719_s3 + $0x838] sm:$0xff] }
 0x1bc   : > { %2722 = vmatpush.msrb.mxu3 %v2288_v40  ;;  %2742 = vmatpush.msrb.mxu0 %v2320_v3  ;;  %v2352_v24 = vld [vmem:[%s5719_s3 + $0x628] sm:$0xff]  ;;  %v2350_v33 = vld [vmem:[%s5719_s3 + $0x618] sm:$0xff] }
 0x1bd   : > { %2684 = vmatpush.msrb.mxu1 %v2220_v62  ;;  %2702 = vmatpush.msrb.mxu2 %v2256_v7  ;;  %v2388_v17 = vld [vmem:[%s5719_s3 + $0x748] sm:$0xff]  ;;  %v2386_v60 = vld [vmem:[%s5719_s3 + $0x738] sm:$0xff] }
 0x1be   : > { %2723 = vmatpush.msrb.mxu3 %v2286_v9  ;;  %2743 = vmatpush.msrb.mxu0 %v2318_v59  ;;  %v2416_v43 = vld [vmem:[%s5719_s3 + $0x828] sm:$0xff]  ;;  %v2414_v18 = vld [vmem:[%s5719_s3 + $0x818] sm:$0xff] }
 0x1bf   : > { %2685 = vmatmul.f32.vlgmr.msrb.gmra.mxu1 %v5161_v27  ;;  %2703 = vmatpush.msrb.mxu2 %v2254_v0  ;;  %v2374_v27 = vld [vmem:[%s5719_s3 + $0x6d8] sm:$0xff]  ;;  %v2348_v49 = vld [vmem:[%s5719_s3 + $0x608] sm:$0xff] }
 0x1c0   : > { %2749 = vmatpush.msra.mxu1 %v2378_v12  ;;  %2724 = vmatpush.msrb.mxu3 %v2284_v13  ;;  %v2384_v58 = vld [vmem:[%s5719_s3 + $0x728] sm:$0xff]  ;;  %v2382_v10 = vld [vmem:[%s5719_s3 + $0x718] sm:$0xff] }
 0x1c1   : > { %2744 = vmatpush.msrb.mxu0 %v2316_v1  ;;  %2725 = vmatmul.f32.vlgmr.msrb.gmra.mxu3 %v5286_v47  ;;  %v2372_v47 = vld [vmem:[%s5719_s3 + $0x6c8] sm:$0xff] }
 0x1c2   : > { %2745 = vmatmul.f32.vlgmr.msrb.gmra.mxu0 %v5296_v50  ;;  %2750 = vmatpush.msra.mxu1 %v2376_v29  ;;  %v2408_v50 = vld [vmem:[%s5719_s3 + $0x7e8] sm:$0xff] }
 0x1c3   : > { %2789 = vmatpush.msra.mxu3 %v2442_v53  ;;  %2704 = vmatpush.msrb.mxu2 %v2252_v63  ;;  %v2412_v51 = vld [vmem:[%s5719_s3 + $0x808] sm:$0xff] }
 0x1c4   : > { %2705 = vmatmul.f32.vlgmr.msrb.gmra.mxu2 %v5242_v6  ;;  %2751 = vmatpush.msra.mxu1 %v2374_v27  ;;  %v2406_v6 = vld [vmem:[%s5719_s3 + $0x7d8] sm:$0xff]  ;;  %v2380_v54 = vld [vmem:[%s5719_s3 + $0x708] sm:$0xff] }
 0x1c5   : > { %2769 = vmatpush.msra.mxu2 %v2410_v5  ;;  %2790 = vmatpush.msra.mxu3 %v2440_v16 }
 0x1c6   : > { %2752 = vmatpush.msra.mxu1 %v2372_v47 }
 0x1c7   : > { %2770 = vmatpush.msra.mxu2 %v2408_v50  ;;  %2791 = vmatpush.msra.mxu3 %v2438_v23 }
 0x1c8   : > { %2753 = vmatpush.msra.mxu1 %v2370_v31 }
 0x1c9   : > { %2771 = vmatpush.msra.mxu2 %v2406_v6  ;;  %2792 = vmatpush.msra.mxu3 %v2436_v48 }
 0x1ca   : > { %2754 = vmatpush.msra.mxu1 %v2368_v14 }
 0x1cb   : > { %2772 = vmatpush.msra.mxu2 %v2404_v22  ;;  %2793 = vmatpush.msra.mxu3 %v2434_v21 }
 0x1cc   : > { %2755 = vmatpush.msra.mxu1 %v2366_v11 }
 0x1cd   : > { %2773 = vmatpush.msra.mxu2 %v2402_v19  ;;  %2794 = vmatpush.msra.mxu3 %v2432_v32 }
 0x1ce   : > { %2756 = vmatpush.msra.mxu1 %v2364_v20 }
 0x1cf   : > { %2774 = vmatpush.msra.mxu2 %v2400_v25  ;;  %2795 = vmatpush.msra.mxu3 %v2430_v26  ;;  %v2814_v25 = vlaneseq }
 0x1d0   : > { %2757 = vmatpush.msra.mxu1 %v2362_v39 }
 0x1d1   : > { %2775 = vmatpush.msra.mxu2 %v2398_v30  ;;  %2796 = vmatpush.msra.mxu3 %v2428_v34  ;;  %vm2816_vm3 = vcmp.lt.s32.totalorder %v2814_v25, 256 }
 0x1d2   : > { %2758 = vmatpush.msra.mxu1 %v2360_v35 }
 0x1d3   : > { %2776 = vmatpush.msra.mxu2 %v2396_v8  ;;  %2797 = vmatpush.msra.mxu3 %v2426_v36 }
 0x1d4   : > { %2759 = vmatpush.msra.mxu1 %v2358_v37 }
 0x1d5   : > { %2777 = vmatpush.msra.mxu2 %v2394_v38  ;;  %2798 = vmatpush.msra.mxu3 %v2424_v41 }
 0x1d6   : > { %2760 = vmatpush.msra.mxu1 %v2356_v55 }
 0x1d7   : > { %2778 = vmatpush.msra.mxu2 %v2392_v57  ;;  %2799 = vmatpush.msra.mxu3 %v2422_v45 }
 0x1d8   : > { %2761 = vmatpush.msra.mxu1 %v2354_v42 }
 0x1d9   : > { %2779 = vmatpush.msra.mxu2 %v2390_v4  ;;  %2800 = vmatpush.msra.mxu3 %v2420_v2 }
 0x1da   : > { %2762 = vmatpush.msra.mxu1 %v2352_v24 }
 0x1db   : > { %2780 = vmatpush.msra.mxu2 %v2388_v17  ;;  %2801 = vmatpush.msra.mxu3 %v2418_v46 }
 0x1dc   : > { %2763 = vmatpush.msra.mxu1 %v2350_v33 }
 0x1dd   : > { %2781 = vmatpush.msra.mxu2 %v2386_v60  ;;  %2802 = vmatpush.msra.mxu3 %v2416_v43 }
 0x1de   : > { %2764 = vmatpush.msra.mxu1 %v2348_v49 }
 0x1df   : > { %2782 = vmatpush.msra.mxu2 %v2384_v58  ;;  %2803 = vmatpush.msra.mxu3 %v2414_v18 }
 0x1e0   : > { %2765 = vmatmul.f32.vlgmr.msra.gmra.mxu1 %v5326_v44  ;;  %v2443_v44 = vld [vmem:[%s5720_s4] sm:$0x3] }
 0x1e1   : > { %2783 = vmatpush.msra.mxu2 %v2382_v10  ;;  %2804 = vmatpush.msra.mxu3 %v2412_v51  ;;  %v2445_v59 = vperm.slane %v2443_v44, 0  ;;  %v2446_v0 = vperm.slane %v2443_v44, 1 }
 0x1e2   : > { %2805 = vmatmul.f32.vlgmr.msra.gmra.mxu3 %v5381_v15 }
 0x1e3   : > { %2784 = vmatpush.msra.mxu2 %v2380_v54 }
 0x1e4   : > { %2785 = vmatmul.f32.vlgmr.msra.gmra.mxu2 %v5341_v28 }
 0x1f9   : > { %v2466_v52 = vpop.f32.mrf.mxu1 }
 0x1fa   : > { %v2467_v13 = vadd.f32 %v2466_v52, %v2445_v59 }
 0x201   : > { %v2506_v56 = vpop.f32.mrf.mxu3 }
 0x203   : > { %v2486_v61 = vpop.f32.mrf.mxu2 }
 0x204   : > { %v2487_v29 = vadd.f32 %v2486_v61, %v2467_v13 }
 0x206   : > { %v2507_v5 = vadd.f32 %v2506_v56, %v2487_v29 }
 0x20b   : > { %v2526_v40 = vpop.f32.mrf.mxu1 }
 0x20c   : > { %v2527_v47 = vadd.f32 %v2526_v40, %v2507_v5 }
 0x219   : > { %v2546_v62 = vpop.f32.mrf.mxu2 }
 0x21a   : > { %v2566_v3 = vpop.f32.mrf.mxu3  ;;  %v2586_v7 = vpop.f32.mrf.mxu0  ;;  %v2547_v23 = vadd.f32 %v2546_v62, %v2527_v47 }
 0x21c   : > { %v2567_v48 = vadd.f32 %v2566_v3, %v2547_v23 }
 0x21e   : > { %v2606_v9 = vpop.f32.mrf.mxu1  ;;  %v2587_v11 = vadd.f32 %v2586_v7, %v2567_v48 }
 0x220   : > { %v2607_v39 = vadd.f32 %v2606_v9, %v2587_v11 }
 0x224   : > { %v2646_v12 = vpop.f32.mrf.mxu3 }
 0x225   : > { %v2647_v1 = vadd.f32 %v2646_v12, %v2446_v0  ;;  %v2666_v28 = vpop.f32.mrf.mxu0 }
 0x227   : > { %v2667_v63 = vadd.f32 %v2666_v28, %v2647_v1 }
 0x22b   : > { %v2626_v15 = vpop.f32.mrf.mxu2 }
 0x22c   : > { %v2627_v34 = vadd.f32 %v2626_v15, %v2607_v39 }
 0x23c   : > { %v2686_v53 = vpop.f32.mrf.mxu1 }
 0x23d   : > { %v2687_v16 = vadd.f32 %v2686_v53, %v2667_v63 }
 0x23f   : > { %v2746_v14 = vpop.f32.mrf.mxu0 }
 0x244   : > { %v2726_v31 = vpop.f32.mrf.mxu3 }
 0x247   : > { %v2706_v27 = vpop.f32.mrf.mxu2 }
 0x248   : > { %v2707_v50 = vadd.f32 %v2706_v27, %v2687_v16 }
 0x24a   : > { %v2727_v6 = vadd.f32 %v2726_v31, %v2707_v50 }
 0x24c   : > { %v2747_v21 = vadd.f32 %v2746_v14, %v2727_v6 }
 0x25d   : > { %v2766_v22 = vpop.f32.mrf.mxu1 }
 0x25e   : > { %v2767_v19 = vadd.f32 %v2766_v22, %v2747_v21 }
 0x265   : > { %v2806_v26 = vpop.f32.mrf.mxu3 }
 0x267   : > { %v2786_v32 = vpop.f32.mrf.mxu2 }
 0x268   : > { %v2787_v20 = vadd.f32 %v2786_v32, %v2767_v19 }
 0x26a   : > { %v2807_v30 = vadd.f32 %v2806_v26, %v2787_v20 }
 0x26c   : > { %v2811_v35 = vrot.slane %v2807_v30, 7 }
 0x26e   : > { %v2812_v8 = vsel %vm2048_vm1, %v2627_v34, %v2811_v35 }
 0x26f   : > { %2818 = vst.msk [vmem:[%s217_s10] sm:$0x3] %vm2816_vm3, %v2812_v8 }
 0x270   : > { %3660 = shalt.err (!%p3657_p3)
}
 0x271   : > { %3592 = dma.vmem_to_hbm [thread:$0]  (%p3766_p5), %s2833_s11, 32, %s2835_s12, %s2820_s22  }
 0x272 PF: > { %p3598_p4 = scmp.ge.s32.totalorder %s3695_s21, 2  ;;  %s2846_s15 = sand.u32 1, %s3683_s18  }
 0x273   : > { %s2847_s6 = scalar_lea.sflag [#allocation4], %s2846_s15 }
 0x274   : > { %p3595_p7 = pnand %p3598_p4, %p3770_p6 }
 0x276   : > { %p3596_p8 = pneg %p3595_p7 }
 0x278   : > { %3678 = dma.done.wait (%p3596_p8), %s2847_s6, 32  }
 0x279   : > { %3680 = vsyncadd (%p3596_p8), %s2847_s6, 4294967264  ;;  %p15_p9 = scmp.ge.s32.totalorder %s3753_s24, 4   ;;  %s5724_s18 = smov %s3687_s19 }
 0x27a   : > { %s5725_s19 = smov %s3691_s20  ;;  %s5726_s20 = smov %s3764_s27 }
 0x27b   : > { %s5727_s21 = smov %s3753_s24  ;;  %17 = sbr.rel (!%p15_p9) target bundleno = 3 (0x3), region = 163 }
 0x280   :  { %2853 = vsyncpa [#allocation4], 1 }
 0x281   :  { %2855 = vsyncpa [#allocation4 + $0x1], 1 }

</bundles_post_ra>
